<compile_context>
chip_gen: v7x
topology: tpu7x:2x2x1
jax: 0.10.0
libtpu: 0.0.40
codegen_flags: <defaults>
</compile_context>

<pallas_src>
import functools
import math

import jax
import jax.numpy as jnp
from jax.experimental import pallas as pl
from jax.experimental.pallas import tpu as pltpu

# ----------------------------- hyperparameters ------------------------------
VOCAB = 100
DIM_TEXT = 32
DIM_SPK = 32
DIM_OUT = 48
CONV_POS_KERNEL = 15
CONV_POS_DEPTH = 3
CONV_POS_GROUPS = 4
DEPTH = 2
DIM = 64
DIM_HEAD = 16
HEADS = 4
FF_MULT = 4.0
LN_EPS = 1e-6          # transformer LayerNorm eps (layer_norm_eps arg)
CONV_LN_EPS = 1e-5     # nn.LayerNorm default inside the conv-pos blocks

INNER = HEADS * DIM_HEAD                              # 64
HIDDEN = int(DIM * FF_MULT)                           # 256
CONV_K = max(3, CONV_POS_KERNEL // CONV_POS_DEPTH)    # 5 (odd -> SamePad is a no-op)
assert CONV_K % 2 == 1  # TODO(synk): even-kernel SamePad trim path not implemented
CONV_PAD = CONV_K // 2

B, T = 2, 16  # small test shapes


def _round_up(x, m):
    return (x + m - 1) // m * m


SLAB_W = _round_up(DIM + DIM_OUT, 128)  # lane-dense packed output width (= 128)


# --------------------------------- helpers ----------------------------------
def _gelu(x):
    # tanh-approx GELU (torch nn.GELU() default is exact erf; max diff ~3e-3)
    # TODO(synk): exact erf GELU not used (no guaranteed erf lowering in Mosaic).
    c = math.sqrt(2.0 / math.pi)
    return 0.5 * x * (1.0 + jnp.tanh(c * (x + 0.044715 * x * x * x)))


def _layer_norm(x, eps, g=None, b=None):
    mu = jnp.mean(x, axis=-1, keepdims=True)
    xc = x - mu
    var = jnp.mean(xc * xc, axis=-1, keepdims=True)
    y = xc * jax.lax.rsqrt(var + eps)
    if g is not None:
        y = y * g + b
    return y


def _alibi_slopes(heads):
    def pow2(n):
        start = 2.0 ** (-(2.0 ** -(math.log2(n) - 3)))
        return [start * start ** i for i in range(n)]
    if math.log2(heads).is_integer():
        return pow2(heads)
    closest = 2 ** math.floor(math.log2(heads))
    return pow2(closest) + pow2(2 * closest)[0::2][: heads - closest]


# ------------------------------ fused Pallas kernel --------------------------
def _encoder_kernel(
    # ---- inputs ----
    emb_ref, in_w_ref, in_b_ref,
    conv_w_ref, conv_b_ref,
    ln1_g_ref, ln1_b_ref, wqkv_ref, bqkv_ref, wo_ref, bo_ref,
    ln2_g_ref, ln2_b_ref, ffw1_ref, ffb1_ref, ffw2_ref, ffb2_ref,
    lnf_g_ref, lnf_b_ref, out_w_ref, out_b_ref,
    # ---- output ----
    slab_ref,
    # ---- scratch ----
    xpad_ref, qkv_ref, attn_o_ref, cres_ref,
    *, bsz, seq,
):
    f32 = jnp.float32
    scale = DIM_HEAD ** -0.5
    slopes = _alibi_slopes(HEADS)  # static python floats

    # ---- input projection: (B*T, dim_text) @ (dim_text, dim) ----
    x = jnp.dot(emb_ref[...], in_w_ref[...], preferred_element_type=f32) + in_b_ref[...]

    # ---- conv positional encoder: 3 x (grouped conv -> LN(no affine) -> GELU) ----
    # grouped conv is expressed as dense block-diagonal (k, C, C) weights; zero
    # padding is realised by writing into a zero-initialised VMEM scratch.
    h_b = [x[b * seq:(b + 1) * seq, :] for b in range(bsz)]
    for d in range(CONV_POS_DEPTH):
        bias_d = conv_b_ref[pl.ds(d, 1), :]                       # (1, DIM)
        nxt = []
        for b in range(bsz):
            xpad_ref[...] = jnp.zeros(xpad_ref.shape, f32)
            xpad_ref[pl.ds(CONV_PAD, seq), :] = h_b[b]
            acc = jnp.zeros((seq, DIM), f32)
            for tau in range(CONV_K):                             # unrolled shifted matmuls
                acc = acc + jnp.dot(xpad_ref[pl.ds(tau, seq), :],
                                    conv_w_ref[d * CONV_K + tau],
                                    preferred_element_type=f32)
            y = _layer_norm(acc + bias_d, CONV_LN_EPS)
            nxt.append(_gelu(y))
        h_b = nxt
    for b in range(bsz):
        cres_ref[pl.ds(b * seq, seq), :] = h_b[b]
    x = x + cres_ref[...]                                         # x = x + conv_pos(x)

    # ---- alibi bias pattern (shared across heads/layers) ----
    ri = jax.lax.broadcasted_iota(jnp.int32, (seq, seq), 0)
    ci = jax.lax.broadcasted_iota(jnp.int32, (seq, seq), 1)
    rel = -jnp.abs((ri - ci).astype(f32))                         # (T, T)

    # ---- pre-norm transformer layers (static unrolled loop) ----
    for l in range(DEPTH):
        # attention block
        xn = _layer_norm(x, LN_EPS,
                         ln1_g_ref[pl.ds(l, 1), :], ln1_b_ref[pl.ds(l, 1), :])
        qkv_ref[...] = (jnp.dot(xn, wqkv_ref[l], preferred_element_type=f32)
                        + bqkv_ref[pl.ds(l, 1), :])               # (B*T, 3*inner) fused QKV
        for b in range(bsz):
            r0 = b * seq
            for hh in range(HEADS):
                c0 = hh * DIM_HEAD
                q = qkv_ref[pl.ds(r0, seq), pl.ds(c0, DIM_HEAD)]
                k = qkv_ref[pl.ds(r0, seq), pl.ds(INNER + c0, DIM_HEAD)]
                v = qkv_ref[pl.ds(r0, seq), pl.ds(2 * INNER + c0, DIM_HEAD)]
                s = jnp.dot(q, k.T, preferred_element_type=f32) * scale + rel * slopes[hh]
                m = jnp.max(s, axis=-1, keepdims=True)
                p = jnp.exp(s - m)
                p = p * pl.reciprocal(jnp.sum(p, axis=-1, keepdims=True), approx=True)
                attn_o_ref[pl.ds(r0, seq), pl.ds(c0, DIM_HEAD)] = jnp.dot(
                    p, v, preferred_element_type=f32)
        x = x + (jnp.dot(attn_o_ref[...], wo_ref[l], preferred_element_type=f32)
                 + bo_ref[pl.ds(l, 1), :])

        # feed-forward block
        xn = _layer_norm(x, LN_EPS,
                         ln2_g_ref[pl.ds(l, 1), :], ln2_b_ref[pl.ds(l, 1), :])
        hf = _gelu(jnp.dot(xn, ffw1_ref[l], preferred_element_type=f32)
                   + ffb1_ref[pl.ds(l, 1), :])
        x = x + (jnp.dot(hf, ffw2_ref[l], preferred_element_type=f32)
                 + ffb2_ref[pl.ds(l, 1), :])

    # ---- final norm + output projection, packed into one lane-dense slab ----
    xf = _layer_norm(x, LN_EPS, lnf_g_ref[...], lnf_b_ref[...])
    out = jnp.dot(xf, out_w_ref[...], preferred_element_type=f32) + out_b_ref[...]
    slab_ref[...] = jnp.zeros(slab_ref.shape, f32)
    slab_ref[:, pl.ds(0, DIM)] = xf
    slab_ref[:, pl.ds(DIM, DIM_OUT)] = out


# ------------------------------- parameters ----------------------------------
def init_params(key):
    keys = iter(jax.random.split(key, 64))

    def nrm(shape, scale=0.02):
        return jax.random.normal(next(keys), shape, jnp.float32) * scale

    # dense block-diagonal mask realising the grouped conv
    group_size = DIM // CONV_POS_GROUPS
    gids = jnp.arange(DIM) // group_size
    gmask = (gids[:, None] == gids[None, :]).astype(jnp.float32)       # (C_in, C_out)

    return {
        "text_emb": nrm((VOCAB, DIM_TEXT), 1.0),
        "in_w": nrm((DIM_TEXT, DIM)), "in_b": nrm((1, DIM)),
        "conv_w": nrm((CONV_POS_DEPTH * CONV_K, DIM, DIM)) * gmask[None],
        "conv_b": nrm((CONV_POS_DEPTH, DIM)),
        "ln1_g": jnp.ones((DEPTH, DIM), jnp.float32),
        "ln1_b": jnp.zeros((DEPTH, DIM), jnp.float32),
        "wqkv": nrm((DEPTH, DIM, 3 * INNER)), "bqkv": nrm((DEPTH, 3 * INNER)),
        "wo": nrm((DEPTH, INNER, DIM)), "bo": nrm((DEPTH, DIM)),
        "ln2_g": jnp.ones((DEPTH, DIM), jnp.float32),
        "ln2_b": jnp.zeros((DEPTH, DIM), jnp.float32),
        "ff_w1": nrm((DEPTH, DIM, HIDDEN)), "ff_b1": nrm((DEPTH, HIDDEN)),
        "ff_w2": nrm((DEPTH, HIDDEN, DIM)), "ff_b2": nrm((DEPTH, DIM)),
        "lnf_g": jnp.ones((1, DIM), jnp.float32),
        "lnf_b": jnp.zeros((1, DIM), jnp.float32),
        "out_w": nrm((DIM, DIM_OUT)), "out_b": nrm((1, DIM_OUT)),
    }


# --------------------------------- forward -----------------------------------
def text_encoder_forward(params, text_tokens, spk_emb, padding_mask=None, lang_emb=None):
    # TODO(synk): padding_mask / masked-attention path not implemented (None in this test);
    #             with norm_type='layer' & scale_type='none' spk_emb / lang_emb are unused,
    #             matching the reference forward.
    del spk_emb, lang_emb, padding_mask

    emb = jnp.take(params["text_emb"], text_tokens, axis=0)       # (B, T, dim_text) gather (XLA glue)
    bsz, seq, _ = emb.shape
    bt = bsz * seq
    pad_rows = _round_up(seq + 2 * CONV_PAD, 8)

    slab = pl.pallas_call(
        functools.partial(_encoder_kernel, bsz=bsz, seq=seq),
        out_shape=jax.ShapeDtypeStruct((bt, SLAB_W), jnp.float32),
        scratch_shapes=[
            pltpu.VMEM((pad_rows, DIM), jnp.float32),    # zero-padded conv input window
            pltpu.VMEM((bt, 3 * INNER), jnp.float32),    # fused QKV
            pltpu.VMEM((bt, INNER), jnp.float32),        # attention output (heads merged)
            pltpu.VMEM((bt, DIM), jnp.float32),          # conv-pos residual
        ],
    )(emb.reshape(bt, DIM_TEXT),
      params["in_w"], params["in_b"],
      params["conv_w"], params["conv_b"],
      params["ln1_g"], params["ln1_b"], params["wqkv"], params["bqkv"],
      params["wo"], params["bo"],
      params["ln2_g"], params["ln2_b"],
      params["ff_w1"], params["ff_b1"], params["ff_w2"], params["ff_b2"],
      params["lnf_g"], params["lnf_b"], params["out_w"], params["out_b"])

    hidden = slab[:, :DIM].reshape(bsz, seq, DIM)
    out = slab[:, DIM:DIM + DIM_OUT].reshape(bsz, seq, DIM_OUT)
    return out, hidden


# ----------------------- plain-JAX reference (self-check) --------------------
def _forward_ref(params, text_tokens):
    hi = jax.lax.Precision.HIGHEST

    def mm(a, b):
        return jnp.dot(a, b, precision=hi)

    emb = jnp.take(params["text_emb"], text_tokens, axis=0)
    bsz, seq, _ = emb.shape
    bt = bsz * seq
    x = mm(emb.reshape(bt, DIM_TEXT), params["in_w"]) + params["in_b"]

    h = x.reshape(bsz, seq, DIM)
    for d in range(CONV_POS_DEPTH):
        hp = jnp.pad(h, ((0, 0), (CONV_PAD, CONV_PAD), (0, 0)))
        acc = jnp.zeros((bsz, seq, DIM), jnp.float32)
        for tau in range(CONV_K):
            acc = acc + jnp.einsum("btc,cd->btd", hp[:, tau:tau + seq, :],
                                   params["conv_w"][d * CONV_K + tau], precision=hi)
        h = _gelu(_layer_norm(acc + params["conv_b"][d], CONV_LN_EPS))
    x = x + h.reshape(bt, DIM)

    idx = jnp.arange(seq)
    rel = -jnp.abs(idx[None, :] - idx[:, None]).astype(jnp.float32)
    slopes = jnp.asarray(_alibi_slopes(HEADS), jnp.float32)
    scale = DIM_HEAD ** -0.5
    for l in range(DEPTH):
        xn = _layer_norm(x, LN_EPS, params["ln1_g"][l], params["ln1_b"][l])
        qkv = (mm(xn, params["wqkv"][l]) + params["bqkv"][l]).reshape(bsz, seq, 3, HEADS, DIM_HEAD)
        q, k, v = (qkv[:, :, i].transpose(0, 2, 1, 3) for i in range(3))
        s = jnp.einsum("bhqd,bhkd->bhqk", q, k, precision=hi) * scale \
            + rel[None, None] * slopes[None, :, None, None]
        p = jax.nn.softmax(s, axis=-1)
        o = jnp.einsum("bhqk,bhkd->bhqd", p, v, precision=hi)
        o = o.transpose(0, 2, 1, 3).reshape(bt, INNER)
        x = x + mm(o, params["wo"][l]) + params["bo"][l]
        xn = _layer_norm(x, LN_EPS, params["ln2_g"][l], params["ln2_b"][l])
        x = x + mm(_gelu(mm(xn, params["ff_w1"][l]) + params["ff_b1"][l]),
                   params["ff_w2"][l]) + params["ff_b2"][l]
    xf = _layer_norm(x, LN_EPS, params["lnf_g"], params["lnf_b"])
    out = mm(xf, params["out_w"]) + params["out_b"]
    return out.reshape(bsz, seq, DIM_OUT), xf.reshape(bsz, seq, DIM)


# ----------------------------------- main -------------------------------------
if __name__ == "__main__":
    key = jax.random.PRNGKey(0)
    pkey, tkey, skey = jax.random.split(key, 3)
    params = init_params(pkey)

    text_tokens = jax.random.randint(tkey, (B, T), 0, VOCAB)
    spk_emb = jax.random.normal(skey, (B, DIM_SPK), jnp.float32)

    fwd = jax.jit(text_encoder_forward)
    out, hidden = fwd(params, text_tokens, spk_emb)
    jax.block_until_ready((out, hidden))

    assert out.shape == (B, T, DIM_OUT), out.shape
    assert hidden.shape == (B, T, DIM), hidden.shape
    assert bool(jnp.isfinite(out).all()) and bool(jnp.isfinite(hidden).all())

    # self-check against a plain-JAX reference of the same math
    out_ref, hid_ref = _forward_ref(params, text_tokens)
    err = max(float(jnp.max(jnp.abs(out - out_ref))),
              float(jnp.max(jnp.abs(hidden - hid_ref))))
    assert err < 5e-2, f"kernel/reference mismatch: max abs err = {err}"

    print("KERNEL_OK")
</pallas_src>

<mosaic_0001>
module attributes {stable_mosaic.version = 11 : i64} {
  func.func @_encoder_kernel(%arg0: memref<32x32xf32, #tpu.memory_space<vmem>>, %arg1: memref<32x64xf32, #tpu.memory_space<vmem>>, %arg2: memref<1x64xf32, #tpu.memory_space<vmem>>, %arg3: memref<15x64x64xf32, #tpu.memory_space<vmem>>, %arg4: memref<3x64xf32, #tpu.memory_space<vmem>>, %arg5: memref<2x64xf32, #tpu.memory_space<vmem>>, %arg6: memref<2x64xf32, #tpu.memory_space<vmem>>, %arg7: memref<2x64x192xf32, #tpu.memory_space<vmem>>, %arg8: memref<2x192xf32, #tpu.memory_space<vmem>>, %arg9: memref<2x64x64xf32, #tpu.memory_space<vmem>>, %arg10: memref<2x64xf32, #tpu.memory_space<vmem>>, %arg11: memref<2x64xf32, #tpu.memory_space<vmem>>, %arg12: memref<2x64xf32, #tpu.memory_space<vmem>>, %arg13: memref<2x64x256xf32, #tpu.memory_space<vmem>>, %arg14: memref<2x256xf32, #tpu.memory_space<vmem>>, %arg15: memref<2x256x64xf32, #tpu.memory_space<vmem>>, %arg16: memref<2x64xf32, #tpu.memory_space<vmem>>, %arg17: memref<1x64xf32, #tpu.memory_space<vmem>>, %arg18: memref<1x64xf32, #tpu.memory_space<vmem>>, %arg19: memref<64x48xf32, #tpu.memory_space<vmem>>, %arg20: memref<1x48xf32, #tpu.memory_space<vmem>>, %arg21: memref<32x128xf32, #tpu.memory_space<vmem>>, %arg22: memref<24x64xf32, #tpu.memory_space<vmem>>, %arg23: memref<32x192xf32, #tpu.memory_space<vmem>>, %arg24: memref<32x64xf32, #tpu.memory_space<vmem>>, %arg25: memref<32x64xf32, #tpu.memory_space<vmem>>) attributes {dimension_semantics = [], scalar_prefetch = 0 : i64, scratch_operands = 4 : i64, tpu.core_type = #tpu.core_type<tc>} {
    %c0 = arith.constant 0 : index
    %c0_0 = arith.constant 0 : index
    %0 = vector.load %arg0[%c0, %c0_0] : memref<32x32xf32, #tpu.memory_space<vmem>>, vector<32x32xf32>
    %c0_1 = arith.constant 0 : index
    %c0_2 = arith.constant 0 : index
    %1 = vector.load %arg1[%c0_1, %c0_2] : memref<32x64xf32, #tpu.memory_space<vmem>>, vector<32x64xf32>
    %cst = arith.constant dense<0.000000e+00> : vector<32x64xf32>
    %2 = tpu.matmul %0, %1, %cst {dimension_numbers = #tpu.dot_dimension_numbers<[1], [0], [0], [1], [0, 0, 1, 1], [], []>} : vector<32x32xf32>, vector<32x64xf32>, vector<32x64xf32> -> vector<32x64xf32>
    %c0_3 = arith.constant 0 : index
    %c0_4 = arith.constant 0 : index
    %3 = vector.load %arg2[%c0_3, %c0_4] : memref<1x64xf32, #tpu.memory_space<vmem>>, vector<1x64xf32>
    %4 = vector.broadcast %3 : vector<1x64xf32> to vector<32x64xf32>
    %5 = arith.addf %2, %4 : vector<32x64xf32>
    %6 = vector.extract_strided_slice %5 {offsets = [0, 0], sizes = [16, 64], strides = [1, 1]} : vector<32x64xf32> to vector<16x64xf32>
    %7 = vector.extract_strided_slice %5 {offsets = [16, 0], sizes = [16, 64], strides = [1, 1]} : vector<32x64xf32> to vector<16x64xf32>
    %c0_5 = arith.constant 0 : index
    %c0_6 = arith.constant 0 : index
    %8 = vector.load %arg4[%c0_5, %c0_6] : memref<3x64xf32, #tpu.memory_space<vmem>>, vector<1x64xf32>
    %cst_7 = arith.constant 0.000000e+00 : f32
    %9 = vector.broadcast %cst_7 : f32 to vector<24x64xf32>
    %c0_8 = arith.constant 0 : index
    %c0_9 = arith.constant 0 : index
    %10 = vector.load %arg22[%c0_8, %c0_9] : memref<24x64xf32, #tpu.memory_space<vmem>>, vector<24x64xf32>
    tpu.vector_store %arg22[%c0_8, %c0_9], %9 {strides = array<i32>} : memref<24x64xf32, #tpu.memory_space<vmem>>, vector<24x64xf32>,
    %c2 = arith.constant 2 : index
    %c0_10 = arith.constant 0 : index
    %11 = vector.load %arg22[%c2, %c0_10] : memref<24x64xf32, #tpu.memory_space<vmem>>, vector<16x64xf32>
    tpu.vector_store %arg22[%c2, %c0_10], %6 {strides = array<i32>} : memref<24x64xf32, #tpu.memory_space<vmem>>, vector<16x64xf32>,
    %cst_11 = arith.constant 0.000000e+00 : f32
    %12 = vector.broadcast %cst_11 : f32 to vector<16x64xf32>
    %c0_12 = arith.constant 0 : index
    %c0_13 = arith.constant 0 : index
    %13 = vector.load %arg22[%c0_12, %c0_13] : memref<24x64xf32, #tpu.memory_space<vmem>>, vector<16x64xf32>
    %c0_14 = arith.constant 0 : index
    %c0_15 = arith.constant 0 : index
    %c0_16 = arith.constant 0 : index
    %14 = vector.load %arg3[%c0_14, %c0_15, %c0_16] : memref<15x64x64xf32, #tpu.memory_space<vmem>>, vector<1x64x64xf32>
    %15 = vector.shape_cast %14 : vector<1x64x64xf32> to vector<64x64xf32>
    %cst_17 = arith.constant dense<0.000000e+00> : vector<16x64xf32>
    %16 = tpu.matmul %13, %15, %cst_17 {dimension_numbers = #tpu.dot_dimension_numbers<[1], [0], [0], [1], [0, 0, 1, 1], [], []>} : vector<16x64xf32>, vector<64x64xf32>, vector<16x64xf32> -> vector<16x64xf32>
    %17 = arith.addf %12, %16 : vector<16x64xf32>
    %c1 = arith.constant 1 : index
    %c0_18 = arith.constant 0 : index
    %18 = vector.load %arg22[%c1, %c0_18] : memref<24x64xf32, #tpu.memory_space<vmem>>, vector<16x64xf32>
    %c1_19 = arith.constant 1 : index
    %c0_20 = arith.constant 0 : index
    %c0_21 = arith.constant 0 : index
    %19 = vector.load %arg3[%c1_19, %c0_20, %c0_21] : memref<15x64x64xf32, #tpu.memory_space<vmem>>, vector<1x64x64xf32>
    %20 = vector.shape_cast %19 : vector<1x64x64xf32> to vector<64x64xf32>
    %cst_22 = arith.constant dense<0.000000e+00> : vector<16x64xf32>
    %21 = tpu.matmul %18, %20, %cst_22 {dimension_numbers = #tpu.dot_dimension_numbers<[1], [0], [0], [1], [0, 0, 1, 1], [], []>} : vector<16x64xf32>, vector<64x64xf32>, vector<16x64xf32> -> vector<16x64xf32>
    %22 = arith.addf %17, %21 : vector<16x64xf32>
    %c2_23 = arith.constant 2 : index
    %c0_24 = arith.constant 0 : index
    %23 = vector.load %arg22[%c2_23, %c0_24] : memref<24x64xf32, #tpu.memory_space<vmem>>, vector<16x64xf32>
    %c2_25 = arith.constant 2 : index
    %c0_26 = arith.constant 0 : index
    %c0_27 = arith.constant 0 : index
    %24 = vector.load %arg3[%c2_25, %c0_26, %c0_27] : memref<15x64x64xf32, #tpu.memory_space<vmem>>, vector<1x64x64xf32>
    %25 = vector.shape_cast %24 : vector<1x64x64xf32> to vector<64x64xf32>
    %cst_28 = arith.constant dense<0.000000e+00> : vector<16x64xf32>
    %26 = tpu.matmul %23, %25, %cst_28 {dimension_numbers = #tpu.dot_dimension_numbers<[1], [0], [0], [1], [0, 0, 1, 1], [], []>} : vector<16x64xf32>, vector<64x64xf32>, vector<16x64xf32> -> vector<16x64xf32>
    %27 = arith.addf %22, %26 : vector<16x64xf32>
    %c3 = arith.constant 3 : index
    %c0_29 = arith.constant 0 : index
    %28 = vector.load %arg22[%c3, %c0_29] : memref<24x64xf32, #tpu.memory_space<vmem>>, vector<16x64xf32>
    %c3_30 = arith.constant 3 : index
    %c0_31 = arith.constant 0 : index
    %c0_32 = arith.constant 0 : index
    %29 = vector.load %arg3[%c3_30, %c0_31, %c0_32] : memref<15x64x64xf32, #tpu.memory_space<vmem>>, vector<1x64x64xf32>
    %30 = vector.shape_cast %29 : vector<1x64x64xf32> to vector<64x64xf32>
    %cst_33 = arith.constant dense<0.000000e+00> : vector<16x64xf32>
    %31 = tpu.matmul %28, %30, %cst_33 {dimension_numbers = #tpu.dot_dimension_numbers<[1], [0], [0], [1], [0, 0, 1, 1], [], []>} : vector<16x64xf32>, vector<64x64xf32>, vector<16x64xf32> -> vector<16x64xf32>
    %32 = arith.addf %27, %31 : vector<16x64xf32>
    %c4 = arith.constant 4 : index
    %c0_34 = arith.constant 0 : index
    %33 = vector.load %arg22[%c4, %c0_34] : memref<24x64xf32, #tpu.memory_space<vmem>>, vector<16x64xf32>
    %c4_35 = arith.constant 4 : index
    %c0_36 = arith.constant 0 : index
    %c0_37 = arith.constant 0 : index
    %34 = vector.load %arg3[%c4_35, %c0_36, %c0_37] : memref<15x64x64xf32, #tpu.memory_space<vmem>>, vector<1x64x64xf32>
    %35 = vector.shape_cast %34 : vector<1x64x64xf32> to vector<64x64xf32>
    %cst_38 = arith.constant dense<0.000000e+00> : vector<16x64xf32>
    %36 = tpu.matmul %33, %35, %cst_38 {dimension_numbers = #tpu.dot_dimension_numbers<[1], [0], [0], [1], [0, 0, 1, 1], [], []>} : vector<16x64xf32>, vector<64x64xf32>, vector<16x64xf32> -> vector<16x64xf32>
    %37 = arith.addf %32, %36 : vector<16x64xf32>
    %38 = vector.broadcast %8 : vector<1x64xf32> to vector<16x64xf32>
    %39 = arith.addf %37, %38 : vector<16x64xf32>
    %cst_39 = arith.constant dense<0.000000e+00> : vector<16xf32>
    %40 = vector.multi_reduction <add>, %39, %cst_39 [1] : vector<16x64xf32> to vector<16xf32>
    %41 = vector.shape_cast %40 : vector<16xf32> to vector<16x1xf32>
    %cst_40 = arith.constant 6.400000e+01 : f32
    %42 = vector.broadcast %cst_40 : f32 to vector<16x1xf32>
    %43 = arith.divf %41, %42 : vector<16x1xf32>
    %44 = vector.broadcast %43 : vector<16x1xf32> to vector<16x64xf32>
    %45 = arith.subf %39, %44 : vector<16x64xf32>
    %46 = arith.mulf %45, %45 : vector<16x64xf32>
    %cst_41 = arith.constant dense<0.000000e+00> : vector<16xf32>
    %47 = vector.multi_reduction <add>, %46, %cst_41 [1] : vector<16x64xf32> to vector<16xf32>
    %48 = vector.shape_cast %47 : vector<16xf32> to vector<16x1xf32>
    %cst_42 = arith.constant 6.400000e+01 : f32
    %49 = vector.broadcast %cst_42 : f32 to vector<16x1xf32>
    %50 = arith.divf %48, %49 : vector<16x1xf32>
    %cst_43 = arith.constant 9.99999974E-6 : f32
    %51 = vector.broadcast %cst_43 : f32 to vector<16x1xf32>
    %52 = arith.addf %50, %51 : vector<16x1xf32>
    %53 = math.rsqrt %52 : vector<16x1xf32>
    %54 = vector.broadcast %53 : vector<16x1xf32> to vector<16x64xf32>
    %55 = arith.mulf %45, %54 : vector<16x64xf32>
    %cst_44 = arith.constant 5.000000e-01 : f32
    %56 = vector.broadcast %cst_44 : f32 to vector<16x64xf32>
    %57 = arith.mulf %56, %55 : vector<16x64xf32>
    %cst_45 = arith.constant 4.471500e-02 : f32
    %58 = vector.broadcast %cst_45 : f32 to vector<16x64xf32>
    %59 = arith.mulf %58, %55 : vector<16x64xf32>
    %60 = arith.mulf %59, %55 : vector<16x64xf32>
    %61 = arith.mulf %60, %55 : vector<16x64xf32>
    %62 = arith.addf %55, %61 : vector<16x64xf32>
    %cst_46 = arith.constant 0.797884583 : f32
    %63 = vector.broadcast %cst_46 : f32 to vector<16x64xf32>
    %64 = arith.mulf %63, %62 : vector<16x64xf32>
    %65 = math.tanh %64 : vector<16x64xf32>
    %cst_47 = arith.constant 1.000000e+00 : f32
    %66 = vector.broadcast %cst_47 : f32 to vector<16x64xf32>
    %67 = arith.addf %66, %65 : vector<16x64xf32>
    %68 = arith.mulf %57, %67 : vector<16x64xf32>
    %cst_48 = arith.constant 0.000000e+00 : f32
    %69 = vector.broadcast %cst_48 : f32 to vector<24x64xf32>
    %c0_49 = arith.constant 0 : index
    %c0_50 = arith.constant 0 : index
    %70 = vector.load %arg22[%c0_49, %c0_50] : memref<24x64xf32, #tpu.memory_space<vmem>>, vector<24x64xf32>
    tpu.vector_store %arg22[%c0_49, %c0_50], %69 {strides = array<i32>} : memref<24x64xf32, #tpu.memory_space<vmem>>, vector<24x64xf32>,
    %c2_51 = arith.constant 2 : index
    %c0_52 = arith.constant 0 : index
    %71 = vector.load %arg22[%c2_51, %c0_52] : memref<24x64xf32, #tpu.memory_space<vmem>>, vector<16x64xf32>
    tpu.vector_store %arg22[%c2_51, %c0_52], %7 {strides = array<i32>} : memref<24x64xf32, #tpu.memory_space<vmem>>, vector<16x64xf32>,
    %cst_53 = arith.constant 0.000000e+00 : f32
    %72 = vector.broadcast %cst_53 : f32 to vector<16x64xf32>
    %c0_54 = arith.constant 0 : index
    %c0_55 = arith.constant 0 : index
    %73 = vector.load %arg22[%c0_54, %c0_55] : memref<24x64xf32, #tpu.memory_space<vmem>>, vector<16x64xf32>
    %c0_56 = arith.constant 0 : index
    %c0_57 = arith.constant 0 : index
    %c0_58 = arith.constant 0 : index
    %74 = vector.load %arg3[%c0_56, %c0_57, %c0_58] : memref<15x64x64xf32, #tpu.memory_space<vmem>>, vector<1x64x64xf32>
    %75 = vector.shape_cast %74 : vector<1x64x64xf32> to vector<64x64xf32>
    %cst_59 = arith.constant dense<0.000000e+00> : vector<16x64xf32>
    %76 = tpu.matmul %73, %75, %cst_59 {dimension_numbers = #tpu.dot_dimension_numbers<[1], [0], [0], [1], [0, 0, 1, 1], [], []>} : vector<16x64xf32>, vector<64x64xf32>, vector<16x64xf32> -> vector<16x64xf32>
    %77 = arith.addf %72, %76 : vector<16x64xf32>
    %c1_60 = arith.constant 1 : index
    %c0_61 = arith.constant 0 : index
    %78 = vector.load %arg22[%c1_60, %c0_61] : memref<24x64xf32, #tpu.memory_space<vmem>>, vector<16x64xf32>
    %c1_62 = arith.constant 1 : index
    %c0_63 = arith.constant 0 : index
    %c0_64 = arith.constant 0 : index
    %79 = vector.load %arg3[%c1_62, %c0_63, %c0_64] : memref<15x64x64xf32, #tpu.memory_space<vmem>>, vector<1x64x64xf32>
    %80 = vector.shape_cast %79 : vector<1x64x64xf32> to vector<64x64xf32>
    %cst_65 = arith.constant dense<0.000000e+00> : vector<16x64xf32>
    %81 = tpu.matmul %78, %80, %cst_65 {dimension_numbers = #tpu.dot_dimension_numbers<[1], [0], [0], [1], [0, 0, 1, 1], [], []>} : vector<16x64xf32>, vector<64x64xf32>, vector<16x64xf32> -> vector<16x64xf32>
    %82 = arith.addf %77, %81 : vector<16x64xf32>
    %c2_66 = arith.constant 2 : index
    %c0_67 = arith.constant 0 : index
    %83 = vector.load %arg22[%c2_66, %c0_67] : memref<24x64xf32, #tpu.memory_space<vmem>>, vector<16x64xf32>
    %c2_68 = arith.constant 2 : index
    %c0_69 = arith.constant 0 : index
    %c0_70 = arith.constant 0 : index
    %84 = vector.load %arg3[%c2_68, %c0_69, %c0_70] : memref<15x64x64xf32, #tpu.memory_space<vmem>>, vector<1x64x64xf32>
    %85 = vector.shape_cast %84 : vector<1x64x64xf32> to vector<64x64xf32>
    %cst_71 = arith.constant dense<0.000000e+00> : vector<16x64xf32>
    %86 = tpu.matmul %83, %85, %cst_71 {dimension_numbers = #tpu.dot_dimension_numbers<[1], [0], [0], [1], [0, 0, 1, 1], [], []>} : vector<16x64xf32>, vector<64x64xf32>, vector<16x64xf32> -> vector<16x64xf32>
    %87 = arith.addf %82, %86 : vector<16x64xf32>
    %c3_72 = arith.constant 3 : index
    %c0_73 = arith.constant 0 : index
    %88 = vector.load %arg22[%c3_72, %c0_73] : memref<24x64xf32, #tpu.memory_space<vmem>>, vector<16x64xf32>
    %c3_74 = arith.constant 3 : index
    %c0_75 = arith.constant 0 : index
    %c0_76 = arith.constant 0 : index
    %89 = vector.load %arg3[%c3_74, %c0_75, %c0_76] : memref<15x64x64xf32, #tpu.memory_space<vmem>>, vector<1x64x64xf32>
    %90 = vector.shape_cast %89 : vector<1x64x64xf32> to vector<64x64xf32>
    %cst_77 = arith.constant dense<0.000000e+00> : vector<16x64xf32>
    %91 = tpu.matmul %88, %90, %cst_77 {dimension_numbers = #tpu.dot_dimension_numbers<[1], [0], [0], [1], [0, 0, 1, 1], [], []>} : vector<16x64xf32>, vector<64x64xf32>, vector<16x64xf32> -> vector<16x64xf32>
    %92 = arith.addf %87, %91 : vector<16x64xf32>
    %c4_78 = arith.constant 4 : index
    %c0_79 = arith.constant 0 : index
    %93 = vector.load %arg22[%c4_78, %c0_79] : memref<24x64xf32, #tpu.memory_space<vmem>>, vector<16x64xf32>
    %c4_80 = arith.constant 4 : index
    %c0_81 = arith.constant 0 : index
    %c0_82 = arith.constant 0 : index
    %94 = vector.load %arg3[%c4_80, %c0_81, %c0_82] : memref<15x64x64xf32, #tpu.memory_space<vmem>>, vector<1x64x64xf32>
    %95 = vector.shape_cast %94 : vector<1x64x64xf32> to vector<64x64xf32>
    %cst_83 = arith.constant dense<0.000000e+00> : vector<16x64xf32>
    %96 = tpu.matmul %93, %95, %cst_83 {dimension_numbers = #tpu.dot_dimension_numbers<[1], [0], [0], [1], [0, 0, 1, 1], [], []>} : vector<16x64xf32>, vector<64x64xf32>, vector<16x64xf32> -> vector<16x64xf32>
    %97 = arith.addf %92, %96 : vector<16x64xf32>
    %98 = vector.broadcast %8 : vector<1x64xf32> to vector<16x64xf32>
    %99 = arith.addf %97, %98 : vector<16x64xf32>
    %cst_84 = arith.constant dense<0.000000e+00> : vector<16xf32>
    %100 = vector.multi_reduction <add>, %99, %cst_84 [1] : vector<16x64xf32> to vector<16xf32>
    %101 = vector.shape_cast %100 : vector<16xf32> to vector<16x1xf32>
    %cst_85 = arith.constant 6.400000e+01 : f32
    %102 = vector.broadcast %cst_85 : f32 to vector<16x1xf32>
    %103 = arith.divf %101, %102 : vector<16x1xf32>
    %104 = vector.broadcast %103 : vector<16x1xf32> to vector<16x64xf32>
    %105 = arith.subf %99, %104 : vector<16x64xf32>
    %106 = arith.mulf %105, %105 : vector<16x64xf32>
    %cst_86 = arith.constant dense<0.000000e+00> : vector<16xf32>
    %107 = vector.multi_reduction <add>, %106, %cst_86 [1] : vector<16x64xf32> to vector<16xf32>
    %108 = vector.shape_cast %107 : vector<16xf32> to vector<16x1xf32>
    %cst_87 = arith.constant 6.400000e+01 : f32
    %109 = vector.broadcast %cst_87 : f32 to vector<16x1xf32>
    %110 = arith.divf %108, %109 : vector<16x1xf32>
    %cst_88 = arith.constant 9.99999974E-6 : f32
    %111 = vector.broadcast %cst_88 : f32 to vector<16x1xf32>
    %112 = arith.addf %110, %111 : vector<16x1xf32>
    %113 = math.rsqrt %112 : vector<16x1xf32>
    %114 = vector.broadcast %113 : vector<16x1xf32> to vector<16x64xf32>
    %115 = arith.mulf %105, %114 : vector<16x64xf32>
    %cst_89 = arith.constant 5.000000e-01 : f32
    %116 = vector.broadcast %cst_89 : f32 to vector<16x64xf32>
    %117 = arith.mulf %116, %115 : vector<16x64xf32>
    %cst_90 = arith.constant 4.471500e-02 : f32
    %118 = vector.broadcast %cst_90 : f32 to vector<16x64xf32>
    %119 = arith.mulf %118, %115 : vector<16x64xf32>
    %120 = arith.mulf %119, %115 : vector<16x64xf32>
    %121 = arith.mulf %120, %115 : vector<16x64xf32>
    %122 = arith.addf %115, %121 : vector<16x64xf32>
    %cst_91 = arith.constant 0.797884583 : f32
    %123 = vector.broadcast %cst_91 : f32 to vector<16x64xf32>
    %124 = arith.mulf %123, %122 : vector<16x64xf32>
    %125 = math.tanh %124 : vector<16x64xf32>
    %cst_92 = arith.constant 1.000000e+00 : f32
    %126 = vector.broadcast %cst_92 : f32 to vector<16x64xf32>
    %127 = arith.addf %126, %125 : vector<16x64xf32>
    %128 = arith.mulf %117, %127 : vector<16x64xf32>
    %c1_93 = arith.constant 1 : index
    %c0_94 = arith.constant 0 : index
    %129 = vector.load %arg4[%c1_93, %c0_94] : memref<3x64xf32, #tpu.memory_space<vmem>>, vector<1x64xf32>
    %cst_95 = arith.constant 0.000000e+00 : f32
    %130 = vector.broadcast %cst_95 : f32 to vector<24x64xf32>
    %c0_96 = arith.constant 0 : index
    %c0_97 = arith.constant 0 : index
    %131 = vector.load %arg22[%c0_96, %c0_97] : memref<24x64xf32, #tpu.memory_space<vmem>>, vector<24x64xf32>
    tpu.vector_store %arg22[%c0_96, %c0_97], %130 {strides = array<i32>} : memref<24x64xf32, #tpu.memory_space<vmem>>, vector<24x64xf32>,
    %c2_98 = arith.constant 2 : index
    %c0_99 = arith.constant 0 : index
    %132 = vector.load %arg22[%c2_98, %c0_99] : memref<24x64xf32, #tpu.memory_space<vmem>>, vector<16x64xf32>
    tpu.vector_store %arg22[%c2_98, %c0_99], %68 {strides = array<i32>} : memref<24x64xf32, #tpu.memory_space<vmem>>, vector<16x64xf32>,
    %cst_100 = arith.constant 0.000000e+00 : f32
    %133 = vector.broadcast %cst_100 : f32 to vector<16x64xf32>
    %c0_101 = arith.constant 0 : index
    %c0_102 = arith.constant 0 : index
    %134 = vector.load %arg22[%c0_101, %c0_102] : memref<24x64xf32, #tpu.memory_space<vmem>>, vector<16x64xf32>
    %c5 = arith.constant 5 : index
    %c0_103 = arith.constant 0 : index
    %c0_104 = arith.constant 0 : index
    %135 = vector.load %arg3[%c5, %c0_103, %c0_104] : memref<15x64x64xf32, #tpu.memory_space<vmem>>, vector<1x64x64xf32>
    %136 = vector.shape_cast %135 : vector<1x64x64xf32> to vector<64x64xf32>
    %cst_105 = arith.constant dense<0.000000e+00> : vector<16x64xf32>
    %137 = tpu.matmul %134, %136, %cst_105 {dimension_numbers = #tpu.dot_dimension_numbers<[1], [0], [0], [1], [0, 0, 1, 1], [], []>} : vector<16x64xf32>, vector<64x64xf32>, vector<16x64xf32> -> vector<16x64xf32>
    %138 = arith.addf %133, %137 : vector<16x64xf32>
    %c1_106 = arith.constant 1 : index
    %c0_107 = arith.constant 0 : index
    %139 = vector.load %arg22[%c1_106, %c0_107] : memref<24x64xf32, #tpu.memory_space<vmem>>, vector<16x64xf32>
    %c6 = arith.constant 6 : index
    %c0_108 = arith.constant 0 : index
    %c0_109 = arith.constant 0 : index
    %140 = vector.load %arg3[%c6, %c0_108, %c0_109] : memref<15x64x64xf32, #tpu.memory_space<vmem>>, vector<1x64x64xf32>
    %141 = vector.shape_cast %140 : vector<1x64x64xf32> to vector<64x64xf32>
    %cst_110 = arith.constant dense<0.000000e+00> : vector<16x64xf32>
    %142 = tpu.matmul %139, %141, %cst_110 {dimension_numbers = #tpu.dot_dimension_numbers<[1], [0], [0], [1], [0, 0, 1, 1], [], []>} : vector<16x64xf32>, vector<64x64xf32>, vector<16x64xf32> -> vector<16x64xf32>
    %143 = arith.addf %138, %142 : vector<16x64xf32>
    %c2_111 = arith.constant 2 : index
    %c0_112 = arith.constant 0 : index
    %144 = vector.load %arg22[%c2_111, %c0_112] : memref<24x64xf32, #tpu.memory_space<vmem>>, vector<16x64xf32>
    %c7 = arith.constant 7 : index
    %c0_113 = arith.constant 0 : index
    %c0_114 = arith.constant 0 : index
    %145 = vector.load %arg3[%c7, %c0_113, %c0_114] : memref<15x64x64xf32, #tpu.memory_space<vmem>>, vector<1x64x64xf32>
    %146 = vector.shape_cast %145 : vector<1x64x64xf32> to vector<64x64xf32>
    %cst_115 = arith.constant dense<0.000000e+00> : vector<16x64xf32>
    %147 = tpu.matmul %144, %146, %cst_115 {dimension_numbers = #tpu.dot_dimension_numbers<[1], [0], [0], [1], [0, 0, 1, 1], [], []>} : vector<16x64xf32>, vector<64x64xf32>, vector<16x64xf32> -> vector<16x64xf32>
    %148 = arith.addf %143, %147 : vector<16x64xf32>
    %c3_116 = arith.constant 3 : index
    %c0_117 = arith.constant 0 : index
    %149 = vector.load %arg22[%c3_116, %c0_117] : memref<24x64xf32, #tpu.memory_space<vmem>>, vector<16x64xf32>
    %c8 = arith.constant 8 : index
    %c0_118 = arith.constant 0 : index
    %c0_119 = arith.constant 0 : index
    %150 = vector.load %arg3[%c8, %c0_118, %c0_119] : memref<15x64x64xf32, #tpu.memory_space<vmem>>, vector<1x64x64xf32>
    %151 = vector.shape_cast %150 : vector<1x64x64xf32> to vector<64x64xf32>
    %cst_120 = arith.constant dense<0.000000e+00> : vector<16x64xf32>
    %152 = tpu.matmul %149, %151, %cst_120 {dimension_numbers = #tpu.dot_dimension_numbers<[1], [0], [0], [1], [0, 0, 1, 1], [], []>} : vector<16x64xf32>, vector<64x64xf32>, vector<16x64xf32> -> vector<16x64xf32>
    %153 = arith.addf %148, %152 : vector<16x64xf32>
    %c4_121 = arith.constant 4 : index
    %c0_122 = arith.constant 0 : index
    %154 = vector.load %arg22[%c4_121, %c0_122] : memref<24x64xf32, #tpu.memory_space<vmem>>, vector<16x64xf32>
    %c9 = arith.constant 9 : index
    %c0_123 = arith.constant 0 : index
    %c0_124 = arith.constant 0 : index
    %155 = vector.load %arg3[%c9, %c0_123, %c0_124] : memref<15x64x64xf32, #tpu.memory_space<vmem>>, vector<1x64x64xf32>
    %156 = vector.shape_cast %155 : vector<1x64x64xf32> to vector<64x64xf32>
    %cst_125 = arith.constant dense<0.000000e+00> : vector<16x64xf32>
    %157 = tpu.matmul %154, %156, %cst_125 {dimension_numbers = #tpu.dot_dimension_numbers<[1], [0], [0], [1], [0, 0, 1, 1], [], []>} : vector<16x64xf32>, vector<64x64xf32>, vector<16x64xf32> -> vector<16x64xf32>
    %158 = arith.addf %153, %157 : vector<16x64xf32>
    %159 = vector.broadcast %129 : vector<1x64xf32> to vector<16x64xf32>
    %160 = arith.addf %158, %159 : vector<16x64xf32>
    %cst_126 = arith.constant dense<0.000000e+00> : vector<16xf32>
    %161 = vector.multi_reduction <add>, %160, %cst_126 [1] : vector<16x64xf32> to vector<16xf32>
    %162 = vector.shape_cast %161 : vector<16xf32> to vector<16x1xf32>
    %cst_127 = arith.constant 6.400000e+01 : f32
    %163 = vector.broadcast %cst_127 : f32 to vector<16x1xf32>
    %164 = arith.divf %162, %163 : vector<16x1xf32>
    %165 = vector.broadcast %164 : vector<16x1xf32> to vector<16x64xf32>
    %166 = arith.subf %160, %165 : vector<16x64xf32>
    %167 = arith.mulf %166, %166 : vector<16x64xf32>
    %cst_128 = arith.constant dense<0.000000e+00> : vector<16xf32>
    %168 = vector.multi_reduction <add>, %167, %cst_128 [1] : vector<16x64xf32> to vector<16xf32>
    %169 = vector.shape_cast %168 : vector<16xf32> to vector<16x1xf32>
    %cst_129 = arith.constant 6.400000e+01 : f32
    %170 = vector.broadcast %cst_129 : f32 to vector<16x1xf32>
    %171 = arith.divf %169, %170 : vector<16x1xf32>
    %cst_130 = arith.constant 9.99999974E-6 : f32
    %172 = vector.broadcast %cst_130 : f32 to vector<16x1xf32>
    %173 = arith.addf %171, %172 : vector<16x1xf32>
    %174 = math.rsqrt %173 : vector<16x1xf32>
    %175 = vector.broadcast %174 : vector<16x1xf32> to vector<16x64xf32>
    %176 = arith.mulf %166, %175 : vector<16x64xf32>
    %cst_131 = arith.constant 5.000000e-01 : f32
    %177 = vector.broadcast %cst_131 : f32 to vector<16x64xf32>
    %178 = arith.mulf %177, %176 : vector<16x64xf32>
    %cst_132 = arith.constant 4.471500e-02 : f32
    %179 = vector.broadcast %cst_132 : f32 to vector<16x64xf32>
    %180 = arith.mulf %179, %176 : vector<16x64xf32>
    %181 = arith.mulf %180, %176 : vector<16x64xf32>
    %182 = arith.mulf %181, %176 : vector<16x64xf32>
    %183 = arith.addf %176, %182 : vector<16x64xf32>
    %cst_133 = arith.constant 0.797884583 : f32
    %184 = vector.broadcast %cst_133 : f32 to vector<16x64xf32>
    %185 = arith.mulf %184, %183 : vector<16x64xf32>
    %186 = math.tanh %185 : vector<16x64xf32>
    %cst_134 = arith.constant 1.000000e+00 : f32
    %187 = vector.broadcast %cst_134 : f32 to vector<16x64xf32>
    %188 = arith.addf %187, %186 : vector<16x64xf32>
    %189 = arith.mulf %178, %188 : vector<16x64xf32>
    %cst_135 = arith.constant 0.000000e+00 : f32
    %190 = vector.broadcast %cst_135 : f32 to vector<24x64xf32>
    %c0_136 = arith.constant 0 : index
    %c0_137 = arith.constant 0 : index
    %191 = vector.load %arg22[%c0_136, %c0_137] : memref<24x64xf32, #tpu.memory_space<vmem>>, vector<24x64xf32>
    tpu.vector_store %arg22[%c0_136, %c0_137], %190 {strides = array<i32>} : memref<24x64xf32, #tpu.memory_space<vmem>>, vector<24x64xf32>,
    %c2_138 = arith.constant 2 : index
    %c0_139 = arith.constant 0 : index
    %192 = vector.load %arg22[%c2_138, %c0_139] : memref<24x64xf32, #tpu.memory_space<vmem>>, vector<16x64xf32>
    tpu.vector_store %arg22[%c2_138, %c0_139], %128 {strides = array<i32>} : memref<24x64xf32, #tpu.memory_space<vmem>>, vector<16x64xf32>,
    %cst_140 = arith.constant 0.000000e+00 : f32
    %193 = vector.broadcast %cst_140 : f32 to vector<16x64xf32>
    %c0_141 = arith.constant 0 : index
    %c0_142 = arith.constant 0 : index
    %194 = vector.load %arg22[%c0_141, %c0_142] : memref<24x64xf32, #tpu.memory_space<vmem>>, vector<16x64xf32>
    %c5_143 = arith.constant 5 : index
    %c0_144 = arith.constant 0 : index
    %c0_145 = arith.constant 0 : index
    %195 = vector.load %arg3[%c5_143, %c0_144, %c0_145] : memref<15x64x64xf32, #tpu.memory_space<vmem>>, vector<1x64x64xf32>
    %196 = vector.shape_cast %195 : vector<1x64x64xf32> to vector<64x64xf32>
    %cst_146 = arith.constant dense<0.000000e+00> : vector<16x64xf32>
    %197 = tpu.matmul %194, %196, %cst_146 {dimension_numbers = #tpu.dot_dimension_numbers<[1], [0], [0], [1], [0, 0, 1, 1], [], []>} : vector<16x64xf32>, vector<64x64xf32>, vector<16x64xf32> -> vector<16x64xf32>
    %198 = arith.addf %193, %197 : vector<16x64xf32>
    %c1_147 = arith.constant 1 : index
    %c0_148 = arith.constant 0 : index
    %199 = vector.load %arg22[%c1_147, %c0_148] : memref<24x64xf32, #tpu.memory_space<vmem>>, vector<16x64xf32>
    %c6_149 = arith.constant 6 : index
    %c0_150 = arith.constant 0 : index
    %c0_151 = arith.constant 0 : index
    %200 = vector.load %arg3[%c6_149, %c0_150, %c0_151] : memref<15x64x64xf32, #tpu.memory_space<vmem>>, vector<1x64x64xf32>
    %201 = vector.shape_cast %200 : vector<1x64x64xf32> to vector<64x64xf32>
    %cst_152 = arith.constant dense<0.000000e+00> : vector<16x64xf32>
    %202 = tpu.matmul %199, %201, %cst_152 {dimension_numbers = #tpu.dot_dimension_numbers<[1], [0], [0], [1], [0, 0, 1, 1], [], []>} : vector<16x64xf32>, vector<64x64xf32>, vector<16x64xf32> -> vector<16x64xf32>
    %203 = arith.addf %198, %202 : vector<16x64xf32>
    %c2_153 = arith.constant 2 : index
    %c0_154 = arith.constant 0 : index
    %204 = vector.load %arg22[%c2_153, %c0_154] : memref<24x64xf32, #tpu.memory_space<vmem>>, vector<16x64xf32>
    %c7_155 = arith.constant 7 : index
    %c0_156 = arith.constant 0 : index
    %c0_157 = arith.constant 0 : index
    %205 = vector.load %arg3[%c7_155, %c0_156, %c0_157] : memref<15x64x64xf32, #tpu.memory_space<vmem>>, vector<1x64x64xf32>
    %206 = vector.shape_cast %205 : vector<1x64x64xf32> to vector<64x64xf32>
    %cst_158 = arith.constant dense<0.000000e+00> : vector<16x64xf32>
    %207 = tpu.matmul %204, %206, %cst_158 {dimension_numbers = #tpu.dot_dimension_numbers<[1], [0], [0], [1], [0, 0, 1, 1], [], []>} : vector<16x64xf32>, vector<64x64xf32>, vector<16x64xf32> -> vector<16x64xf32>
    %208 = arith.addf %203, %207 : vector<16x64xf32>
    %c3_159 = arith.constant 3 : index
    %c0_160 = arith.constant 0 : index
    %209 = vector.load %arg22[%c3_159, %c0_160] : memref<24x64xf32, #tpu.memory_space<vmem>>, vector<16x64xf32>
    %c8_161 = arith.constant 8 : index
    %c0_162 = arith.constant 0 : index
    %c0_163 = arith.constant 0 : index
    %210 = vector.load %arg3[%c8_161, %c0_162, %c0_163] : memref<15x64x64xf32, #tpu.memory_space<vmem>>, vector<1x64x64xf32>
    %211 = vector.shape_cast %210 : vector<1x64x64xf32> to vector<64x64xf32>
    %cst_164 = arith.constant dense<0.000000e+00> : vector<16x64xf32>
    %212 = tpu.matmul %209, %211, %cst_164 {dimension_numbers = #tpu.dot_dimension_numbers<[1], [0], [0], [1], [0, 0, 1, 1], [], []>} : vector<16x64xf32>, vector<64x64xf32>, vector<16x64xf32> -> vector<16x64xf32>
    %213 = arith.addf %208, %212 : vector<16x64xf32>
    %c4_165 = arith.constant 4 : index
    %c0_166 = arith.constant 0 : index
    %214 = vector.load %arg22[%c4_165, %c0_166] : memref<24x64xf32, #tpu.memory_space<vmem>>, vector<16x64xf32>
    %c9_167 = arith.constant 9 : index
    %c0_168 = arith.constant 0 : index
    %c0_169 = arith.constant 0 : index
    %215 = vector.load %arg3[%c9_167, %c0_168, %c0_169] : memref<15x64x64xf32, #tpu.memory_space<vmem>>, vector<1x64x64xf32>
    %216 = vector.shape_cast %215 : vector<1x64x64xf32> to vector<64x64xf32>
    %cst_170 = arith.constant dense<0.000000e+00> : vector<16x64xf32>
    %217 = tpu.matmul %214, %216, %cst_170 {dimension_numbers = #tpu.dot_dimension_numbers<[1], [0], [0], [1], [0, 0, 1, 1], [], []>} : vector<16x64xf32>, vector<64x64xf32>, vector<16x64xf32> -> vector<16x64xf32>
    %218 = arith.addf %213, %217 : vector<16x64xf32>
    %219 = vector.broadcast %129 : vector<1x64xf32> to vector<16x64xf32>
    %220 = arith.addf %218, %219 : vector<16x64xf32>
    %cst_171 = arith.constant dense<0.000000e+00> : vector<16xf32>
    %221 = vector.multi_reduction <add>, %220, %cst_171 [1] : vector<16x64xf32> to vector<16xf32>
    %222 = vector.shape_cast %221 : vector<16xf32> to vector<16x1xf32>
    %cst_172 = arith.constant 6.400000e+01 : f32
    %223 = vector.broadcast %cst_172 : f32 to vector<16x1xf32>
    %224 = arith.divf %222, %223 : vector<16x1xf32>
    %225 = vector.broadcast %224 : vector<16x1xf32> to vector<16x64xf32>
    %226 = arith.subf %220, %225 : vector<16x64xf32>
    %227 = arith.mulf %226, %226 : vector<16x64xf32>
    %cst_173 = arith.constant dense<0.000000e+00> : vector<16xf32>
    %228 = vector.multi_reduction <add>, %227, %cst_173 [1] : vector<16x64xf32> to vector<16xf32>
    %229 = vector.shape_cast %228 : vector<16xf32> to vector<16x1xf32>
    %cst_174 = arith.constant 6.400000e+01 : f32
    %230 = vector.broadcast %cst_174 : f32 to vector<16x1xf32>
    %231 = arith.divf %229, %230 : vector<16x1xf32>
    %cst_175 = arith.constant 9.99999974E-6 : f32
    %232 = vector.broadcast %cst_175 : f32 to vector<16x1xf32>
    %233 = arith.addf %231, %232 : vector<16x1xf32>
    %234 = math.rsqrt %233 : vector<16x1xf32>
    %235 = vector.broadcast %234 : vector<16x1xf32> to vector<16x64xf32>
    %236 = arith.mulf %226, %235 : vector<16x64xf32>
    %cst_176 = arith.constant 5.000000e-01 : f32
    %237 = vector.broadcast %cst_176 : f32 to vector<16x64xf32>
    %238 = arith.mulf %237, %236 : vector<16x64xf32>
    %cst_177 = arith.constant 4.471500e-02 : f32
    %239 = vector.broadcast %cst_177 : f32 to vector<16x64xf32>
    %240 = arith.mulf %239, %236 : vector<16x64xf32>
    %241 = arith.mulf %240, %236 : vector<16x64xf32>
    %242 = arith.mulf %241, %236 : vector<16x64xf32>
    %243 = arith.addf %236, %242 : vector<16x64xf32>
    %cst_178 = arith.constant 0.797884583 : f32
    %244 = vector.broadcast %cst_178 : f32 to vector<16x64xf32>
    %245 = arith.mulf %244, %243 : vector<16x64xf32>
    %246 = math.tanh %245 : vector<16x64xf32>
    %cst_179 = arith.constant 1.000000e+00 : f32
    %247 = vector.broadcast %cst_179 : f32 to vector<16x64xf32>
    %248 = arith.addf %247, %246 : vector<16x64xf32>
    %249 = arith.mulf %238, %248 : vector<16x64xf32>
    %c2_180 = arith.constant 2 : index
    %c0_181 = arith.constant 0 : index
    %250 = vector.load %arg4[%c2_180, %c0_181] : memref<3x64xf32, #tpu.memory_space<vmem>>, vector<1x64xf32>
    %cst_182 = arith.constant 0.000000e+00 : f32
    %251 = vector.broadcast %cst_182 : f32 to vector<24x64xf32>
    %c0_183 = arith.constant 0 : index
    %c0_184 = arith.constant 0 : index
    %252 = vector.load %arg22[%c0_183, %c0_184] : memref<24x64xf32, #tpu.memory_space<vmem>>, vector<24x64xf32>
    tpu.vector_store %arg22[%c0_183, %c0_184], %251 {strides = array<i32>} : memref<24x64xf32, #tpu.memory_space<vmem>>, vector<24x64xf32>,
    %c2_185 = arith.constant 2 : index
    %c0_186 = arith.constant 0 : index
    %253 = vector.load %arg22[%c2_185, %c0_186] : memref<24x64xf32, #tpu.memory_space<vmem>>, vector<16x64xf32>
    tpu.vector_store %arg22[%c2_185, %c0_186], %189 {strides = array<i32>} : memref<24x64xf32, #tpu.memory_space<vmem>>, vector<16x64xf32>,
    %cst_187 = arith.constant 0.000000e+00 : f32
    %254 = vector.broadcast %cst_187 : f32 to vector<16x64xf32>
    %c0_188 = arith.constant 0 : index
    %c0_189 = arith.constant 0 : index
    %255 = vector.load %arg22[%c0_188, %c0_189] : memref<24x64xf32, #tpu.memory_space<vmem>>, vector<16x64xf32>
    %c10 = arith.constant 10 : index
    %c0_190 = arith.constant 0 : index
    %c0_191 = arith.constant 0 : index
    %256 = vector.load %arg3[%c10, %c0_190, %c0_191] : memref<15x64x64xf32, #tpu.memory_space<vmem>>, vector<1x64x64xf32>
    %257 = vector.shape_cast %256 : vector<1x64x64xf32> to vector<64x64xf32>
    %cst_192 = arith.constant dense<0.000000e+00> : vector<16x64xf32>
    %258 = tpu.matmul %255, %257, %cst_192 {dimension_numbers = #tpu.dot_dimension_numbers<[1], [0], [0], [1], [0, 0, 1, 1], [], []>} : vector<16x64xf32>, vector<64x64xf32>, vector<16x64xf32> -> vector<16x64xf32>
    %259 = arith.addf %254, %258 : vector<16x64xf32>
    %c1_193 = arith.constant 1 : index
    %c0_194 = arith.constant 0 : index
    %260 = vector.load %arg22[%c1_193, %c0_194] : memref<24x64xf32, #tpu.memory_space<vmem>>, vector<16x64xf32>
    %c11 = arith.constant 11 : index
    %c0_195 = arith.constant 0 : index
    %c0_196 = arith.constant 0 : index
    %261 = vector.load %arg3[%c11, %c0_195, %c0_196] : memref<15x64x64xf32, #tpu.memory_space<vmem>>, vector<1x64x64xf32>
    %262 = vector.shape_cast %261 : vector<1x64x64xf32> to vector<64x64xf32>
    %cst_197 = arith.constant dense<0.000000e+00> : vector<16x64xf32>
    %263 = tpu.matmul %260, %262, %cst_197 {dimension_numbers = #tpu.dot_dimension_numbers<[1], [0], [0], [1], [0, 0, 1, 1], [], []>} : vector<16x64xf32>, vector<64x64xf32>, vector<16x64xf32> -> vector<16x64xf32>
    %264 = arith.addf %259, %263 : vector<16x64xf32>
    %c2_198 = arith.constant 2 : index
    %c0_199 = arith.constant 0 : index
    %265 = vector.load %arg22[%c2_198, %c0_199] : memref<24x64xf32, #tpu.memory_space<vmem>>, vector<16x64xf32>
    %c12 = arith.constant 12 : index
    %c0_200 = arith.constant 0 : index
    %c0_201 = arith.constant 0 : index
    %266 = vector.load %arg3[%c12, %c0_200, %c0_201] : memref<15x64x64xf32, #tpu.memory_space<vmem>>, vector<1x64x64xf32>
    %267 = vector.shape_cast %266 : vector<1x64x64xf32> to vector<64x64xf32>
    %cst_202 = arith.constant dense<0.000000e+00> : vector<16x64xf32>
    %268 = tpu.matmul %265, %267, %cst_202 {dimension_numbers = #tpu.dot_dimension_numbers<[1], [0], [0], [1], [0, 0, 1, 1], [], []>} : vector<16x64xf32>, vector<64x64xf32>, vector<16x64xf32> -> vector<16x64xf32>
    %269 = arith.addf %264, %268 : vector<16x64xf32>
    %c3_203 = arith.constant 3 : index
    %c0_204 = arith.constant 0 : index
    %270 = vector.load %arg22[%c3_203, %c0_204] : memref<24x64xf32, #tpu.memory_space<vmem>>, vector<16x64xf32>
    %c13 = arith.constant 13 : index
    %c0_205 = arith.constant 0 : index
    %c0_206 = arith.constant 0 : index
    %271 = vector.load %arg3[%c13, %c0_205, %c0_206] : memref<15x64x64xf32, #tpu.memory_space<vmem>>, vector<1x64x64xf32>
    %272 = vector.shape_cast %271 : vector<1x64x64xf32> to vector<64x64xf32>
    %cst_207 = arith.constant dense<0.000000e+00> : vector<16x64xf32>
    %273 = tpu.matmul %270, %272, %cst_207 {dimension_numbers = #tpu.dot_dimension_numbers<[1], [0], [0], [1], [0, 0, 1, 1], [], []>} : vector<16x64xf32>, vector<64x64xf32>, vector<16x64xf32> -> vector<16x64xf32>
    %274 = arith.addf %269, %273 : vector<16x64xf32>
    %c4_208 = arith.constant 4 : index
    %c0_209 = arith.constant 0 : index
    %275 = vector.load %arg22[%c4_208, %c0_209] : memref<24x64xf32, #tpu.memory_space<vmem>>, vector<16x64xf32>
    %c14 = arith.constant 14 : index
    %c0_210 = arith.constant 0 : index
    %c0_211 = arith.constant 0 : index
    %276 = vector.load %arg3[%c14, %c0_210, %c0_211] : memref<15x64x64xf32, #tpu.memory_space<vmem>>, vector<1x64x64xf32>
    %277 = vector.shape_cast %276 : vector<1x64x64xf32> to vector<64x64xf32>
    %cst_212 = arith.constant dense<0.000000e+00> : vector<16x64xf32>
    %278 = tpu.matmul %275, %277, %cst_212 {dimension_numbers = #tpu.dot_dimension_numbers<[1], [0], [0], [1], [0, 0, 1, 1], [], []>} : vector<16x64xf32>, vector<64x64xf32>, vector<16x64xf32> -> vector<16x64xf32>
    %279 = arith.addf %274, %278 : vector<16x64xf32>
    %280 = vector.broadcast %250 : vector<1x64xf32> to vector<16x64xf32>
    %281 = arith.addf %279, %280 : vector<16x64xf32>
    %cst_213 = arith.constant dense<0.000000e+00> : vector<16xf32>
    %282 = vector.multi_reduction <add>, %281, %cst_213 [1] : vector<16x64xf32> to vector<16xf32>
    %283 = vector.shape_cast %282 : vector<16xf32> to vector<16x1xf32>
    %cst_214 = arith.constant 6.400000e+01 : f32
    %284 = vector.broadcast %cst_214 : f32 to vector<16x1xf32>
    %285 = arith.divf %283, %284 : vector<16x1xf32>
    %286 = vector.broadcast %285 : vector<16x1xf32> to vector<16x64xf32>
    %287 = arith.subf %281, %286 : vector<16x64xf32>
    %288 = arith.mulf %287, %287 : vector<16x64xf32>
    %cst_215 = arith.constant dense<0.000000e+00> : vector<16xf32>
    %289 = vector.multi_reduction <add>, %288, %cst_215 [1] : vector<16x64xf32> to vector<16xf32>
    %290 = vector.shape_cast %289 : vector<16xf32> to vector<16x1xf32>
    %cst_216 = arith.constant 6.400000e+01 : f32
    %291 = vector.broadcast %cst_216 : f32 to vector<16x1xf32>
    %292 = arith.divf %290, %291 : vector<16x1xf32>
    %cst_217 = arith.constant 9.99999974E-6 : f32
    %293 = vector.broadcast %cst_217 : f32 to vector<16x1xf32>
    %294 = arith.addf %292, %293 : vector<16x1xf32>
    %295 = math.rsqrt %294 : vector<16x1xf32>
    %296 = vector.broadcast %295 : vector<16x1xf32> to vector<16x64xf32>
    %297 = arith.mulf %287, %296 : vector<16x64xf32>
    %cst_218 = arith.constant 5.000000e-01 : f32
    %298 = vector.broadcast %cst_218 : f32 to vector<16x64xf32>
    %299 = arith.mulf %298, %297 : vector<16x64xf32>
    %cst_219 = arith.constant 4.471500e-02 : f32
    %300 = vector.broadcast %cst_219 : f32 to vector<16x64xf32>
    %301 = arith.mulf %300, %297 : vector<16x64xf32>
    %302 = arith.mulf %301, %297 : vector<16x64xf32>
    %303 = arith.mulf %302, %297 : vector<16x64xf32>
    %304 = arith.addf %297, %303 : vector<16x64xf32>
    %cst_220 = arith.constant 0.797884583 : f32
    %305 = vector.broadcast %cst_220 : f32 to vector<16x64xf32>
    %306 = arith.mulf %305, %304 : vector<16x64xf32>
    %307 = math.tanh %306 : vector<16x64xf32>
    %cst_221 = arith.constant 1.000000e+00 : f32
    %308 = vector.broadcast %cst_221 : f32 to vector<16x64xf32>
    %309 = arith.addf %308, %307 : vector<16x64xf32>
    %310 = arith.mulf %299, %309 : vector<16x64xf32>
    %cst_222 = arith.constant 0.000000e+00 : f32
    %311 = vector.broadcast %cst_222 : f32 to vector<24x64xf32>
    %c0_223 = arith.constant 0 : index
    %c0_224 = arith.constant 0 : index
    %312 = vector.load %arg22[%c0_223, %c0_224] : memref<24x64xf32, #tpu.memory_space<vmem>>, vector<24x64xf32>
    tpu.vector_store %arg22[%c0_223, %c0_224], %311 {strides = array<i32>} : memref<24x64xf32, #tpu.memory_space<vmem>>, vector<24x64xf32>,
    %c2_225 = arith.constant 2 : index
    %c0_226 = arith.constant 0 : index
    %313 = vector.load %arg22[%c2_225, %c0_226] : memref<24x64xf32, #tpu.memory_space<vmem>>, vector<16x64xf32>
    tpu.vector_store %arg22[%c2_225, %c0_226], %249 {strides = array<i32>} : memref<24x64xf32, #tpu.memory_space<vmem>>, vector<16x64xf32>,
    %cst_227 = arith.constant 0.000000e+00 : f32
    %314 = vector.broadcast %cst_227 : f32 to vector<16x64xf32>
    %c0_228 = arith.constant 0 : index
    %c0_229 = arith.constant 0 : index
    %315 = vector.load %arg22[%c0_228, %c0_229] : memref<24x64xf32, #tpu.memory_space<vmem>>, vector<16x64xf32>
    %c10_230 = arith.constant 10 : index
    %c0_231 = arith.constant 0 : index
    %c0_232 = arith.constant 0 : index
    %316 = vector.load %arg3[%c10_230, %c0_231, %c0_232] : memref<15x64x64xf32, #tpu.memory_space<vmem>>, vector<1x64x64xf32>
    %317 = vector.shape_cast %316 : vector<1x64x64xf32> to vector<64x64xf32>
    %cst_233 = arith.constant dense<0.000000e+00> : vector<16x64xf32>
    %318 = tpu.matmul %315, %317, %cst_233 {dimension_numbers = #tpu.dot_dimension_numbers<[1], [0], [0], [1], [0, 0, 1, 1], [], []>} : vector<16x64xf32>, vector<64x64xf32>, vector<16x64xf32> -> vector<16x64xf32>
    %319 = arith.addf %314, %318 : vector<16x64xf32>
    %c1_234 = arith.constant 1 : index
    %c0_235 = arith.constant 0 : index
    %320 = vector.load %arg22[%c1_234, %c0_235] : memref<24x64xf32, #tpu.memory_space<vmem>>, vector<16x64xf32>
    %c11_236 = arith.constant 11 : index
    %c0_237 = arith.constant 0 : index
    %c0_238 = arith.constant 0 : index
    %321 = vector.load %arg3[%c11_236, %c0_237, %c0_238] : memref<15x64x64xf32, #tpu.memory_space<vmem>>, vector<1x64x64xf32>
    %322 = vector.shape_cast %321 : vector<1x64x64xf32> to vector<64x64xf32>
    %cst_239 = arith.constant dense<0.000000e+00> : vector<16x64xf32>
    %323 = tpu.matmul %320, %322, %cst_239 {dimension_numbers = #tpu.dot_dimension_numbers<[1], [0], [0], [1], [0, 0, 1, 1], [], []>} : vector<16x64xf32>, vector<64x64xf32>, vector<16x64xf32> -> vector<16x64xf32>
    %324 = arith.addf %319, %323 : vector<16x64xf32>
    %c2_240 = arith.constant 2 : index
    %c0_241 = arith.constant 0 : index
    %325 = vector.load %arg22[%c2_240, %c0_241] : memref<24x64xf32, #tpu.memory_space<vmem>>, vector<16x64xf32>
    %c12_242 = arith.constant 12 : index
    %c0_243 = arith.constant 0 : index
    %c0_244 = arith.constant 0 : index
    %326 = vector.load %arg3[%c12_242, %c0_243, %c0_244] : memref<15x64x64xf32, #tpu.memory_space<vmem>>, vector<1x64x64xf32>
    %327 = vector.shape_cast %326 : vector<1x64x64xf32> to vector<64x64xf32>
    %cst_245 = arith.constant dense<0.000000e+00> : vector<16x64xf32>
    %328 = tpu.matmul %325, %327, %cst_245 {dimension_numbers = #tpu.dot_dimension_numbers<[1], [0], [0], [1], [0, 0, 1, 1], [], []>} : vector<16x64xf32>, vector<64x64xf32>, vector<16x64xf32> -> vector<16x64xf32>
    %329 = arith.addf %324, %328 : vector<16x64xf32>
    %c3_246 = arith.constant 3 : index
    %c0_247 = arith.constant 0 : index
    %330 = vector.load %arg22[%c3_246, %c0_247] : memref<24x64xf32, #tpu.memory_space<vmem>>, vector<16x64xf32>
    %c13_248 = arith.constant 13 : index
    %c0_249 = arith.constant 0 : index
    %c0_250 = arith.constant 0 : index
    %331 = vector.load %arg3[%c13_248, %c0_249, %c0_250] : memref<15x64x64xf32, #tpu.memory_space<vmem>>, vector<1x64x64xf32>
    %332 = vector.shape_cast %331 : vector<1x64x64xf32> to vector<64x64xf32>
    %cst_251 = arith.constant dense<0.000000e+00> : vector<16x64xf32>
    %333 = tpu.matmul %330, %332, %cst_251 {dimension_numbers = #tpu.dot_dimension_numbers<[1], [0], [0], [1], [0, 0, 1, 1], [], []>} : vector<16x64xf32>, vector<64x64xf32>, vector<16x64xf32> -> vector<16x64xf32>
    %334 = arith.addf %329, %333 : vector<16x64xf32>
    %c4_252 = arith.constant 4 : index
    %c0_253 = arith.constant 0 : index
    %335 = vector.load %arg22[%c4_252, %c0_253] : memref<24x64xf32, #tpu.memory_space<vmem>>, vector<16x64xf32>
    %c14_254 = arith.constant 14 : index
    %c0_255 = arith.constant 0 : index
    %c0_256 = arith.constant 0 : index
    %336 = vector.load %arg3[%c14_254, %c0_255, %c0_256] : memref<15x64x64xf32, #tpu.memory_space<vmem>>, vector<1x64x64xf32>
    %337 = vector.shape_cast %336 : vector<1x64x64xf32> to vector<64x64xf32>
    %cst_257 = arith.constant dense<0.000000e+00> : vector<16x64xf32>
    %338 = tpu.matmul %335, %337, %cst_257 {dimension_numbers = #tpu.dot_dimension_numbers<[1], [0], [0], [1], [0, 0, 1, 1], [], []>} : vector<16x64xf32>, vector<64x64xf32>, vector<16x64xf32> -> vector<16x64xf32>
    %339 = arith.addf %334, %338 : vector<16x64xf32>
    %340 = vector.broadcast %250 : vector<1x64xf32> to vector<16x64xf32>
    %341 = arith.addf %339, %340 : vector<16x64xf32>
    %cst_258 = arith.constant dense<0.000000e+00> : vector<16xf32>
    %342 = vector.multi_reduction <add>, %341, %cst_258 [1] : vector<16x64xf32> to vector<16xf32>
    %343 = vector.shape_cast %342 : vector<16xf32> to vector<16x1xf32>
    %cst_259 = arith.constant 6.400000e+01 : f32
    %344 = vector.broadcast %cst_259 : f32 to vector<16x1xf32>
    %345 = arith.divf %343, %344 : vector<16x1xf32>
    %346 = vector.broadcast %345 : vector<16x1xf32> to vector<16x64xf32>
    %347 = arith.subf %341, %346 : vector<16x64xf32>
    %348 = arith.mulf %347, %347 : vector<16x64xf32>
    %cst_260 = arith.constant dense<0.000000e+00> : vector<16xf32>
    %349 = vector.multi_reduction <add>, %348, %cst_260 [1] : vector<16x64xf32> to vector<16xf32>
    %350 = vector.shape_cast %349 : vector<16xf32> to vector<16x1xf32>
    %cst_261 = arith.constant 6.400000e+01 : f32
    %351 = vector.broadcast %cst_261 : f32 to vector<16x1xf32>
    %352 = arith.divf %350, %351 : vector<16x1xf32>
    %cst_262 = arith.constant 9.99999974E-6 : f32
    %353 = vector.broadcast %cst_262 : f32 to vector<16x1xf32>
    %354 = arith.addf %352, %353 : vector<16x1xf32>
    %355 = math.rsqrt %354 : vector<16x1xf32>
    %356 = vector.broadcast %355 : vector<16x1xf32> to vector<16x64xf32>
    %357 = arith.mulf %347, %356 : vector<16x64xf32>
    %cst_263 = arith.constant 5.000000e-01 : f32
    %358 = vector.broadcast %cst_263 : f32 to vector<16x64xf32>
    %359 = arith.mulf %358, %357 : vector<16x64xf32>
    %cst_264 = arith.constant 4.471500e-02 : f32
    %360 = vector.broadcast %cst_264 : f32 to vector<16x64xf32>
    %361 = arith.mulf %360, %357 : vector<16x64xf32>
    %362 = arith.mulf %361, %357 : vector<16x64xf32>
    %363 = arith.mulf %362, %357 : vector<16x64xf32>
    %364 = arith.addf %357, %363 : vector<16x64xf32>
    %cst_265 = arith.constant 0.797884583 : f32
    %365 = vector.broadcast %cst_265 : f32 to vector<16x64xf32>
    %366 = arith.mulf %365, %364 : vector<16x64xf32>
    %367 = math.tanh %366 : vector<16x64xf32>
    %cst_266 = arith.constant 1.000000e+00 : f32
    %368 = vector.broadcast %cst_266 : f32 to vector<16x64xf32>
    %369 = arith.addf %368, %367 : vector<16x64xf32>
    %370 = arith.mulf %359, %369 : vector<16x64xf32>
    %c0_267 = arith.constant 0 : index
    %c0_268 = arith.constant 0 : index
    %371 = vector.load %arg25[%c0_267, %c0_268] : memref<32x64xf32, #tpu.memory_space<vmem>>, vector<16x64xf32>
    tpu.vector_store %arg25[%c0_267, %c0_268], %310 {strides = array<i32>} : memref<32x64xf32, #tpu.memory_space<vmem>>, vector<16x64xf32>,
    %c16 = arith.constant 16 : index
    %c0_269 = arith.constant 0 : index
    %372 = vector.load %arg25[%c16, %c0_269] : memref<32x64xf32, #tpu.memory_space<vmem>>, vector<16x64xf32>
    tpu.vector_store %arg25[%c16, %c0_269], %370 {strides = array<i32>} : memref<32x64xf32, #tpu.memory_space<vmem>>, vector<16x64xf32>,
    %c0_270 = arith.constant 0 : index
    %c0_271 = arith.constant 0 : index
    %373 = vector.load %arg25[%c0_270, %c0_271] : memref<32x64xf32, #tpu.memory_space<vmem>>, vector<32x64xf32>
    %374 = arith.addf %5, %373 : vector<32x64xf32>
    %375 = tpu.iota {dimensions = array<i32: 0>} : vector<16x16xi32>
    %376 = tpu.iota {dimensions = array<i32: 1>} : vector<16x16xi32>
    %377 = arith.subi %375, %376 : vector<16x16xi32>
    %378 = arith.sitofp %377 : vector<16x16xi32> to vector<16x16xf32>
    %379 = math.absf %378 : vector<16x16xf32>
    %cst_272 = arith.constant 0.000000e+00 : f32
    %380 = vector.broadcast %cst_272 : f32 to vector<16x16xf32>
    %381 = arith.subf %380, %379 : vector<16x16xf32>
    %c0_273 = arith.constant 0 : index
    %c0_274 = arith.constant 0 : index
    %382 = vector.load %arg5[%c0_273, %c0_274] : memref<2x64xf32, #tpu.memory_space<vmem>>, vector<1x64xf32>
    %c0_275 = arith.constant 0 : index
    %c0_276 = arith.constant 0 : index
    %383 = vector.load %arg6[%c0_275, %c0_276] : memref<2x64xf32, #tpu.memory_space<vmem>>, vector<1x64xf32>
    %cst_277 = arith.constant dense<0.000000e+00> : vector<32xf32>
    %384 = vector.multi_reduction <add>, %374, %cst_277 [1] : vector<32x64xf32> to vector<32xf32>
    %385 = vector.shape_cast %384 : vector<32xf32> to vector<32x1xf32>
    %cst_278 = arith.constant 6.400000e+01 : f32
    %386 = vector.broadcast %cst_278 : f32 to vector<32x1xf32>
    %387 = arith.divf %385, %386 : vector<32x1xf32>
    %388 = vector.broadcast %387 : vector<32x1xf32> to vector<32x64xf32>
    %389 = arith.subf %374, %388 : vector<32x64xf32>
    %390 = arith.mulf %389, %389 : vector<32x64xf32>
    %cst_279 = arith.constant dense<0.000000e+00> : vector<32xf32>
    %391 = vector.multi_reduction <add>, %390, %cst_279 [1] : vector<32x64xf32> to vector<32xf32>
    %392 = vector.shape_cast %391 : vector<32xf32> to vector<32x1xf32>
    %cst_280 = arith.constant 6.400000e+01 : f32
    %393 = vector.broadcast %cst_280 : f32 to vector<32x1xf32>
    %394 = arith.divf %392, %393 : vector<32x1xf32>
    %cst_281 = arith.constant 9.99999997E-7 : f32
    %395 = vector.broadcast %cst_281 : f32 to vector<32x1xf32>
    %396 = arith.addf %394, %395 : vector<32x1xf32>
    %397 = math.rsqrt %396 : vector<32x1xf32>
    %398 = vector.broadcast %397 : vector<32x1xf32> to vector<32x64xf32>
    %399 = arith.mulf %389, %398 : vector<32x64xf32>
    %400 = vector.broadcast %382 : vector<1x64xf32> to vector<32x64xf32>
    %401 = arith.mulf %399, %400 : vector<32x64xf32>
    %402 = vector.broadcast %383 : vector<1x64xf32> to vector<32x64xf32>
    %403 = arith.addf %401, %402 : vector<32x64xf32>
    %c0_282 = arith.constant 0 : index
    %c0_283 = arith.constant 0 : index
    %c0_284 = arith.constant 0 : index
    %404 = vector.load %arg7[%c0_282, %c0_283, %c0_284] : memref<2x64x192xf32, #tpu.memory_space<vmem>>, vector<1x64x192xf32>
    %405 = vector.shape_cast %404 : vector<1x64x192xf32> to vector<64x192xf32>
    %cst_285 = arith.constant dense<0.000000e+00> : vector<32x192xf32>
    %406 = tpu.matmul %403, %405, %cst_285 {dimension_numbers = #tpu.dot_dimension_numbers<[1], [0], [0], [1], [0, 0, 1, 1], [], []>} : vector<32x64xf32>, vector<64x192xf32>, vector<32x192xf32> -> vector<32x192xf32>
    %c0_286 = arith.constant 0 : index
    %c0_287 = arith.constant 0 : index
    %407 = vector.load %arg8[%c0_286, %c0_287] : memref<2x192xf32, #tpu.memory_space<vmem>>, vector<1x192xf32>
    %408 = vector.broadcast %407 : vector<1x192xf32> to vector<32x192xf32>
    %409 = arith.addf %406, %408 : vector<32x192xf32>
    %c0_288 = arith.constant 0 : index
    %c0_289 = arith.constant 0 : index
    %410 = vector.load %arg23[%c0_288, %c0_289] : memref<32x192xf32, #tpu.memory_space<vmem>>, vector<32x192xf32>
    tpu.vector_store %arg23[%c0_288, %c0_289], %409 {strides = array<i32>} : memref<32x192xf32, #tpu.memory_space<vmem>>, vector<32x192xf32>,
    %c0_290 = arith.constant 0 : index
    %c0_291 = arith.constant 0 : index
    %411 = vector.load %arg23[%c0_290, %c0_291] : memref<32x192xf32, #tpu.memory_space<vmem>>, vector<16x16xf32>
    %c0_292 = arith.constant 0 : index
    %c64 = arith.constant 64 : index
    %412 = vector.load %arg23[%c0_292, %c64] : memref<32x192xf32, #tpu.memory_space<vmem>>, vector<16x16xf32>
    %c0_293 = arith.constant 0 : index
    %c128 = arith.constant 128 : index
    %413 = vector.load %arg23[%c0_293, %c128] : memref<32x192xf32, #tpu.memory_space<vmem>>, vector<16x16xf32>
    %414 = tpu.transpose %412, [1, 0] : vector<16x16xf32> -> vector<16x16xf32>
    %cst_294 = arith.constant dense<0.000000e+00> : vector<16x16xf32>
    %415 = tpu.matmul %411, %414, %cst_294 {dimension_numbers = #tpu.dot_dimension_numbers<[1], [0], [0], [1], [0, 0, 1, 1], [], []>} : vector<16x16xf32>, vector<16x16xf32>, vector<16x16xf32> -> vector<16x16xf32>
    %cst_295 = arith.constant 2.500000e-01 : f32
    %416 = vector.broadcast %cst_295 : f32 to vector<16x16xf32>
    %417 = arith.mulf %415, %416 : vector<16x16xf32>
    %cst_296 = arith.constant 2.500000e-01 : f32
    %418 = vector.broadcast %cst_296 : f32 to vector<16x16xf32>
    %419 = arith.mulf %381, %418 : vector<16x16xf32>
    %420 = arith.addf %417, %419 : vector<16x16xf32>
    %cst_297 = arith.constant dense<0xFF800000> : vector<16xf32>
    %421 = vector.multi_reduction <maximumf>, %420, %cst_297 [1] : vector<16x16xf32> to vector<16xf32>
    %422 = vector.shape_cast %421 : vector<16xf32> to vector<16x1xf32>
    %423 = vector.broadcast %422 : vector<16x1xf32> to vector<16x16xf32>
    %424 = arith.subf %420, %423 : vector<16x16xf32>
    %425 = math.exp %424 : vector<16x16xf32>
    %cst_298 = arith.constant dense<0.000000e+00> : vector<16xf32>
    %426 = vector.multi_reduction <add>, %425, %cst_298 [1] : vector<16x16xf32> to vector<16xf32>
    %427 = vector.shape_cast %426 : vector<16xf32> to vector<16x1xf32>
    %428 = tpu.reciprocal %427 {approx = true} : vector<16x1xf32> -> vector<16x1xf32>
    %429 = vector.broadcast %428 : vector<16x1xf32> to vector<16x16xf32>
    %430 = arith.mulf %425, %429 : vector<16x16xf32>
    %cst_299 = arith.constant dense<0.000000e+00> : vector<16x16xf32>
    %431 = tpu.matmul %430, %413, %cst_299 {dimension_numbers = #tpu.dot_dimension_numbers<[1], [0], [0], [1], [0, 0, 1, 1], [], []>} : vector<16x16xf32>, vector<16x16xf32>, vector<16x16xf32> -> vector<16x16xf32>
    %c0_300 = arith.constant 0 : index
    %c0_301 = arith.constant 0 : index
    %432 = vector.load %arg24[%c0_300, %c0_301] : memref<32x64xf32, #tpu.memory_space<vmem>>, vector<16x16xf32>
    tpu.vector_store %arg24[%c0_300, %c0_301], %431 {strides = array<i32>} : memref<32x64xf32, #tpu.memory_space<vmem>>, vector<16x16xf32>,
    %c0_302 = arith.constant 0 : index
    %c16_303 = arith.constant 16 : index
    %433 = vector.load %arg23[%c0_302, %c16_303] : memref<32x192xf32, #tpu.memory_space<vmem>>, vector<16x16xf32>
    %c0_304 = arith.constant 0 : index
    %c80 = arith.constant 80 : index
    %434 = vector.load %arg23[%c0_304, %c80] : memref<32x192xf32, #tpu.memory_space<vmem>>, vector<16x16xf32>
    %c0_305 = arith.constant 0 : index
    %c144 = arith.constant 144 : index
    %435 = vector.load %arg23[%c0_305, %c144] : memref<32x192xf32, #tpu.memory_space<vmem>>, vector<16x16xf32>
    %436 = tpu.transpose %434, [1, 0] : vector<16x16xf32> -> vector<16x16xf32>
    %cst_306 = arith.constant dense<0.000000e+00> : vector<16x16xf32>
    %437 = tpu.matmul %433, %436, %cst_306 {dimension_numbers = #tpu.dot_dimension_numbers<[1], [0], [0], [1], [0, 0, 1, 1], [], []>} : vector<16x16xf32>, vector<16x16xf32>, vector<16x16xf32> -> vector<16x16xf32>
    %cst_307 = arith.constant 2.500000e-01 : f32
    %438 = vector.broadcast %cst_307 : f32 to vector<16x16xf32>
    %439 = arith.mulf %437, %438 : vector<16x16xf32>
    %cst_308 = arith.constant 6.250000e-02 : f32
    %440 = vector.broadcast %cst_308 : f32 to vector<16x16xf32>
    %441 = arith.mulf %381, %440 : vector<16x16xf32>
    %442 = arith.addf %439, %441 : vector<16x16xf32>
    %cst_309 = arith.constant dense<0xFF800000> : vector<16xf32>
    %443 = vector.multi_reduction <maximumf>, %442, %cst_309 [1] : vector<16x16xf32> to vector<16xf32>
    %444 = vector.shape_cast %443 : vector<16xf32> to vector<16x1xf32>
    %445 = vector.broadcast %444 : vector<16x1xf32> to vector<16x16xf32>
    %446 = arith.subf %442, %445 : vector<16x16xf32>
    %447 = math.exp %446 : vector<16x16xf32>
    %cst_310 = arith.constant dense<0.000000e+00> : vector<16xf32>
    %448 = vector.multi_reduction <add>, %447, %cst_310 [1] : vector<16x16xf32> to vector<16xf32>
    %449 = vector.shape_cast %448 : vector<16xf32> to vector<16x1xf32>
    %450 = tpu.reciprocal %449 {approx = true} : vector<16x1xf32> -> vector<16x1xf32>
    %451 = vector.broadcast %450 : vector<16x1xf32> to vector<16x16xf32>
    %452 = arith.mulf %447, %451 : vector<16x16xf32>
    %cst_311 = arith.constant dense<0.000000e+00> : vector<16x16xf32>
    %453 = tpu.matmul %452, %435, %cst_311 {dimension_numbers = #tpu.dot_dimension_numbers<[1], [0], [0], [1], [0, 0, 1, 1], [], []>} : vector<16x16xf32>, vector<16x16xf32>, vector<16x16xf32> -> vector<16x16xf32>
    %c0_312 = arith.constant 0 : index
    %c16_313 = arith.constant 16 : index
    %454 = vector.load %arg24[%c0_312, %c16_313] : memref<32x64xf32, #tpu.memory_space<vmem>>, vector<16x16xf32>
    tpu.vector_store %arg24[%c0_312, %c16_313], %453 {strides = array<i32>} : memref<32x64xf32, #tpu.memory_space<vmem>>, vector<16x16xf32>,
    %c0_314 = arith.constant 0 : index
    %c32 = arith.constant 32 : index
    %455 = vector.load %arg23[%c0_314, %c32] : memref<32x192xf32, #tpu.memory_space<vmem>>, vector<16x16xf32>
    %c0_315 = arith.constant 0 : index
    %c96 = arith.constant 96 : index
    %456 = vector.load %arg23[%c0_315, %c96] : memref<32x192xf32, #tpu.memory_space<vmem>>, vector<16x16xf32>
    %c0_316 = arith.constant 0 : index
    %c160 = arith.constant 160 : index
    %457 = vector.load %arg23[%c0_316, %c160] : memref<32x192xf32, #tpu.memory_space<vmem>>, vector<16x16xf32>
    %458 = tpu.transpose %456, [1, 0] : vector<16x16xf32> -> vector<16x16xf32>
    %cst_317 = arith.constant dense<0.000000e+00> : vector<16x16xf32>
    %459 = tpu.matmul %455, %458, %cst_317 {dimension_numbers = #tpu.dot_dimension_numbers<[1], [0], [0], [1], [0, 0, 1, 1], [], []>} : vector<16x16xf32>, vector<16x16xf32>, vector<16x16xf32> -> vector<16x16xf32>
    %cst_318 = arith.constant 2.500000e-01 : f32
    %460 = vector.broadcast %cst_318 : f32 to vector<16x16xf32>
    %461 = arith.mulf %459, %460 : vector<16x16xf32>
    %cst_319 = arith.constant 1.562500e-02 : f32
    %462 = vector.broadcast %cst_319 : f32 to vector<16x16xf32>
    %463 = arith.mulf %381, %462 : vector<16x16xf32>
    %464 = arith.addf %461, %463 : vector<16x16xf32>
    %cst_320 = arith.constant dense<0xFF800000> : vector<16xf32>
    %465 = vector.multi_reduction <maximumf>, %464, %cst_320 [1] : vector<16x16xf32> to vector<16xf32>
    %466 = vector.shape_cast %465 : vector<16xf32> to vector<16x1xf32>
    %467 = vector.broadcast %466 : vector<16x1xf32> to vector<16x16xf32>
    %468 = arith.subf %464, %467 : vector<16x16xf32>
    %469 = math.exp %468 : vector<16x16xf32>
    %cst_321 = arith.constant dense<0.000000e+00> : vector<16xf32>
    %470 = vector.multi_reduction <add>, %469, %cst_321 [1] : vector<16x16xf32> to vector<16xf32>
    %471 = vector.shape_cast %470 : vector<16xf32> to vector<16x1xf32>
    %472 = tpu.reciprocal %471 {approx = true} : vector<16x1xf32> -> vector<16x1xf32>
    %473 = vector.broadcast %472 : vector<16x1xf32> to vector<16x16xf32>
    %474 = arith.mulf %469, %473 : vector<16x16xf32>
    %cst_322 = arith.constant dense<0.000000e+00> : vector<16x16xf32>
    %475 = tpu.matmul %474, %457, %cst_322 {dimension_numbers = #tpu.dot_dimension_numbers<[1], [0], [0], [1], [0, 0, 1, 1], [], []>} : vector<16x16xf32>, vector<16x16xf32>, vector<16x16xf32> -> vector<16x16xf32>
    %c0_323 = arith.constant 0 : index
    %c32_324 = arith.constant 32 : index
    %476 = vector.load %arg24[%c0_323, %c32_324] : memref<32x64xf32, #tpu.memory_space<vmem>>, vector<16x16xf32>
    tpu.vector_store %arg24[%c0_323, %c32_324], %475 {strides = array<i32>} : memref<32x64xf32, #tpu.memory_space<vmem>>, vector<16x16xf32>,
    %c0_325 = arith.constant 0 : index
    %c48 = arith.constant 48 : index
    %477 = vector.load %arg23[%c0_325, %c48] : memref<32x192xf32, #tpu.memory_space<vmem>>, vector<16x16xf32>
    %c0_326 = arith.constant 0 : index
    %c112 = arith.constant 112 : index
    %478 = vector.load %arg23[%c0_326, %c112] : memref<32x192xf32, #tpu.memory_space<vmem>>, vector<16x16xf32>
    %c0_327 = arith.constant 0 : index
    %c176 = arith.constant 176 : index
    %479 = vector.load %arg23[%c0_327, %c176] : memref<32x192xf32, #tpu.memory_space<vmem>>, vector<16x16xf32>
    %480 = tpu.transpose %478, [1, 0] : vector<16x16xf32> -> vector<16x16xf32>
    %cst_328 = arith.constant dense<0.000000e+00> : vector<16x16xf32>
    %481 = tpu.matmul %477, %480, %cst_328 {dimension_numbers = #tpu.dot_dimension_numbers<[1], [0], [0], [1], [0, 0, 1, 1], [], []>} : vector<16x16xf32>, vector<16x16xf32>, vector<16x16xf32> -> vector<16x16xf32>
    %cst_329 = arith.constant 2.500000e-01 : f32
    %482 = vector.broadcast %cst_329 : f32 to vector<16x16xf32>
    %483 = arith.mulf %481, %482 : vector<16x16xf32>
    %cst_330 = arith.constant 3.906250e-03 : f32
    %484 = vector.broadcast %cst_330 : f32 to vector<16x16xf32>
    %485 = arith.mulf %381, %484 : vector<16x16xf32>
    %486 = arith.addf %483, %485 : vector<16x16xf32>
    %cst_331 = arith.constant dense<0xFF800000> : vector<16xf32>
    %487 = vector.multi_reduction <maximumf>, %486, %cst_331 [1] : vector<16x16xf32> to vector<16xf32>
    %488 = vector.shape_cast %487 : vector<16xf32> to vector<16x1xf32>
    %489 = vector.broadcast %488 : vector<16x1xf32> to vector<16x16xf32>
    %490 = arith.subf %486, %489 : vector<16x16xf32>
    %491 = math.exp %490 : vector<16x16xf32>
    %cst_332 = arith.constant dense<0.000000e+00> : vector<16xf32>
    %492 = vector.multi_reduction <add>, %491, %cst_332 [1] : vector<16x16xf32> to vector<16xf32>
    %493 = vector.shape_cast %492 : vector<16xf32> to vector<16x1xf32>
    %494 = tpu.reciprocal %493 {approx = true} : vector<16x1xf32> -> vector<16x1xf32>
    %495 = vector.broadcast %494 : vector<16x1xf32> to vector<16x16xf32>
    %496 = arith.mulf %491, %495 : vector<16x16xf32>
    %cst_333 = arith.constant dense<0.000000e+00> : vector<16x16xf32>
    %497 = tpu.matmul %496, %479, %cst_333 {dimension_numbers = #tpu.dot_dimension_numbers<[1], [0], [0], [1], [0, 0, 1, 1], [], []>} : vector<16x16xf32>, vector<16x16xf32>, vector<16x16xf32> -> vector<16x16xf32>
    %c0_334 = arith.constant 0 : index
    %c48_335 = arith.constant 48 : index
    %498 = vector.load %arg24[%c0_334, %c48_335] : memref<32x64xf32, #tpu.memory_space<vmem>>, vector<16x16xf32>
    tpu.vector_store %arg24[%c0_334, %c48_335], %497 {strides = array<i32>} : memref<32x64xf32, #tpu.memory_space<vmem>>, vector<16x16xf32>,
    %c16_336 = arith.constant 16 : index
    %c0_337 = arith.constant 0 : index
    %499 = vector.load %arg23[%c16_336, %c0_337] : memref<32x192xf32, #tpu.memory_space<vmem>>, vector<16x16xf32>
    %c16_338 = arith.constant 16 : index
    %c64_339 = arith.constant 64 : index
    %500 = vector.load %arg23[%c16_338, %c64_339] : memref<32x192xf32, #tpu.memory_space<vmem>>, vector<16x16xf32>
    %c16_340 = arith.constant 16 : index
    %c128_341 = arith.constant 128 : index
    %501 = vector.load %arg23[%c16_340, %c128_341] : memref<32x192xf32, #tpu.memory_space<vmem>>, vector<16x16xf32>
    %502 = tpu.transpose %500, [1, 0] : vector<16x16xf32> -> vector<16x16xf32>
    %cst_342 = arith.constant dense<0.000000e+00> : vector<16x16xf32>
    %503 = tpu.matmul %499, %502, %cst_342 {dimension_numbers = #tpu.dot_dimension_numbers<[1], [0], [0], [1], [0, 0, 1, 1], [], []>} : vector<16x16xf32>, vector<16x16xf32>, vector<16x16xf32> -> vector<16x16xf32>
    %cst_343 = arith.constant 2.500000e-01 : f32
    %504 = vector.broadcast %cst_343 : f32 to vector<16x16xf32>
    %505 = arith.mulf %503, %504 : vector<16x16xf32>
    %cst_344 = arith.constant 2.500000e-01 : f32
    %506 = vector.broadcast %cst_344 : f32 to vector<16x16xf32>
    %507 = arith.mulf %381, %506 : vector<16x16xf32>
    %508 = arith.addf %505, %507 : vector<16x16xf32>
    %cst_345 = arith.constant dense<0xFF800000> : vector<16xf32>
    %509 = vector.multi_reduction <maximumf>, %508, %cst_345 [1] : vector<16x16xf32> to vector<16xf32>
    %510 = vector.shape_cast %509 : vector<16xf32> to vector<16x1xf32>
    %511 = vector.broadcast %510 : vector<16x1xf32> to vector<16x16xf32>
    %512 = arith.subf %508, %511 : vector<16x16xf32>
    %513 = math.exp %512 : vector<16x16xf32>
    %cst_346 = arith.constant dense<0.000000e+00> : vector<16xf32>
    %514 = vector.multi_reduction <add>, %513, %cst_346 [1] : vector<16x16xf32> to vector<16xf32>
    %515 = vector.shape_cast %514 : vector<16xf32> to vector<16x1xf32>
    %516 = tpu.reciprocal %515 {approx = true} : vector<16x1xf32> -> vector<16x1xf32>
    %517 = vector.broadcast %516 : vector<16x1xf32> to vector<16x16xf32>
    %518 = arith.mulf %513, %517 : vector<16x16xf32>
    %cst_347 = arith.constant dense<0.000000e+00> : vector<16x16xf32>
    %519 = tpu.matmul %518, %501, %cst_347 {dimension_numbers = #tpu.dot_dimension_numbers<[1], [0], [0], [1], [0, 0, 1, 1], [], []>} : vector<16x16xf32>, vector<16x16xf32>, vector<16x16xf32> -> vector<16x16xf32>
    %c16_348 = arith.constant 16 : index
    %c0_349 = arith.constant 0 : index
    %520 = vector.load %arg24[%c16_348, %c0_349] : memref<32x64xf32, #tpu.memory_space<vmem>>, vector<16x16xf32>
    tpu.vector_store %arg24[%c16_348, %c0_349], %519 {strides = array<i32>} : memref<32x64xf32, #tpu.memory_space<vmem>>, vector<16x16xf32>,
    %c16_350 = arith.constant 16 : index
    %c16_351 = arith.constant 16 : index
    %521 = vector.load %arg23[%c16_350, %c16_351] : memref<32x192xf32, #tpu.memory_space<vmem>>, vector<16x16xf32>
    %c16_352 = arith.constant 16 : index
    %c80_353 = arith.constant 80 : index
    %522 = vector.load %arg23[%c16_352, %c80_353] : memref<32x192xf32, #tpu.memory_space<vmem>>, vector<16x16xf32>
    %c16_354 = arith.constant 16 : index
    %c144_355 = arith.constant 144 : index
    %523 = vector.load %arg23[%c16_354, %c144_355] : memref<32x192xf32, #tpu.memory_space<vmem>>, vector<16x16xf32>
    %524 = tpu.transpose %522, [1, 0] : vector<16x16xf32> -> vector<16x16xf32>
    %cst_356 = arith.constant dense<0.000000e+00> : vector<16x16xf32>
    %525 = tpu.matmul %521, %524, %cst_356 {dimension_numbers = #tpu.dot_dimension_numbers<[1], [0], [0], [1], [0, 0, 1, 1], [], []>} : vector<16x16xf32>, vector<16x16xf32>, vector<16x16xf32> -> vector<16x16xf32>
    %cst_357 = arith.constant 2.500000e-01 : f32
    %526 = vector.broadcast %cst_357 : f32 to vector<16x16xf32>
    %527 = arith.mulf %525, %526 : vector<16x16xf32>
    %cst_358 = arith.constant 6.250000e-02 : f32
    %528 = vector.broadcast %cst_358 : f32 to vector<16x16xf32>
    %529 = arith.mulf %381, %528 : vector<16x16xf32>
    %530 = arith.addf %527, %529 : vector<16x16xf32>
    %cst_359 = arith.constant dense<0xFF800000> : vector<16xf32>
    %531 = vector.multi_reduction <maximumf>, %530, %cst_359 [1] : vector<16x16xf32> to vector<16xf32>
    %532 = vector.shape_cast %531 : vector<16xf32> to vector<16x1xf32>
    %533 = vector.broadcast %532 : vector<16x1xf32> to vector<16x16xf32>
    %534 = arith.subf %530, %533 : vector<16x16xf32>
    %535 = math.exp %534 : vector<16x16xf32>
    %cst_360 = arith.constant dense<0.000000e+00> : vector<16xf32>
    %536 = vector.multi_reduction <add>, %535, %cst_360 [1] : vector<16x16xf32> to vector<16xf32>
    %537 = vector.shape_cast %536 : vector<16xf32> to vector<16x1xf32>
    %538 = tpu.reciprocal %537 {approx = true} : vector<16x1xf32> -> vector<16x1xf32>
    %539 = vector.broadcast %538 : vector<16x1xf32> to vector<16x16xf32>
    %540 = arith.mulf %535, %539 : vector<16x16xf32>
    %cst_361 = arith.constant dense<0.000000e+00> : vector<16x16xf32>
    %541 = tpu.matmul %540, %523, %cst_361 {dimension_numbers = #tpu.dot_dimension_numbers<[1], [0], [0], [1], [0, 0, 1, 1], [], []>} : vector<16x16xf32>, vector<16x16xf32>, vector<16x16xf32> -> vector<16x16xf32>
    %c16_362 = arith.constant 16 : index
    %c16_363 = arith.constant 16 : index
    %542 = vector.load %arg24[%c16_362, %c16_363] : memref<32x64xf32, #tpu.memory_space<vmem>>, vector<16x16xf32>
    tpu.vector_store %arg24[%c16_362, %c16_363], %541 {strides = array<i32>} : memref<32x64xf32, #tpu.memory_space<vmem>>, vector<16x16xf32>,
    %c16_364 = arith.constant 16 : index
    %c32_365 = arith.constant 32 : index
    %543 = vector.load %arg23[%c16_364, %c32_365] : memref<32x192xf32, #tpu.memory_space<vmem>>, vector<16x16xf32>
    %c16_366 = arith.constant 16 : index
    %c96_367 = arith.constant 96 : index
    %544 = vector.load %arg23[%c16_366, %c96_367] : memref<32x192xf32, #tpu.memory_space<vmem>>, vector<16x16xf32>
    %c16_368 = arith.constant 16 : index
    %c160_369 = arith.constant 160 : index
    %545 = vector.load %arg23[%c16_368, %c160_369] : memref<32x192xf32, #tpu.memory_space<vmem>>, vector<16x16xf32>
    %546 = tpu.transpose %544, [1, 0] : vector<16x16xf32> -> vector<16x16xf32>
    %cst_370 = arith.constant dense<0.000000e+00> : vector<16x16xf32>
    %547 = tpu.matmul %543, %546, %cst_370 {dimension_numbers = #tpu.dot_dimension_numbers<[1], [0], [0], [1], [0, 0, 1, 1], [], []>} : vector<16x16xf32>, vector<16x16xf32>, vector<16x16xf32> -> vector<16x16xf32>
    %cst_371 = arith.constant 2.500000e-01 : f32
    %548 = vector.broadcast %cst_371 : f32 to vector<16x16xf32>
    %549 = arith.mulf %547, %548 : vector<16x16xf32>
    %cst_372 = arith.constant 1.562500e-02 : f32
    %550 = vector.broadcast %cst_372 : f32 to vector<16x16xf32>
    %551 = arith.mulf %381, %550 : vector<16x16xf32>
    %552 = arith.addf %549, %551 : vector<16x16xf32>
    %cst_373 = arith.constant dense<0xFF800000> : vector<16xf32>
    %553 = vector.multi_reduction <maximumf>, %552, %cst_373 [1] : vector<16x16xf32> to vector<16xf32>
    %554 = vector.shape_cast %553 : vector<16xf32> to vector<16x1xf32>
    %555 = vector.broadcast %554 : vector<16x1xf32> to vector<16x16xf32>
    %556 = arith.subf %552, %555 : vector<16x16xf32>
    %557 = math.exp %556 : vector<16x16xf32>
    %cst_374 = arith.constant dense<0.000000e+00> : vector<16xf32>
    %558 = vector.multi_reduction <add>, %557, %cst_374 [1] : vector<16x16xf32> to vector<16xf32>
    %559 = vector.shape_cast %558 : vector<16xf32> to vector<16x1xf32>
    %560 = tpu.reciprocal %559 {approx = true} : vector<16x1xf32> -> vector<16x1xf32>
    %561 = vector.broadcast %560 : vector<16x1xf32> to vector<16x16xf32>
    %562 = arith.mulf %557, %561 : vector<16x16xf32>
    %cst_375 = arith.constant dense<0.000000e+00> : vector<16x16xf32>
    %563 = tpu.matmul %562, %545, %cst_375 {dimension_numbers = #tpu.dot_dimension_numbers<[1], [0], [0], [1], [0, 0, 1, 1], [], []>} : vector<16x16xf32>, vector<16x16xf32>, vector<16x16xf32> -> vector<16x16xf32>
    %c16_376 = arith.constant 16 : index
    %c32_377 = arith.constant 32 : index
    %564 = vector.load %arg24[%c16_376, %c32_377] : memref<32x64xf32, #tpu.memory_space<vmem>>, vector<16x16xf32>
    tpu.vector_store %arg24[%c16_376, %c32_377], %563 {strides = array<i32>} : memref<32x64xf32, #tpu.memory_space<vmem>>, vector<16x16xf32>,
    %c16_378 = arith.constant 16 : index
    %c48_379 = arith.constant 48 : index
    %565 = vector.load %arg23[%c16_378, %c48_379] : memref<32x192xf32, #tpu.memory_space<vmem>>, vector<16x16xf32>
    %c16_380 = arith.constant 16 : index
    %c112_381 = arith.constant 112 : index
    %566 = vector.load %arg23[%c16_380, %c112_381] : memref<32x192xf32, #tpu.memory_space<vmem>>, vector<16x16xf32>
    %c16_382 = arith.constant 16 : index
    %c176_383 = arith.constant 176 : index
    %567 = vector.load %arg23[%c16_382, %c176_383] : memref<32x192xf32, #tpu.memory_space<vmem>>, vector<16x16xf32>
    %568 = tpu.transpose %566, [1, 0] : vector<16x16xf32> -> vector<16x16xf32>
    %cst_384 = arith.constant dense<0.000000e+00> : vector<16x16xf32>
    %569 = tpu.matmul %565, %568, %cst_384 {dimension_numbers = #tpu.dot_dimension_numbers<[1], [0], [0], [1], [0, 0, 1, 1], [], []>} : vector<16x16xf32>, vector<16x16xf32>, vector<16x16xf32> -> vector<16x16xf32>
    %cst_385 = arith.constant 2.500000e-01 : f32
    %570 = vector.broadcast %cst_385 : f32 to vector<16x16xf32>
    %571 = arith.mulf %569, %570 : vector<16x16xf32>
    %cst_386 = arith.constant 3.906250e-03 : f32
    %572 = vector.broadcast %cst_386 : f32 to vector<16x16xf32>
    %573 = arith.mulf %381, %572 : vector<16x16xf32>
    %574 = arith.addf %571, %573 : vector<16x16xf32>
    %cst_387 = arith.constant dense<0xFF800000> : vector<16xf32>
    %575 = vector.multi_reduction <maximumf>, %574, %cst_387 [1] : vector<16x16xf32> to vector<16xf32>
    %576 = vector.shape_cast %575 : vector<16xf32> to vector<16x1xf32>
    %577 = vector.broadcast %576 : vector<16x1xf32> to vector<16x16xf32>
    %578 = arith.subf %574, %577 : vector<16x16xf32>
    %579 = math.exp %578 : vector<16x16xf32>
    %cst_388 = arith.constant dense<0.000000e+00> : vector<16xf32>
    %580 = vector.multi_reduction <add>, %579, %cst_388 [1] : vector<16x16xf32> to vector<16xf32>
    %581 = vector.shape_cast %580 : vector<16xf32> to vector<16x1xf32>
    %582 = tpu.reciprocal %581 {approx = true} : vector<16x1xf32> -> vector<16x1xf32>
    %583 = vector.broadcast %582 : vector<16x1xf32> to vector<16x16xf32>
    %584 = arith.mulf %579, %583 : vector<16x16xf32>
    %cst_389 = arith.constant dense<0.000000e+00> : vector<16x16xf32>
    %585 = tpu.matmul %584, %567, %cst_389 {dimension_numbers = #tpu.dot_dimension_numbers<[1], [0], [0], [1], [0, 0, 1, 1], [], []>} : vector<16x16xf32>, vector<16x16xf32>, vector<16x16xf32> -> vector<16x16xf32>
    %c16_390 = arith.constant 16 : index
    %c48_391 = arith.constant 48 : index
    %586 = vector.load %arg24[%c16_390, %c48_391] : memref<32x64xf32, #tpu.memory_space<vmem>>, vector<16x16xf32>
    tpu.vector_store %arg24[%c16_390, %c48_391], %585 {strides = array<i32>} : memref<32x64xf32, #tpu.memory_space<vmem>>, vector<16x16xf32>,
    %c0_392 = arith.constant 0 : index
    %c0_393 = arith.constant 0 : index
    %587 = vector.load %arg24[%c0_392, %c0_393] : memref<32x64xf32, #tpu.memory_space<vmem>>, vector<32x64xf32>
    %c0_394 = arith.constant 0 : index
    %c0_395 = arith.constant 0 : index
    %c0_396 = arith.constant 0 : index
    %588 = vector.load %arg9[%c0_394, %c0_395, %c0_396] : memref<2x64x64xf32, #tpu.memory_space<vmem>>, vector<1x64x64xf32>
    %589 = vector.shape_cast %588 : vector<1x64x64xf32> to vector<64x64xf32>
    %cst_397 = arith.constant dense<0.000000e+00> : vector<32x64xf32>
    %590 = tpu.matmul %587, %589, %cst_397 {dimension_numbers = #tpu.dot_dimension_numbers<[1], [0], [0], [1], [0, 0, 1, 1], [], []>} : vector<32x64xf32>, vector<64x64xf32>, vector<32x64xf32> -> vector<32x64xf32>
    %c0_398 = arith.constant 0 : index
    %c0_399 = arith.constant 0 : index
    %591 = vector.load %arg10[%c0_398, %c0_399] : memref<2x64xf32, #tpu.memory_space<vmem>>, vector<1x64xf32>
    %592 = vector.broadcast %591 : vector<1x64xf32> to vector<32x64xf32>
    %593 = arith.addf %590, %592 : vector<32x64xf32>
    %594 = arith.addf %374, %593 : vector<32x64xf32>
    %c0_400 = arith.constant 0 : index
    %c0_401 = arith.constant 0 : index
    %595 = vector.load %arg11[%c0_400, %c0_401] : memref<2x64xf32, #tpu.memory_space<vmem>>, vector<1x64xf32>
    %c0_402 = arith.constant 0 : index
    %c0_403 = arith.constant 0 : index
    %596 = vector.load %arg12[%c0_402, %c0_403] : memref<2x64xf32, #tpu.memory_space<vmem>>, vector<1x64xf32>
    %cst_404 = arith.constant dense<0.000000e+00> : vector<32xf32>
    %597 = vector.multi_reduction <add>, %594, %cst_404 [1] : vector<32x64xf32> to vector<32xf32>
    %598 = vector.shape_cast %597 : vector<32xf32> to vector<32x1xf32>
    %cst_405 = arith.constant 6.400000e+01 : f32
    %599 = vector.broadcast %cst_405 : f32 to vector<32x1xf32>
    %600 = arith.divf %598, %599 : vector<32x1xf32>
    %601 = vector.broadcast %600 : vector<32x1xf32> to vector<32x64xf32>
    %602 = arith.subf %594, %601 : vector<32x64xf32>
    %603 = arith.mulf %602, %602 : vector<32x64xf32>
    %cst_406 = arith.constant dense<0.000000e+00> : vector<32xf32>
    %604 = vector.multi_reduction <add>, %603, %cst_406 [1] : vector<32x64xf32> to vector<32xf32>
    %605 = vector.shape_cast %604 : vector<32xf32> to vector<32x1xf32>
    %cst_407 = arith.constant 6.400000e+01 : f32
    %606 = vector.broadcast %cst_407 : f32 to vector<32x1xf32>
    %607 = arith.divf %605, %606 : vector<32x1xf32>
    %cst_408 = arith.constant 9.99999997E-7 : f32
    %608 = vector.broadcast %cst_408 : f32 to vector<32x1xf32>
    %609 = arith.addf %607, %608 : vector<32x1xf32>
    %610 = math.rsqrt %609 : vector<32x1xf32>
    %611 = vector.broadcast %610 : vector<32x1xf32> to vector<32x64xf32>
    %612 = arith.mulf %602, %611 : vector<32x64xf32>
    %613 = vector.broadcast %595 : vector<1x64xf32> to vector<32x64xf32>
    %614 = arith.mulf %612, %613 : vector<32x64xf32>
    %615 = vector.broadcast %596 : vector<1x64xf32> to vector<32x64xf32>
    %616 = arith.addf %614, %615 : vector<32x64xf32>
    %c0_409 = arith.constant 0 : index
    %c0_410 = arith.constant 0 : index
    %c0_411 = arith.constant 0 : index
    %617 = vector.load %arg13[%c0_409, %c0_410, %c0_411] : memref<2x64x256xf32, #tpu.memory_space<vmem>>, vector<1x64x256xf32>
    %618 = vector.shape_cast %617 : vector<1x64x256xf32> to vector<64x256xf32>
    %cst_412 = arith.constant dense<0.000000e+00> : vector<32x256xf32>
    %619 = tpu.matmul %616, %618, %cst_412 {dimension_numbers = #tpu.dot_dimension_numbers<[1], [0], [0], [1], [0, 0, 1, 1], [], []>} : vector<32x64xf32>, vector<64x256xf32>, vector<32x256xf32> -> vector<32x256xf32>
    %c0_413 = arith.constant 0 : index
    %c0_414 = arith.constant 0 : index
    %620 = vector.load %arg14[%c0_413, %c0_414] : memref<2x256xf32, #tpu.memory_space<vmem>>, vector<1x256xf32>
    %621 = vector.broadcast %620 : vector<1x256xf32> to vector<32x256xf32>
    %622 = arith.addf %619, %621 : vector<32x256xf32>
    %cst_415 = arith.constant 5.000000e-01 : f32
    %623 = vector.broadcast %cst_415 : f32 to vector<32x256xf32>
    %624 = arith.mulf %623, %622 : vector<32x256xf32>
    %cst_416 = arith.constant 4.471500e-02 : f32
    %625 = vector.broadcast %cst_416 : f32 to vector<32x256xf32>
    %626 = arith.mulf %625, %622 : vector<32x256xf32>
    %627 = arith.mulf %626, %622 : vector<32x256xf32>
    %628 = arith.mulf %627, %622 : vector<32x256xf32>
    %629 = arith.addf %622, %628 : vector<32x256xf32>
    %cst_417 = arith.constant 0.797884583 : f32
    %630 = vector.broadcast %cst_417 : f32 to vector<32x256xf32>
    %631 = arith.mulf %630, %629 : vector<32x256xf32>
    %632 = math.tanh %631 : vector<32x256xf32>
    %cst_418 = arith.constant 1.000000e+00 : f32
    %633 = vector.broadcast %cst_418 : f32 to vector<32x256xf32>
    %634 = arith.addf %633, %632 : vector<32x256xf32>
    %635 = arith.mulf %624, %634 : vector<32x256xf32>
    %c0_419 = arith.constant 0 : index
    %c0_420 = arith.constant 0 : index
    %c0_421 = arith.constant 0 : index
    %636 = vector.load %arg15[%c0_419, %c0_420, %c0_421] : memref<2x256x64xf32, #tpu.memory_space<vmem>>, vector<1x256x64xf32>
    %637 = vector.shape_cast %636 : vector<1x256x64xf32> to vector<256x64xf32>
    %cst_422 = arith.constant dense<0.000000e+00> : vector<32x64xf32>
    %638 = tpu.matmul %635, %637, %cst_422 {dimension_numbers = #tpu.dot_dimension_numbers<[1], [0], [0], [1], [0, 0, 1, 1], [], []>} : vector<32x256xf32>, vector<256x64xf32>, vector<32x64xf32> -> vector<32x64xf32>
    %c0_423 = arith.constant 0 : index
    %c0_424 = arith.constant 0 : index
    %639 = vector.load %arg16[%c0_423, %c0_424] : memref<2x64xf32, #tpu.memory_space<vmem>>, vector<1x64xf32>
    %640 = vector.broadcast %639 : vector<1x64xf32> to vector<32x64xf32>
    %641 = arith.addf %638, %640 : vector<32x64xf32>
    %642 = arith.addf %594, %641 : vector<32x64xf32>
    %c1_425 = arith.constant 1 : index
    %c0_426 = arith.constant 0 : index
    %643 = vector.load %arg5[%c1_425, %c0_426] : memref<2x64xf32, #tpu.memory_space<vmem>>, vector<1x64xf32>
    %c1_427 = arith.constant 1 : index
    %c0_428 = arith.constant 0 : index
    %644 = vector.load %arg6[%c1_427, %c0_428] : memref<2x64xf32, #tpu.memory_space<vmem>>, vector<1x64xf32>
    %cst_429 = arith.constant dense<0.000000e+00> : vector<32xf32>
    %645 = vector.multi_reduction <add>, %642, %cst_429 [1] : vector<32x64xf32> to vector<32xf32>
    %646 = vector.shape_cast %645 : vector<32xf32> to vector<32x1xf32>
    %cst_430 = arith.constant 6.400000e+01 : f32
    %647 = vector.broadcast %cst_430 : f32 to vector<32x1xf32>
    %648 = arith.divf %646, %647 : vector<32x1xf32>
    %649 = vector.broadcast %648 : vector<32x1xf32> to vector<32x64xf32>
    %650 = arith.subf %642, %649 : vector<32x64xf32>
    %651 = arith.mulf %650, %650 : vector<32x64xf32>
    %cst_431 = arith.constant dense<0.000000e+00> : vector<32xf32>
    %652 = vector.multi_reduction <add>, %651, %cst_431 [1] : vector<32x64xf32> to vector<32xf32>
    %653 = vector.shape_cast %652 : vector<32xf32> to vector<32x1xf32>
    %cst_432 = arith.constant 6.400000e+01 : f32
    %654 = vector.broadcast %cst_432 : f32 to vector<32x1xf32>
    %655 = arith.divf %653, %654 : vector<32x1xf32>
    %cst_433 = arith.constant 9.99999997E-7 : f32
    %656 = vector.broadcast %cst_433 : f32 to vector<32x1xf32>
    %657 = arith.addf %655, %656 : vector<32x1xf32>
    %658 = math.rsqrt %657 : vector<32x1xf32>
    %659 = vector.broadcast %658 : vector<32x1xf32> to vector<32x64xf32>
    %660 = arith.mulf %650, %659 : vector<32x64xf32>
    %661 = vector.broadcast %643 : vector<1x64xf32> to vector<32x64xf32>
    %662 = arith.mulf %660, %661 : vector<32x64xf32>
    %663 = vector.broadcast %644 : vector<1x64xf32> to vector<32x64xf32>
    %664 = arith.addf %662, %663 : vector<32x64xf32>
    %c1_434 = arith.constant 1 : index
    %c0_435 = arith.constant 0 : index
    %c0_436 = arith.constant 0 : index
    %665 = vector.load %arg7[%c1_434, %c0_435, %c0_436] : memref<2x64x192xf32, #tpu.memory_space<vmem>>, vector<1x64x192xf32>
    %666 = vector.shape_cast %665 : vector<1x64x192xf32> to vector<64x192xf32>
    %cst_437 = arith.constant dense<0.000000e+00> : vector<32x192xf32>
    %667 = tpu.matmul %664, %666, %cst_437 {dimension_numbers = #tpu.dot_dimension_numbers<[1], [0], [0], [1], [0, 0, 1, 1], [], []>} : vector<32x64xf32>, vector<64x192xf32>, vector<32x192xf32> -> vector<32x192xf32>
    %c1_438 = arith.constant 1 : index
    %c0_439 = arith.constant 0 : index
    %668 = vector.load %arg8[%c1_438, %c0_439] : memref<2x192xf32, #tpu.memory_space<vmem>>, vector<1x192xf32>
    %669 = vector.broadcast %668 : vector<1x192xf32> to vector<32x192xf32>
    %670 = arith.addf %667, %669 : vector<32x192xf32>
    %c0_440 = arith.constant 0 : index
    %c0_441 = arith.constant 0 : index
    %671 = vector.load %arg23[%c0_440, %c0_441] : memref<32x192xf32, #tpu.memory_space<vmem>>, vector<32x192xf32>
    tpu.vector_store %arg23[%c0_440, %c0_441], %670 {strides = array<i32>} : memref<32x192xf32, #tpu.memory_space<vmem>>, vector<32x192xf32>,
    %c0_442 = arith.constant 0 : index
    %c0_443 = arith.constant 0 : index
    %672 = vector.load %arg23[%c0_442, %c0_443] : memref<32x192xf32, #tpu.memory_space<vmem>>, vector<16x16xf32>
    %c0_444 = arith.constant 0 : index
    %c64_445 = arith.constant 64 : index
    %673 = vector.load %arg23[%c0_444, %c64_445] : memref<32x192xf32, #tpu.memory_space<vmem>>, vector<16x16xf32>
    %c0_446 = arith.constant 0 : index
    %c128_447 = arith.constant 128 : index
    %674 = vector.load %arg23[%c0_446, %c128_447] : memref<32x192xf32, #tpu.memory_space<vmem>>, vector<16x16xf32>
    %675 = tpu.transpose %673, [1, 0] : vector<16x16xf32> -> vector<16x16xf32>
    %cst_448 = arith.constant dense<0.000000e+00> : vector<16x16xf32>
    %676 = tpu.matmul %672, %675, %cst_448 {dimension_numbers = #tpu.dot_dimension_numbers<[1], [0], [0], [1], [0, 0, 1, 1], [], []>} : vector<16x16xf32>, vector<16x16xf32>, vector<16x16xf32> -> vector<16x16xf32>
    %cst_449 = arith.constant 2.500000e-01 : f32
    %677 = vector.broadcast %cst_449 : f32 to vector<16x16xf32>
    %678 = arith.mulf %676, %677 : vector<16x16xf32>
    %cst_450 = arith.constant 2.500000e-01 : f32
    %679 = vector.broadcast %cst_450 : f32 to vector<16x16xf32>
    %680 = arith.mulf %381, %679 : vector<16x16xf32>
    %681 = arith.addf %678, %680 : vector<16x16xf32>
    %cst_451 = arith.constant dense<0xFF800000> : vector<16xf32>
    %682 = vector.multi_reduction <maximumf>, %681, %cst_451 [1] : vector<16x16xf32> to vector<16xf32>
    %683 = vector.shape_cast %682 : vector<16xf32> to vector<16x1xf32>
    %684 = vector.broadcast %683 : vector<16x1xf32> to vector<16x16xf32>
    %685 = arith.subf %681, %684 : vector<16x16xf32>
    %686 = math.exp %685 : vector<16x16xf32>
    %cst_452 = arith.constant dense<0.000000e+00> : vector<16xf32>
    %687 = vector.multi_reduction <add>, %686, %cst_452 [1] : vector<16x16xf32> to vector<16xf32>
    %688 = vector.shape_cast %687 : vector<16xf32> to vector<16x1xf32>
    %689 = tpu.reciprocal %688 {approx = true} : vector<16x1xf32> -> vector<16x1xf32>
    %690 = vector.broadcast %689 : vector<16x1xf32> to vector<16x16xf32>
    %691 = arith.mulf %686, %690 : vector<16x16xf32>
    %cst_453 = arith.constant dense<0.000000e+00> : vector<16x16xf32>
    %692 = tpu.matmul %691, %674, %cst_453 {dimension_numbers = #tpu.dot_dimension_numbers<[1], [0], [0], [1], [0, 0, 1, 1], [], []>} : vector<16x16xf32>, vector<16x16xf32>, vector<16x16xf32> -> vector<16x16xf32>
    %c0_454 = arith.constant 0 : index
    %c0_455 = arith.constant 0 : index
    %693 = vector.load %arg24[%c0_454, %c0_455] : memref<32x64xf32, #tpu.memory_space<vmem>>, vector<16x16xf32>
    tpu.vector_store %arg24[%c0_454, %c0_455], %692 {strides = array<i32>} : memref<32x64xf32, #tpu.memory_space<vmem>>, vector<16x16xf32>,
    %c0_456 = arith.constant 0 : index
    %c16_457 = arith.constant 16 : index
    %694 = vector.load %arg23[%c0_456, %c16_457] : memref<32x192xf32, #tpu.memory_space<vmem>>, vector<16x16xf32>
    %c0_458 = arith.constant 0 : index
    %c80_459 = arith.constant 80 : index
    %695 = vector.load %arg23[%c0_458, %c80_459] : memref<32x192xf32, #tpu.memory_space<vmem>>, vector<16x16xf32>
    %c0_460 = arith.constant 0 : index
    %c144_461 = arith.constant 144 : index
    %696 = vector.load %arg23[%c0_460, %c144_461] : memref<32x192xf32, #tpu.memory_space<vmem>>, vector<16x16xf32>
    %697 = tpu.transpose %695, [1, 0] : vector<16x16xf32> -> vector<16x16xf32>
    %cst_462 = arith.constant dense<0.000000e+00> : vector<16x16xf32>
    %698 = tpu.matmul %694, %697, %cst_462 {dimension_numbers = #tpu.dot_dimension_numbers<[1], [0], [0], [1], [0, 0, 1, 1], [], []>} : vector<16x16xf32>, vector<16x16xf32>, vector<16x16xf32> -> vector<16x16xf32>
    %cst_463 = arith.constant 2.500000e-01 : f32
    %699 = vector.broadcast %cst_463 : f32 to vector<16x16xf32>
    %700 = arith.mulf %698, %699 : vector<16x16xf32>
    %cst_464 = arith.constant 6.250000e-02 : f32
    %701 = vector.broadcast %cst_464 : f32 to vector<16x16xf32>
    %702 = arith.mulf %381, %701 : vector<16x16xf32>
    %703 = arith.addf %700, %702 : vector<16x16xf32>
    %cst_465 = arith.constant dense<0xFF800000> : vector<16xf32>
    %704 = vector.multi_reduction <maximumf>, %703, %cst_465 [1] : vector<16x16xf32> to vector<16xf32>
    %705 = vector.shape_cast %704 : vector<16xf32> to vector<16x1xf32>
    %706 = vector.broadcast %705 : vector<16x1xf32> to vector<16x16xf32>
    %707 = arith.subf %703, %706 : vector<16x16xf32>
    %708 = math.exp %707 : vector<16x16xf32>
    %cst_466 = arith.constant dense<0.000000e+00> : vector<16xf32>
    %709 = vector.multi_reduction <add>, %708, %cst_466 [1] : vector<16x16xf32> to vector<16xf32>
    %710 = vector.shape_cast %709 : vector<16xf32> to vector<16x1xf32>
    %711 = tpu.reciprocal %710 {approx = true} : vector<16x1xf32> -> vector<16x1xf32>
    %712 = vector.broadcast %711 : vector<16x1xf32> to vector<16x16xf32>
    %713 = arith.mulf %708, %712 : vector<16x16xf32>
    %cst_467 = arith.constant dense<0.000000e+00> : vector<16x16xf32>
    %714 = tpu.matmul %713, %696, %cst_467 {dimension_numbers = #tpu.dot_dimension_numbers<[1], [0], [0], [1], [0, 0, 1, 1], [], []>} : vector<16x16xf32>, vector<16x16xf32>, vector<16x16xf32> -> vector<16x16xf32>
    %c0_468 = arith.constant 0 : index
    %c16_469 = arith.constant 16 : index
    %715 = vector.load %arg24[%c0_468, %c16_469] : memref<32x64xf32, #tpu.memory_space<vmem>>, vector<16x16xf32>
    tpu.vector_store %arg24[%c0_468, %c16_469], %714 {strides = array<i32>} : memref<32x64xf32, #tpu.memory_space<vmem>>, vector<16x16xf32>,
    %c0_470 = arith.constant 0 : index
    %c32_471 = arith.constant 32 : index
    %716 = vector.load %arg23[%c0_470, %c32_471] : memref<32x192xf32, #tpu.memory_space<vmem>>, vector<16x16xf32>
    %c0_472 = arith.constant 0 : index
    %c96_473 = arith.constant 96 : index
    %717 = vector.load %arg23[%c0_472, %c96_473] : memref<32x192xf32, #tpu.memory_space<vmem>>, vector<16x16xf32>
    %c0_474 = arith.constant 0 : index
    %c160_475 = arith.constant 160 : index
    %718 = vector.load %arg23[%c0_474, %c160_475] : memref<32x192xf32, #tpu.memory_space<vmem>>, vector<16x16xf32>
    %719 = tpu.transpose %717, [1, 0] : vector<16x16xf32> -> vector<16x16xf32>
    %cst_476 = arith.constant dense<0.000000e+00> : vector<16x16xf32>
    %720 = tpu.matmul %716, %719, %cst_476 {dimension_numbers = #tpu.dot_dimension_numbers<[1], [0], [0], [1], [0, 0, 1, 1], [], []>} : vector<16x16xf32>, vector<16x16xf32>, vector<16x16xf32> -> vector<16x16xf32>
    %cst_477 = arith.constant 2.500000e-01 : f32
    %721 = vector.broadcast %cst_477 : f32 to vector<16x16xf32>
    %722 = arith.mulf %720, %721 : vector<16x16xf32>
    %cst_478 = arith.constant 1.562500e-02 : f32
    %723 = vector.broadcast %cst_478 : f32 to vector<16x16xf32>
    %724 = arith.mulf %381, %723 : vector<16x16xf32>
    %725 = arith.addf %722, %724 : vector<16x16xf32>
    %cst_479 = arith.constant dense<0xFF800000> : vector<16xf32>
    %726 = vector.multi_reduction <maximumf>, %725, %cst_479 [1] : vector<16x16xf32> to vector<16xf32>
    %727 = vector.shape_cast %726 : vector<16xf32> to vector<16x1xf32>
    %728 = vector.broadcast %727 : vector<16x1xf32> to vector<16x16xf32>
    %729 = arith.subf %725, %728 : vector<16x16xf32>
    %730 = math.exp %729 : vector<16x16xf32>
    %cst_480 = arith.constant dense<0.000000e+00> : vector<16xf32>
    %731 = vector.multi_reduction <add>, %730, %cst_480 [1] : vector<16x16xf32> to vector<16xf32>
    %732 = vector.shape_cast %731 : vector<16xf32> to vector<16x1xf32>
    %733 = tpu.reciprocal %732 {approx = true} : vector<16x1xf32> -> vector<16x1xf32>
    %734 = vector.broadcast %733 : vector<16x1xf32> to vector<16x16xf32>
    %735 = arith.mulf %730, %734 : vector<16x16xf32>
    %cst_481 = arith.constant dense<0.000000e+00> : vector<16x16xf32>
    %736 = tpu.matmul %735, %718, %cst_481 {dimension_numbers = #tpu.dot_dimension_numbers<[1], [0], [0], [1], [0, 0, 1, 1], [], []>} : vector<16x16xf32>, vector<16x16xf32>, vector<16x16xf32> -> vector<16x16xf32>
    %c0_482 = arith.constant 0 : index
    %c32_483 = arith.constant 32 : index
    %737 = vector.load %arg24[%c0_482, %c32_483] : memref<32x64xf32, #tpu.memory_space<vmem>>, vector<16x16xf32>
    tpu.vector_store %arg24[%c0_482, %c32_483], %736 {strides = array<i32>} : memref<32x64xf32, #tpu.memory_space<vmem>>, vector<16x16xf32>,
    %c0_484 = arith.constant 0 : index
    %c48_485 = arith.constant 48 : index
    %738 = vector.load %arg23[%c0_484, %c48_485] : memref<32x192xf32, #tpu.memory_space<vmem>>, vector<16x16xf32>
    %c0_486 = arith.constant 0 : index
    %c112_487 = arith.constant 112 : index
    %739 = vector.load %arg23[%c0_486, %c112_487] : memref<32x192xf32, #tpu.memory_space<vmem>>, vector<16x16xf32>
    %c0_488 = arith.constant 0 : index
    %c176_489 = arith.constant 176 : index
    %740 = vector.load %arg23[%c0_488, %c176_489] : memref<32x192xf32, #tpu.memory_space<vmem>>, vector<16x16xf32>
    %741 = tpu.transpose %739, [1, 0] : vector<16x16xf32> -> vector<16x16xf32>
    %cst_490 = arith.constant dense<0.000000e+00> : vector<16x16xf32>
    %742 = tpu.matmul %738, %741, %cst_490 {dimension_numbers = #tpu.dot_dimension_numbers<[1], [0], [0], [1], [0, 0, 1, 1], [], []>} : vector<16x16xf32>, vector<16x16xf32>, vector<16x16xf32> -> vector<16x16xf32>
    %cst_491 = arith.constant 2.500000e-01 : f32
    %743 = vector.broadcast %cst_491 : f32 to vector<16x16xf32>
    %744 = arith.mulf %742, %743 : vector<16x16xf32>
    %cst_492 = arith.constant 3.906250e-03 : f32
    %745 = vector.broadcast %cst_492 : f32 to vector<16x16xf32>
    %746 = arith.mulf %381, %745 : vector<16x16xf32>
    %747 = arith.addf %744, %746 : vector<16x16xf32>
    %cst_493 = arith.constant dense<0xFF800000> : vector<16xf32>
    %748 = vector.multi_reduction <maximumf>, %747, %cst_493 [1] : vector<16x16xf32> to vector<16xf32>
    %749 = vector.shape_cast %748 : vector<16xf32> to vector<16x1xf32>
    %750 = vector.broadcast %749 : vector<16x1xf32> to vector<16x16xf32>
    %751 = arith.subf %747, %750 : vector<16x16xf32>
    %752 = math.exp %751 : vector<16x16xf32>
    %cst_494 = arith.constant dense<0.000000e+00> : vector<16xf32>
    %753 = vector.multi_reduction <add>, %752, %cst_494 [1] : vector<16x16xf32> to vector<16xf32>
    %754 = vector.shape_cast %753 : vector<16xf32> to vector<16x1xf32>
    %755 = tpu.reciprocal %754 {approx = true} : vector<16x1xf32> -> vector<16x1xf32>
    %756 = vector.broadcast %755 : vector<16x1xf32> to vector<16x16xf32>
    %757 = arith.mulf %752, %756 : vector<16x16xf32>
    %cst_495 = arith.constant dense<0.000000e+00> : vector<16x16xf32>
    %758 = tpu.matmul %757, %740, %cst_495 {dimension_numbers = #tpu.dot_dimension_numbers<[1], [0], [0], [1], [0, 0, 1, 1], [], []>} : vector<16x16xf32>, vector<16x16xf32>, vector<16x16xf32> -> vector<16x16xf32>
    %c0_496 = arith.constant 0 : index
    %c48_497 = arith.constant 48 : index
    %759 = vector.load %arg24[%c0_496, %c48_497] : memref<32x64xf32, #tpu.memory_space<vmem>>, vector<16x16xf32>
    tpu.vector_store %arg24[%c0_496, %c48_497], %758 {strides = array<i32>} : memref<32x64xf32, #tpu.memory_space<vmem>>, vector<16x16xf32>,
    %c16_498 = arith.constant 16 : index
    %c0_499 = arith.constant 0 : index
    %760 = vector.load %arg23[%c16_498, %c0_499] : memref<32x192xf32, #tpu.memory_space<vmem>>, vector<16x16xf32>
    %c16_500 = arith.constant 16 : index
    %c64_501 = arith.constant 64 : index
    %761 = vector.load %arg23[%c16_500, %c64_501] : memref<32x192xf32, #tpu.memory_space<vmem>>, vector<16x16xf32>
    %c16_502 = arith.constant 16 : index
    %c128_503 = arith.constant 128 : index
    %762 = vector.load %arg23[%c16_502, %c128_503] : memref<32x192xf32, #tpu.memory_space<vmem>>, vector<16x16xf32>
    %763 = tpu.transpose %761, [1, 0] : vector<16x16xf32> -> vector<16x16xf32>
    %cst_504 = arith.constant dense<0.000000e+00> : vector<16x16xf32>
    %764 = tpu.matmul %760, %763, %cst_504 {dimension_numbers = #tpu.dot_dimension_numbers<[1], [0], [0], [1], [0, 0, 1, 1], [], []>} : vector<16x16xf32>, vector<16x16xf32>, vector<16x16xf32> -> vector<16x16xf32>
    %cst_505 = arith.constant 2.500000e-01 : f32
    %765 = vector.broadcast %cst_505 : f32 to vector<16x16xf32>
    %766 = arith.mulf %764, %765 : vector<16x16xf32>
    %cst_506 = arith.constant 2.500000e-01 : f32
    %767 = vector.broadcast %cst_506 : f32 to vector<16x16xf32>
    %768 = arith.mulf %381, %767 : vector<16x16xf32>
    %769 = arith.addf %766, %768 : vector<16x16xf32>
    %cst_507 = arith.constant dense<0xFF800000> : vector<16xf32>
    %770 = vector.multi_reduction <maximumf>, %769, %cst_507 [1] : vector<16x16xf32> to vector<16xf32>
    %771 = vector.shape_cast %770 : vector<16xf32> to vector<16x1xf32>
    %772 = vector.broadcast %771 : vector<16x1xf32> to vector<16x16xf32>
    %773 = arith.subf %769, %772 : vector<16x16xf32>
    %774 = math.exp %773 : vector<16x16xf32>
    %cst_508 = arith.constant dense<0.000000e+00> : vector<16xf32>
    %775 = vector.multi_reduction <add>, %774, %cst_508 [1] : vector<16x16xf32> to vector<16xf32>
    %776 = vector.shape_cast %775 : vector<16xf32> to vector<16x1xf32>
    %777 = tpu.reciprocal %776 {approx = true} : vector<16x1xf32> -> vector<16x1xf32>
    %778 = vector.broadcast %777 : vector<16x1xf32> to vector<16x16xf32>
    %779 = arith.mulf %774, %778 : vector<16x16xf32>
    %cst_509 = arith.constant dense<0.000000e+00> : vector<16x16xf32>
    %780 = tpu.matmul %779, %762, %cst_509 {dimension_numbers = #tpu.dot_dimension_numbers<[1], [0], [0], [1], [0, 0, 1, 1], [], []>} : vector<16x16xf32>, vector<16x16xf32>, vector<16x16xf32> -> vector<16x16xf32>
    %c16_510 = arith.constant 16 : index
    %c0_511 = arith.constant 0 : index
    %781 = vector.load %arg24[%c16_510, %c0_511] : memref<32x64xf32, #tpu.memory_space<vmem>>, vector<16x16xf32>
    tpu.vector_store %arg24[%c16_510, %c0_511], %780 {strides = array<i32>} : memref<32x64xf32, #tpu.memory_space<vmem>>, vector<16x16xf32>,
    %c16_512 = arith.constant 16 : index
    %c16_513 = arith.constant 16 : index
    %782 = vector.load %arg23[%c16_512, %c16_513] : memref<32x192xf32, #tpu.memory_space<vmem>>, vector<16x16xf32>
    %c16_514 = arith.constant 16 : index
    %c80_515 = arith.constant 80 : index
    %783 = vector.load %arg23[%c16_514, %c80_515] : memref<32x192xf32, #tpu.memory_space<vmem>>, vector<16x16xf32>
    %c16_516 = arith.constant 16 : index
    %c144_517 = arith.constant 144 : index
    %784 = vector.load %arg23[%c16_516, %c144_517] : memref<32x192xf32, #tpu.memory_space<vmem>>, vector<16x16xf32>
    %785 = tpu.transpose %783, [1, 0] : vector<16x16xf32> -> vector<16x16xf32>
    %cst_518 = arith.constant dense<0.000000e+00> : vector<16x16xf32>
    %786 = tpu.matmul %782, %785, %cst_518 {dimension_numbers = #tpu.dot_dimension_numbers<[1], [0], [0], [1], [0, 0, 1, 1], [], []>} : vector<16x16xf32>, vector<16x16xf32>, vector<16x16xf32> -> vector<16x16xf32>
    %cst_519 = arith.constant 2.500000e-01 : f32
    %787 = vector.broadcast %cst_519 : f32 to vector<16x16xf32>
    %788 = arith.mulf %786, %787 : vector<16x16xf32>
    %cst_520 = arith.constant 6.250000e-02 : f32
    %789 = vector.broadcast %cst_520 : f32 to vector<16x16xf32>
    %790 = arith.mulf %381, %789 : vector<16x16xf32>
    %791 = arith.addf %788, %790 : vector<16x16xf32>
    %cst_521 = arith.constant dense<0xFF800000> : vector<16xf32>
    %792 = vector.multi_reduction <maximumf>, %791, %cst_521 [1] : vector<16x16xf32> to vector<16xf32>
    %793 = vector.shape_cast %792 : vector<16xf32> to vector<16x1xf32>
    %794 = vector.broadcast %793 : vector<16x1xf32> to vector<16x16xf32>
    %795 = arith.subf %791, %794 : vector<16x16xf32>
    %796 = math.exp %795 : vector<16x16xf32>
    %cst_522 = arith.constant dense<0.000000e+00> : vector<16xf32>
    %797 = vector.multi_reduction <add>, %796, %cst_522 [1] : vector<16x16xf32> to vector<16xf32>
    %798 = vector.shape_cast %797 : vector<16xf32> to vector<16x1xf32>
    %799 = tpu.reciprocal %798 {approx = true} : vector<16x1xf32> -> vector<16x1xf32>
    %800 = vector.broadcast %799 : vector<16x1xf32> to vector<16x16xf32>
    %801 = arith.mulf %796, %800 : vector<16x16xf32>
    %cst_523 = arith.constant dense<0.000000e+00> : vector<16x16xf32>
    %802 = tpu.matmul %801, %784, %cst_523 {dimension_numbers = #tpu.dot_dimension_numbers<[1], [0], [0], [1], [0, 0, 1, 1], [], []>} : vector<16x16xf32>, vector<16x16xf32>, vector<16x16xf32> -> vector<16x16xf32>
    %c16_524 = arith.constant 16 : index
    %c16_525 = arith.constant 16 : index
    %803 = vector.load %arg24[%c16_524, %c16_525] : memref<32x64xf32, #tpu.memory_space<vmem>>, vector<16x16xf32>
    tpu.vector_store %arg24[%c16_524, %c16_525], %802 {strides = array<i32>} : memref<32x64xf32, #tpu.memory_space<vmem>>, vector<16x16xf32>,
    %c16_526 = arith.constant 16 : index
    %c32_527 = arith.constant 32 : index
    %804 = vector.load %arg23[%c16_526, %c32_527] : memref<32x192xf32, #tpu.memory_space<vmem>>, vector<16x16xf32>
    %c16_528 = arith.constant 16 : index
    %c96_529 = arith.constant 96 : index
    %805 = vector.load %arg23[%c16_528, %c96_529] : memref<32x192xf32, #tpu.memory_space<vmem>>, vector<16x16xf32>
    %c16_530 = arith.constant 16 : index
    %c160_531 = arith.constant 160 : index
    %806 = vector.load %arg23[%c16_530, %c160_531] : memref<32x192xf32, #tpu.memory_space<vmem>>, vector<16x16xf32>
    %807 = tpu.transpose %805, [1, 0] : vector<16x16xf32> -> vector<16x16xf32>
    %cst_532 = arith.constant dense<0.000000e+00> : vector<16x16xf32>
    %808 = tpu.matmul %804, %807, %cst_532 {dimension_numbers = #tpu.dot_dimension_numbers<[1], [0], [0], [1], [0, 0, 1, 1], [], []>} : vector<16x16xf32>, vector<16x16xf32>, vector<16x16xf32> -> vector<16x16xf32>
    %cst_533 = arith.constant 2.500000e-01 : f32
    %809 = vector.broadcast %cst_533 : f32 to vector<16x16xf32>
    %810 = arith.mulf %808, %809 : vector<16x16xf32>
    %cst_534 = arith.constant 1.562500e-02 : f32
    %811 = vector.broadcast %cst_534 : f32 to vector<16x16xf32>
    %812 = arith.mulf %381, %811 : vector<16x16xf32>
    %813 = arith.addf %810, %812 : vector<16x16xf32>
    %cst_535 = arith.constant dense<0xFF800000> : vector<16xf32>
    %814 = vector.multi_reduction <maximumf>, %813, %cst_535 [1] : vector<16x16xf32> to vector<16xf32>
    %815 = vector.shape_cast %814 : vector<16xf32> to vector<16x1xf32>
    %816 = vector.broadcast %815 : vector<16x1xf32> to vector<16x16xf32>
    %817 = arith.subf %813, %816 : vector<16x16xf32>
    %818 = math.exp %817 : vector<16x16xf32>
    %cst_536 = arith.constant dense<0.000000e+00> : vector<16xf32>
    %819 = vector.multi_reduction <add>, %818, %cst_536 [1] : vector<16x16xf32> to vector<16xf32>
    %820 = vector.shape_cast %819 : vector<16xf32> to vector<16x1xf32>
    %821 = tpu.reciprocal %820 {approx = true} : vector<16x1xf32> -> vector<16x1xf32>
    %822 = vector.broadcast %821 : vector<16x1xf32> to vector<16x16xf32>
    %823 = arith.mulf %818, %822 : vector<16x16xf32>
    %cst_537 = arith.constant dense<0.000000e+00> : vector<16x16xf32>
    %824 = tpu.matmul %823, %806, %cst_537 {dimension_numbers = #tpu.dot_dimension_numbers<[1], [0], [0], [1], [0, 0, 1, 1], [], []>} : vector<16x16xf32>, vector<16x16xf32>, vector<16x16xf32> -> vector<16x16xf32>
    %c16_538 = arith.constant 16 : index
    %c32_539 = arith.constant 32 : index
    %825 = vector.load %arg24[%c16_538, %c32_539] : memref<32x64xf32, #tpu.memory_space<vmem>>, vector<16x16xf32>
    tpu.vector_store %arg24[%c16_538, %c32_539], %824 {strides = array<i32>} : memref<32x64xf32, #tpu.memory_space<vmem>>, vector<16x16xf32>,
    %c16_540 = arith.constant 16 : index
    %c48_541 = arith.constant 48 : index
    %826 = vector.load %arg23[%c16_540, %c48_541] : memref<32x192xf32, #tpu.memory_space<vmem>>, vector<16x16xf32>
    %c16_542 = arith.constant 16 : index
    %c112_543 = arith.constant 112 : index
    %827 = vector.load %arg23[%c16_542, %c112_543] : memref<32x192xf32, #tpu.memory_space<vmem>>, vector<16x16xf32>
    %c16_544 = arith.constant 16 : index
    %c176_545 = arith.constant 176 : index
    %828 = vector.load %arg23[%c16_544, %c176_545] : memref<32x192xf32, #tpu.memory_space<vmem>>, vector<16x16xf32>
    %829 = tpu.transpose %827, [1, 0] : vector<16x16xf32> -> vector<16x16xf32>
    %cst_546 = arith.constant dense<0.000000e+00> : vector<16x16xf32>
    %830 = tpu.matmul %826, %829, %cst_546 {dimension_numbers = #tpu.dot_dimension_numbers<[1], [0], [0], [1], [0, 0, 1, 1], [], []>} : vector<16x16xf32>, vector<16x16xf32>, vector<16x16xf32> -> vector<16x16xf32>
    %cst_547 = arith.constant 2.500000e-01 : f32
    %831 = vector.broadcast %cst_547 : f32 to vector<16x16xf32>
    %832 = arith.mulf %830, %831 : vector<16x16xf32>
    %cst_548 = arith.constant 3.906250e-03 : f32
    %833 = vector.broadcast %cst_548 : f32 to vector<16x16xf32>
    %834 = arith.mulf %381, %833 : vector<16x16xf32>
    %835 = arith.addf %832, %834 : vector<16x16xf32>
    %cst_549 = arith.constant dense<0xFF800000> : vector<16xf32>
    %836 = vector.multi_reduction <maximumf>, %835, %cst_549 [1] : vector<16x16xf32> to vector<16xf32>
    %837 = vector.shape_cast %836 : vector<16xf32> to vector<16x1xf32>
    %838 = vector.broadcast %837 : vector<16x1xf32> to vector<16x16xf32>
    %839 = arith.subf %835, %838 : vector<16x16xf32>
    %840 = math.exp %839 : vector<16x16xf32>
    %cst_550 = arith.constant dense<0.000000e+00> : vector<16xf32>
    %841 = vector.multi_reduction <add>, %840, %cst_550 [1] : vector<16x16xf32> to vector<16xf32>
    %842 = vector.shape_cast %841 : vector<16xf32> to vector<16x1xf32>
    %843 = tpu.reciprocal %842 {approx = true} : vector<16x1xf32> -> vector<16x1xf32>
    %844 = vector.broadcast %843 : vector<16x1xf32> to vector<16x16xf32>
    %845 = arith.mulf %840, %844 : vector<16x16xf32>
    %cst_551 = arith.constant dense<0.000000e+00> : vector<16x16xf32>
    %846 = tpu.matmul %845, %828, %cst_551 {dimension_numbers = #tpu.dot_dimension_numbers<[1], [0], [0], [1], [0, 0, 1, 1], [], []>} : vector<16x16xf32>, vector<16x16xf32>, vector<16x16xf32> -> vector<16x16xf32>
    %c16_552 = arith.constant 16 : index
    %c48_553 = arith.constant 48 : index
    %847 = vector.load %arg24[%c16_552, %c48_553] : memref<32x64xf32, #tpu.memory_space<vmem>>, vector<16x16xf32>
    tpu.vector_store %arg24[%c16_552, %c48_553], %846 {strides = array<i32>} : memref<32x64xf32, #tpu.memory_space<vmem>>, vector<16x16xf32>,
    %c0_554 = arith.constant 0 : index
    %c0_555 = arith.constant 0 : index
    %848 = vector.load %arg24[%c0_554, %c0_555] : memref<32x64xf32, #tpu.memory_space<vmem>>, vector<32x64xf32>
    %c1_556 = arith.constant 1 : index
    %c0_557 = arith.constant 0 : index
    %c0_558 = arith.constant 0 : index
    %849 = vector.load %arg9[%c1_556, %c0_557, %c0_558] : memref<2x64x64xf32, #tpu.memory_space<vmem>>, vector<1x64x64xf32>
    %850 = vector.shape_cast %849 : vector<1x64x64xf32> to vector<64x64xf32>
    %cst_559 = arith.constant dense<0.000000e+00> : vector<32x64xf32>
    %851 = tpu.matmul %848, %850, %cst_559 {dimension_numbers = #tpu.dot_dimension_numbers<[1], [0], [0], [1], [0, 0, 1, 1], [], []>} : vector<32x64xf32>, vector<64x64xf32>, vector<32x64xf32> -> vector<32x64xf32>
    %c1_560 = arith.constant 1 : index
    %c0_561 = arith.constant 0 : index
    %852 = vector.load %arg10[%c1_560, %c0_561] : memref<2x64xf32, #tpu.memory_space<vmem>>, vector<1x64xf32>
    %853 = vector.broadcast %852 : vector<1x64xf32> to vector<32x64xf32>
    %854 = arith.addf %851, %853 : vector<32x64xf32>
    %855 = arith.addf %642, %854 : vector<32x64xf32>
    %c1_562 = arith.constant 1 : index
    %c0_563 = arith.constant 0 : index
    %856 = vector.load %arg11[%c1_562, %c0_563] : memref<2x64xf32, #tpu.memory_space<vmem>>, vector<1x64xf32>
    %c1_564 = arith.constant 1 : index
    %c0_565 = arith.constant 0 : index
    %857 = vector.load %arg12[%c1_564, %c0_565] : memref<2x64xf32, #tpu.memory_space<vmem>>, vector<1x64xf32>
    %cst_566 = arith.constant dense<0.000000e+00> : vector<32xf32>
    %858 = vector.multi_reduction <add>, %855, %cst_566 [1] : vector<32x64xf32> to vector<32xf32>
    %859 = vector.shape_cast %858 : vector<32xf32> to vector<32x1xf32>
    %cst_567 = arith.constant 6.400000e+01 : f32
    %860 = vector.broadcast %cst_567 : f32 to vector<32x1xf32>
    %861 = arith.divf %859, %860 : vector<32x1xf32>
    %862 = vector.broadcast %861 : vector<32x1xf32> to vector<32x64xf32>
    %863 = arith.subf %855, %862 : vector<32x64xf32>
    %864 = arith.mulf %863, %863 : vector<32x64xf32>
    %cst_568 = arith.constant dense<0.000000e+00> : vector<32xf32>
    %865 = vector.multi_reduction <add>, %864, %cst_568 [1] : vector<32x64xf32> to vector<32xf32>
    %866 = vector.shape_cast %865 : vector<32xf32> to vector<32x1xf32>
    %cst_569 = arith.constant 6.400000e+01 : f32
    %867 = vector.broadcast %cst_569 : f32 to vector<32x1xf32>
    %868 = arith.divf %866, %867 : vector<32x1xf32>
    %cst_570 = arith.constant 9.99999997E-7 : f32
    %869 = vector.broadcast %cst_570 : f32 to vector<32x1xf32>
    %870 = arith.addf %868, %869 : vector<32x1xf32>
    %871 = math.rsqrt %870 : vector<32x1xf32>
    %872 = vector.broadcast %871 : vector<32x1xf32> to vector<32x64xf32>
    %873 = arith.mulf %863, %872 : vector<32x64xf32>
    %874 = vector.broadcast %856 : vector<1x64xf32> to vector<32x64xf32>
    %875 = arith.mulf %873, %874 : vector<32x64xf32>
    %876 = vector.broadcast %857 : vector<1x64xf32> to vector<32x64xf32>
    %877 = arith.addf %875, %876 : vector<32x64xf32>
    %c1_571 = arith.constant 1 : index
    %c0_572 = arith.constant 0 : index
    %c0_573 = arith.constant 0 : index
    %878 = vector.load %arg13[%c1_571, %c0_572, %c0_573] : memref<2x64x256xf32, #tpu.memory_space<vmem>>, vector<1x64x256xf32>
    %879 = vector.shape_cast %878 : vector<1x64x256xf32> to vector<64x256xf32>
    %cst_574 = arith.constant dense<0.000000e+00> : vector<32x256xf32>
    %880 = tpu.matmul %877, %879, %cst_574 {dimension_numbers = #tpu.dot_dimension_numbers<[1], [0], [0], [1], [0, 0, 1, 1], [], []>} : vector<32x64xf32>, vector<64x256xf32>, vector<32x256xf32> -> vector<32x256xf32>
    %c1_575 = arith.constant 1 : index
    %c0_576 = arith.constant 0 : index
    %881 = vector.load %arg14[%c1_575, %c0_576] : memref<2x256xf32, #tpu.memory_space<vmem>>, vector<1x256xf32>
    %882 = vector.broadcast %881 : vector<1x256xf32> to vector<32x256xf32>
    %883 = arith.addf %880, %882 : vector<32x256xf32>
    %cst_577 = arith.constant 5.000000e-01 : f32
    %884 = vector.broadcast %cst_577 : f32 to vector<32x256xf32>
    %885 = arith.mulf %884, %883 : vector<32x256xf32>
    %cst_578 = arith.constant 4.471500e-02 : f32
    %886 = vector.broadcast %cst_578 : f32 to vector<32x256xf32>
    %887 = arith.mulf %886, %883 : vector<32x256xf32>
    %888 = arith.mulf %887, %883 : vector<32x256xf32>
    %889 = arith.mulf %888, %883 : vector<32x256xf32>
    %890 = arith.addf %883, %889 : vector<32x256xf32>
    %cst_579 = arith.constant 0.797884583 : f32
    %891 = vector.broadcast %cst_579 : f32 to vector<32x256xf32>
    %892 = arith.mulf %891, %890 : vector<32x256xf32>
    %893 = math.tanh %892 : vector<32x256xf32>
    %cst_580 = arith.constant 1.000000e+00 : f32
    %894 = vector.broadcast %cst_580 : f32 to vector<32x256xf32>
    %895 = arith.addf %894, %893 : vector<32x256xf32>
    %896 = arith.mulf %885, %895 : vector<32x256xf32>
    %c1_581 = arith.constant 1 : index
    %c0_582 = arith.constant 0 : index
    %c0_583 = arith.constant 0 : index
    %897 = vector.load %arg15[%c1_581, %c0_582, %c0_583] : memref<2x256x64xf32, #tpu.memory_space<vmem>>, vector<1x256x64xf32>
    %898 = vector.shape_cast %897 : vector<1x256x64xf32> to vector<256x64xf32>
    %cst_584 = arith.constant dense<0.000000e+00> : vector<32x64xf32>
    %899 = tpu.matmul %896, %898, %cst_584 {dimension_numbers = #tpu.dot_dimension_numbers<[1], [0], [0], [1], [0, 0, 1, 1], [], []>} : vector<32x256xf32>, vector<256x64xf32>, vector<32x64xf32> -> vector<32x64xf32>
    %c1_585 = arith.constant 1 : index
    %c0_586 = arith.constant 0 : index
    %900 = vector.load %arg16[%c1_585, %c0_586] : memref<2x64xf32, #tpu.memory_space<vmem>>, vector<1x64xf32>
    %901 = vector.broadcast %900 : vector<1x64xf32> to vector<32x64xf32>
    %902 = arith.addf %899, %901 : vector<32x64xf32>
    %903 = arith.addf %855, %902 : vector<32x64xf32>
    %c0_587 = arith.constant 0 : index
    %c0_588 = arith.constant 0 : index
    %904 = vector.load %arg17[%c0_587, %c0_588] : memref<1x64xf32, #tpu.memory_space<vmem>>, vector<1x64xf32>
    %c0_589 = arith.constant 0 : index
    %c0_590 = arith.constant 0 : index
    %905 = vector.load %arg18[%c0_589, %c0_590] : memref<1x64xf32, #tpu.memory_space<vmem>>, vector<1x64xf32>
    %cst_591 = arith.constant dense<0.000000e+00> : vector<32xf32>
    %906 = vector.multi_reduction <add>, %903, %cst_591 [1] : vector<32x64xf32> to vector<32xf32>
    %907 = vector.shape_cast %906 : vector<32xf32> to vector<32x1xf32>
    %cst_592 = arith.constant 6.400000e+01 : f32
    %908 = vector.broadcast %cst_592 : f32 to vector<32x1xf32>
    %909 = arith.divf %907, %908 : vector<32x1xf32>
    %910 = vector.broadcast %909 : vector<32x1xf32> to vector<32x64xf32>
    %911 = arith.subf %903, %910 : vector<32x64xf32>
    %912 = arith.mulf %911, %911 : vector<32x64xf32>
    %cst_593 = arith.constant dense<0.000000e+00> : vector<32xf32>
    %913 = vector.multi_reduction <add>, %912, %cst_593 [1] : vector<32x64xf32> to vector<32xf32>
    %914 = vector.shape_cast %913 : vector<32xf32> to vector<32x1xf32>
    %cst_594 = arith.constant 6.400000e+01 : f32
    %915 = vector.broadcast %cst_594 : f32 to vector<32x1xf32>
    %916 = arith.divf %914, %915 : vector<32x1xf32>
    %cst_595 = arith.constant 9.99999997E-7 : f32
    %917 = vector.broadcast %cst_595 : f32 to vector<32x1xf32>
    %918 = arith.addf %916, %917 : vector<32x1xf32>
    %919 = math.rsqrt %918 : vector<32x1xf32>
    %920 = vector.broadcast %919 : vector<32x1xf32> to vector<32x64xf32>
    %921 = arith.mulf %911, %920 : vector<32x64xf32>
    %922 = vector.broadcast %904 : vector<1x64xf32> to vector<32x64xf32>
    %923 = arith.mulf %921, %922 : vector<32x64xf32>
    %924 = vector.broadcast %905 : vector<1x64xf32> to vector<32x64xf32>
    %925 = arith.addf %923, %924 : vector<32x64xf32>
    %c0_596 = arith.constant 0 : index
    %c0_597 = arith.constant 0 : index
    %926 = vector.load %arg19[%c0_596, %c0_597] : memref<64x48xf32, #tpu.memory_space<vmem>>, vector<64x48xf32>
    %cst_598 = arith.constant dense<0.000000e+00> : vector<32x48xf32>
    %927 = tpu.matmul %925, %926, %cst_598 {dimension_numbers = #tpu.dot_dimension_numbers<[1], [0], [0], [1], [0, 0, 1, 1], [], []>} : vector<32x64xf32>, vector<64x48xf32>, vector<32x48xf32> -> vector<32x48xf32>
    %c0_599 = arith.constant 0 : index
    %c0_600 = arith.constant 0 : index
    %928 = vector.load %arg20[%c0_599, %c0_600] : memref<1x48xf32, #tpu.memory_space<vmem>>, vector<1x48xf32>
    %929 = vector.broadcast %928 : vector<1x48xf32> to vector<32x48xf32>
    %930 = arith.addf %927, %929 : vector<32x48xf32>
    %cst_601 = arith.constant 0.000000e+00 : f32
    %931 = vector.broadcast %cst_601 : f32 to vector<32x128xf32>
    %c0_602 = arith.constant 0 : index
    %c0_603 = arith.constant 0 : index
    %932 = vector.load %arg21[%c0_602, %c0_603] : memref<32x128xf32, #tpu.memory_space<vmem>>, vector<32x128xf32>
    tpu.vector_store %arg21[%c0_602, %c0_603], %931 {strides = array<i32>} : memref<32x128xf32, #tpu.memory_space<vmem>>, vector<32x128xf32>,
    %c0_604 = arith.constant 0 : index
    %c0_605 = arith.constant 0 : index
    %933 = vector.load %arg21[%c0_604, %c0_605] : memref<32x128xf32, #tpu.memory_space<vmem>>, vector<32x64xf32>
    tpu.vector_store %arg21[%c0_604, %c0_605], %925 {strides = array<i32>} : memref<32x128xf32, #tpu.memory_space<vmem>>, vector<32x64xf32>,
    %c0_606 = arith.constant 0 : index
    %c64_607 = arith.constant 64 : index
    %934 = vector.load %arg21[%c0_606, %c64_607] : memref<32x128xf32, #tpu.memory_space<vmem>>, vector<32x48xf32>
    tpu.vector_store %arg21[%c0_606, %c64_607], %930 {strides = array<i32>} : memref<32x128xf32, #tpu.memory_space<vmem>>, vector<32x48xf32>,
    return
  }
}

</mosaic_0001>

<bundles_post_ra>
// kernel: text_encoder_forward.1
= control target key start
LH: loop header
LB: loop body
LE: loop exit
PB: predicated region body
PF: predicated region fallthrough
CT: control target
= control target key end

     0   :  { %s14524_s0 = inlined_call_operand.vmem [shape: f32[32,32], index: 0, kind: input, shape index: {}]   ;;  %s14525_s1 = inlined_call_operand.vmem [shape: f32[32,64], index: 1, kind: input, shape index: {}]   ;;  %s14526_s2 = inlined_call_operand.vmem [shape: f32[1,64], index: 2, kind: input, shape index: {}]   ;;  %s14527_s3 = inlined_call_operand.vmem [shape: f32[15,64,64], index: 3, kind: input, shape index: {}]   ;;  %s14528_s4 = inlined_call_operand.hbm [shape: f32[3,64], index: 4, kind: input, shape index: {}]   ;;  %s14529_s5 = inlined_call_operand.vmem [shape: f32[2,64], index: 5, kind: input, shape index: {}]   ;;  %s14530_s6 = inlined_call_operand.hbm [shape: f32[2,64], index: 6, kind: input, shape index: {}]   ;;  %s14531_s7 = inlined_call_operand.hbm [shape: f32[2,64,192], index: 7, kind: input, shape index: {}]   ;;  %s14532_s8 = inlined_call_operand.hbm [shape: f32[2,192], index: 8, kind: input, shape index: {}]   ;;  %s14533_s9 = inlined_call_operand.vmem [shape: f32[2,64,64], index: 9, kind: input, shape index: {}]   ;;  %s14534_s10 = inlined_call_operand.hbm [shape: f32[2,64], index: 10, kind: input, shape index: {}]   ;;  %s14535_s11 = inlined_call_operand.hbm [shape: f32[2,64], index: 11, kind: input, shape index: {}]   ;;  %s14536_s12 = inlined_call_operand.hbm [shape: f32[2,64], index: 12, kind: input, shape index: {}]   ;;  %s14537_s13 = inlined_call_operand.hbm [shape: f32[2,64,256], index: 13, kind: input, shape index: {}]   ;;  %s14538_s14 = inlined_call_operand.hbm [shape: f32[2,256], index: 14, kind: input, shape index: {}]   ;;  %s14539_s15 = inlined_call_operand.vmem [shape: f32[2,256,64], index: 15, kind: input, shape index: {}]   ;;  %s14540_s16 = inlined_call_operand.hbm [shape: f32[2,64], index: 16, kind: input, shape index: {}]   ;;  %s14541_s17 = inlined_call_operand.hbm [shape: f32[1,64], index: 17, kind: input, shape index: {}]   ;;  %s14542_s18 = inlined_call_operand.hbm [shape: f32[1,64], index: 18, kind: input, shape index: {}]   ;;  %s14543_s19 = inlined_call_operand.vmem [shape: f32[64,48], index: 19, kind: input, shape index: {}]   ;;  %s14544_s20 = inlined_call_operand.hbm [shape: f32[1,48], index: 20, kind: input, shape index: {}]   ;;  %s14545_s21 = inlined_call_operand.vmem [shape: f32[32,128], index: 21, kind: output, shape index: {}]  }
   0x1   :  { %14551 = sst [smem:[#allocation33_spill]] %s14524_s0 }
   0x2   :  { %14552 = sst [smem:[#allocation34_spill]] %s14525_s1 }
   0x3   :  { %14553 = sst [smem:[#allocation35_spill]] %s14526_s2 }
   0x4   :  { %14554 = sst [smem:[#allocation36_spill]] %s14527_s3 }
   0x5   :  { %14555 = sst [smem:[#allocation37_spill]] %s14528_s4 }
   0x6   :  { %14556 = sst [smem:[#allocation38_spill]] %s14529_s5 }
   0x7   :  { %26 = vsyncpa [#allocation7], 0 }
   0x8   :  { %27 = vsyncpa [#allocation9], 0 }
   0x9   :  { %28 = vsyncpa [#allocation12], 0 }
   0xa   :  { %29 = vsyncpa [#allocation15], 0 }
   0xb   :  { %30 = vsyncpa [#allocation18], 0 }
   0xc   :  { %31 = vsyncpa [#allocation21], 0 }
   0xd   :  { %32 = vsyncpa [#allocation24], 0  ;;  %s12114_s2 = smov [#allocation8]   ;;  %s12115_s26 = smov [#allocation11]  }
   0xe   :  { %s59_s25 = sshll.u32 %s12114_s2, 4  ;;  %s81_s27 = sshll.u32 %s12115_s26, 4  ;;  %s60_s25 = int_to_ptr.vmem [resolvable:$true] %s59_s25  ;;  %s82_s27 = int_to_ptr.vmem [resolvable:$true] %s81_s27 }
   0xf   :  { %s11814_s29 = scalar_lea.hbm %s14530_s6, 32 }
  0x10   :  { %p11815_p0 = scmp.ne.s32.totalorder %s14530_s6, %s11814_s29  ;;  %p11818_p1 = scmp.lt.u32.totalorder %s11814_s29, %s14530_s6 }
  0x12   :  { %p11820_p2 = pnand %p11818_p1, %p11815_p0 }
  0x14   :  { %11823 = shalt.err (!%p11820_p2)
}
  0x15   :  { %s11824_s22 = scalar_lea.vmem %s60_s25, 32  ;;  %p11829_p4 = scmp.lt.s32.totalorder %s60_s25, %s60_s25 }
  0x16   :  { %p11825_p3 = scmp.ne.s32.totalorder %s60_s25, %s11824_s22  ;;  %p11830_p5 = scmp.lt.s32.totalorder %s11824_s22, %s11824_s22 }
  0x18   :  { %p11831_p6 = por %p11830_p5, %p11829_p4 }
  0x1a   :  { %p11832_p7 = pnand %p11831_p6, %p11825_p3 }
  0x1c   :  { %11835 = shalt.err (!%p11832_p7)
}
  0x1d   :  { %62 = dma.hbm_to_vmem [thread:$0]  %s14530_s6, 32, %s60_s25, [#allocation9]  }
  0x1e   :  { %s11836_s26 = scalar_lea.hbm %s14532_s8, 64 }
  0x1f   :  { %p11837_p8 = scmp.ne.s32.totalorder %s14532_s8, %s11836_s26  ;;  %p11840_p9 = scmp.lt.u32.totalorder %s11836_s26, %s14532_s8 }
  0x21   :  { %p11842_p10 = pnand %p11840_p9, %p11837_p8 }
  0x23   :  { %11845 = shalt.err (!%p11842_p10)
}
  0x24   :  { %s11846_s4 = scalar_lea.vmem %s82_s27, 64  ;;  %p11851_p12 = scmp.lt.s32.totalorder %s82_s27, %s82_s27 }
  0x25   :  { %p11847_p11 = scmp.ne.s32.totalorder %s82_s27, %s11846_s4  ;;  %p11852_p13 = scmp.lt.s32.totalorder %s11846_s4, %s11846_s4 }
  0x27   :  { %p11853_p0 = por %p11852_p13, %p11851_p12 }
  0x29   :  { %p11854_p1 = pnand %p11853_p0, %p11847_p11 }
  0x2b   :  { %11857 = shalt.err (!%p11854_p1)
}
  0x2c   :  { %84 = dma.hbm_to_vmem [thread:$0]  %s14532_s8, 64, %s82_s27, [#allocation12]  }
  0x2d   :  { %s12116_s30 = smov [#allocation14]   ;;  %s11858_s1 = scalar_lea.hbm %s14535_s11, 32 }
  0x2e   :  { %s103_s5 = sshll.u32 %s12116_s30, 4  ;;  %p11859_p2 = scmp.ne.s32.totalorder %s14535_s11, %s11858_s1  ;;  %s104_s5 = int_to_ptr.vmem [resolvable:$true] %s103_s5 }
  0x2f   :  { %p11862_p3 = scmp.lt.u32.totalorder %s11858_s1, %s14535_s11 }
  0x31   :  { %p11864_p4 = pnand %p11862_p3, %p11859_p2 }
  0x33   :  { %11867 = shalt.err (!%p11864_p4)
}
  0x34   :  { %s11868_s28 = scalar_lea.vmem %s104_s5, 32  ;;  %p11873_p6 = scmp.lt.s32.totalorder %s104_s5, %s104_s5 }
  0x35   :  { %p11869_p5 = scmp.ne.s32.totalorder %s104_s5, %s11868_s28  ;;  %p11874_p7 = scmp.lt.s32.totalorder %s11868_s28, %s11868_s28 }
  0x37   :  { %p11875_p8 = por %p11874_p7, %p11873_p6 }
  0x39   :  { %p11876_p9 = pnand %p11875_p8, %p11869_p5 }
  0x3b   :  { %11879 = shalt.err (!%p11876_p9)
}
  0x3c   :  { %106 = dma.hbm_to_vmem [thread:$0]  %s14535_s11, 32, %s104_s5, [#allocation15]  }
  0x3d   :  { %s12117_s29 = smov [#allocation17]   ;;  %s12118_s4 = smov [#allocation20]  }
  0x3e   :  { %s122_s0 = sshll.u32 %s12117_s29, 4  ;;  %s147_s6 = sshll.u32 %s12118_s4, 4  ;;  %s123_s0 = int_to_ptr.vmem [resolvable:$true] %s122_s0  ;;  %s148_s6 = int_to_ptr.vmem [resolvable:$true] %s147_s6 }
  0x3f   :  { %s11880_s22 = scalar_lea.hbm %s14537_s13, 4096 }
  0x40   :  { %p11881_p10 = scmp.ne.s32.totalorder %s14537_s13, %s11880_s22  ;;  %p11884_p11 = scmp.lt.u32.totalorder %s11880_s22, %s14537_s13 }
  0x42   :  { %p11886_p12 = pnand %p11884_p11, %p11881_p10 }
  0x44   :  { %11889 = shalt.err (!%p11886_p12)
}
  0x45   :  { %s11890_s11 = scalar_lea.vmem %s123_s0, 4096  ;;  %p11895_p0 = scmp.lt.s32.totalorder %s123_s0, %s123_s0 }
  0x46   :  { %p11891_p13 = scmp.ne.s32.totalorder %s123_s0, %s11890_s11  ;;  %p11896_p1 = scmp.lt.s32.totalorder %s11890_s11, %s11890_s11 }
  0x48   :  { %p11897_p2 = por %p11896_p1, %p11895_p0 }
  0x4a   :  { %p11898_p3 = pnand %p11897_p2, %p11891_p13 }
  0x4c   :  { %11901 = shalt.err (!%p11898_p3)
}
  0x4d   :  { %s12119_s5 = smov 256   ;;  %s12120_s26 = smov 16  }
  0x4e   :  { %128 = dma.hbm_to_vmem [thread:$0]  %s14537_s13, 4096, %s123_s0, [#allocation18], %s12119_s5, %s12119_s5, %s12120_s26  }
  0x4f   :  { %s11902_s29 = scalar_lea.hbm %s14540_s16, 32 }
  0x50   :  { %p11903_p4 = scmp.ne.s32.totalorder %s14540_s16, %s11902_s29  ;;  %p11906_p5 = scmp.lt.u32.totalorder %s11902_s29, %s14540_s16 }
  0x52   :  { %p11908_p6 = pnand %p11906_p5, %p11903_p4 }
  0x54   :  { %11911 = shalt.err (!%p11908_p6)
}
  0x55   :  { %s11912_s23 = scalar_lea.vmem %s148_s6, 32  ;;  %p11917_p8 = scmp.lt.s32.totalorder %s148_s6, %s148_s6 }
  0x56   :  { %p11913_p7 = scmp.ne.s32.totalorder %s148_s6, %s11912_s23  ;;  %p11918_p9 = scmp.lt.s32.totalorder %s11912_s23, %s11912_s23 }
  0x58   :  { %p11919_p10 = por %p11918_p9, %p11917_p8 }
  0x5a   :  { %p11920_p11 = pnand %p11919_p10, %p11913_p7 }
  0x5c   :  { %11923 = shalt.err (!%p11920_p11)
}
  0x5d   :  { %150 = dma.hbm_to_vmem [thread:$0]  %s14540_s16, 32, %s148_s6, [#allocation21]  }
  0x5e   :  { %s12121_s1 = smov [#allocation23]   ;;  %s12122_s2 = smov [#allocation6]  }
  0x5f   :  { %s167_s24 = sshll.u32 %s12121_s1, 4  ;;  %s47_s11 = sshll.u32 %s12122_s2, 4  ;;  %s168_s24 = int_to_ptr.vmem [resolvable:$true] %s167_s24  ;;  %s48_s11 = int_to_ptr.vmem [resolvable:$true] %s47_s11 }
  0x60   :  { %s11924_s8 = scalar_lea.hbm %s14542_s18, 16 }
  0x61   :  { %p11925_p12 = scmp.ne.s32.totalorder %s14542_s18, %s11924_s8  ;;  %p11928_p13 = scmp.lt.u32.totalorder %s11924_s8, %s14542_s18 }
  0x63   :  { %p11930_p0 = pnand %p11928_p13, %p11925_p12 }
  0x65   :  { %11933 = shalt.err (!%p11930_p0)
}
  0x66   :  { %s11934_s16 = scalar_lea.vmem %s168_s24, 16  ;;  %s11938_s6 = scalar_lea.vmem %s168_s24, 32 }
  0x67   :  { %p11935_p1 = scmp.ne.s32.totalorder %s168_s24, %s11934_s16  ;;  %p11939_p2 = scmp.lt.s32.totalorder %s168_s24, %s168_s24 }
  0x68   :  { %p11940_p3 = scmp.lt.s32.totalorder %s11938_s6, %s11934_s16 }
  0x6a   :  { %p11941_p4 = por %p11940_p3, %p11939_p2 }
  0x6c   :  { %p11942_p5 = pnand %p11941_p4, %p11935_p1 }
  0x6e   :  { %11945 = shalt.err (!%p11942_p5)
}
  0x6f   :  { %170 = dma.hbm_to_vmem [thread:$0]  %s14542_s18, 16, %s168_s24, [#allocation24]  }
  0x70   :  { %s14557_s0 = sld [smem:[#allocation37_spill]] }
  0x76   :  { %s11946_s1 = scalar_lea.hbm %s14557_s0, 64 }
  0x77   :  { %p11947_p6 = scmp.ne.s32.totalorder %s14557_s0, %s11946_s1  ;;  %p11950_p7 = scmp.lt.u32.totalorder %s11946_s1, %s14557_s0 }
  0x79   :  { %p11952_p8 = pnand %p11950_p7, %p11947_p6 }
  0x7b   :  { %11955 = shalt.err (!%p11952_p8)
}
  0x7c   :  { %s11956_s27 = scalar_lea.vmem %s48_s11, 64  ;;  %p11961_p10 = scmp.lt.s32.totalorder %s48_s11, %s48_s11 }
  0x7d   :  { %p11957_p9 = scmp.ne.s32.totalorder %s48_s11, %s11956_s27  ;;  %p11962_p11 = scmp.lt.s32.totalorder %s11956_s27, %s11956_s27 }
  0x7f   :  { %p11963_p12 = por %p11962_p11, %p11961_p10 }
  0x81   :  { %p11964_p13 = pnand %p11963_p12, %p11957_p9 }
  0x83   :  { %11967 = shalt.err (!%p11964_p13)
}
  0x84   :  { %50 = dma.hbm_to_vmem [thread:$0]  %s14557_s0, 64, %s48_s11, [#allocation7]  }
  0x85   :  { %s12123_s29 = smov [#allocation10]   ;;  %s12124_s25 = smov [#allocation13]  }
  0x86   :  { %s68_s4 = sshll.u32 %s12123_s29, 4  ;;  %s93_s16 = sshll.u32 %s12124_s25, 4  ;;  %s69_s4 = int_to_ptr.vmem [resolvable:$true] %s68_s4  ;;  %s94_s16 = int_to_ptr.vmem [resolvable:$true] %s93_s16 }
  0x87   :  { %s11968_s22 = scalar_lea.hbm %s14531_s7, 4096 }
  0x88   :  { %p11969_p0 = scmp.ne.s32.totalorder %s14531_s7, %s11968_s22  ;;  %p11972_p1 = scmp.lt.u32.totalorder %s11968_s22, %s14531_s7 }
  0x8a   :  { %p11974_p2 = pnand %p11972_p1, %p11969_p0 }
  0x8c   :  { %11977 = shalt.err (!%p11974_p2)
}
  0x8d   :  { %s11978_s11 = scalar_lea.vmem %s69_s4, 4096  ;;  %p11983_p4 = scmp.lt.s32.totalorder %s69_s4, %s69_s4 }
  0x8e   :  { %p11979_p3 = scmp.ne.s32.totalorder %s69_s4, %s11978_s11  ;;  %p11984_p5 = scmp.lt.s32.totalorder %s11978_s11, %s11978_s11 }
  0x90   :  { %p11985_p6 = por %p11984_p5, %p11983_p4 }
  0x92   :  { %p11986_p7 = pnand %p11985_p6, %p11979_p3 }
  0x94   :  { %11989 = shalt.err (!%p11986_p7)
}
  0x95   :  { %74 = dma.hbm_to_vmem [thread:$0]  %s14531_s7, 4096, %s69_s4, [#allocation9], %s12119_s5, %s12119_s5, %s12120_s26  }
  0x96   :  { %s11990_s27 = scalar_lea.hbm %s14534_s10, 32 }
  0x97   :  { %p11991_p8 = scmp.ne.s32.totalorder %s14534_s10, %s11990_s27  ;;  %p11994_p9 = scmp.lt.u32.totalorder %s11990_s27, %s14534_s10 }
  0x99   :  { %p11996_p10 = pnand %p11994_p9, %p11991_p8 }
  0x9b   :  { %11999 = shalt.err (!%p11996_p10)
}
  0x9c   :  { %s12000_s6 = scalar_lea.vmem %s94_s16, 32  ;;  %p12005_p12 = scmp.lt.s32.totalorder %s94_s16, %s94_s16 }
  0x9d   :  { %p12001_p11 = scmp.ne.s32.totalorder %s94_s16, %s12000_s6  ;;  %p12006_p13 = scmp.lt.s32.totalorder %s12000_s6, %s12000_s6 }
  0x9f   :  { %p12007_p0 = por %p12006_p13, %p12005_p12 }
  0xa1   :  { %p12008_p1 = pnand %p12007_p0, %p12001_p11 }
  0xa3   :  { %12011 = shalt.err (!%p12008_p1)
}
  0xa4   :  { %96 = dma.hbm_to_vmem [thread:$0]  %s14534_s10, 32, %s94_s16, [#allocation12]  }
  0xa5   :  { %s12125_s4 = smov [#allocation16]   ;;  %s12126_s22 = smov [#allocation19]  }
  0xa6   :  { %s113_s30 = sshll.u32 %s12125_s4, 4  ;;  %s135_s23 = sshll.u32 %s12126_s22, 4  ;;  %s114_s30 = int_to_ptr.vmem [resolvable:$true] %s113_s30  ;;  %s136_s23 = int_to_ptr.vmem [resolvable:$true] %s135_s23 }
  0xa7   :  { %s12012_s2 = scalar_lea.hbm %s14536_s12, 32 }
  0xa8   :  { %p12013_p2 = scmp.ne.s32.totalorder %s14536_s12, %s12012_s2  ;;  %p12016_p3 = scmp.lt.u32.totalorder %s12012_s2, %s14536_s12 }
  0xaa   :  { %p12018_p4 = pnand %p12016_p3, %p12013_p2 }
  0xac   :  { %12021 = shalt.err (!%p12018_p4)
}
  0xad   :  { %s12022_s10 = scalar_lea.vmem %s114_s30, 32  ;;  %p12027_p6 = scmp.lt.s32.totalorder %s114_s30, %s114_s30 }
  0xae   :  { %p12023_p5 = scmp.ne.s32.totalorder %s114_s30, %s12022_s10  ;;  %p12028_p7 = scmp.lt.s32.totalorder %s12022_s10, %s12022_s10 }
  0xb0   :  { %p12029_p8 = por %p12028_p7, %p12027_p6 }
  0xb2   :  { %p12030_p9 = pnand %p12029_p8, %p12023_p5 }
  0xb4   :  { %12033 = shalt.err (!%p12030_p9)
}
  0xb5   :  { %116 = dma.hbm_to_vmem [thread:$0]  %s14536_s12, 32, %s114_s30, [#allocation15]  }
  0xb6   :  { %s12034_s24 = scalar_lea.hbm %s14538_s14, 64 }
  0xb7   :  { %p12035_p10 = scmp.ne.s32.totalorder %s14538_s14, %s12034_s24  ;;  %p12038_p11 = scmp.lt.u32.totalorder %s12034_s24, %s14538_s14 }
  0xb9   :  { %p12040_p12 = pnand %p12038_p11, %p12035_p10 }
  0xbb   :  { %12043 = shalt.err (!%p12040_p12)
}
  0xbc   :  { %s12044_s5 = scalar_lea.vmem %s136_s23, 64  ;;  %p12049_p0 = scmp.lt.s32.totalorder %s136_s23, %s136_s23 }
  0xbd   :  { %p12045_p13 = scmp.ne.s32.totalorder %s136_s23, %s12044_s5  ;;  %p12050_p1 = scmp.lt.s32.totalorder %s12044_s5, %s12044_s5 }
  0xbf   :  { %p12051_p2 = por %p12050_p1, %p12049_p0 }
  0xc1   :  { %p12052_p3 = pnand %p12051_p2, %p12045_p13 }
  0xc3   :  { %12055 = shalt.err (!%p12052_p3)
}
  0xc4   :  { %138 = dma.hbm_to_vmem [thread:$0]  %s14538_s14, 64, %s136_s23, [#allocation18]  }
  0xc5   :  { %s12127_s30 = smov [#allocation22]   ;;  %s12128_s13 = smov [#allocation25]  }
  0xc6   :  { %s157_s22 = sshll.u32 %s12127_s30, 4  ;;  %s179_s1 = sshll.u32 %s12128_s13, 4  ;;  %s158_s22 = int_to_ptr.vmem [resolvable:$true] %s157_s22  ;;  %s180_s1 = int_to_ptr.vmem [resolvable:$true] %s179_s1 }
  0xc7   :  { %s12056_s0 = scalar_lea.hbm %s14541_s17, 16 }
  0xc8   :  { %p12057_p4 = scmp.ne.s32.totalorder %s14541_s17, %s12056_s0  ;;  %p12060_p5 = scmp.lt.u32.totalorder %s12056_s0, %s14541_s17 }
  0xca   :  { %p12062_p6 = pnand %p12060_p5, %p12057_p4 }
  0xcc   :  { %12065 = shalt.err (!%p12062_p6)
}
  0xcd   :  { %s12066_s14 = scalar_lea.vmem %s158_s22, 16  ;;  %s12070_s23 = scalar_lea.vmem %s158_s22, 32 }
  0xce   :  { %p12067_p7 = scmp.ne.s32.totalorder %s158_s22, %s12066_s14  ;;  %p12071_p8 = scmp.lt.s32.totalorder %s158_s22, %s158_s22 }
  0xcf   :  { %p12072_p9 = scmp.lt.s32.totalorder %s12070_s23, %s12066_s14 }
  0xd1   :  { %p12073_p10 = por %p12072_p9, %p12071_p8 }
  0xd3   :  { %p12074_p11 = pnand %p12073_p10, %p12067_p7 }
  0xd5   :  { %12077 = shalt.err (!%p12074_p11)
}
  0xd6   :  { %160 = dma.hbm_to_vmem [thread:$0]  %s14541_s17, 16, %s158_s22, [#allocation21]  }
  0xd7   :  { %s12078_s29 = scalar_lea.hbm %s14544_s20, 16 }
  0xd8   :  { %p12079_p12 = scmp.ne.s32.totalorder %s14544_s20, %s12078_s29  ;;  %p12082_p13 = scmp.lt.u32.totalorder %s12078_s29, %s14544_s20 }
  0xda   :  { %p12084_p0 = pnand %p12082_p13, %p12079_p12 }
  0xdc   :  { %12087 = shalt.err (!%p12084_p0)
}
  0xdd   :  { %s12088_s12 = scalar_lea.vmem %s180_s1, 16  ;;  %s12092_s4 = scalar_lea.vmem %s180_s1, 32 }
  0xde   :  { %p12089_p1 = scmp.ne.s32.totalorder %s180_s1, %s12088_s12  ;;  %p12093_p2 = scmp.lt.s32.totalorder %s180_s1, %s180_s1 }
  0xdf   :  { %p12094_p3 = scmp.lt.s32.totalorder %s12092_s4, %s12088_s12 }
  0xe1   :  { %p12095_p4 = por %p12094_p3, %p12093_p2 }
  0xe3   :  { %p12096_p5 = pnand %p12095_p4, %p12089_p1 }
  0xe5   :  { %12099 = shalt.err (!%p12096_p5)
}
  0xe6   :  { %182 = dma.hbm_to_vmem [thread:$0]  %s14544_s20, 16, %s180_s1, [#allocation24]  }
  0xe7   :  { %12100 = dma.done.wait [#allocation7], 64  }
  0xe8   :  { %12101 = vsyncadd [#allocation7], 4294967232 }
  0xe9   :  { %12102 = dma.done.wait [#allocation9], 4128  }
  0xea   :  { %12103 = vsyncadd [#allocation9], 4294963168 }
  0xeb   :  { %12104 = dma.done.wait [#allocation12], 96  }
  0xec   :  { %12105 = vsyncadd [#allocation12], 4294967200 }
  0xed   :  { %12106 = dma.done.wait [#allocation15], 64  }
  0xee   :  { %12107 = vsyncadd [#allocation15], 4294967232 }
  0xef   :  { %12108 = dma.done.wait [#allocation18], 4160  }
  0xf0   :  { %12109 = vsyncadd [#allocation18], 4294963136 }
  0xf1   :  { %12110 = dma.done.wait [#allocation21], 48  }
  0xf2   :  { %12111 = vsyncadd [#allocation21], 4294967248 }
  0xf3   :  { %12112 = dma.done.wait [#allocation24], 32  }
  0xf4   :  { %12113 = vsyncadd [#allocation24], 4294967264  ;;  %vm237_vm0 = vcmask 261120   ;;  %s14558_s2 = sld [smem:[#allocation34_spill]]  ;;  %s14559_s14 = sld [smem:[#allocation33_spill]]  ;;  %vm336_vm1 = vcmask 523264  }
  0xf5   :  { %s14560_s27 = sld [smem:[#allocation36_spill]]  ;;  %v12129_v14 = vmov 0.0   ;;  %s14561_s30 = sld [smem:[#allocation35_spill]]  ;;  %vm3680_vm2 = vcmask 130048   ;;  %vm4097_vm4 = vcmask 261248   ;;  %vm4322_vm5 = vcmask 392448  }
  0xf6   :  { %338 = vst.msk [vmem:[#allocation2 + $0x8] sm:$0xff] %vm336_vm1, %v12129_v14  ;;  %339 = vst.msk [vmem:[#allocation2 + $0x10] sm:$0xff] %vm336_vm1, %v12129_v14  ;;  %s14562_s17 = sld [smem:[#allocation38_spill]]  ;;  %s12132_s22 = smov 48   ;;  %vm4547_vm6 = vcmask 523648   ;;  %vm8607_vm7 = vcmask 916992  }
  0xf7   :  { %337 = vst.msk [vmem:[#allocation2] sm:$0xff] %vm336_vm1, %v12129_v14  ;;  %8583 = vst [vmem:[%s14545_s21] sm:$0xff] %v12129_v14  ;;  %s12133_s13 = smov 32   ;;  %s12135_s20 = smov 80  }
  0xf8   :  { %8584 = vst [vmem:[%s14545_s21 + $0x8] sm:$0xff] %v12129_v14  ;;  %8585 = vst [vmem:[%s14545_s21 + $0x10] sm:$0xff] %v12129_v14 }
  0xf9   :  { %8586 = vst [vmem:[%s14545_s21 + $0x18] sm:$0xff] %v12129_v14  ;;  %vm13408_vm3 = vmpackc.low %vm3680_vm2, %vm3680_vm2 }
  0xfa   :  { %v226_v0 = vld [vmem:[%s14558_s2] sm:$0xff]  ;;  %v227_v1 = vld [vmem:[%s14558_s2 + $0x8] sm:$0xff]  ;;  %v228_v2 = vld [vmem:[%s14558_s2 + $0x10] sm:$0xff] }
  0xfb   :  { %v10528_v3 = vpack.c.bf16 %v227_v1, %v226_v0  ;;  %v229_v4 = vld [vmem:[%s14558_s2 + $0x18] sm:$0xff]  ;;  %v222_v5 = vld [vmem:[%s14559_s14] sm:$0xff]  ;;  %v8629_v8 = vld [vmem:[%s14560_s27 + $0x48] sm:$0xff]  ;;  %s12134_s2 = smov 96  }
  0xfc   :  { %v10532_v6 = vpack.c.bf16 %v229_v4, %v228_v2  ;;  %9662 = vmatprep.mubr.msk.f32.mxu0 %vm237_vm0, %v222_v5  ;;  %v8628_v7 = vld [vmem:[%s14560_s27 + $0x40] sm:$0xff]  ;;  %v223_v10 = vld [vmem:[%s14559_s14 + $0x8] sm:$0xff]  ;;  %v8630_v11 = vld [vmem:[%s14560_s27 + $0x50] sm:$0xff] }
  0xfd   :  { %10529 = vmatprep.subr.bf16.mxu0 %v10528_v3  ;;  %v10536_v9 = vpack.c.bf16 %v8629_v8, %v8628_v7  ;;  %v8631_v12 = vld [vmem:[%s14560_s27 + $0x58] sm:$0xff]  ;;  %v8632_v15 = vld [vmem:[%s14560_s27 + $0x60] sm:$0xff]  ;;  %v8633_v16 = vld [vmem:[%s14560_s27 + $0x68] sm:$0xff] }
  0xfe   :  { %10531 = vmatpush3.bf16.msra.mxu0 %v10528_v3  ;;  %v10540_v13 = vpack.c.bf16 %v8631_v12, %v8630_v11  ;;  %v10544_v17 = vpack.c.bf16 %v8633_v16, %v8632_v15  ;;  %v8634_v18 = vld [vmem:[%s14560_s27 + $0x70] sm:$0xff]  ;;  %v8635_v19 = vld [vmem:[%s14560_s27 + $0x78] sm:$0xff]  ;;  %v344_v21 = vld [vmem:[%s14560_s27] sm:$0xff] }
  0xff   :  { %10533 = vmatprep.subr.bf16.mxu0 %v10532_v6  ;;  %10537 = vmatprep.subr.bf16.mxu1 %v10536_v9  ;;  %v10548_v20 = vpack.c.bf16 %v8635_v19, %v8634_v18  ;;  %v345_v22 = vld [vmem:[%s14560_s27 + $0x8] sm:$0xff]  ;;  %v224_v24 = vld [vmem:[%s14559_s14 + $0x10] sm:$0xff]  ;;  %v225_v25 = vld [vmem:[%s14559_s14 + $0x18] sm:$0xff]  ;;  %s12131_s14 = smov 112  }
 0x100   :  { %10539 = vmatpush3.bf16.msra.mxu1 %v10536_v9  ;;  %v12480_v23 = vpack.c.bf16 %v345_v22, %v344_v21  ;;  %v12495_v26 = vld [vmem:[%s14561_s30] ss:$0 sm:$0xff]  ;;  %v346_v31 = vld [vmem:[%s14560_s27 + $0x10] sm:$0xff]  ;;  %v347_v32 = vld [vmem:[%s14560_s27 + $0x18] sm:$0xff]  ;;  %s12130_s30 = smov 64  }
 0x101   :  { %10541 = vmatprep.subr.bf16.mxu1 %v10540_v13  ;;  %v348_v35 = vld [vmem:[%s14560_s27 + $0x20] sm:$0xff]  ;;  %v12520_v38 = vpack.c.bf16 %v347_v32, %v346_v31  ;;  %v349_v42 = vld [vmem:[%s14560_s27 + $0x28] sm:$0xff]  ;;  %v350_v47 = vld [vmem:[%s14560_s27 + $0x30] sm:$0xff] }
 0x102   :  { %10535 = vmatpush3.bf16.msra.mxu0 %v10532_v6  ;;  %v12538_v46 = vpack.c.bf16 %v349_v42, %v348_v35  ;;  %v351_v48 = vld [vmem:[%s14560_s27 + $0x38] sm:$0xff]  ;;  %v8640_v50 = vld [vmem:[%s14560_s27 + $0x80] sm:$0xff]  ;;  %v8641_v51 = vld [vmem:[%s14560_s27 + $0x88] sm:$0xff] }
 0x103   :  { %10617 = vmatprep.subr.bf16.mxu0 %v10536_v9  ;;  %v12548_v49 = vpack.c.bf16 %v351_v48, %v350_v47  ;;  %v12558_v52 = vpack.c.bf16 %v8641_v51, %v8640_v50  ;;  %v8642_v53 = vld [vmem:[%s14560_s27 + $0x90] sm:$0xff]  ;;  %v8643_v54 = vld [vmem:[%s14560_s27 + $0x98] sm:$0xff]  ;;  %v8644_v56 = vld [vmem:[%s14560_s27 + $0xa0] sm:$0xff] }
 0x104   :  { %10543 = vmatpush3.bf16.msra.mxu1 %v10540_v13  ;;  %v12568_v55 = vpack.c.bf16 %v8643_v54, %v8642_v53  ;;  %v8645_v57 = vld [vmem:[%s14560_s27 + $0xa8] sm:$0xff]  ;;  %v8646_v59 = vld [vmem:[%s14560_s27 + $0xb0] sm:$0xff]  ;;  %v8647_v60 = vld [vmem:[%s14560_s27 + $0xb8] sm:$0xff] }
 0x105   :  { %9663 = vmatmul.mubr.msk.f32.vlgmr.msra.gmra.mrb[0].mxu0 %vm237_vm0, %v223_v10  ;;  %10545 = vmatprep.subr.bf16.mxu1 %v10544_v17  ;;  %v12580_v58 = vpack.c.bf16 %v8645_v57, %v8644_v56  ;;  %v12590_v61 = vpack.c.bf16 %v8647_v60, %v8646_v59  ;;  %v8650_v62 = vld [vmem:[%s14560_s27 + $0xc0] sm:$0xff]  ;;  %v8651_v63 = vld [vmem:[%s14560_s27 + $0xc8] sm:$0xff]  ;;  %v8652_v1 = vld [vmem:[%s14560_s27 + $0xd0] sm:$0xff] }
 0x106   :  { %10619 = vmatpush3.bf16.msra.mxu0 %v10536_v9  ;;  %9665 = vmatprep.mubr.msk.f32.mxu0 %vm237_vm0, %v224_v24  ;;  %v12600_v0 = vpack.c.bf16 %v8651_v63, %v8650_v62  ;;  %v8653_v2 = vld [vmem:[%s14560_s27 + $0xd8] sm:$0xff]  ;;  %v8654_v4 = vld [vmem:[%s14560_s27 + $0xe0] sm:$0xff]  ;;  %v8655_v5 = vld [vmem:[%s14560_s27 + $0xe8] sm:$0xff] }
 0x107   :  { %10621 = vmatprep.subr.bf16.mxu0 %v10540_v13  ;;  %v12610_v3 = vpack.c.bf16 %v8653_v2, %v8652_v1  ;;  %v12622_v6 = vpack.c.bf16 %v8655_v5, %v8654_v4  ;;  %v8656_v7 = vld [vmem:[%s14560_s27 + $0xf0] sm:$0xff]  ;;  %v8657_v8 = vld [vmem:[%s14560_s27 + $0xf8] sm:$0xff]  ;;  %v8660_v10 = vld [vmem:[%s14560_s27 + $0x100] sm:$0xff] }
 0x108   :  { %10547 = vmatpush3.bf16.msra.mxu1 %v10544_v17  ;;  %v12632_v9 = vpack.c.bf16 %v8657_v8, %v8656_v7  ;;  %v8661_v11 = vld [vmem:[%s14560_s27 + $0x108] sm:$0xff]  ;;  %v8663_v15 = vld [vmem:[%s14560_s27 + $0x118] sm:$0xff]  ;;  %v8721_v56 = vld [vmem:[%s14560_s27 + $0x180] sm:$0xff] }
 0x109   :  { %10549 = vmatprep.subr.bf16.mxu1 %v10548_v20  ;;  %9666 = vmatmul.mubr.msk.f32.gmra.mrb[2].mxu0 %vm237_vm0, %v225_v25  ;;  %v12642_v12 = vpack.c.bf16 %v8661_v11, %v8660_v10  ;;  %v8665_v18 = vld [vmem:[%s14560_s27 + $0x128] sm:$0xff]  ;;  %v8667_v21 = vld [vmem:[%s14560_s27 + $0x138] sm:$0xff]  ;;  %v8723_v59 = vld [vmem:[%s14560_s27 + $0x190] sm:$0xff] }
 0x10a   :  { %10623 = vmatpush3.bf16.msra.mxu0 %v10540_v13  ;;  %v8662_v13 = vld [vmem:[%s14560_s27 + $0x110] sm:$0xff]  ;;  %v8722_v57 = vld [vmem:[%s14560_s27 + $0x188] sm:$0xff]  ;;  %v8724_v60 = vld [vmem:[%s14560_s27 + $0x198] sm:$0xff] }
 0x10b   :  { %10625 = vmatprep.subr.bf16.mxu0 %v10544_v17  ;;  %v12652_v16 = vpack.c.bf16 %v8663_v15, %v8662_v13  ;;  %v8725_v62 = vld [vmem:[%s14560_s27 + $0x1a0] sm:$0xff]  ;;  %v8726_v63 = vld [vmem:[%s14560_s27 + $0x1a8] sm:$0xff]  ;;  %v8727_v1 = vld [vmem:[%s14560_s27 + $0x1b0] sm:$0xff] }
 0x10c   :  { %10551 = vmatpush3.bf16.msra.mxu1 %v10548_v20  ;;  %v8728_v2 = vld [vmem:[%s14560_s27 + $0x1b8] sm:$0xff]  ;;  %v8713_v4 = vld [vmem:[%s14560_s27 + $0x140] sm:$0xff]  ;;  %v8714_v5 = vld [vmem:[%s14560_s27 + $0x148] sm:$0xff] }
 0x10d   :  { %10553 = vmatprep.subr.bf16.mxu1 %v12480_v23 }
 0x10e   :  { %10627 = vmatpush3.bf16.msra.mxu0 %v10544_v17  ;;  %v8664_v17 = vld [vmem:[%s14560_s27 + $0x120] sm:$0xff] }
 0x10f   :  { %10629 = vmatprep.subr.bf16.mxu0 %v10548_v20  ;;  %v12666_v19 = vpack.c.bf16 %v8665_v18, %v8664_v17 }
 0x112   :  { %10631 = vmatpush3.bf16.msra.mxu0 %v10548_v20  ;;  %v8666_v20 = vld [vmem:[%s14560_s27 + $0x130] sm:$0xff] }
 0x113   :  { %10633 = vmatprep.subr.bf16.mxu0 %v12480_v23  ;;  %v12676_v22 = vpack.c.bf16 %v8667_v21, %v8666_v20 }
 0x1d8   :  { %v9664_v27 = vpop.f32.mrb[0].mxu0 }
 0x1d9   :  { %v12498_v28 = vadd.f32 %v9664_v27, %v12495_v26  ;;  %v316_v29 = vpop.f32.mrb[1].mxu0 }
 0x1da   :  { %v12501_v30 = vadd.f32 %v12495_v26, %v316_v29 }
 0x1db   :  { %341 = vst.msk [vmem:[#allocation2 + $0xa] sm:$0xff] %vm336_vm1, %v12498_v28 }
 0x1dc   :  { %340 = vst.msk [vmem:[#allocation2 + $0x2] sm:$0xff] %vm336_vm1, %v12501_v30  ;;  %v9667_v24 = vpop.f32.mrb[2].mxu0 }
 0x1dd   :  { %v12684_v25 = vadd.f32 %v9667_v24, %v12495_v26  ;;  %v326_v27 = vpop.f32.mrb[3].mxu0 }
 0x1de   :  { %v12687_v29 = vadd.f32 %v12495_v26, %v326_v27 }
 0x1e2   :  { %v12513_v33 = vld [vmem:[#allocation2 + $0xb] sm:$0xff] }
 0x1e3   :  { %v12515_v34 = vld [vmem:[#allocation2 + $0xc] sm:$0xff]  ;;  %v352_v36 = vld [vmem:[#allocation2 + $0x1] sm:$0xff] }
 0x1e4   :  { %v353_v37 = vld [vmem:[#allocation2 + $0x9] sm:$0xff]  ;;  %9684 = vmatprep.mubr.msk.f32.mxu1 %vm336_vm1, %v352_v36  ;;  %v342_v43 = vld [vmem:[#allocation2] sm:$0xff] }
 0x1e5   :  { %v526_v39 = vld [vmem:[#allocation2 + $0xa] sm:$0xff]  ;;  %9685 = vmatmul.mubr.msk.f32.vlgmr.msra.gmra.mrb[0].mxu1 %vm336_vm1, %v353_v37  ;;  %v525_v45 = vld [vmem:[#allocation2 + $0x2] sm:$0xff] }
 0x1e6   :  { %v619_v40 = vld [vmem:[#allocation2 + $0x3] sm:$0xff]  ;;  %860 = vst.msk [vmem:[#allocation2 + $0x10] sm:$0xff] %vm336_vm1, %v12129_v14  ;;  %10555 = vmatpush3.bf16.msra.mxu1 %v12480_v23  ;;  %9703 = vmatprep.mubr.msk.f32.mxu1 %vm336_vm1, %v342_v43 }
 0x1e7   :  { %v12522_v41 = vld [vmem:[#allocation2 + $0x4] sm:$0xff]  ;;  %10557 = vmatprep.subr.bf16.mxu1 %v12520_v38 }
 0x1e8   :  { %v343_v44 = vld [vmem:[#allocation2 + $0x8] sm:$0xff]  ;;  %858 = vst.msk [vmem:[#allocation2] sm:$0xff] %vm336_vm1, %v12129_v14 }
 0x1e9   :  { %859 = vst.msk [vmem:[#allocation2 + $0x8] sm:$0xff] %vm336_vm1, %v12129_v14 }
 0x1ea   :  { %10559 = vmatpush3.bf16.msra.mxu1 %v12520_v38  ;;  %862 = vst.msk [vmem:[#allocation2 + $0xa] sm:$0xff] %vm336_vm1, %v12684_v25  ;;  %861 = vst.msk [vmem:[#allocation2 + $0x2] sm:$0xff] %vm336_vm1, %v12687_v29 }
 0x1eb   :  { %10561 = vmatprep.subr.bf16.mxu1 %v12538_v46 }
 0x1ee   :  { %10563 = vmatpush3.bf16.msra.mxu1 %v12538_v46 }
 0x1ef   :  { %10565 = vmatprep.subr.bf16.mxu1 %v12548_v49 }
 0x1f1   :  { %v873_v31 = vld [vmem:[#allocation2 + $0x1] sm:$0xff]  ;;  %v874_v32 = vld [vmem:[#allocation2 + $0x9] sm:$0xff] }
 0x1f2   :  { %10567 = vmatpush3.bf16.msra.mxu1 %v12548_v49  ;;  %9779 = vmatprep.mubr.msk.f32.mxu0 %vm336_vm1, %v873_v31  ;;  %v864_v26 = vld [vmem:[#allocation2 + $0x8] sm:$0xff] }
 0x1f3   :  { %10569 = vmatprep.subr.bf16.mxu1 %v12558_v52  ;;  %9780 = vmatmul.mubr.msk.f32.vlgmr.msra.gmra.mrb[4].mxu0 %vm336_vm1, %v874_v32  ;;  %v1045_v42 = vld [vmem:[#allocation2 + $0x2] sm:$0xff]  ;;  %v1046_v43 = vld [vmem:[#allocation2 + $0xa] sm:$0xff] }
 0x1f4   :  { %10635 = vmatpush3.bf16.msra.mxu0 %v12480_v23  ;;  %v12713_v23 = vld [vmem:[#allocation6] ss:$0 sm:$0xff] }
 0x1f5   :  { %9704 = vmatmul.mubr.msk.f32.vlgmr.msra.gmra.mrb[0].mxu1 %vm336_vm1, %v343_v44  ;;  %10637 = vmatprep.subr.bf16.mxu0 %v12520_v38  ;;  %v1139_v44 = vld [vmem:[#allocation2 + $0xb] sm:$0xff] }
 0x1f6   :  { %10571 = vmatpush3.bf16.msra.mxu1 %v12558_v52  ;;  %9722 = vmatprep.mubr.msk.f32.mxu1 %vm336_vm1, %v525_v45  ;;  %v1232_v45 = vld [vmem:[#allocation2 + $0xc] sm:$0xff] }
 0x1f7   :  { %10573 = vmatprep.subr.bf16.mxu1 %v12568_v55  ;;  %1373 = vst.msk [vmem:[#allocation2 + $0x10] sm:$0xff] %vm336_vm1, %v12129_v14 }
 0x1f8   :  { %10639 = vmatpush3.bf16.msra.mxu0 %v12520_v38 }
 0x1f9   :  { %10641 = vmatprep.subr.bf16.mxu0 %v12538_v46 }
 0x1fa   :  { %10575 = vmatpush3.bf16.msra.mxu1 %v12568_v55 }
 0x1fb   :  { %10577 = vmatprep.subr.bf16.mxu1 %v12580_v58 }
 0x1fc   :  { %10643 = vmatpush3.bf16.msra.mxu0 %v12538_v46 }
 0x1fd   :  { %10645 = vmatprep.subr.bf16.mxu0 %v12548_v49 }
 0x1fe   :  { %10579 = vmatpush3.bf16.msra.mxu1 %v12580_v58 }
 0x1ff   :  { %10581 = vmatprep.subr.bf16.mxu1 %v12590_v61 }
 0x200   :  { %10647 = vmatpush3.bf16.msra.mxu0 %v12548_v49 }
 0x201   :  { %10649 = vmatprep.subr.bf16.mxu0 %v12558_v52 }
 0x202   :  { %10583 = vmatpush3.bf16.msra.mxu1 %v12590_v61 }
 0x203   :  { %10585 = vmatprep.subr.bf16.mxu1 %v12600_v0 }
 0x205   :  { %9723 = vmatmul.mubr.msk.f32.vlgmr.msra.gmra.mrb[0].mxu1 %vm336_vm1, %v526_v39 }
 0x206   :  { %10587 = vmatpush3.bf16.msra.mxu1 %v12600_v0  ;;  %9741 = vmatprep.mubr.msk.f32.mxu1 %vm336_vm1, %v619_v40  ;;  %v1138_v40 = vld [vmem:[#allocation2 + $0x3] sm:$0xff] }
 0x207   :  { %10589 = vmatprep.subr.bf16.mxu1 %v12610_v3 }
 0x20a   :  { %10591 = vmatpush3.bf16.msra.mxu1 %v12610_v3 }
 0x20b   :  { %10593 = vmatprep.subr.bf16.mxu1 %v12622_v6 }
 0x20e   :  { %10595 = vmatpush3.bf16.msra.mxu1 %v12622_v6 }
 0x20f   :  { %10597 = vmatprep.subr.bf16.mxu1 %v12632_v9 }
 0x212   :  { %10599 = vmatpush3.bf16.msra.mxu1 %v12632_v9 }
 0x213   :  { %10601 = vmatprep.subr.bf16.mxu1 %v12642_v12 }
 0x215   :  { %9742 = vmatmul.mubr.msk.f32.vlgmr.msra.gmra.mrb[0].mxu1 %vm336_vm1, %v12513_v33  ;;  %v863_v33 = vld [vmem:[#allocation2] sm:$0xff] }
 0x216   :  { %10603 = vmatpush3.bf16.msra.mxu1 %v12642_v12  ;;  %9760 = vmatprep.mubr.msk.f32.mxu1 %vm336_vm1, %v12522_v41  ;;  %v1231_v41 = vld [vmem:[#allocation2 + $0x4] sm:$0xff] }
 0x217   :  { %10605 = vmatprep.subr.bf16.mxu1 %v12652_v16  ;;  %9798 = vmatprep.mubr.msk.f32.mxu0 %vm336_vm1, %v863_v33  ;;  %1371 = vst.msk [vmem:[#allocation2] sm:$0xff] %vm336_vm1, %v12129_v14  ;;  %1372 = vst.msk [vmem:[#allocation2 + $0x8] sm:$0xff] %vm336_vm1, %v12129_v14 }
 0x218   :  { %9799 = vmatmul.mubr.msk.f32.vlgmr.msra.gmra.mrb[4].mxu0 %vm336_vm1, %v864_v26 }
 0x219   :  { %10651 = vmatpush3.bf16.msra.mxu0 %v12558_v52  ;;  %9817 = vmatprep.mubr.msk.f32.mxu0 %vm336_vm1, %v1045_v42 }
 0x21a   :  { %10607 = vmatpush3.bf16.msra.mxu1 %v12652_v16  ;;  %10653 = vmatprep.subr.bf16.mxu0 %v12568_v55 }
 0x21b   :  { %10609 = vmatprep.subr.bf16.mxu1 %v12666_v19 }
 0x21d   :  { %10655 = vmatpush3.bf16.msra.mxu0 %v12568_v55 }
 0x21e   :  { %10611 = vmatpush3.bf16.msra.mxu1 %v12666_v19  ;;  %10657 = vmatprep.subr.bf16.mxu0 %v12580_v58 }
 0x21f   :  { %10613 = vmatprep.subr.bf16.mxu1 %v12676_v22 }
 0x221   :  { %10659 = vmatpush3.bf16.msra.mxu0 %v12580_v58  ;;  %v10696_v58 = vpack.c.bf16 %v8722_v57, %v8721_v56 }
 0x222   :  { %10615 = vmatpush3.bf16.msra.mxu1 %v12676_v22  ;;  %10661 = vmatprep.subr.bf16.mxu0 %v12590_v61 }
 0x223   :  { %10697 = vmatprep.subr.bf16.mxu1 %v10696_v58 }
 0x225   :  { %9761 = vmatmul.mubr.msk.f32.vlgmr.msra.gmra.mrb[0].mxu1 %vm336_vm1, %v12515_v34  ;;  %10663 = vmatpush3.bf16.msra.mxu0 %v12590_v61  ;;  %v10700_v61 = vpack.c.bf16 %v8724_v60, %v8723_v59 }
 0x226   :  { %10665 = vmatprep.subr.bf16.mxu0 %v12600_v0  ;;  %10699 = vmatpush3.bf16.msra.mxu1 %v10696_v58 }
 0x227   :  { %10701 = vmatprep.subr.bf16.mxu1 %v10700_v61 }
 0x228   :  { %9818 = vmatmul.mubr.msk.f32.vlgmr.msra.gmra.mrb[4].mxu0 %vm336_vm1, %v1046_v43 }
 0x229   :  { %10667 = vmatpush3.bf16.msra.mxu0 %v12600_v0  ;;  %9836 = vmatprep.mubr.msk.f32.mxu0 %vm336_vm1, %v1138_v40  ;;  %v10704_v0 = vpack.c.bf16 %v8726_v63, %v8725_v62  ;;  %v8719_v62 = vld [vmem:[%s14560_s27 + $0x170] sm:$0xff]  ;;  %v8720_v63 = vld [vmem:[%s14560_s27 + $0x178] sm:$0xff] }
 0x22a   :  { %10669 = vmatprep.subr.bf16.mxu0 %v12610_v3  ;;  %10703 = vmatpush3.bf16.msra.mxu1 %v10700_v61 }
 0x22b   :  { %10705 = vmatprep.subr.bf16.mxu1 %v10704_v0 }
 0x22d   :  { %10671 = vmatpush3.bf16.msra.mxu0 %v12610_v3  ;;  %v10708_v3 = vpack.c.bf16 %v8728_v2, %v8727_v1  ;;  %v8733_v1 = vld [vmem:[%s14560_s27 + $0x1c0] sm:$0xff]  ;;  %v8734_v2 = vld [vmem:[%s14560_s27 + $0x1c8] sm:$0xff] }
 0x22e   :  { %10673 = vmatprep.subr.bf16.mxu0 %v12622_v6  ;;  %10707 = vmatpush3.bf16.msra.mxu1 %v10704_v0 }
 0x22f   :  { %10709 = vmatprep.subr.bf16.mxu1 %v10708_v3 }
 0x231   :  { %10675 = vmatpush3.bf16.msra.mxu0 %v12622_v6  ;;  %v12778_v6 = vpack.c.bf16 %v8714_v5, %v8713_v4  ;;  %v8735_v4 = vld [vmem:[%s14560_s27 + $0x1d0] sm:$0xff]  ;;  %v8736_v5 = vld [vmem:[%s14560_s27 + $0x1d8] sm:$0xff] }
 0x232   :  { %10677 = vmatprep.subr.bf16.mxu0 %v12632_v9  ;;  %10711 = vmatpush3.bf16.msra.mxu1 %v10708_v3 }
 0x233   :  { %10713 = vmatprep.subr.bf16.mxu1 %v12778_v6 }
 0x235   :  { %10679 = vmatpush3.bf16.msra.mxu0 %v12632_v9 }
 0x236   :  { %10681 = vmatprep.subr.bf16.mxu0 %v12642_v12 }
 0x238   :  { %9837 = vmatmul.mubr.msk.f32.vlgmr.msra.gmra.mrb[4].mxu0 %vm336_vm1, %v1139_v44 }
 0x239   :  { %10683 = vmatpush3.bf16.msra.mxu0 %v12642_v12  ;;  %9855 = vmatprep.mubr.msk.f32.mxu0 %vm336_vm1, %v1231_v41 }
 0x23a   :  { %10685 = vmatprep.subr.bf16.mxu0 %v12652_v16 }
 0x23d   :  { %10687 = vmatpush3.bf16.msra.mxu0 %v12652_v16 }
 0x23e   :  { %10689 = vmatprep.subr.bf16.mxu0 %v12666_v19 }
 0x241   :  { %10691 = vmatpush3.bf16.msra.mxu0 %v12666_v19 }
 0x242   :  { %10693 = vmatprep.subr.bf16.mxu0 %v12676_v22 }
 0x245   :  { %10695 = vmatpush3.bf16.msra.mxu0 %v12676_v22 }
 0x246   :  { %10777 = vmatprep.subr.bf16.mxu0 %v10696_v58 }
 0x248   :  { %9856 = vmatmul.mubr.msk.f32.vlgmr.msra.gmra.mrb[4].mxu0 %vm336_vm1, %v1232_v45 }
 0x249   :  { %10779 = vmatpush3.bf16.msra.mxu0 %v10696_v58 }
 0x24a   :  { %10781 = vmatprep.subr.bf16.mxu0 %v10700_v61 }
 0x24d   :  { %10783 = vmatpush3.bf16.msra.mxu0 %v10700_v61 }
 0x24e   :  { %10785 = vmatprep.subr.bf16.mxu0 %v10704_v0 }
 0x251   :  { %10787 = vmatpush3.bf16.msra.mxu0 %v10704_v0  ;;  %v12835_v0 = vpack.c.bf16 %v8720_v63, %v8719_v62 }
 0x252   :  { %10789 = vmatprep.subr.bf16.mxu0 %v10708_v3 }
 0x255   :  { %10791 = vmatpush3.bf16.msra.mxu0 %v10708_v3  ;;  %v12845_v3 = vpack.c.bf16 %v8734_v2, %v8733_v1 }
 0x256   :  { %10793 = vmatprep.subr.bf16.mxu0 %v12778_v6 }
 0x2f8   :  { %v9762_v34 = vpop.f32.mrb[0].mxu1 }
 0x2f9   :  { %v796_v35 = vpop.f32.mrb[1].mxu1  ;;  %v812_v37 = vadd.f32 %v9762_v34, %v12713_v23 }
 0x2fa   :  { %v811_v36 = vadd.f32 %v12713_v23, %v796_v35 }
 0x2fb   :  { %v816_v39 = vsel %vm336_vm1, %v812_v37, 0.0 }
 0x2fc   :  { %v813_v38 = vsel %vm336_vm1, %v811_v36, 0.0 }
 0x2fd   :  { %814 = vadd.xlane.f32.xlu0 %v813_v38 }
 0x301   :  { %817 = vadd.xlane.f32.xlu0 %v816_v39 }
 0x31b   :  { %v9857_v7 = vpop.f32.mrb[4].mxu0 }
 0x31c   :  { %v12783_v8 = vadd.f32 %v9857_v7, %v12713_v23  ;;  %v1313_v9 = vpop.f32.mrb[5].mxu0  ;;  %v12855_v7 = vpack.c.bf16 %v8736_v5, %v8735_v4 }
 0x31d   :  { %v12786_v10 = vadd.f32 %v12713_v23, %v1313_v9  ;;  %v8737_v9 = vld [vmem:[%s14560_s27 + $0x1e0] sm:$0xff] }
 0x31e   :  { %v1329_v12 = vsel %vm336_vm1, %v12783_v8, 0.0 }
 0x31f   :  { %v1326_v11 = vsel %vm336_vm1, %v12786_v10, 0.0 }
 0x320   :  { %1327 = vadd.xlane.f32.xlu0 %v1326_v11  ;;  %v8738_v11 = vld [vmem:[%s14560_s27 + $0x1e8] sm:$0xff] }
 0x38a   :  { %v815_v46 = vpop.xlane.xlu0 %814 }
 0x38b   :  { %v820_v47 = vmul.f32 0.015625, %v815_v46 }
 0x38d   :  { %v822_v48 = vsub.f32 %v811_v36, %v820_v47  ;;  %v8715_v47 = vld [vmem:[%s14560_s27 + $0x150] sm:$0xff] }
 0x38e   :  { %v818_v49 = vpop.xlane.xlu0 %817 }
 0x38f   :  { %v821_v50 = vmul.f32 0.015625, %v818_v49  ;;  %v824_v51 = vmul.f32 %v822_v48, %v822_v48 }
 0x391   :  { %v823_v52 = vsub.f32 %v812_v37, %v821_v50  ;;  %v826_v53 = vsel %vm336_vm1, %v824_v51, 0.0  ;;  %v8717_v50 = vld [vmem:[%s14560_s27 + $0x160] sm:$0xff]  ;;  %v8718_v51 = vld [vmem:[%s14560_s27 + $0x168] sm:$0xff] }
 0x392   :  { %827 = vadd.xlane.f32.xlu1 %v826_v53  ;;  %v12821_v61 = vpack.c.bf16 %v8718_v51, %v8717_v50  ;;  %v12970_v50 = vld [vmem:[#allocation6 + $0x1] ss:$0 sm:$0xff] }
 0x393   :  { %v825_v54 = vmul.f32 %v823_v52, %v823_v52 }
 0x395   :  { %v829_v55 = vsel %vm336_vm1, %v825_v54, 0.0 }
 0x396   :  { %830 = vadd.xlane.f32.xlu1 %v829_v55 }
 0x39a   :  { %1330 = vadd.xlane.f32.xlu1 %v1329_v12  ;;  %v12867_v12 = vpack.c.bf16 %v8738_v11, %v8737_v9 }
 0x41f   :  { %v828_v13 = vpop.xlane.xlu1 %827 }
 0x420   :  { %v832_v15 = vmul.f32 0.015625, %v828_v13  ;;  %v8739_v13 = vld [vmem:[%s14560_s27 + $0x1f0] sm:$0xff] }
 0x422   :  { %v834_v16 = vadd.f32 1e-05, %v832_v15  ;;  %v8740_v15 = vld [vmem:[%s14560_s27 + $0x1f8] sm:$0xff] }
 0x423   :  { %v831_v17 = vpop.xlane.xlu1 %830 }
 0x424   :  { %11562 = vrsqrt.f32 %v834_v16  ;;  %v833_v18 = vmul.f32 0.015625, %v831_v17  ;;  %v12877_v16 = vpack.c.bf16 %v8740_v15, %v8739_v13  ;;  %v8743_v17 = vld [vmem:[%s14560_s27 + $0x200] sm:$0xff] }
 0x426   :  { %v835_v19 = vadd.f32 1e-05, %v833_v18  ;;  %v8744_v18 = vld [vmem:[%s14560_s27 + $0x208] sm:$0xff] }
 0x428   :  { %11564 = vrsqrt.f32 %v835_v19  ;;  %v12887_v19 = vpack.c.bf16 %v8744_v18, %v8743_v17 }
 0x42e   :  { %v11563_v20 = vpop.eup %11562 }
 0x42f   :  { %v838_v21 = vmul.f32 %v11563_v20, %v822_v48  ;;  %v8716_v48 = vld [vmem:[%s14560_s27 + $0x158] sm:$0xff]  ;;  %v8745_v20 = vld [vmem:[%s14560_s27 + $0x210] sm:$0xff] }
 0x430   :  { %v12801_v49 = vpack.c.bf16 %v8716_v48, %v8715_v47 }
 0x431   :  { %v842_v22 = vmul.f32 0.044715, %v838_v21  ;;  %v840_v39 = vmul.f32 0.5, %v838_v21 }
 0x432   :  { %v11565_v24 = vpop.eup %11564 }
 0x433   :  { %v844_v27 = vmul.f32 %v842_v22, %v838_v21  ;;  %v839_v31 = vmul.f32 %v11565_v24, %v823_v52  ;;  %v8747_v24 = vld [vmem:[%s14560_s27 + $0x220] sm:$0xff] }
 0x435   :  { %v846_v32 = vmul.f32 %v844_v27, %v838_v21  ;;  %v843_v33 = vmul.f32 0.044715, %v839_v31  ;;  %v841_v43 = vmul.f32 0.5, %v839_v31  ;;  %v8748_v27 = vld [vmem:[%s14560_s27 + $0x228] sm:$0xff] }
 0x437   :  { %v848_v26 = vadd.f32 %v846_v32, %v838_v21  ;;  %v845_v23 = vmul.f32 %v843_v33, %v839_v31  ;;  %v8746_v21 = vld [vmem:[%s14560_s27 + $0x218] sm:$0xff]  ;;  %v8749_v32 = vld [vmem:[%s14560_s27 + $0x230] sm:$0xff] }
 0x438   :  { %v12897_v22 = vpack.c.bf16 %v8746_v21, %v8745_v20  ;;  %v8750_v33 = vld [vmem:[%s14560_s27 + $0x238] sm:$0xff] }
 0x439   :  { %v850_v34 = vmul.f32 0.7978846, %v848_v26  ;;  %v847_v35 = vmul.f32 %v845_v23, %v839_v31  ;;  %v12919_v26 = vpack.c.bf16 %v8750_v33, %v8749_v32  ;;  %v8753_v23 = vld [vmem:[%s14560_s27 + $0x240] sm:$0xff] }
 0x43b   :  { %11566 = vtanh.f32 %v850_v34  ;;  %v849_v36 = vadd.f32 %v847_v35, %v839_v31  ;;  %v12909_v31 = vpack.c.bf16 %v8748_v27, %v8747_v24  ;;  %v8754_v34 = vld [vmem:[%s14560_s27 + $0x248] sm:$0xff] }
 0x43c   :  { %v12929_v35 = vpack.c.bf16 %v8754_v34, %v8753_v23 }
 0x43d   :  { %v851_v37 = vmul.f32 0.7978846, %v849_v36  ;;  %v8755_v36 = vld [vmem:[%s14560_s27 + $0x250] sm:$0xff] }
 0x43f   :  { %11568 = vtanh.f32 %v851_v37  ;;  %v8756_v37 = vld [vmem:[%s14560_s27 + $0x258] sm:$0xff] }
 0x445   :  { %v11567_v38 = vpop.eup %11566 }
 0x446   :  { %v854_v40 = vadd.f32 1.0, %v11567_v38  ;;  %v12939_v38 = vpack.c.bf16 %v8756_v37, %v8755_v36 }
 0x448   :  { %v856_v41 = vmul.f32 %v854_v40, %v840_v39  ;;  %v8757_v39 = vld [vmem:[%s14560_s27 + $0x260] sm:$0xff]  ;;  %v8758_v40 = vld [vmem:[%s14560_s27 + $0x268] sm:$0xff] }
 0x449   :  { %v11569_v42 = vpop.eup %11568 }
 0x44a   :  { %1374 = vst.msk [vmem:[#allocation2 + $0x2] sm:$0xff] %vm336_vm1, %v856_v41  ;;  %v855_v44 = vadd.f32 1.0, %v11569_v42  ;;  %v12953_v41 = vpack.c.bf16 %v8758_v40, %v8757_v39  ;;  %v8759_v42 = vld [vmem:[%s14560_s27 + $0x270] sm:$0xff] }
 0x44c   :  { %v857_v45 = vmul.f32 %v855_v44, %v841_v43  ;;  %v8760_v43 = vld [vmem:[%s14560_s27 + $0x278] sm:$0xff] }
 0x44d   :  { %v12963_v44 = vpack.c.bf16 %v8760_v43, %v8759_v42 }
 0x44e   :  { %1375 = vst.msk [vmem:[#allocation2 + $0xa] sm:$0xff] %vm336_vm1, %v857_v45  ;;  %v1331_v45 = vpop.xlane.xlu1 %1330 }
 0x44f   :  { %v1333_v47 = vmul.f32 0.015625, %v1331_v45 }
 0x451   :  { %v1387_v46 = vld [vmem:[#allocation2 + $0x1] sm:$0xff]  ;;  %v1335_v51 = vsub.f32 %v12783_v8, %v1333_v47 }
 0x452   :  { %9874 = vmatprep.mubr.msk.f32.mxu1 %vm336_vm1, %v1387_v46  ;;  %v1376_v53 = vld [vmem:[#allocation2] sm:$0xff]  ;;  %v1328_v46 = vpop.xlane.xlu0 %1327 }
 0x453   :  { %v1560_v54 = vld [vmem:[#allocation2 + $0x2] sm:$0xff]  ;;  %v1332_v48 = vmul.f32 0.015625, %v1328_v46 }
 0x455   :  { %v1388_v52 = vld [vmem:[#allocation2 + $0x9] sm:$0xff] }
 0x456   :  { %9875 = vmatmul.mubr.msk.f32.vlgmr.msra.gmra.mrb[2].mxu1 %vm336_vm1, %v1388_v52  ;;  %v1377_v55 = vld [vmem:[#allocation2 + $0x8] sm:$0xff]  ;;  %v1334_v52 = vsub.f32 %v12786_v10, %v1332_v48 }
 0x457   :  { %v1654_v56 = vld [vmem:[#allocation2 + $0x3] sm:$0xff]  ;;  %10715 = vmatpush3.bf16.msra.mxu1 %v12778_v6  ;;  %9893 = vmatprep.mubr.msk.f32.mxu1 %vm336_vm1, %v1376_v53  ;;  %v12814_v59 = vld [vmem:[#allocation2 + $0xb] sm:$0xff] }
 0x458   :  { %v12810_v57 = vld [vmem:[#allocation2 + $0x4] sm:$0xff]  ;;  %v12818_v60 = vld [vmem:[#allocation2 + $0xc] sm:$0xff]  ;;  %10717 = vmatprep.subr.bf16.mxu1 %v12801_v49 }
 0x459   :  { %v1561_v58 = vld [vmem:[#allocation2 + $0xa] sm:$0xff]  ;;  %1892 = vst.msk [vmem:[#allocation2] sm:$0xff] %vm336_vm1, %v12129_v14 }
 0x45a   :  { %1894 = vst.msk [vmem:[#allocation2 + $0x10] sm:$0xff] %vm336_vm1, %v12129_v14  ;;  %1893 = vst.msk [vmem:[#allocation2 + $0x8] sm:$0xff] %vm336_vm1, %v12129_v14 }
 0x45b   :  { %10719 = vmatpush3.bf16.msra.mxu1 %v12801_v49 }
 0x45c   :  { %10721 = vmatprep.subr.bf16.mxu1 %v12821_v61 }
 0x45f   :  { %10723 = vmatpush3.bf16.msra.mxu1 %v12821_v61 }
 0x460   :  { %10725 = vmatprep.subr.bf16.mxu1 %v12835_v0 }
 0x463   :  { %10727 = vmatpush3.bf16.msra.mxu1 %v12835_v0 }
 0x464   :  { %10729 = vmatprep.subr.bf16.mxu1 %v12845_v3 }
 0x466   :  { %9894 = vmatmul.mubr.msk.f32.vlgmr.msra.gmra.mrb[2].mxu1 %vm336_vm1, %v1377_v55 }
 0x467   :  { %10731 = vmatpush3.bf16.msra.mxu1 %v12845_v3  ;;  %9912 = vmatprep.mubr.msk.f32.mxu1 %vm336_vm1, %v1560_v54 }
 0x468   :  { %10733 = vmatprep.subr.bf16.mxu1 %v12855_v7 }
 0x46b   :  { %10735 = vmatpush3.bf16.msra.mxu1 %v12855_v7 }
 0x46c   :  { %10737 = vmatprep.subr.bf16.mxu1 %v12867_v12 }
 0x46f   :  { %10739 = vmatpush3.bf16.msra.mxu1 %v12867_v12 }
 0x470   :  { %10741 = vmatprep.subr.bf16.mxu1 %v12877_v16 }
 0x473   :  { %10743 = vmatpush3.bf16.msra.mxu1 %v12877_v16 }
 0x474   :  { %10745 = vmatprep.subr.bf16.mxu1 %v12887_v19 }
 0x476   :  { %9913 = vmatmul.mubr.msk.f32.vlgmr.msra.gmra.mrb[2].mxu1 %vm336_vm1, %v1561_v58  ;;  %v1337_v58 = vmul.f32 %v1335_v51, %v1335_v51 }
 0x477   :  { %10747 = vmatpush3.bf16.msra.mxu1 %v12887_v19  ;;  %9931 = vmatprep.mubr.msk.f32.mxu1 %vm336_vm1, %v1654_v56 }
 0x478   :  { %10749 = vmatprep.subr.bf16.mxu1 %v12897_v22  ;;  %v1341_v62 = vsel %vm336_vm1, %v1337_v58, 0.0 }
 0x47b   :  { %10751 = vmatpush3.bf16.msra.mxu1 %v12897_v22 }
 0x47c   :  { %10753 = vmatprep.subr.bf16.mxu1 %v12909_v31 }
 0x47f   :  { %10755 = vmatpush3.bf16.msra.mxu1 %v12909_v31 }
 0x480   :  { %10757 = vmatprep.subr.bf16.mxu1 %v12919_v26 }
 0x483   :  { %10759 = vmatpush3.bf16.msra.mxu1 %v12919_v26 }
 0x484   :  { %10761 = vmatprep.subr.bf16.mxu1 %v12929_v35 }
 0x486   :  { %9932 = vmatmul.mubr.msk.f32.vlgmr.msra.gmra.mrb[2].mxu1 %vm336_vm1, %v12814_v59 }
 0x487   :  { %10763 = vmatpush3.bf16.msra.mxu1 %v12929_v35  ;;  %9950 = vmatprep.mubr.msk.f32.mxu1 %vm336_vm1, %v12810_v57 }
 0x488   :  { %10765 = vmatprep.subr.bf16.mxu1 %v12939_v38 }
 0x48b   :  { %10767 = vmatpush3.bf16.msra.mxu1 %v12939_v38 }
 0x48c   :  { %10769 = vmatprep.subr.bf16.mxu1 %v12953_v41 }
 0x48f   :  { %10771 = vmatpush3.bf16.msra.mxu1 %v12953_v41 }
 0x490   :  { %10773 = vmatprep.subr.bf16.mxu1 %v12963_v44 }
 0x493   :  { %10775 = vmatpush3.bf16.msra.mxu1 %v12963_v44 }
 0x496   :  { %9951 = vmatmul.mubr.msk.f32.vlgmr.msra.gmra.mrb[2].mxu1 %vm336_vm1, %v12818_v60  ;;  %v1336_v60 = vmul.f32 %v1334_v52, %v1334_v52 }
 0x498   :  { %v1338_v8 = vsel %vm336_vm1, %v1336_v60, 0.0 }
 0x569   :  { %v9952_v53 = vpop.f32.mrb[2].mxu1 }
 0x56a   :  { %v1847_v54 = vadd.f32 %v9952_v53, %v12970_v50  ;;  %v1831_v55 = vpop.f32.mrb[3].mxu1 }
 0x56b   :  { %v1846_v56 = vadd.f32 %v12970_v50, %v1831_v55 }
 0x56c   :  { %v1851_v57 = vsel %vm336_vm1, %v1847_v54, 0.0 }
 0x56d   :  { %1852 = vadd.xlane.f32.xlu1 %v1851_v57  ;;  %v1848_v59 = vsel %vm336_vm1, %v1846_v56, 0.0 }
 0x56e   :  { %1849 = vadd.xlane.f32.xlu0 %v1848_v59 }
 0x571   :  { %1342 = vadd.xlane.f32.xlu1 %v1341_v62 }
 0x572   :  { %1339 = vadd.xlane.f32.xlu0 %v1338_v8 }
 0x5fa   :  { %v1853_v10 = vpop.xlane.xlu1 %1852 }
 0x5fb   :  { %v1855_v63 = vmul.f32 0.015625, %v1853_v10  ;;  %v1850_v1 = vpop.xlane.xlu0 %1849 }
 0x5fc   :  { %v1854_v2 = vmul.f32 0.015625, %v1850_v1 }
 0x5fd   :  { %v12980_v4 = vsub.f32 %v1847_v54, %v1855_v63 }
 0x5fe   :  { %v12982_v5 = vsub.f32 %v1846_v56, %v1854_v2  ;;  %v1343_v9 = vpop.xlane.xlu1 %1342 }
 0x5ff   :  { %v1345_v11 = vmul.f32 0.015625, %v1343_v9  ;;  %v1340_v13 = vpop.xlane.xlu0 %1339  ;;  %v1859_v15 = vmul.f32 %v12980_v4, %v12980_v4 }
 0x600   :  { %v1344_v17 = vmul.f32 0.015625, %v1340_v13  ;;  %v1858_v18 = vmul.f32 %v12982_v5, %v12982_v5  ;;  %v8822_v13 = vld [vmem:[%s14560_s27 + $0x2c0] sm:$0xff] }
 0x601   :  { %v1347_v20 = vadd.f32 1e-05, %v1345_v11  ;;  %v1863_v21 = vsel %vm336_vm1, %v1859_v15, 0.0  ;;  %v8823_v15 = vld [vmem:[%s14560_s27 + $0x2c8] sm:$0xff] }
 0x602   :  { %v1346_v24 = vadd.f32 1e-05, %v1344_v17  ;;  %1864 = vadd.xlane.f32.xlu1 %v1863_v21  ;;  %v1860_v27 = vsel %vm336_vm1, %v1858_v18, 0.0  ;;  %v10856_v17 = vpack.c.bf16 %v8823_v15, %v8822_v13  ;;  %v8824_v18 = vld [vmem:[%s14560_s27 + $0x2d0] sm:$0xff]  ;;  %v8827_v21 = vld [vmem:[%s14560_s27 + $0x2e8] sm:$0xff] }
 0x603   :  { %11570 = vrsqrt.f32 %v1347_v20  ;;  %1861 = vadd.xlane.f32.xlu0 %v1860_v27  ;;  %v8828_v27 = vld [vmem:[%s14560_s27 + $0x2f0] sm:$0xff] }
 0x604   :  { %11572 = vrsqrt.f32 %v1346_v24  ;;  %10857 = vmatprep.subr.bf16.mxu1 %v10856_v17  ;;  %v8820_v15 = vld [vmem:[%s14560_s27 + $0x2b0] sm:$0xff] }
 0x605   :  { %10859 = vmatpush3.bf16.msra.mxu1 %v10856_v17 }
 0x60d   :  { %v11571_v32 = vpop.eup %11570 }
 0x60e   :  { %v11573_v33 = vpop.eup %11572  ;;  %v1351_v23 = vmul.f32 %v11571_v32, %v1335_v51 }
 0x60f   :  { %v1350_v34 = vmul.f32 %v11573_v33, %v1334_v52  ;;  %v8814_v33 = vld [vmem:[%s14560_s27 + $0x280] sm:$0xff] }
 0x610   :  { %v1355_v36 = vmul.f32 0.044715, %v1351_v23  ;;  %v1353_v55 = vmul.f32 0.5, %v1351_v23 }
 0x611   :  { %v1354_v37 = vmul.f32 0.044715, %v1350_v34  ;;  %v1352_v57 = vmul.f32 0.5, %v1350_v34 }
 0x612   :  { %v1357_v39 = vmul.f32 %v1355_v36, %v1351_v23 }
 0x613   :  { %v1356_v40 = vmul.f32 %v1354_v37, %v1350_v34 }
 0x614   :  { %v1359_v42 = vmul.f32 %v1357_v39, %v1351_v23 }
 0x615   :  { %v1358_v43 = vmul.f32 %v1356_v40, %v1350_v34 }
 0x616   :  { %v1361_v45 = vadd.f32 %v1359_v42, %v1351_v23  ;;  %v8815_v23 = vld [vmem:[%s14560_s27 + $0x288] sm:$0xff] }
 0x617   :  { %v1360_v46 = vadd.f32 %v1358_v43, %v1350_v34 }
 0x618   :  { %v1363_v47 = vmul.f32 0.7978846, %v1361_v45 }
 0x619   :  { %v1362_v48 = vmul.f32 0.7978846, %v1360_v46 }
 0x61a   :  { %11574 = vtanh.f32 %v1363_v47 }
 0x61b   :  { %11576 = vtanh.f32 %v1362_v48 }
 0x624   :  { %v11575_v53 = vpop.eup %11574 }
 0x625   :  { %v11577_v54 = vpop.eup %11576  ;;  %v1367_v56 = vadd.f32 1.0, %v11575_v53 }
 0x626   :  { %v1366_v58 = vadd.f32 1.0, %v11577_v54 }
 0x627   :  { %v1369_v51 = vmul.f32 %v1367_v56, %v1353_v55  ;;  %v8816_v55 = vld [vmem:[%s14560_s27 + $0x290] sm:$0xff]  ;;  %v8817_v56 = vld [vmem:[%s14560_s27 + $0x298] sm:$0xff] }
 0x628   :  { %v1368_v52 = vmul.f32 %v1366_v58, %v1352_v57  ;;  %v8818_v57 = vld [vmem:[%s14560_s27 + $0x2a0] sm:$0xff] }
 0x629   :  { %1896 = vst.msk [vmem:[#allocation2 + $0xa] sm:$0xff] %vm336_vm1, %v1369_v51 }
 0x62a   :  { %1895 = vst.msk [vmem:[#allocation2 + $0x2] sm:$0xff] %vm336_vm1, %v1368_v52 }
 0x630   :  { %v2080_v59 = vld [vmem:[#allocation2 + $0xa] sm:$0xff] }
 0x631   :  { %v12992_v60 = vld [vmem:[#allocation2 + $0xb] sm:$0xff]  ;;  %v1907_v8 = vld [vmem:[#allocation2 + $0x1] sm:$0xff] }
 0x632   :  { %v12994_v62 = vld [vmem:[#allocation2 + $0xc] sm:$0xff]  ;;  %v1897_v63 = vld [vmem:[#allocation2] sm:$0xff]  ;;  %9969 = vmatprep.mubr.msk.f32.mxu0 %vm336_vm1, %v1907_v8 }
 0x633   :  { %v1908_v10 = vld [vmem:[#allocation2 + $0x9] sm:$0xff] }
 0x634   :  { %v1898_v1 = vld [vmem:[#allocation2 + $0x8] sm:$0xff]  ;;  %2407 = vst.msk [vmem:[#allocation2 + $0x10] sm:$0xff] %vm336_vm1, %v12129_v14  ;;  %9970 = vmatmul.mubr.msk.f32.vlgmr.msra.gmra.mrb[6].mxu0 %vm336_vm1, %v1908_v10 }
 0x635   :  { %v2079_v2 = vld [vmem:[#allocation2 + $0x2] sm:$0xff]  ;;  %10795 = vmatpush3.bf16.msra.mxu0 %v12778_v6  ;;  %9988 = vmatprep.mubr.msk.f32.mxu0 %vm336_vm1, %v1897_v63  ;;  %v8825_v6 = vld [vmem:[%s14560_s27 + $0x2d8] sm:$0xff] }
 0x636   :  { %v2172_v9 = vld [vmem:[#allocation2 + $0x3] sm:$0xff]  ;;  %10797 = vmatprep.subr.bf16.mxu0 %v12801_v49  ;;  %v10860_v20 = vpack.c.bf16 %v8825_v6, %v8824_v18 }
 0x637   :  { %v2265_v11 = vld [vmem:[#allocation2 + $0x4] sm:$0xff] }
 0x638   :  { %2405 = vst.msk [vmem:[#allocation2] sm:$0xff] %vm336_vm1, %v12129_v14  ;;  %2406 = vst.msk [vmem:[#allocation2 + $0x8] sm:$0xff] %vm336_vm1, %v12129_v14  ;;  %10861 = vmatprep.subr.bf16.mxu1 %v10860_v20  ;;  %v8826_v14 = vld [vmem:[%s14560_s27 + $0x2e0] sm:$0xff]  ;;  %v8819_v10 = vld [vmem:[%s14560_s27 + $0x2a8] sm:$0xff] }
 0x639   :  { %10799 = vmatpush3.bf16.msra.mxu0 %v12801_v49  ;;  %10863 = vmatpush3.bf16.msra.mxu1 %v10860_v20  ;;  %v10864_v24 = vpack.c.bf16 %v8827_v21, %v8826_v14  ;;  %v8829_v49 = vld [vmem:[%s14560_s27 + $0x2f8] sm:$0xff]  ;;  %v13119_v13 = vpack.c.bf16 %v8819_v10, %v8818_v57  ;;  %v8834_v6 = vld [vmem:[%s14560_s27 + $0x300] sm:$0xff]  ;;  %v8836_v21 = vld [vmem:[%s14560_s27 + $0x310] sm:$0xff] }
 0x63a   :  { %10801 = vmatprep.subr.bf16.mxu0 %v12821_v61  ;;  %v10868_v32 = vpack.c.bf16 %v8829_v49, %v8828_v27  ;;  %v8838_v49 = vld [vmem:[%s14560_s27 + $0x320] sm:$0xff] }
 0x63b   :  { %10865 = vmatprep.subr.bf16.mxu1 %v10864_v24 }
 0x63d   :  { %10803 = vmatpush3.bf16.msra.mxu0 %v12821_v61  ;;  %10867 = vmatpush3.bf16.msra.mxu1 %v10864_v24  ;;  %v13044_v61 = vpack.c.bf16 %v8815_v23, %v8814_v33  ;;  %v8840_v23 = vld [vmem:[%s14560_s27 + $0x330] sm:$0xff] }
 0x63e   :  { %10805 = vmatprep.subr.bf16.mxu0 %v12835_v0  ;;  %10869 = vmatprep.subr.bf16.mxu1 %v10868_v32 }
 0x641   :  { %10807 = vmatpush3.bf16.msra.mxu0 %v12835_v0  ;;  %10871 = vmatpush3.bf16.msra.mxu1 %v10868_v32 }
 0x642   :  { %10809 = vmatprep.subr.bf16.mxu0 %v12845_v3  ;;  %10873 = vmatprep.subr.bf16.mxu1 %v13044_v61 }
 0x644   :  { %9989 = vmatmul.mubr.msk.f32.vlgmr.msra.gmra.mrb[6].mxu0 %vm336_vm1, %v1898_v1  ;;  %v13105_v1 = vld [vmem:[%s14545_s21] sm:$0xff] }
 0x645   :  { %10811 = vmatpush3.bf16.msra.mxu0 %v12845_v3  ;;  %10007 = vmatprep.mubr.msk.f32.mxu0 %vm336_vm1, %v2079_v2 }
 0x646   :  { %10813 = vmatprep.subr.bf16.mxu0 %v12855_v7 }
 0x649   :  { %10815 = vmatpush3.bf16.msra.mxu0 %v12855_v7 }
 0x64a   :  { %10817 = vmatprep.subr.bf16.mxu0 %v12867_v12 }
 0x64d   :  { %10819 = vmatpush3.bf16.msra.mxu0 %v12867_v12 }
 0x64e   :  { %10821 = vmatprep.subr.bf16.mxu0 %v12877_v16 }
 0x651   :  { %10823 = vmatpush3.bf16.msra.mxu0 %v12877_v16 }
 0x652   :  { %10825 = vmatprep.subr.bf16.mxu0 %v12887_v19 }
 0x654   :  { %10008 = vmatmul.mubr.msk.f32.vlgmr.msra.gmra.mrb[6].mxu0 %vm336_vm1, %v2080_v59 }
 0x655   :  { %10827 = vmatpush3.bf16.msra.mxu0 %v12887_v19  ;;  %10026 = vmatprep.mubr.msk.f32.mxu0 %vm336_vm1, %v2172_v9 }
 0x656   :  { %10829 = vmatprep.subr.bf16.mxu0 %v12897_v22 }
 0x659   :  { %10831 = vmatpush3.bf16.msra.mxu0 %v12897_v22 }
 0x65a   :  { %10833 = vmatprep.subr.bf16.mxu0 %v12909_v31 }
 0x65d   :  { %10835 = vmatpush3.bf16.msra.mxu0 %v12909_v31 }
 0x65e   :  { %10837 = vmatprep.subr.bf16.mxu0 %v12919_v26 }
 0x661   :  { %10839 = vmatpush3.bf16.msra.mxu0 %v12919_v26 }
 0x662   :  { %10841 = vmatprep.subr.bf16.mxu0 %v12929_v35 }
 0x664   :  { %10027 = vmatmul.mubr.msk.f32.vlgmr.msra.gmra.mrb[6].mxu0 %vm336_vm1, %v12992_v60  ;;  %v13094_v60 = vpack.c.bf16 %v8817_v56, %v8816_v55  ;;  %v13269_v55 = vld [vmem:[#allocation6 + $0x2] ss:$0 sm:$0xff] }
 0x665   :  { %10843 = vmatpush3.bf16.msra.mxu0 %v12929_v35  ;;  %10045 = vmatprep.mubr.msk.f32.mxu0 %vm336_vm1, %v2265_v11 }
 0x666   :  { %10845 = vmatprep.subr.bf16.mxu0 %v12939_v38 }
 0x669   :  { %10847 = vmatpush3.bf16.msra.mxu0 %v12939_v38 }
 0x66a   :  { %10849 = vmatprep.subr.bf16.mxu0 %v12953_v41 }
 0x66d   :  { %10851 = vmatpush3.bf16.msra.mxu0 %v12953_v41 }
 0x66e   :  { %10853 = vmatprep.subr.bf16.mxu0 %v12963_v44 }
 0x671   :  { %10855 = vmatpush3.bf16.msra.mxu0 %v12963_v44 }
 0x672   :  { %10937 = vmatprep.subr.bf16.mxu0 %v10856_v17 }
 0x674   :  { %10046 = vmatmul.mubr.msk.f32.vlgmr.msra.gmra.mrb[6].mxu0 %vm336_vm1, %v12994_v62 }
 0x675   :  { %10939 = vmatpush3.bf16.msra.mxu0 %v10856_v17  ;;  %v8821_v17 = vld [vmem:[%s14560_s27 + $0x2b8] sm:$0xff] }
 0x676   :  { %10941 = vmatprep.subr.bf16.mxu0 %v10860_v20  ;;  %v13129_v18 = vpack.c.bf16 %v8821_v17, %v8820_v15 }
 0x679   :  { %10943 = vmatpush3.bf16.msra.mxu0 %v10860_v20  ;;  %v8835_v20 = vld [vmem:[%s14560_s27 + $0x308] sm:$0xff] }
 0x67a   :  { %10945 = vmatprep.subr.bf16.mxu0 %v10864_v24  ;;  %v13139_v14 = vpack.c.bf16 %v8835_v20, %v8834_v6 }
 0x67d   :  { %10947 = vmatpush3.bf16.msra.mxu0 %v10864_v24  ;;  %v8837_v24 = vld [vmem:[%s14560_s27 + $0x318] sm:$0xff] }
 0x67e   :  { %10949 = vmatprep.subr.bf16.mxu0 %v10868_v32  ;;  %v13149_v27 = vpack.c.bf16 %v8837_v24, %v8836_v21 }
 0x681   :  { %10951 = vmatpush3.bf16.msra.mxu0 %v10868_v32  ;;  %v8839_v32 = vld [vmem:[%s14560_s27 + $0x328] sm:$0xff] }
 0x682   :  { %10953 = vmatprep.subr.bf16.mxu0 %v13044_v61  ;;  %v13161_v33 = vpack.c.bf16 %v8839_v32, %v8838_v49 }
 0x68f   :  { %v1865_v0 = vpop.xlane.xlu1 %1864 }
 0x690   :  { %v1867_v3 = vmul.f32 0.015625, %v1865_v0  ;;  %v1862_v7 = vpop.xlane.xlu0 %1861  ;;  %v8841_v0 = vld [vmem:[%s14560_s27 + $0x338] sm:$0xff] }
 0x691   :  { %v1866_v12 = vmul.f32 0.015625, %v1862_v7  ;;  %v8844_v7 = vld [vmem:[%s14560_s27 + $0x340] sm:$0xff] }
 0x692   :  { %v1869_v16 = vadd.f32 1e-05, %v1867_v3  ;;  %v13171_v3 = vpack.c.bf16 %v8841_v0, %v8840_v23 }
 0x693   :  { %v1868_v19 = vadd.f32 1e-05, %v1866_v12  ;;  %v8845_v12 = vld [vmem:[%s14560_s27 + $0x348] sm:$0xff] }
 0x694   :  { %11578 = vrsqrt.f32 %v1869_v16  ;;  %v13181_v16 = vpack.c.bf16 %v8845_v12, %v8844_v7 }
 0x695   :  { %11580 = vrsqrt.f32 %v1868_v19  ;;  %v8846_v19 = vld [vmem:[%s14560_s27 + $0x350] sm:$0xff] }
 0x69e   :  { %v11579_v22 = vpop.eup %11578 }
 0x69f   :  { %v11581_v31 = vpop.eup %11580  ;;  %v1873_v26 = vmul.f32 %v11579_v22, %v12980_v4  ;;  %v8847_v22 = vld [vmem:[%s14560_s27 + $0x358] sm:$0xff] }
 0x6a0   :  { %v1872_v35 = vmul.f32 %v11581_v31, %v12982_v5  ;;  %v13191_v31 = vpack.c.bf16 %v8847_v22, %v8846_v19 }
 0x6a1   :  { %v1877_v38 = vmul.f32 0.044715, %v1873_v26  ;;  %v1875_v47 = vmul.f32 0.5, %v1873_v26 }
 0x6a2   :  { %v1876_v41 = vmul.f32 0.044715, %v1872_v35  ;;  %v1874_v53 = vmul.f32 0.5, %v1872_v35 }
 0x6a3   :  { %v1879_v44 = vmul.f32 %v1877_v38, %v1873_v26 }
 0x6a4   :  { %v1878_v34 = vmul.f32 %v1876_v41, %v1872_v35  ;;  %v8850_v41 = vld [vmem:[%s14560_s27 + $0x370] sm:$0xff] }
 0x6a5   :  { %v1881_v36 = vmul.f32 %v1879_v44, %v1873_v26  ;;  %v8851_v44 = vld [vmem:[%s14560_s27 + $0x378] sm:$0xff] }
 0x6a6   :  { %v1880_v37 = vmul.f32 %v1878_v34, %v1872_v35  ;;  %v13213_v34 = vpack.c.bf16 %v8851_v44, %v8850_v41 }
 0x6a7   :  { %v1883_v39 = vadd.f32 %v1881_v36, %v1873_v26  ;;  %v8848_v26 = vld [vmem:[%s14560_s27 + $0x360] sm:$0xff] }
 0x6a8   :  { %v1882_v40 = vadd.f32 %v1880_v37, %v1872_v35  ;;  %v8849_v35 = vld [vmem:[%s14560_s27 + $0x368] sm:$0xff]  ;;  %v8854_v36 = vld [vmem:[%s14560_s27 + $0x380] sm:$0xff] }
 0x6a9   :  { %v1885_v42 = vmul.f32 0.7978846, %v1883_v39  ;;  %v13203_v38 = vpack.c.bf16 %v8849_v35, %v8848_v26  ;;  %v8855_v37 = vld [vmem:[%s14560_s27 + $0x388] sm:$0xff] }
 0x6aa   :  { %v1884_v43 = vmul.f32 0.7978846, %v1882_v40  ;;  %v13223_v39 = vpack.c.bf16 %v8855_v37, %v8854_v36  ;;  %v8856_v40 = vld [vmem:[%s14560_s27 + $0x390] sm:$0xff] }
 0x6ab   :  { %11582 = vtanh.f32 %v1885_v42  ;;  %v8857_v42 = vld [vmem:[%s14560_s27 + $0x398] sm:$0xff] }
 0x6ac   :  { %11584 = vtanh.f32 %v1884_v43  ;;  %v13233_v43 = vpack.c.bf16 %v8857_v42, %v8856_v40 }
 0x6b5   :  { %v11583_v45 = vpop.eup %11582 }
 0x6b6   :  { %v11585_v46 = vpop.eup %11584  ;;  %v1889_v48 = vadd.f32 1.0, %v11583_v45  ;;  %v8858_v45 = vld [vmem:[%s14560_s27 + $0x3a0] sm:$0xff] }
 0x6b7   :  { %v1888_v4 = vadd.f32 1.0, %v11585_v46  ;;  %v8859_v46 = vld [vmem:[%s14560_s27 + $0x3a8] sm:$0xff] }
 0x6b8   :  { %v1891_v54 = vmul.f32 %v1889_v48, %v1875_v47  ;;  %v13247_v47 = vpack.c.bf16 %v8859_v46, %v8858_v45  ;;  %v8860_v48 = vld [vmem:[%s14560_s27 + $0x3b0] sm:$0xff] }
 0x6b9   :  { %v1890_v5 = vmul.f32 %v1888_v4, %v1874_v53  ;;  %v8861_v53 = vld [vmem:[%s14560_s27 + $0x3b8] sm:$0xff] }
 0x6ba   :  { %2409 = vst.msk [vmem:[#allocation2 + $0xa] sm:$0xff] %vm336_vm1, %v1891_v54  ;;  %v13257_v4 = vpack.c.bf16 %v8861_v53, %v8860_v48 }
 0x6bb   :  { %2408 = vst.msk [vmem:[#allocation2 + $0x2] sm:$0xff] %vm336_vm1, %v1890_v5 }
 0x6c1   :  { %v2595_v58 = vld [vmem:[#allocation2 + $0xa] sm:$0xff] }
 0x6c2   :  { %v13092_v51 = vld [vmem:[#allocation2 + $0xb] sm:$0xff]  ;;  %v2421_v52 = vld [vmem:[#allocation2 + $0x1] sm:$0xff] }
 0x6c3   :  { %v2422_v59 = vld [vmem:[#allocation2 + $0x9] sm:$0xff]  ;;  %10064 = vmatprep.mubr.msk.f32.mxu1 %vm336_vm1, %v2421_v52  ;;  %v2410_v8 = vld [vmem:[#allocation2] sm:$0xff] }
 0x6c4   :  { %v13096_v62 = vld [vmem:[#allocation2 + $0xc] sm:$0xff]  ;;  %10065 = vmatmul.mubr.msk.f32.vlgmr.msra.gmra.mrb[4].mxu1 %vm336_vm1, %v2422_v59  ;;  %v2594_v2 = vld [vmem:[#allocation2 + $0x2] sm:$0xff] }
 0x6c5   :  { %v2411_v63 = vld [vmem:[#allocation2 + $0x8] sm:$0xff]  ;;  %2928 = vst.msk [vmem:[#allocation2 + $0x10] sm:$0xff] %vm336_vm1, %v13105_v1  ;;  %10875 = vmatpush3.bf16.msra.mxu1 %v13044_v61  ;;  %10083 = vmatprep.mubr.msk.f32.mxu1 %vm336_vm1, %v2410_v8 }
 0x6c6   :  { %v2688_v9 = vld [vmem:[#allocation2 + $0x3] sm:$0xff]  ;;  %10877 = vmatprep.subr.bf16.mxu1 %v13094_v60 }
 0x6c7   :  { %v13110_v11 = vld [vmem:[#allocation2 + $0x4] sm:$0xff] }
 0x6c8   :  { %2926 = vst.msk [vmem:[#allocation2] sm:$0xff] %vm336_vm1, %v13105_v1  ;;  %2927 = vst.msk [vmem:[#allocation2 + $0x8] sm:$0xff] %vm336_vm1, %v13105_v1 }
 0x6c9   :  { %10879 = vmatpush3.bf16.msra.mxu1 %v13094_v60 }
 0x6ca   :  { %10881 = vmatprep.subr.bf16.mxu1 %v13119_v13 }
 0x6cd   :  { %10883 = vmatpush3.bf16.msra.mxu1 %v13119_v13 }
 0x6ce   :  { %10885 = vmatprep.subr.bf16.mxu1 %v13129_v18 }
 0x6d1   :  { %10887 = vmatpush3.bf16.msra.mxu1 %v13129_v18 }
 0x6d2   :  { %10889 = vmatprep.subr.bf16.mxu1 %v13139_v14 }
 0x6d4   :  { %10084 = vmatmul.mubr.msk.f32.vlgmr.msra.gmra.mrb[4].mxu1 %vm336_vm1, %v2411_v63 }
 0x6d5   :  { %10891 = vmatpush3.bf16.msra.mxu1 %v13139_v14  ;;  %10102 = vmatprep.mubr.msk.f32.mxu1 %vm336_vm1, %v2594_v2 }
 0x6d6   :  { %10893 = vmatprep.subr.bf16.mxu1 %v13149_v27 }
 0x6d9   :  { %10895 = vmatpush3.bf16.msra.mxu1 %v13149_v27 }
 0x6da   :  { %10897 = vmatprep.subr.bf16.mxu1 %v13161_v33 }
 0x6dd   :  { %10899 = vmatpush3.bf16.msra.mxu1 %v13161_v33 }
 0x6de   :  { %10901 = vmatprep.subr.bf16.mxu1 %v13171_v3 }
 0x6e1   :  { %10903 = vmatpush3.bf16.msra.mxu1 %v13171_v3 }
 0x6e2   :  { %10905 = vmatprep.subr.bf16.mxu1 %v13181_v16 }
 0x6e4   :  { %10103 = vmatmul.mubr.msk.f32.vlgmr.msra.gmra.mrb[4].mxu1 %vm336_vm1, %v2595_v58 }
 0x6e5   :  { %10907 = vmatpush3.bf16.msra.mxu1 %v13181_v16  ;;  %10121 = vmatprep.mubr.msk.f32.mxu1 %vm336_vm1, %v2688_v9 }
 0x6e6   :  { %10909 = vmatprep.subr.bf16.mxu1 %v13191_v31 }
 0x6e9   :  { %10911 = vmatpush3.bf16.msra.mxu1 %v13191_v31 }
 0x6ea   :  { %10913 = vmatprep.subr.bf16.mxu1 %v13203_v38 }
 0x6ed   :  { %10915 = vmatpush3.bf16.msra.mxu1 %v13203_v38 }
 0x6ee   :  { %10917 = vmatprep.subr.bf16.mxu1 %v13213_v34 }
 0x6f1   :  { %10919 = vmatpush3.bf16.msra.mxu1 %v13213_v34 }
 0x6f2   :  { %10921 = vmatprep.subr.bf16.mxu1 %v13223_v39 }
 0x6f4   :  { %10122 = vmatmul.mubr.msk.f32.vlgmr.msra.gmra.mrb[4].mxu1 %vm336_vm1, %v13092_v51 }
 0x6f5   :  { %10923 = vmatpush3.bf16.msra.mxu1 %v13223_v39  ;;  %10140 = vmatprep.mubr.msk.f32.mxu1 %vm336_vm1, %v13110_v11 }
 0x6f6   :  { %10925 = vmatprep.subr.bf16.mxu1 %v13233_v43 }
 0x6f9   :  { %10927 = vmatpush3.bf16.msra.mxu1 %v13233_v43 }
 0x6fa   :  { %10929 = vmatprep.subr.bf16.mxu1 %v13247_v47 }
 0x6fd   :  { %10931 = vmatpush3.bf16.msra.mxu1 %v13247_v47 }
 0x6fe   :  { %10933 = vmatprep.subr.bf16.mxu1 %v13257_v4 }
 0x701   :  { %10935 = vmatpush3.bf16.msra.mxu1 %v13257_v4 }
 0x704   :  { %10141 = vmatmul.mubr.msk.f32.vlgmr.msra.gmra.mrb[4].mxu1 %vm336_vm1, %v13096_v62 }
 0x705   :  { %3637 = vmatprep.mubr.f32.mxu1 %v13105_v1 }
 0x747   :  { %v13265_v54 = vpop.f32.mrb[6].mxu0 }
 0x748   :  { %v13267_v5 = vpop.f32.mrb[7].mxu0 }
 0x7d7   :  { %v10142_v56 = vpop.f32.mrb[4].mxu1 }
 0x7d8   :  { %v2881_v57 = vadd.f32 %v10142_v56, %v13269_v55  ;;  %v2865_v58 = vpop.f32.mrb[5].mxu1 }
 0x7d9   :  { %v2880_v51 = vadd.f32 %v13269_v55, %v2865_v58 }
 0x7da   :  { %v2885_v52 = vsel %vm336_vm1, %v2881_v57, 0.0 }
 0x7db   :  { %2886 = vadd.xlane.f32.xlu1 %v2885_v52  ;;  %v2882_v59 = vsel %vm336_vm1, %v2880_v51, 0.0 }
 0x7dc   :  { %2883 = vadd.xlane.f32.xlu0 %v2882_v59 }
 0x868   :  { %v2887_v62 = vpop.xlane.xlu1 %2886 }
 0x869   :  { %v2889_v8 = vmul.f32 0.015625, %v2887_v62  ;;  %v2884_v10 = vpop.xlane.xlu0 %2883 }
 0x86a   :  { %v2888_v63 = vmul.f32 0.015625, %v2884_v10 }
 0x86b   :  { %v2891_v2 = vsub.f32 %v2881_v57, %v2889_v8 }
 0x86c   :  { %v2890_v9 = vsub.f32 %v2880_v51, %v2888_v63 }
 0x86d   :  { %v2893_v11 = vmul.f32 %v2891_v2, %v2891_v2 }
 0x86e   :  { %v2892_v15 = vmul.f32 %v2890_v9, %v2890_v9 }
 0x86f   :  { %v2897_v17 = vsel %vm336_vm1, %v2893_v11, 0.0 }
 0x870   :  { %2898 = vadd.xlane.f32.xlu1 %v2897_v17  ;;  %v2894_v6 = vsel %vm336_vm1, %v2892_v15, 0.0 }
 0x871   :  { %2895 = vadd.xlane.f32.xlu0 %v2894_v6 }
 0x8fd   :  { %v2899_v20 = vpop.xlane.xlu1 %2898 }
 0x8fe   :  { %v2901_v21 = vmul.f32 0.015625, %v2899_v20  ;;  %v2896_v24 = vpop.xlane.xlu0 %2895 }
 0x8ff   :  { %v2900_v49 = vmul.f32 0.015625, %v2896_v24 }
 0x900   :  { %v2903_v32 = vadd.f32 1e-05, %v2901_v21  ;;  %v2359_v21 = vadd.f32 %v13265_v54, %v12970_v50  ;;  %v3535_v54 = vld [vmem:[#allocation10 + $0x10] sm:$0xff] }
 0x901   :  { %v2902_v23 = vadd.f32 1e-05, %v2900_v49  ;;  %v2358_v49 = vadd.f32 %v12970_v50, %v13267_v5  ;;  %v3540_v50 = vld [vmem:[#allocation10 + $0x38] sm:$0xff] }
 0x902   :  { %11586 = vrsqrt.f32 %v2903_v32 }
 0x903   :  { %11588 = vrsqrt.f32 %v2902_v23  ;;  %v2363_v23 = vsel %vm336_vm1, %v2359_v21, 0.0 }
 0x90c   :  { %v11587_v0 = vpop.eup %11586 }
 0x90d   :  { %v11589_v7 = vpop.eup %11588  ;;  %v2907_v12 = vmul.f32 %v11587_v0, %v2891_v2  ;;  %v2360_v0 = vsel %vm336_vm1, %v2358_v49, 0.0 }
 0x90e   :  { %v2906_v19 = vmul.f32 %v11589_v7, %v2890_v9  ;;  %v3534_v7 = vld [vmem:[#allocation10 + $0x8] sm:$0xff] }
 0x90f   :  { %v2911_v22 = vmul.f32 0.044715, %v2907_v12  ;;  %v2909_v53 = vmul.f32 0.5, %v2907_v12 }
 0x910   :  { %v2910_v26 = vmul.f32 0.044715, %v2906_v19  ;;  %v2908_v57 = vmul.f32 0.5, %v2906_v19 }
 0x911   :  { %v2913_v35 = vmul.f32 %v2911_v22, %v2907_v12  ;;  %v3533_v22 = vld [vmem:[#allocation10] sm:$0xff] }
 0x912   :  { %v2912_v41 = vmul.f32 %v2910_v26, %v2906_v19  ;;  %v11018_v26 = vpack.c.bf16 %v3535_v54, %v3533_v22  ;;  %v13312_v54 = vld [vmem:[%s14562_s17] ss:$0 sm:$0xff] }
 0x913   :  { %v2915_v44 = vmul.f32 %v2913_v35, %v2907_v12  ;;  %v3538_v35 = vld [vmem:[#allocation10 + $0x28] sm:$0xff] }
 0x914   :  { %v2914_v36 = vmul.f32 %v2912_v41, %v2906_v19  ;;  %v11020_v5 = vpack.c.bf16 %v3540_v50, %v3538_v35  ;;  %v3537_v41 = vld [vmem:[#allocation10 + $0x20] sm:$0xff] }
 0x915   :  { %v2917_v37 = vadd.f32 %v2915_v44, %v2907_v12  ;;  %v3536_v12 = vld [vmem:[#allocation10 + $0x18] sm:$0xff]  ;;  %v3539_v44 = vld [vmem:[#allocation10 + $0x30] sm:$0xff] }
 0x916   :  { %v2916_v40 = vadd.f32 %v2914_v36, %v2906_v19  ;;  %v11016_v19 = vpack.c.bf16 %v3536_v12, %v3534_v7  ;;  %v11022_v36 = vpack.c.bf16 %v3539_v44, %v3537_v41 }
 0x917   :  { %v2919_v42 = vmul.f32 0.7978846, %v2917_v37  ;;  %v3542_v37 = vld [vmem:[#allocation10 + $0x48] sm:$0xff] }
 0x918   :  { %v2918_v45 = vmul.f32 0.7978846, %v2916_v40  ;;  %11017 = vmatprep.subr.bf16.mxu1 %v11016_v19  ;;  %v3544_v40 = vld [vmem:[#allocation10 + $0x58] sm:$0xff] }
 0x919   :  { %11590 = vtanh.f32 %v2919_v42  ;;  %11019 = vmatpush1.bf16.msra.mxu1 %v11018_v26  ;;  %v11024_v42 = vpack.c.bf16 %v3544_v40, %v3542_v37 }
 0x91a   :  { %11592 = vtanh.f32 %v2918_v45  ;;  %11021 = vmatprep.subr.bf16.mxu1 %v11020_v5  ;;  %v3541_v45 = vld [vmem:[#allocation10 + $0x40] sm:$0xff] }
 0x91d   :  { %11023 = vmatpush1.bf16.msra.mxu1 %v11022_v36 }
 0x91e   :  { %11025 = vmatprep.subr.bf16.mxu1 %v11024_v42 }
 0x923   :  { %v11591_v46 = vpop.eup %11590 }
 0x924   :  { %v11593_v48 = vpop.eup %11592  ;;  %v2923_v56 = vadd.f32 1.0, %v11591_v46  ;;  %v3543_v46 = vld [vmem:[#allocation10 + $0x50] sm:$0xff] }
 0x925   :  { %v2922_v58 = vadd.f32 1.0, %v11593_v48  ;;  %v11026_v48 = vpack.c.bf16 %v3543_v46, %v3541_v45 }
 0x926   :  { %v2925_v51 = vmul.f32 %v2923_v56, %v2909_v53  ;;  %v3546_v53 = vld [vmem:[#allocation10 + $0x68] sm:$0xff]  ;;  %v3548_v56 = vld [vmem:[#allocation10 + $0x78] sm:$0xff] }
 0x927   :  { %v2924_v52 = vmul.f32 %v2922_v58, %v2908_v57  ;;  %11027 = vmatpush1.bf16.msra.mxu1 %v11026_v48  ;;  %v3545_v57 = vld [vmem:[#allocation10 + $0x60] sm:$0xff]  ;;  %v11028_v58 = vpack.c.bf16 %v3548_v56, %v3546_v53 }
 0x928   :  { %3439 = vst.msk [vmem:[#allocation5 + $0x8] sm:$0xff] %vm336_vm1, %v2925_v51  ;;  %v3547_v51 = vld [vmem:[#allocation10 + $0x70] sm:$0xff] }
 0x929   :  { %3438 = vst.msk [vmem:[#allocation5] sm:$0xff] %vm336_vm1, %v2924_v52  ;;  %v11030_v52 = vpack.c.bf16 %v3547_v51, %v3545_v57  ;;  %11029 = vmatprep.subr.bf16.mxu1 %v11028_v58 }
 0x92b   :  { %11031 = vmatpush1.bf16.msra.mxu1 %v11030_v52 }
 0x92f   :  { %v3443_v59 = vld [vmem:[#allocation5 + $0x8] sm:$0xff] }
 0x930   :  { %v13280_v62 = vadd.f32 %v3443_v59, %v12498_v28  ;;  %v3442_v8 = vld [vmem:[#allocation5] sm:$0xff] }
 0x931   :  { %v13283_v10 = vadd.f32 %v3442_v8, %v12501_v30 }
 0x932   :  { %v3468_v63 = vsel %vm336_vm1, %v13280_v62, 0.0 }
 0x933   :  { %3469 = vadd.xlane.f32.xlu1 %v3468_v63  ;;  %v3465_v2 = vsel %vm336_vm1, %v13283_v10, 0.0 }
 0x934   :  { %3466 = vadd.xlane.f32.xlu0 %v3465_v2 }
 0x9c0   :  { %v3470_v9 = vpop.xlane.xlu1 %3469 }
 0x9c1   :  { %v3478_v11 = vmul.f32 0.015625, %v3470_v9  ;;  %v3467_v15 = vpop.xlane.xlu0 %3466 }
 0x9c2   :  { %v3477_v17 = vmul.f32 0.015625, %v3467_v15 }
 0x9c3   :  { %v13290_v6 = vsub.f32 %v13280_v62, %v3478_v11 }
 0x9c4   :  { %v13293_v28 = vsub.f32 %v13283_v10, %v3477_v17 }
 0x9c5   :  { %v3486_v30 = vmul.f32 %v13290_v6, %v13290_v6 }
 0x9c6   :  { %v3485_v20 = vmul.f32 %v13293_v28, %v13293_v28 }
 0x9c7   :  { %v3492_v24 = vsel %vm336_vm1, %v3486_v30, 0.0 }
 0x9c8   :  { %3493 = vadd.xlane.f32.xlu1 %v3492_v24  ;;  %v3489_v32 = vsel %vm336_vm1, %v3485_v20, 0.0 }
 0x9c9   :  { %3490 = vadd.xlane.f32.xlu0 %v3489_v32 }
 0x9cc   :  { %2364 = vadd.xlane.f32.xlu1 %v2363_v23 }
 0x9cd   :  { %2361 = vadd.xlane.f32.xlu0 %v2360_v0 }
 0xa55   :  { %v3494_v59 = vpop.xlane.xlu1 %3493 }
 0xa56   :  { %v3502_v8 = vmul.f32 0.015625, %v3494_v59  ;;  %v3491_v63 = vpop.xlane.xlu0 %3490 }
 0xa57   :  { %v3501_v2 = vmul.f32 0.015625, %v3491_v63 }
 0xa58   :  { %v3506_v9 = vadd.f32 1e-06, %v3502_v8 }
 0xa59   :  { %v3505_v11 = vadd.f32 1e-06, %v3501_v2  ;;  %v2365_v15 = vpop.xlane.xlu1 %2364 }
 0xa5a   :  { %11594 = vrsqrt.f32 %v3506_v9  ;;  %v2367_v17 = vmul.f32 0.015625, %v2365_v15  ;;  %v2362_v30 = vpop.xlane.xlu0 %2361 }
 0xa5b   :  { %11596 = vrsqrt.f32 %v3505_v11  ;;  %v2366_v20 = vmul.f32 0.015625, %v2362_v30 }
 0xa5c   :  { %v2369_v24 = vsub.f32 %v2359_v21, %v2367_v17 }
 0xa5d   :  { %v2368_v32 = vsub.f32 %v2358_v49, %v2366_v20  ;;  %v13316_v49 = vld [vmem:[#allocation8] ss:$0 sm:$0xff] }
 0xa5e   :  { %v2371_v23 = vmul.f32 %v2369_v24, %v2369_v24 }
 0xa5f   :  { %v2370_v0 = vmul.f32 %v2368_v32, %v2368_v32 }
 0xa60   :  { %v2375_v7 = vsel %vm336_vm1, %v2371_v23, 0.0 }
 0xa61   :  { %2376 = vadd.xlane.f32.xlu1 %v2375_v7  ;;  %v2372_v12 = vsel %vm336_vm1, %v2370_v0, 0.0  ;;  %v3450_v7 = vlaneseq }
 0xa62   :  { %2373 = vadd.xlane.f32.xlu0 %v2372_v12 }
 0xa64   :  { %v11595_v19 = vpop.eup %11594 }
 0xa65   :  { %v11597_v22 = vpop.eup %11596  ;;  %v3514_v21 = vmul.f32 %v11595_v19, %v13290_v6 }
 0xa66   :  { %v3513_v26 = vmul.f32 %v11597_v22, %v13293_v28 }
 0xa67   :  { %v3522_v5 = vmul.f32 %v13312_v54, %v3514_v21 }
 0xa68   :  { %v3521_v35 = vmul.f32 %v13312_v54, %v3513_v26 }
 0xa69   :  { %v3530_v41 = vadd.f32 %v13316_v49, %v3522_v5 }
 0xa6a   :  { %v3529_v50 = vadd.f32 %v13316_v49, %v3521_v35 }
 0xa6c   :  { %8917 = vmatmul.mubr.msk.f32.vlgmr.msra.gmra.mrb[6].mxu1 %vm336_vm1, %v3529_v50 }
 0xa6d   :  { %3643 = vmatprep.mubr.f32.mxu1 %v13105_v1 }
 0xa70   :  { %8918 = vmatmul.mubr.msk.f32.gmra.mrb[8].mxu1 %vm336_vm1, %v3530_v41 }
 0xa71   :  { %3649 = vmatprep.mubr.f32.mxu1 %v13105_v1 }
 0xaee   :  { %v2377_v28 = vpop.xlane.xlu1 %2376 }
 0xaef   :  { %v2379_v6 = vmul.f32 0.015625, %v2377_v28  ;;  %v2374_v44 = vpop.xlane.xlu0 %2373 }
 0xaf0   :  { %v2378_v36 = vmul.f32 0.015625, %v2374_v44 }
 0xaf1   :  { %v2381_v37 = vadd.f32 1e-05, %v2379_v6 }
 0xaf2   :  { %v2380_v40 = vadd.f32 1e-05, %v2378_v36 }
 0xaf3   :  { %11598 = vrsqrt.f32 %v2381_v37 }
 0xaf4   :  { %11600 = vrsqrt.f32 %v2380_v40 }
 0xafd   :  { %v11599_v42 = vpop.eup %11598 }
 0xafe   :  { %v11601_v45 = vpop.eup %11600  ;;  %v2385_v46 = vmul.f32 %v11599_v42, %v2369_v24 }
 0xaff   :  { %v2384_v48 = vmul.f32 %v11601_v45, %v2368_v32 }
 0xb00   :  { %v2389_v53 = vmul.f32 0.044715, %v2385_v46  ;;  %v2387_v11 = vmul.f32 0.5, %v2385_v46 }
 0xb01   :  { %v2388_v56 = vmul.f32 0.044715, %v2384_v48  ;;  %v2386_v17 = vmul.f32 0.5, %v2384_v48 }
 0xb02   :  { %v2391_v57 = vmul.f32 %v2389_v53, %v2385_v46 }
 0xb03   :  { %v2390_v58 = vmul.f32 %v2388_v56, %v2384_v48 }
 0xb04   :  { %v2393_v51 = vmul.f32 %v2391_v57, %v2385_v46 }
 0xb05   :  { %v2392_v52 = vmul.f32 %v2390_v58, %v2384_v48 }
 0xb06   :  { %v2395_v59 = vadd.f32 %v2393_v51, %v2385_v46 }
 0xb07   :  { %v2394_v1 = vadd.f32 %v2392_v52, %v2384_v48  ;;  %v3454_v48 = vand.u32 127, %v3450_v7 }
 0xb08   :  { %v2397_v8 = vmul.f32 0.7978846, %v2395_v59 }
 0xb09   :  { %v2396_v63 = vmul.f32 0.7978846, %v2394_v1 }
 0xb0a   :  { %11602 = vtanh.f32 %v2397_v8 }
 0xb0b   :  { %11604 = vtanh.f32 %v2396_v63 }
 0xb14   :  { %v11603_v2 = vpop.eup %11602 }
 0xb15   :  { %v11605_v9 = vpop.eup %11604  ;;  %v2401_v15 = vadd.f32 1.0, %v11603_v2 }
 0xb16   :  { %v2400_v30 = vadd.f32 1.0, %v11605_v9 }
 0xb17   :  { %v2403_v20 = vmul.f32 %v2401_v15, %v2387_v11 }
 0xb18   :  { %v2402_v24 = vmul.f32 %v2400_v30, %v2386_v17 }
 0xb19   :  { %2930 = vst.msk [vmem:[#allocation2 + $0xa] sm:$0xff] %vm336_vm1, %v2403_v20 }
 0xb1a   :  { %2929 = vst.msk [vmem:[#allocation2 + $0x2] sm:$0xff] %vm336_vm1, %v2402_v24 }
 0xb21   :  { %v2941_v32 = vld [vmem:[#allocation2 + $0x1] sm:$0xff]  ;;  %v2942_v23 = vld [vmem:[#allocation2 + $0x9] sm:$0xff] }
 0xb22   :  { %10159 = vmatprep.mubr.msk.f32.mxu0 %vm336_vm1, %v2941_v32  ;;  %v2931_v0 = vld [vmem:[#allocation2] sm:$0xff]  ;;  %v2932_v12 = vld [vmem:[#allocation2 + $0x8] sm:$0xff] }
 0xb23   :  { %10160 = vmatmul.mubr.msk.f32.vlgmr.msra.gmra.mrb[8].mxu0 %vm336_vm1, %v2942_v23  ;;  %v3206_v35 = vld [vmem:[#allocation2 + $0x3] sm:$0xff] }
 0xb24   :  { %10955 = vmatpush3.bf16.msra.mxu0 %v13044_v61  ;;  %10178 = vmatprep.mubr.msk.f32.mxu0 %vm336_vm1, %v2931_v0  ;;  %v3113_v61 = vld [vmem:[#allocation2 + $0x2] sm:$0xff] }
 0xb25   :  { %10957 = vmatprep.subr.bf16.mxu0 %v13094_v60 }
 0xb28   :  { %10959 = vmatpush3.bf16.msra.mxu0 %v13094_v60  ;;  %v13344_v60 = vshrl.u32 %v3450_v7, 7 }
 0xb29   :  { %10961 = vmatprep.subr.bf16.mxu0 %v13119_v13 }
 0xb2a   :  { %v13353_v19 = vsub.s32 0, %v13344_v60  ;;  %v3452_v53 = vadd.s32 8, %v13344_v60  ;;  %v3455_v56 = vsub.s32 %v13344_v60, %v3454_v48 }
 0xb2c   :  { %10963 = vmatpush3.bf16.msra.mxu0 %v13119_v13  ;;  %v13349_v13 = vsub.s32 1, %v13344_v60  ;;  %v3456_v57 = vsub.s32 %v3452_v53, %v3454_v48  ;;  %v3457_v58 = vcvt.s32.f32 %v3455_v56 }
 0xb2d   :  { %10965 = vmatprep.subr.bf16.mxu0 %v13129_v18 }
 0xb2e   :  { %v3458_v51 = vcvt.s32.f32 %v3456_v57  ;;  %v3459_v52 = vand.u32 2147483647, %v3457_v58 }
 0xb30   :  { %10967 = vmatpush3.bf16.msra.mxu0 %v13129_v18  ;;  %v3549_v18 = vld [vmem:[#allocation11] ss:$2 sm:$0x3]  ;;  %v3460_v59 = vand.u32 2147483647, %v3458_v51  ;;  %v13429_v1 = vsub.f32 0.0, %v3459_v52 }
 0xb31   :  { %10969 = vmatprep.subr.bf16.mxu0 %v13139_v14 }
 0xb32   :  { %v13431_v8 = vsub.f32 0.0, %v3460_v59  ;;  %v13434_v2 = vmul.f32 0.25, %v13429_v1 }
 0xb33   :  { %10179 = vmatmul.mubr.msk.f32.vlgmr.msra.gmra.mrb[8].mxu0 %vm336_vm1, %v2932_v12 }
 0xb34   :  { %10971 = vmatpush3.bf16.msra.mxu0 %v13139_v14  ;;  %10197 = vmatprep.mubr.msk.f32.mxu0 %vm336_vm1, %v3113_v61  ;;  %v13357_v14 = vrot.slane %v3549_v18, %v13349_v13  ;;  %v13437_v17 = vmul.f32 0.25, %v13431_v8 }
 0xb35   :  { %10973 = vmatprep.subr.bf16.mxu0 %v13149_v27 }
 0xb38   :  { %10975 = vmatpush3.bf16.msra.mxu0 %v13149_v27  ;;  %v13361_v27 = vrot.slane %v3549_v18, %v13353_v19 }
 0xb39   :  { %10977 = vmatprep.subr.bf16.mxu0 %v13161_v33 }
 0xb3c   :  { %10979 = vmatpush3.bf16.msra.mxu0 %v13161_v33  ;;  %v3114_v33 = vld [vmem:[#allocation2 + $0xa] sm:$0xff] }
 0xb3d   :  { %10981 = vmatprep.subr.bf16.mxu0 %v13171_v3 }
 0xb3f   :  { %v3639_v22 = vpop.f32.mrb[6].mxu1 }
 0xb40   :  { %10983 = vmatpush3.bf16.msra.mxu0 %v13171_v3  ;;  %v3641_v26 = vpop.f32.mrb[7].mxu1  ;;  %v13368_v5 = vadd.f32 %v3639_v22, %v13361_v27 }
 0xb41   :  { %v3642_v21 = vadd.f32 %v3641_v26, %v13357_v14  ;;  %10985 = vmatprep.subr.bf16.mxu0 %v13181_v16 }
 0xb43   :  { %3663 = vst.msk [vmem:[#allocation3 + $0x8] sm:$0xff] %vm336_vm1, %v3642_v21  ;;  %10198 = vmatmul.mubr.msk.f32.vlgmr.msra.gmra.mrb[8].mxu0 %vm336_vm1, %v3114_v33  ;;  %v3645_v50 = vpop.f32.mrb[8].mxu1 }
 0xb44   :  { %10987 = vmatpush3.bf16.msra.mxu0 %v13181_v16  ;;  %10216 = vmatprep.mubr.msk.f32.mxu0 %vm336_vm1, %v3206_v35  ;;  %v13373_v3 = vadd.f32 %v3645_v50, %v13361_v27  ;;  %v3647_v41 = vpop.f32.mrb[9].mxu1  ;;  %v3207_v16 = vld [vmem:[#allocation2 + $0xb] sm:$0xff] }
 0xb45   :  { %v3648_v28 = vadd.f32 %v3647_v41, %v13357_v14  ;;  %10989 = vmatprep.subr.bf16.mxu0 %v13191_v31 }
 0xb46   :  { %v13379_v6 = vpack.i.bf16 %v13373_v3, %v13368_v5 }
 0xb47   :  { %3665 = vst.msk [vmem:[#allocation3 + $0x18] sm:$0xff] %vm336_vm1, %v3648_v28 }
 0xb48   :  { %10991 = vmatpush3.bf16.msra.mxu0 %v13191_v31  ;;  %11423 = vrot.lane.b32.xlu0 %v13379_v6, %s12130_s30  ;;  %v3299_v31 = vld [vmem:[#allocation2 + $0x4] sm:$0xff] }
 0xb49   :  { %10993 = vmatprep.subr.bf16.mxu0 %v13203_v38 }
 0xb4c   :  { %10995 = vmatpush3.bf16.msra.mxu0 %v13203_v38  ;;  %3881 = vrot.lane.b32.xlu0 %v13368_v5, %s12131_s14  ;;  %v3300_v38 = vld [vmem:[#allocation2 + $0xc] sm:$0xff] }
 0xb4d   :  { %10997 = vmatprep.subr.bf16.mxu0 %v13213_v34 }
 0xb50   :  { %10999 = vmatpush3.bf16.msra.mxu0 %v13213_v34  ;;  %3883 = vrot.lane.b32.xlu0 %v13373_v3, %s12131_s14 }
 0xb51   :  { %11001 = vmatprep.subr.bf16.mxu0 %v13223_v39 }
 0xb53   :  { %10217 = vmatmul.mubr.msk.f32.vlgmr.msra.gmra.mrb[8].mxu0 %vm336_vm1, %v3207_v16 }
 0xb54   :  { %11003 = vmatpush3.bf16.msra.mxu0 %v13223_v39  ;;  %10235 = vmatprep.mubr.msk.f32.mxu0 %vm336_vm1, %v3299_v31 }
 0xb55   :  { %11005 = vmatprep.subr.bf16.mxu0 %v13233_v43 }
 0xb58   :  { %11007 = vmatpush3.bf16.msra.mxu0 %v13233_v43 }
 0xb59   :  { %11009 = vmatprep.subr.bf16.mxu0 %v13247_v47 }
 0xb5c   :  { %11011 = vmatpush3.bf16.msra.mxu0 %v13247_v47  ;;  %v13412_v47 = vld [vmem:[#allocation3 + $0x18] sm:$0xff] }
 0xb5d   :  { %11013 = vmatprep.subr.bf16.mxu0 %v13257_v4 }
 0xb60   :  { %11015 = vmatpush3.bf16.msra.mxu0 %v13257_v4  ;;  %v13414_v4 = vld [vmem:[#allocation3 + $0x8] sm:$0xff] }
 0xb61   :  { %v11038_v37 = vpack.c.bf16 %v13412_v47, %v13414_v4 }
 0xb63   :  { %10236 = vmatmul.mubr.msk.f32.vlgmr.msra.gmra.mrb[8].mxu0 %vm336_vm1, %v3300_v38 }
 0xb64   :  { %10242 = vmatprep.mubr.msk.f32.mxu0 %vm3680_vm2, %v13368_v5 }
 0xbba   :  { %v11424_v34 = vpop.permute.xlu0 %11423 }
 0xbbb   :  { %v11426_v39 = vunpack.i.h.bf16 %v11424_v34  ;;  %v11425_v44 = vunpack.i.l.bf16 %v11424_v34 }
 0xbbd   :  { %v11032_v36 = vpack.c.bf16 %v11426_v39, %v11425_v44 }
 0xbbe   :  { %v3882_v23 = vpop.permute.xlu0 %3881 }
 0xbbf   :  { %11034 = vmatprep.subr.msk.bf16.mxu0 %vm13408_vm3, %v11032_v36 }
 0xbc0   :  { %11037 = vmatpush3.bf16.xpose.msk.msra.mxu0 %vm13408_vm3, %v11032_v36 }
 0xbc1   :  { %11039 = vmatprep.subr.bf16.mxu0 %v11038_v37 }
 0xbc2   :  { %v3884_v0 = vpop.permute.xlu0 %3883 }
 0xbc7   :  { %10243 = vmatmul.mubr.msk.f32.vlgmr.msra.gmra.mrb[10].mxu0 %vm3680_vm2, %v13373_v3 }
 0xbc8   :  { %11041 = vmatpush3.bf16.msra.mxu0 %v11038_v37 }
 0xc36   :  { %v10237_v40 = vpop.f32.mrb[8].mxu0 }
 0xc37   :  { %v3381_v42 = vpop.f32.mrb[9].mxu0  ;;  %v3393_v48 = vadd.f32 %v10237_v40, %v13269_v55 }
 0xc38   :  { %v3392_v45 = vadd.f32 %v13269_v55, %v3381_v42 }
 0xc39   :  { %v3397_v56 = vsel %vm336_vm1, %v3393_v48, 0.0 }
 0xc3a   :  { %v3394_v46 = vsel %vm336_vm1, %v3392_v45, 0.0 }
 0xc3b   :  { %3395 = vadd.xlane.f32.xlu0 %v3394_v46 }
 0xc9a   :  { %v10244_v63 = vpop.f32.mrb[10].mxu0 }
 0xc9b   :  { %v3755_v9 = vpop.f32.mrb[11].mxu0  ;;  %v3765_v11 = vmul.f32 0.25, %v10244_v63 }
 0xc9c   :  { %v3764_v15 = vmul.f32 0.25, %v3755_v9 }
 0xc9d   :  { %v3769_v24 = vadd.f32 %v13437_v17, %v3765_v11 }
 0xc9e   :  { %v3768_v30 = vadd.f32 %v13434_v2, %v3764_v15 }
 0xc9f   :  { %v3773_v32 = vsel %vm3680_vm2, %v3769_v24, -inf }
 0xca0   :  { %v3770_v20 = vsel %vm3680_vm2, %v3768_v30, -inf }
 0xca1   :  { %3771 = vmax.xlane.f32.xlu1 %v3770_v20 }
 0xca5   :  { %3774 = vmax.xlane.f32.xlu1 %v3773_v32 }
 0xcc8   :  { %v3396_v7 = vpop.xlane.xlu0 %3395 }
 0xcc9   :  { %v3400_v12 = vmul.f32 0.015625, %v3396_v7 }
 0xccb   :  { %v3402_v61 = vsub.f32 %v3392_v45, %v3400_v12 }
 0xccd   :  { %v3404_v60 = vmul.f32 %v3402_v61, %v3402_v61 }
 0xccf   :  { %v3406_v18 = vsel %vm336_vm1, %v3404_v60, 0.0 }
 0xcd0   :  { %3407 = vadd.xlane.f32.xlu0 %v3406_v18 }
 0xd2e   :  { %v3772_v22 = vpop.xlane.xlu1 %3771 }
 0xd2f   :  { %v3776_v26 = vsub.f32 %v3768_v30, %v3772_v22 }
 0xd31   :  { %v3778_v35 = vmul.f32 1.442695, %v3776_v26 }
 0xd32   :  { %v3775_v21 = vpop.xlane.xlu1 %3774 }
 0xd33   :  { %v3777_v33 = vsub.f32 %v3769_v24, %v3775_v21 }
 0xd35   :  { %v3780_v50 = vmul.f32 1.442695, %v3777_v33 }
 0xd37   :  { %11606 = vpow2.f32 %v3780_v50 }
 0xd38   :  { %11608 = vpow2.f32 %v3778_v35 }
 0xd41   :  { %v11607_v41 = vpop.eup %11606 }
 0xd42   :  { %v3785_v28 = vsel %vm3680_vm2, %v11607_v41, 0.0  ;;  %v11609_v16 = vpop.eup %11608 }
 0xd43   :  { %3786 = vadd.xlane.f32.xlu1 %v3785_v28  ;;  %v3782_v31 = vsel %vm3680_vm2, %v11609_v16, 0.0 }
 0xd47   :  { %3783 = vadd.xlane.f32.xlu1 %v3782_v31  ;;  %v13463_v31 = vmul.f32 0.0625, %v13431_v8 }
 0xd58   :  { %11428 = vrot.lane.b32.xlu1 %v13379_v6, %s12132_s22 }
 0xd5d   :  { %v3408_v38 = vpop.xlane.xlu0 %3407 }
 0xd5e   :  { %v3412_v34 = vmul.f32 0.015625, %v3408_v38 }
 0xd60   :  { %v3414_v39 = vadd.f32 1e-05, %v3412_v34  ;;  %v13466_v34 = vmul.f32 0.0625, %v13429_v1 }
 0xd62   :  { %11610 = vrsqrt.f32 %v3414_v39 }
 0xd6c   :  { %v11611_v44 = vpop.eup %11610 }
 0xd6d   :  { %v3418_v36 = vmul.f32 %v11611_v44, %v3402_v61 }
 0xd6f   :  { %v3422_v37 = vmul.f32 0.044715, %v3418_v36  ;;  %v3420_v58 = vmul.f32 0.5, %v3418_v36 }
 0xd71   :  { %v3424_v42 = vmul.f32 %v3422_v37, %v3418_v36 }
 0xd73   :  { %v3426_v45 = vmul.f32 %v3424_v42, %v3418_v36 }
 0xd75   :  { %v3428_v46 = vadd.f32 %v3426_v45, %v3418_v36 }
 0xd77   :  { %v3430_v53 = vmul.f32 0.7978846, %v3428_v46 }
 0xd79   :  { %11612 = vtanh.f32 %v3430_v53 }
 0xd7c   :  { %3398 = vadd.xlane.f32.xlu1 %v3397_v56 }
 0xd83   :  { %v11613_v57 = vpop.eup %11612 }
 0xd84   :  { %v3434_v51 = vadd.f32 1.0, %v11613_v57 }
 0xd86   :  { %v3436_v52 = vmul.f32 %v3434_v51, %v3420_v58 }
 0xd88   :  { %3440 = vst.msk [vmem:[#allocation5 + $0x10] sm:$0xff] %vm336_vm1, %v3436_v52 }
 0xd8f   :  { %v3444_v42 = vld [vmem:[#allocation5 + $0x10] sm:$0xff] }
 0xd90   :  { %v13473_v56 = vadd.f32 %v3444_v42, %v12687_v29 }
 0xd92   :  { %v3471_v52 = vsel %vm336_vm1, %v13473_v56, 0.0 }
 0xdd0   :  { %v3787_v59 = vpop.xlane.xlu1 %3786 }
 0xdd1   :  { %11614 = vrcp.f32 %v3787_v59 }
 0xdd4   :  { %v3784_v63 = vpop.xlane.xlu1 %3783 }
 0xdd5   :  { %11616 = vrcp.f32 %v3784_v63 }
 0xdd8   :  { %v11429_v9 = vpop.permute.xlu1 %11428 }
 0xdd9   :  { %v11431_v11 = vunpack.i.h.bf16 %v11429_v9  ;;  %v11430_v15 = vunpack.i.l.bf16 %v11429_v9 }
 0xddb   :  { %v11042_v30 = vpack.c.bf16 %v11431_v11, %v11430_v15  ;;  %v11615_v55 = vpop.eup %11614 }
 0xddc   :  { %v3791_v24 = vmul.f32 %v11615_v55, %v11607_v41 }
 0xddd   :  { %11044 = vmatprep.subr.msk.bf16.mxu0 %vm13408_vm3, %v11042_v30 }
 0xddf   :  { %v11617_v40 = vpop.eup %11616 }
 0xde0   :  { %v3790_v20 = vmul.f32 %v11617_v40, %v11609_v16 }
 0xde2   :  { %10249 = vmatprep.mubr.msk.f32.mxu0 %vm3680_vm2, %v3790_v20 }
 0xde3   :  { %10250 = vmatmul.mubr.msk.f32.vlgmr.msra.gmra.mrb[12].mxu0 %vm3680_vm2, %v3791_v24 }
 0xde4   :  { %11047 = vmatpush3.bf16.xpose.msk.msra.mxu0 %vm13408_vm3, %v11042_v30  ;;  %10256 = vmatprep.mubr.msk.f32.mxu0 %vm3680_vm2, %v3882_v23 }
 0xdeb   :  { %10257 = vmatmul.mubr.msk.f32.vlgmr.msra.gmra.mrb[14].mxu0 %vm3680_vm2, %v3884_v0 }
 0xe09   :  { %v3399_v32 = vpop.xlane.xlu1 %3398 }
 0xe0a   :  { %v3401_v7 = vmul.f32 0.015625, %v3399_v32 }
 0xe0c   :  { %v3403_v12 = vsub.f32 %v3393_v48, %v3401_v7 }
 0xe0e   :  { %v3405_v61 = vmul.f32 %v3403_v12, %v3403_v12 }
 0xe10   :  { %v3409_v60 = vsel %vm336_vm1, %v3405_v61, 0.0 }
 0xe11   :  { %3410 = vadd.xlane.f32.xlu0 %v3409_v60 }
 0xe9e   :  { %v3411_v18 = vpop.xlane.xlu0 %3410 }
 0xe9f   :  { %v3413_v22 = vmul.f32 0.015625, %v3411_v18 }
 0xea1   :  { %v3415_v26 = vadd.f32 1e-05, %v3413_v22 }
 0xea3   :  { %11618 = vrsqrt.f32 %v3415_v26 }
 0xead   :  { %v11619_v21 = vpop.eup %11618 }
 0xeae   :  { %v3419_v33 = vmul.f32 %v11619_v21, %v3403_v12 }
 0xeb0   :  { %v3423_v35 = vmul.f32 0.044715, %v3419_v33  ;;  %v3421_v57 = vmul.f32 0.5, %v3419_v33 }
 0xeb2   :  { %v3425_v50 = vmul.f32 %v3423_v35, %v3419_v33 }
 0xeb4   :  { %v3427_v41 = vmul.f32 %v3425_v50, %v3419_v33  ;;  %v13493_v50 = vpack.i.bf16 %v13412_v47, %v13414_v4 }
 0xeb6   :  { %v3429_v28 = vadd.f32 %v3427_v41, %v3419_v33  ;;  %v10251_v23 = vpop.f32.mrb[12].mxu0 }
 0xeb7   :  { %3874 = vst.msk [vmem:[#allocation4 + $0x8] sm:$0xff] %vm3680_vm2, %v10251_v23  ;;  %v3864_v0 = vpop.f32.mrb[13].mxu0 }
 0xeb8   :  { %v3431_v16 = vmul.f32 0.7978846, %v3429_v28  ;;  %3873 = vst.msk [vmem:[#allocation4] sm:$0xff] %vm3680_vm2, %v3864_v0 }
 0xeba   :  { %11620 = vtanh.f32 %v3431_v16 }
 0xebe   :  { %v10258_v38 = vpop.f32.mrb[14].mxu0 }
 0xebf   :  { %v3973_v39 = vmul.f32 0.25, %v10258_v38  ;;  %v3963_v44 = vpop.f32.mrb[15].mxu0 }
 0xec0   :  { %v3972_v36 = vmul.f32 0.25, %v3963_v44 }
 0xec1   :  { %v3977_v37 = vadd.f32 %v13463_v31, %v3973_v39 }
 0xec2   :  { %v3976_v45 = vadd.f32 %v13466_v34, %v3972_v36 }
 0xec3   :  { %v3981_v46 = vsel %vm3680_vm2, %v3977_v37, -inf }
 0xec4   :  { %v11621_v48 = vpop.eup %11620  ;;  %3982 = vmax.xlane.f32.xlu1 %v3981_v46  ;;  %v3978_v53 = vsel %vm3680_vm2, %v3976_v45, -inf }
 0xec5   :  { %v3435_v58 = vadd.f32 1.0, %v11621_v48  ;;  %3979 = vmax.xlane.f32.xlu0 %v3978_v53 }
 0xec7   :  { %v3437_v51 = vmul.f32 %v3435_v58, %v3421_v57 }
 0xec9   :  { %3441 = vst.msk [vmem:[#allocation5 + $0x18] sm:$0xff] %vm336_vm1, %v3437_v51  ;;  %3472 = vadd.xlane.f32.xlu0 %v3471_v52 }
 0xed0   :  { %v3445_v59 = vld [vmem:[#allocation5 + $0x18] sm:$0xff] }
 0xed1   :  { %v13479_v63 = vadd.f32 %v3445_v59, %v12684_v25 }
 0xed3   :  { %v3474_v9 = vsel %vm336_vm1, %v13479_v63, 0.0 }
 0xed4   :  { %3475 = vadd.xlane.f32.xlu1 %v3474_v9 }
 0xf51   :  { %v3983_v29 = vpop.xlane.xlu1 %3982 }
 0xf52   :  { %v3985_v11 = vsub.f32 %v3977_v37, %v3983_v29  ;;  %v3980_v15 = vpop.xlane.xlu0 %3979  ;;  %v13517_v29 = vld [vmem:[%s14545_s21] sm:$0xff] }
 0xf53   :  { %v3984_v30 = vsub.f32 %v3976_v45, %v3980_v15 }
 0xf54   :  { %v3988_v55 = vmul.f32 1.442695, %v3985_v11 }
 0xf55   :  { %v3986_v40 = vmul.f32 1.442695, %v3984_v30 }
 0xf56   :  { %11622 = vpow2.f32 %v3988_v55  ;;  %v3473_v20 = vpop.xlane.xlu0 %3472 }
 0xf57   :  { %v3479_v24 = vmul.f32 0.015625, %v3473_v20  ;;  %11624 = vpow2.f32 %v3986_v40 }
 0xf59   :  { %v3483_v32 = vsub.f32 %v13473_v56, %v3479_v24 }
 0xf5b   :  { %v3487_v7 = vmul.f32 %v3483_v32, %v3483_v32 }
 0xf5d   :  { %v3495_v25 = vsel %vm336_vm1, %v3487_v7, 0.0 }
 0xf5e   :  { %3496 = vadd.xlane.f32.xlu1 %v3495_v25 }
 0xf60   :  { %v11623_v12 = vpop.eup %11622 }
 0xf61   :  { %v3476_v61 = vpop.xlane.xlu1 %3475  ;;  %v3993_v60 = vsel %vm3680_vm2, %v11623_v12, 0.0  ;;  %v11625_v18 = vpop.eup %11624 }
 0xf62   :  { %v3480_v22 = vmul.f32 0.015625, %v3476_v61  ;;  %3994 = vadd.xlane.f32.xlu0 %v3993_v60  ;;  %v3990_v21 = vsel %vm3680_vm2, %v11625_v18, 0.0 }
 0xf64   :  { %v3484_v26 = vsub.f32 %v13479_v63, %v3480_v22  ;;  %v13544_v22 = vmul.f32 0.015625, %v13431_v8 }
 0xf66   :  { %3991 = vadd.xlane.f32.xlu0 %v3990_v21  ;;  %v3488_v33 = vmul.f32 %v3484_v26, %v3484_v26 }
 0xf68   :  { %v3498_v35 = vsel %vm336_vm1, %v3488_v33, 0.0  ;;  %v13547_v33 = vmul.f32 0.015625, %v13429_v1 }
 0xf69   :  { %3499 = vadd.xlane.f32.xlu1 %v3498_v35 }
 0xf7a   :  { %11438 = vrot.lane.b32.xlu1 %v13379_v6, %s12133_s13 }
 0xf7c   :  { %11433 = vrot.lane.b32.xlu0 %v13493_v50, %s12131_s14 }
 0xf7e   :  { %4106 = vrot.lane.b32.xlu1 %v13368_v5, %s12134_s2 }
 0xf80   :  { %4108 = vrot.lane.b32.xlu0 %v13373_v3, %s12134_s2 }
 0xf82   :  { %11443 = vrot.lane.b32.xlu1 %v13379_v6, %s12120_s26 }
 0xf84   :  { %4333 = vrot.lane.b32.xlu0 %v13373_v3, %s12135_s20 }
 0xf86   :  { %4331 = vrot.lane.b32.xlu1 %v13368_v5, %s12135_s20 }
 0xfeb   :  { %v3497_v47 = vpop.xlane.xlu1 %3496 }
 0xfec   :  { %v3503_v4 = vmul.f32 0.015625, %v3497_v47 }
 0xfee   :  { %v3507_v41 = vadd.f32 1e-06, %v3503_v4 }
 0xfef   :  { %v3995_v28 = vpop.xlane.xlu0 %3994 }
 0xff0   :  { %11626 = vrsqrt.f32 %v3507_v41 }
 0xff1   :  { %11628 = vrcp.f32 %v3995_v28 }
 0xff3   :  { %v3992_v23 = vpop.xlane.xlu0 %3991 }
 0xff4   :  { %11630 = vrcp.f32 %v3992_v23 }
 0xff6   :  { %v3500_v0 = vpop.xlane.xlu1 %3499 }
 0xff7   :  { %v3504_v16 = vmul.f32 0.015625, %v3500_v0  ;;  %v11434_v38 = vpop.permute.xlu0 %11433  ;;  %v13553_v0 = vmul.f32 0.00390625, %v13429_v1 }
 0xff8   :  { %v11436_v39 = vunpack.i.h.bf16 %v11434_v38  ;;  %v11435_v6 = vunpack.i.l.bf16 %v11434_v38 }
 0xff9   :  { %v3508_v44 = vadd.f32 1e-06, %v3504_v16 }
 0xffa   :  { %v11627_v36 = vpop.eup %11626  ;;  %v11439_v37 = vpop.permute.xlu1 %11438  ;;  %v11048_v3 = vpack.c.bf16 %v11436_v39, %v11435_v6 }
 0xffb   :  { %11632 = vrsqrt.f32 %v3508_v44  ;;  %v11441_v42 = vunpack.i.h.bf16 %v11439_v37  ;;  %v11440_v5 = vunpack.i.l.bf16 %v11439_v37  ;;  %v3515_v45 = vmul.f32 %v11627_v36, %v3483_v32  ;;  %v11629_v46 = vpop.eup %11628  ;;  %v4109_v24 = vpop.permute.xlu0 %4108 }
 0xffc   :  { %11049 = vmatprep.subr.bf16.mxu0 %v11048_v3  ;;  %v3999_v59 = vmul.f32 %v11629_v46, %v11623_v12  ;;  %v13558_v36 = vmul.f32 0.00390625, %v13431_v8 }
 0xffd   :  { %v11052_v48 = vpack.c.bf16 %v11441_v42, %v11440_v5  ;;  %11051 = vmatpush3.bf16.msra.mxu0 %v11048_v3  ;;  %v3523_v53 = vmul.f32 %v13312_v54, %v3515_v45 }
 0xffe   :  { %v11631_v57 = vpop.eup %11630  ;;  %v4107_v58 = vpop.permute.xlu1 %4106 }
 0xfff   :  { %11054 = vmatprep.subr.msk.bf16.mxu0 %vm13408_vm3, %v11052_v48  ;;  %v3531_v51 = vadd.f32 %v13316_v49, %v3523_v53  ;;  %v3998_v52 = vmul.f32 %v11631_v57, %v11625_v18  ;;  %v4334_v25 = vpop.permute.xlu0 %4333 }
0x1001   :  { %8919 = vmatmul.mubr.msk.f32.gmra.mrb[10].mxu1 %vm336_vm1, %v3531_v51  ;;  %10263 = vmatprep.mubr.msk.f32.mxu0 %vm3680_vm2, %v3998_v52 }
0x1002   :  { %10264 = vmatmul.mubr.msk.f32.vlgmr.msra.gmra.mrb[16].mxu0 %vm3680_vm2, %v3999_v59  ;;  %v11444_v9 = vpop.permute.xlu1 %11443  ;;  %3655 = vmatprep.mubr.f32.mxu1 %v13517_v29 }
0x1003   :  { %v11446_v11 = vunpack.i.h.bf16 %v11444_v9  ;;  %v11445_v15 = vunpack.i.l.bf16 %v11444_v9  ;;  %10270 = vmatprep.mubr.msk.f32.mxu0 %vm3680_vm2, %v4107_v58 }
0x1005   :  { %v11633_v30 = vpop.eup %11632  ;;  %v11062_v55 = vpack.c.bf16 %v11446_v11, %v11445_v15 }
0x1006   :  { %11057 = vmatpush3.bf16.xpose.msk.msra.mxu0 %vm13408_vm3, %v11052_v48  ;;  %v3516_v40 = vmul.f32 %v11633_v30, %v3484_v26  ;;  %v4332_v7 = vpop.permute.xlu1 %4331 }
0x1007   :  { %11064 = vmatprep.subr.msk.bf16.mxu1 %vm13408_vm3, %v11062_v55 }
0x1008   :  { %11067 = vmatpush3.bf16.xpose.msk.msra.mxu1 %vm13408_vm3, %v11062_v55  ;;  %v3524_v20 = vmul.f32 %v13312_v54, %v3516_v40 }
0x100a   :  { %v3532_v32 = vadd.f32 %v13316_v49, %v3524_v20 }
0x100c   :  { %8920 = vmatmul.mubr.msk.f32.gmra.mrb[12].mxu1 %vm336_vm1, %v3532_v32 }
0x100d   :  { %10271 = vmatmul.mubr.msk.f32.vlgmr.msra.gmra.mrb[18].mxu0 %vm3680_vm2, %v4109_v24  ;;  %10284 = vmatprep.mubr.msk.f32.mxu1 %vm3680_vm2, %v4332_v7 }
0x1010   :  { %10285 = vmatmul.mubr.msk.f32.vlgmr.msra.gmra.mrb[14].mxu1 %vm3680_vm2, %v4334_v25 }
0x10d4   :  { %v13533_v12 = vpop.f32.mrb[10].mxu1 }
0x10d5   :  { %v3653_v61 = vpop.f32.mrb[11].mxu1  ;;  %v13535_v60 = vpop.f32.mrb[16].mxu0 }
0x10d6   :  { %v3654_v54 = vadd.f32 %v3653_v61, %v13357_v14  ;;  %v13538_v18 = vpop.f32.mrb[17].mxu0 }
0x10d8   :  { %3667 = vst.msk [vmem:[#allocation3 + $0x28] sm:$0xff] %vm336_vm1, %v3654_v54 }
0x10df   :  { %v13541_v49 = vpop.f32.mrb[12].mxu1  ;;  %v13564_v42 = vld [vmem:[#allocation3 + $0x28] sm:$0xff] }
0x10e0   :  { %v10272_v26 = vpop.f32.mrb[18].mxu0  ;;  %v3659_v21 = vpop.f32.mrb[13].mxu1  ;;  %v13581_v54 = vadd.f32 %v13541_v49, %v13361_v27 }
0x10e1   :  { %v4198_v35 = vmul.f32 0.25, %v10272_v26  ;;  %v3660_v47 = vadd.f32 %v3659_v21, %v13357_v14  ;;  %v4188_v4 = vpop.f32.mrb[19].mxu0  ;;  %v13585_v26 = vadd.f32 %v13533_v12, %v13361_v27 }
0x10e2   :  { %v4197_v41 = vmul.f32 0.25, %v4188_v4 }
0x10e3   :  { %3669 = vst.msk [vmem:[#allocation3 + $0x38] sm:$0xff] %vm336_vm1, %v3660_v47  ;;  %v10286_v28 = vpop.f32.mrb[14].mxu1  ;;  %v4202_v23 = vadd.f32 %v13544_v22, %v4198_v35  ;;  %v13589_v21 = vpack.i.bf16 %v13581_v54, %v13585_v26 }
0x10e4   :  { %v4413_v16 = vpop.f32.mrb[15].mxu1  ;;  %v4201_v38 = vadd.f32 %v13547_v33, %v4197_v41  ;;  %v4423_v39 = vmul.f32 0.25, %v10286_v28 }
0x10e5   :  { %v4422_v6 = vmul.f32 0.25, %v4413_v16  ;;  %v4206_v44 = vsel %vm3680_vm2, %v4202_v23, -inf }
0x10e6   :  { %4207 = vmax.xlane.f32.xlu0 %v4206_v44  ;;  %v4203_v14 = vsel %vm3680_vm2, %v4201_v38, -inf  ;;  %v4427_v1 = vadd.f32 %v13558_v36, %v4423_v39 }
0x10e7   :  { %4204 = vmax.xlane.f32.xlu1 %v4203_v14  ;;  %v4426_v37 = vadd.f32 %v13553_v0, %v4422_v6 }
0x10e8   :  { %v4431_v8 = vsel %vm3680_vm2, %v4427_v1, -inf }
0x10e9   :  { %v4428_v3 = vsel %vm3680_vm2, %v4426_v37, -inf }
0x10ea   :  { %4429 = vmax.xlane.f32.xlu0 %v4428_v3  ;;  %v13566_v5 = vld [vmem:[#allocation3 + $0x38] sm:$0xff] }
0x10eb   :  { %v11078_v45 = vpack.c.bf16 %v13566_v5, %v13564_v42 }
0x10ed   :  { %11079 = vmatprep.subr.bf16.mxu1 %v11078_v45 }
0x10ee   :  { %11081 = vmatpush3.bf16.msra.mxu1 %v11078_v45  ;;  %4432 = vmax.xlane.f32.xlu0 %v4431_v8 }
0x1173   :  { %v4208_v46 = vpop.xlane.xlu0 %4207 }
0x1174   :  { %v4210_v57 = vsub.f32 %v4202_v23, %v4208_v46  ;;  %v4205_v24 = vpop.xlane.xlu1 %4204 }
0x1175   :  { %v4209_v32 = vsub.f32 %v4201_v38, %v4205_v24 }
0x1176   :  { %v4213_v59 = vmul.f32 1.442695, %v4210_v57 }
0x1177   :  { %v4430_v48 = vpop.xlane.xlu0 %4429  ;;  %v4211_v7 = vmul.f32 1.442695, %v4209_v32 }
0x1178   :  { %v4434_v53 = vsub.f32 %v4426_v37, %v4430_v48 }
0x117a   :  { %v4436_v58 = vmul.f32 1.442695, %v4434_v53 }
0x117b   :  { %v4433_v51 = vpop.xlane.xlu0 %4432 }
0x117c   :  { %11634 = vpow2.f32 %v4436_v58  ;;  %v4435_v52 = vsub.f32 %v4427_v1, %v4433_v51 }
0x117e   :  { %v4438_v9 = vmul.f32 1.442695, %v4435_v52 }
0x1180   :  { %11636 = vpow2.f32 %v4438_v9 }
0x1181   :  { %11638 = vpow2.f32 %v4213_v59 }
0x1182   :  { %11640 = vpow2.f32 %v4211_v7 }
0x1186   :  { %v11635_v11 = vpop.eup %11634 }
0x1187   :  { %v4440_v15 = vsel %vm3680_vm2, %v11635_v11, 0.0 }
0x1188   :  { %4441 = vadd.xlane.f32.xlu1 %v4440_v15 }
0x118a   :  { %v11637_v30 = vpop.eup %11636 }
0x118b   :  { %v4443_v55 = vsel %vm3680_vm2, %v11637_v30, 0.0  ;;  %v11639_v40 = vpop.eup %11638 }
0x118c   :  { %4444 = vadd.xlane.f32.xlu0 %v4443_v55  ;;  %v4218_v20 = vsel %vm3680_vm2, %v11639_v40, 0.0  ;;  %v11641_v25 = vpop.eup %11640 }
0x118d   :  { %v4215_v61 = vsel %vm3680_vm2, %v11641_v25, 0.0 }
0x1190   :  { %4219 = vadd.xlane.f32.xlu0 %v4218_v20 }
0x1199   :  { %11448 = vrot.lane.b32.xlu1 %v13493_v50, %s12134_s2 }
0x11a6   :  { %11453 = vrot.lane.b32.xlu0 %v13493_v50, %s12135_s20 }
0x11bd   :  { %4216 = vadd.xlane.f32.xlu1 %v4215_v61 }
0x11ce   :  { %11458 = vrot.lane.b32.xlu1 %v13589_v21, %s12130_s30 }
0x1215   :  { %v4442_v50 = vpop.xlane.xlu1 %4441 }
0x1216   :  { %11642 = vrcp.f32 %v4442_v50 }
0x1219   :  { %v4445_v35 = vpop.xlane.xlu0 %4444  ;;  %v11449_v47 = vpop.permute.xlu1 %11448 }
0x121a   :  { %v11451_v4 = vunpack.i.h.bf16 %v11449_v47  ;;  %v11450_v41 = vunpack.i.l.bf16 %v11449_v47 }
0x121c   :  { %v11058_v28 = vpack.c.bf16 %v11451_v4, %v11450_v41 }
0x121d   :  { %v4220_v23 = vpop.xlane.xlu0 %4219 }
0x121e   :  { %11059 = vmatprep.subr.bf16.mxu0 %v11058_v28  ;;  %11644 = vrcp.f32 %v4220_v23 }
0x121f   :  { %11061 = vmatpush3.bf16.msra.mxu0 %v11058_v28 }
0x1220   :  { %v11643_v6 = vpop.eup %11642 }
0x1221   :  { %v11454_v49 = vpop.permute.xlu0 %11453  ;;  %v4448_v46 = vmul.f32 %v11643_v6, %v11635_v11 }
0x1222   :  { %v11456_v16 = vunpack.i.h.bf16 %v11454_v49  ;;  %v11455_v27 = vunpack.i.l.bf16 %v11454_v49 }
0x1224   :  { %v11068_v12 = vpack.c.bf16 %v11456_v16, %v11455_v27 }
0x1226   :  { %11069 = vmatprep.subr.bf16.mxu0 %v11068_v12 }
0x1228   :  { %v11645_v44 = vpop.eup %11644 }
0x1229   :  { %v4224_v45 = vmul.f32 %v11645_v44, %v11639_v40 }
0x124a   :  { %v4217_v38 = vpop.xlane.xlu1 %4216 }
0x124b   :  { %11646 = vrcp.f32 %v4217_v38 }
0x124c   :  { %11648 = vrcp.f32 %v4445_v35 }
0x124e   :  { %v11459_v39 = vpop.permute.xlu1 %11458 }
0x124f   :  { %v11461_v37 = vunpack.i.h.bf16 %v11459_v39  ;;  %v11460_v3 = vunpack.i.l.bf16 %v11459_v39 }
0x1251   :  { %v11072_v48 = vpack.c.bf16 %v11461_v37, %v11460_v3 }
0x1255   :  { %v11647_v14 = vpop.eup %11646 }
0x1256   :  { %v4223_v1 = vmul.f32 %v11647_v14, %v11641_v25  ;;  %v11649_v8 = vpop.eup %11648 }
0x1257   :  { %v4449_v53 = vmul.f32 %v11649_v8, %v11637_v30 }
0x1258   :  { %10277 = vmatprep.mubr.msk.f32.mxu0 %vm3680_vm2, %v4223_v1 }
0x1259   :  { %10278 = vmatmul.mubr.msk.f32.vlgmr.msra.gmra.mrb[20].mxu0 %vm3680_vm2, %v4224_v45 }
0x125a   :  { %11071 = vmatpush3.bf16.msra.mxu0 %v11068_v12  ;;  %10291 = vmatprep.mubr.msk.f32.mxu0 %vm3680_vm2, %v4448_v46 }
0x125b   :  { %11074 = vmatprep.subr.msk.bf16.mxu0 %vm13408_vm3, %v11072_v48 }
0x125d   :  { %10292 = vmatmul.mubr.msk.f32.vlgmr.msra.gmra.mrb[22].mxu0 %vm3680_vm2, %v4449_v53 }
0x125e   :  { %10298 = vmatprep.mubr.msk.f32.mxu0 %vm3680_vm2, %v13585_v26 }
0x1263   :  { %11077 = vmatpush3.bf16.xpose.msk.msra.mxu0 %vm13408_vm3, %v11072_v48 }
0x126a   :  { %10299 = vmatmul.mubr.msk.f32.vlgmr.msra.gmra.mrb[24].mxu0 %vm3680_vm2, %v13581_v54 }
0x132c   :  { %v13605_v57 = vpop.f32.mrb[20].mxu0 }
0x132d   :  { %v13607_v58 = vpop.f32.mrb[21].mxu0 }
0x1330   :  { %v13609_v51 = vpop.f32.mrb[22].mxu0 }
0x1331   :  { %v13611_v52 = vpop.f32.mrb[23].mxu0 }
0x133d   :  { %v10300_v59 = vpop.f32.mrb[24].mxu0 }
0x133e   :  { %v4644_v9 = vmul.f32 0.25, %v10300_v59  ;;  %v4634_v11 = vpop.f32.mrb[25].mxu0 }
0x133f   :  { %v4643_v15 = vmul.f32 0.25, %v4634_v11 }
0x1340   :  { %v4646_v30 = vadd.f32 %v4644_v9, %v13437_v17 }
0x1341   :  { %v4645_v55 = vadd.f32 %v4643_v15, %v13434_v2  ;;  %v13641_v15 = vpack.i.bf16 %v13566_v5, %v13564_v42 }
0x1342   :  { %v4650_v40 = vsel %vm3680_vm2, %v4646_v30, -inf }
0x1343   :  { %4651 = vmax.xlane.f32.xlu0 %v4650_v40  ;;  %v4647_v20 = vsel %vm3680_vm2, %v4645_v55, -inf }
0x1344   :  { %4648 = vmax.xlane.f32.xlu1 %v4647_v20 }
0x13d0   :  { %v4652_v24 = vpop.xlane.xlu0 %4651 }
0x13d1   :  { %v4654_v32 = vsub.f32 %v4646_v30, %v4652_v24  ;;  %v4649_v7 = vpop.xlane.xlu1 %4648 }
0x13d2   :  { %v4653_v25 = vsub.f32 %v4645_v55, %v4649_v7 }
0x13d3   :  { %v4657_v61 = vmul.f32 1.442695, %v4654_v32 }
0x13d4   :  { %v4655_v50 = vmul.f32 1.442695, %v4653_v25 }
0x13d5   :  { %11650 = vpow2.f32 %v4657_v61 }
0x13d6   :  { %11652 = vpow2.f32 %v4655_v50 }
0x13df   :  { %v11651_v35 = vpop.eup %11650 }
0x13e0   :  { %v11653_v47 = vpop.eup %11652  ;;  %v4662_v4 = vsel %vm3680_vm2, %v11651_v35, 0.0 }
0x13e1   :  { %4663 = vadd.xlane.f32.xlu1 %v4662_v4  ;;  %v4659_v41 = vsel %vm3680_vm2, %v11653_v47, 0.0 }
0x13e2   :  { %4660 = vadd.xlane.f32.xlu0 %v4659_v41 }
0x13f2   :  { %4758 = vrot.lane.b32.xlu1 %v13585_v26, %s12131_s14 }
0x13f6   :  { %4760 = vrot.lane.b32.xlu1 %v13581_v54, %s12131_s14 }
0x13f8   :  { %11463 = vrot.lane.b32.xlu0 %v13589_v21, %s12132_s22 }
0x146e   :  { %v4664_v28 = vpop.xlane.xlu1 %4663 }
0x146f   :  { %11654 = vrcp.f32 %v4664_v28  ;;  %v4661_v23 = vpop.xlane.xlu0 %4660 }
0x1470   :  { %11656 = vrcp.f32 %v4661_v23 }
0x1472   :  { %v4759_v14 = vpop.permute.xlu1 %4758 }
0x1473   :  { %v11464_v49 = vpop.permute.xlu0 %11463 }
0x1474   :  { %v11466_v16 = vunpack.i.h.bf16 %v11464_v49  ;;  %v11465_v27 = vunpack.i.l.bf16 %v11464_v49 }
0x1476   :  { %v11082_v12 = vpack.c.bf16 %v11466_v16, %v11465_v27  ;;  %v4761_v37 = vpop.permute.xlu1 %4760 }
0x1478   :  { %11084 = vmatprep.subr.msk.bf16.mxu1 %vm13408_vm3, %v11082_v12 }
0x1479   :  { %v11655_v38 = vpop.eup %11654 }
0x147a   :  { %v11657_v39 = vpop.eup %11656  ;;  %v4668_v44 = vmul.f32 %v11655_v38, %v11651_v35 }
0x147b   :  { %v4667_v6 = vmul.f32 %v11657_v39, %v11653_v47 }
0x147d   :  { %10305 = vmatprep.mubr.msk.f32.mxu1 %vm3680_vm2, %v4667_v6 }
0x147e   :  { %10306 = vmatmul.mubr.msk.f32.vlgmr.msra.gmra.mrb[16].mxu1 %vm3680_vm2, %v4668_v44 }
0x147f   :  { %11087 = vmatpush3.bf16.xpose.msk.msra.mxu1 %vm13408_vm3, %v11082_v12  ;;  %10312 = vmatprep.mubr.msk.f32.mxu1 %vm3680_vm2, %v4759_v14 }
0x1486   :  { %10313 = vmatmul.mubr.msk.f32.vlgmr.msra.gmra.mrb[18].mxu1 %vm3680_vm2, %v4761_v37 }
0x1551   :  { %v10307_v3 = vpop.f32.mrb[16].mxu1 }
0x1552   :  { %4751 = vst.msk [vmem:[#allocation4 + $0x18] sm:$0xff] %vm3680_vm2, %v10307_v3  ;;  %v4741_v1 = vpop.f32.mrb[17].mxu1 }
0x1553   :  { %4750 = vst.msk [vmem:[#allocation4 + $0x10] sm:$0xff] %vm3680_vm2, %v4741_v1 }
0x1559   :  { %v10314_v45 = vpop.f32.mrb[18].mxu1 }
0x155a   :  { %v4850_v8 = vmul.f32 0.25, %v10314_v45  ;;  %v4840_v46 = vpop.f32.mrb[19].mxu1 }
0x155b   :  { %v4849_v48 = vmul.f32 0.25, %v4840_v46 }
0x155c   :  { %v4852_v53 = vadd.f32 %v4850_v8, %v13463_v31 }
0x155d   :  { %v4851_v59 = vadd.f32 %v4849_v48, %v13466_v34 }
0x155e   :  { %v4856_v9 = vsel %vm3680_vm2, %v4852_v53, -inf }
0x155f   :  { %4857 = vmax.xlane.f32.xlu0 %v4856_v9  ;;  %v4853_v11 = vsel %vm3680_vm2, %v4851_v59, -inf }
0x1560   :  { %4854 = vmax.xlane.f32.xlu1 %v4853_v11 }
0x1571   :  { %11468 = vrot.lane.b32.xlu1 %v13641_v15, %s12131_s14 }
0x1575   :  { %4980 = vrot.lane.b32.xlu1 %v13585_v26, %s12134_s2 }
0x1579   :  { %4982 = vrot.lane.b32.xlu1 %v13581_v54, %s12134_s2 }
0x15ec   :  { %v4858_v30 = vpop.xlane.xlu0 %4857 }
0x15ed   :  { %v4860_v55 = vsub.f32 %v4852_v53, %v4858_v30  ;;  %v4855_v40 = vpop.xlane.xlu1 %4854 }
0x15ee   :  { %v4859_v20 = vsub.f32 %v4851_v59, %v4855_v40 }
0x15ef   :  { %v4863_v24 = vmul.f32 1.442695, %v4860_v55 }
0x15f0   :  { %v4861_v32 = vmul.f32 1.442695, %v4859_v20 }
0x15f1   :  { %11658 = vpow2.f32 %v4863_v24  ;;  %v11469_v7 = vpop.permute.xlu1 %11468 }
0x15f2   :  { %v11471_v25 = vunpack.i.h.bf16 %v11469_v7  ;;  %v11470_v42 = vunpack.i.l.bf16 %v11469_v7  ;;  %11660 = vpow2.f32 %v4861_v32 }
0x15f4   :  { %v11088_v5 = vpack.c.bf16 %v11471_v25, %v11470_v42 }
0x15f5   :  { %v4981_v6 = vpop.permute.xlu1 %4980 }
0x15f6   :  { %11089 = vmatprep.subr.bf16.mxu0 %v11088_v5 }
0x15f7   :  { %11091 = vmatpush3.bf16.msra.mxu0 %v11088_v5 }
0x15f9   :  { %v4983_v44 = vpop.permute.xlu1 %4982 }
0x15fb   :  { %v11659_v61 = vpop.eup %11658 }
0x15fc   :  { %v4868_v50 = vsel %vm3680_vm2, %v11659_v61, 0.0  ;;  %v11661_v35 = vpop.eup %11660 }
0x15fd   :  { %4869 = vadd.xlane.f32.xlu0 %v4868_v50  ;;  %v4865_v47 = vsel %vm3680_vm2, %v11661_v35, 0.0 }
0x1601   :  { %4866 = vadd.xlane.f32.xlu0 %v4865_v47 }
0x1617   :  { %11473 = vrot.lane.b32.xlu0 %v13589_v21, %s12133_s13 }
0x168a   :  { %v4870_v4 = vpop.xlane.xlu0 %4869 }
0x168b   :  { %11662 = vrcp.f32 %v4870_v4 }
0x168e   :  { %v4867_v41 = vpop.xlane.xlu0 %4866 }
0x168f   :  { %11664 = vrcp.f32 %v4867_v41 }
0x1692   :  { %v11474_v28 = vpop.permute.xlu0 %11473 }
0x1693   :  { %v11476_v23 = vunpack.i.h.bf16 %v11474_v28  ;;  %v11475_v49 = vunpack.i.l.bf16 %v11474_v28 }
0x1695   :  { %v11092_v16 = vpack.c.bf16 %v11476_v23, %v11475_v49  ;;  %v11663_v27 = vpop.eup %11662 }
0x1696   :  { %v4874_v39 = vmul.f32 %v11663_v27, %v11659_v61 }
0x1697   :  { %11094 = vmatprep.subr.msk.bf16.mxu0 %vm13408_vm3, %v11092_v16 }
0x1699   :  { %v11665_v12 = vpop.eup %11664 }
0x169a   :  { %v4873_v38 = vmul.f32 %v11665_v12, %v11661_v35 }
0x169c   :  { %10319 = vmatprep.mubr.msk.f32.mxu0 %vm3680_vm2, %v4873_v38 }
0x169d   :  { %10320 = vmatmul.mubr.msk.f32.vlgmr.msra.gmra.mrb[26].mxu0 %vm3680_vm2, %v4874_v39 }
0x169e   :  { %11097 = vmatpush3.bf16.xpose.msk.msra.mxu0 %vm13408_vm3, %v11092_v16  ;;  %10326 = vmatprep.mubr.msk.f32.mxu0 %vm3680_vm2, %v4981_v6 }
0x16a5   :  { %10327 = vmatmul.mubr.msk.f32.vlgmr.msra.gmra.mrb[28].mxu0 %vm3680_vm2, %v4983_v44 }
0x1770   :  { %v13661_v14 = vpop.f32.mrb[26].mxu0 }
0x1771   :  { %v13663_v37 = vpop.f32.mrb[27].mxu0 }
0x1778   :  { %v10328_v3 = vpop.f32.mrb[28].mxu0 }
0x1779   :  { %v5072_v1 = vmul.f32 0.25, %v10328_v3  ;;  %v5062_v45 = vpop.f32.mrb[29].mxu0 }
0x177a   :  { %v5071_v8 = vmul.f32 0.25, %v5062_v45 }
0x177b   :  { %v5074_v46 = vadd.f32 %v5072_v1, %v13544_v22 }
0x177c   :  { %v5073_v48 = vadd.f32 %v5071_v8, %v13547_v33 }
0x177d   :  { %v5078_v53 = vsel %vm3680_vm2, %v5074_v46, -inf }
0x177e   :  { %5079 = vmax.xlane.f32.xlu0 %v5078_v53  ;;  %v5075_v59 = vsel %vm3680_vm2, %v5073_v48, -inf }
0x177f   :  { %5076 = vmax.xlane.f32.xlu1 %v5075_v59 }
0x1790   :  { %11478 = vrot.lane.b32.xlu1 %v13641_v15, %s12134_s2 }
0x1794   :  { %5202 = vrot.lane.b32.xlu1 %v13585_v26, %s12135_s20 }
0x1798   :  { %5204 = vrot.lane.b32.xlu1 %v13581_v54, %s12135_s20 }
0x180b   :  { %v5080_v9 = vpop.xlane.xlu0 %5079 }
0x180c   :  { %v5082_v11 = vsub.f32 %v5074_v46, %v5080_v9  ;;  %v5077_v30 = vpop.xlane.xlu1 %5076 }
0x180d   :  { %v5081_v55 = vsub.f32 %v5073_v48, %v5077_v30 }
0x180e   :  { %v5085_v40 = vmul.f32 1.442695, %v5082_v11 }
0x180f   :  { %v5083_v20 = vmul.f32 1.442695, %v5081_v55 }
0x1810   :  { %11666 = vpow2.f32 %v5085_v40  ;;  %v11479_v24 = vpop.permute.xlu1 %11478 }
0x1811   :  { %v11481_v32 = vunpack.i.h.bf16 %v11479_v24  ;;  %v11480_v7 = vunpack.i.l.bf16 %v11479_v24  ;;  %11668 = vpow2.f32 %v5083_v20 }
0x1813   :  { %v11098_v25 = vpack.c.bf16 %v11481_v32, %v11480_v7 }
0x1814   :  { %v5203_v27 = vpop.permute.xlu1 %5202 }
0x1815   :  { %11099 = vmatprep.subr.bf16.mxu1 %v11098_v25 }
0x1816   :  { %11101 = vmatpush3.bf16.msra.mxu1 %v11098_v25 }
0x181a   :  { %v11667_v42 = vpop.eup %11666 }
0x181b   :  { %v5090_v26 = vsel %vm3680_vm2, %v11667_v42, 0.0  ;;  %v11669_v5 = vpop.eup %11668 }
0x181c   :  { %5091 = vadd.xlane.f32.xlu0 %v5090_v26  ;;  %v5087_v54 = vsel %vm3680_vm2, %v11669_v5, 0.0  ;;  %v5423_v26 = vld [vmem:[%s14533_s9 + $0x8] sm:$0xff] }
0x1820   :  { %5088 = vadd.xlane.f32.xlu0 %v5087_v54 }
0x1836   :  { %11483 = vrot.lane.b32.xlu0 %v13589_v21, %s12120_s26  ;;  %v5205_v21 = vpop.permute.xlu1 %5204 }
0x18a9   :  { %v5092_v61 = vpop.xlane.xlu0 %5091 }
0x18aa   :  { %11670 = vrcp.f32 %v5092_v61 }
0x18ad   :  { %v5089_v50 = vpop.xlane.xlu0 %5088 }
0x18ae   :  { %11672 = vrcp.f32 %v5089_v50 }
0x18b1   :  { %v11484_v35 = vpop.permute.xlu0 %11483 }
0x18b2   :  { %v11486_v47 = vunpack.i.h.bf16 %v11484_v35  ;;  %v11485_v4 = vunpack.i.l.bf16 %v11484_v35  ;;  %v5425_v35 = vld [vmem:[%s14533_s9 + $0x18] sm:$0xff] }
0x18b4   :  { %v11102_v41 = vpack.c.bf16 %v11486_v47, %v11485_v4  ;;  %v11671_v28 = vpop.eup %11670 }
0x18b5   :  { %v5096_v16 = vmul.f32 %v11671_v28, %v11667_v42  ;;  %v5422_v42 = vld [vmem:[%s14533_s9] sm:$0xff] }
0x18b6   :  { %11104 = vmatprep.subr.msk.bf16.mxu1 %vm13408_vm3, %v11102_v41 }
0x18b8   :  { %v11673_v23 = vpop.eup %11672 }
0x18b9   :  { %v5095_v49 = vmul.f32 %v11673_v23, %v11669_v5  ;;  %v11112_v5 = vpack.c.bf16 %v5423_v26, %v5422_v42  ;;  %v5607_v42 = vld [vmem:[#allocation17 + $0x8] sm:$0xff]  ;;  %v5609_v26 = vld [vmem:[#allocation17 + $0x18] sm:$0xff] }
0x18bb   :  { %10333 = vmatprep.mubr.msk.f32.mxu1 %vm3680_vm2, %v5095_v49  ;;  %v5426_v49 = vld [vmem:[%s14533_s9 + $0x20] sm:$0xff] }
0x18bc   :  { %10334 = vmatmul.mubr.msk.f32.vlgmr.msra.gmra.mrb[20].mxu1 %vm3680_vm2, %v5096_v16  ;;  %v5427_v16 = vld [vmem:[%s14533_s9 + $0x28] sm:$0xff] }
0x18bd   :  { %11107 = vmatpush3.bf16.xpose.msk.msra.mxu1 %vm13408_vm3, %v11102_v41  ;;  %10340 = vmatprep.mubr.msk.f32.mxu1 %vm3680_vm2, %v5203_v27 }
0x18c4   :  { %10341 = vmatmul.mubr.msk.f32.vlgmr.msra.gmra.mrb[22].mxu1 %vm3680_vm2, %v5205_v21 }
0x18c5   :  { %5710 = vmatprep.mubr.f32.mxu1 %v13517_v29 }
0x198f   :  { %v10335_v12 = vpop.f32.mrb[20].mxu1 }
0x1990   :  { %v5177_v38 = vpop.f32.mrb[21].mxu1 }
0x1997   :  { %v10342_v39 = vpop.f32.mrb[22].mxu1 }
0x1998   :  { %v5294_v6 = vmul.f32 0.25, %v10342_v39  ;;  %v5284_v44 = vpop.f32.mrb[23].mxu1  ;;  %v5429_v39 = vld [vmem:[%s14533_s9 + $0x38] sm:$0xff] }
0x1999   :  { %v5293_v3 = vmul.f32 0.25, %v5284_v44 }
0x199a   :  { %v5296_v1 = vadd.f32 %v5294_v6, %v13558_v36 }
0x199b   :  { %v5295_v45 = vadd.f32 %v5293_v3, %v13553_v0 }
0x199c   :  { %v5300_v8 = vsel %vm3680_vm2, %v5296_v1, -inf }
0x199d   :  { %5301 = vmax.xlane.f32.xlu0 %v5300_v8  ;;  %v5297_v46 = vsel %vm3680_vm2, %v5295_v45, -inf  ;;  %v13754_v8 = vld [vmem:[#allocation13] ss:$0 sm:$0xff] }
0x199e   :  { %5298 = vmax.xlane.f32.xlu1 %v5297_v46 }
0x19af   :  { %11488 = vrot.lane.b32.xlu1 %v13641_v15, %s12135_s20 }
0x19b3   :  { %4093 = vrot.lane.b32.xlu1 %v13535_v60, %s12120_s26 }
0x19b7   :  { %4316 = vrot.lane.b32.xlu1 %v13607_v58, %s12133_s13 }
0x19bb   :  { %4318 = vrot.lane.b32.xlu1 %v13605_v57, %s12133_s13 }
0x19bf   :  { %4543 = vrot.lane.b32.xlu1 %v13609_v51, %s12132_s22 }
0x19c3   :  { %4968 = vrot.lane.b32.xlu1 %v13661_v14, %s12120_s26 }
0x1a2a   :  { %v5302_v48 = vpop.xlane.xlu0 %5301 }
0x1a2b   :  { %v5304_v53 = vsub.f32 %v5296_v1, %v5302_v48  ;;  %v5299_v59 = vpop.xlane.xlu1 %5298 }
0x1a2c   :  { %v5303_v9 = vsub.f32 %v5295_v45, %v5299_v59 }
0x1a2d   :  { %v5307_v15 = vmul.f32 1.442695, %v5304_v53 }
0x1a2e   :  { %v5305_v11 = vmul.f32 1.442695, %v5303_v9 }
0x1a2f   :  { %11674 = vpow2.f32 %v5307_v15  ;;  %v11489_v60 = vpop.permute.xlu1 %11488 }
0x1a30   :  { %v11491_v30 = vunpack.i.h.bf16 %v11489_v60  ;;  %v11490_v55 = vunpack.i.l.bf16 %v11489_v60  ;;  %11676 = vpow2.f32 %v5305_v11 }
0x1a32   :  { %v11108_v58 = vpack.c.bf16 %v11491_v30, %v11490_v55 }
0x1a33   :  { %v4094_v57 = vpop.permute.xlu1 %4093 }
0x1a34   :  { %4099 = vst.msk [vmem:[#allocation4 + $0x8] sm:$0xff] %vm4097_vm4, %v4094_v57  ;;  %11109 = vmatprep.subr.bf16.mxu0 %v11108_v58 }
0x1a35   :  { %11111 = vmatpush3.bf16.msra.mxu0 %v11108_v58 }
0x1a36   :  { %11113 = vmatprep.subr.bf16.mxu0 %v11112_v5 }
0x1a37   :  { %v4317_v51 = vpop.permute.xlu1 %4316 }
0x1a39   :  { %v11675_v14 = vpop.eup %11674 }
0x1a3a   :  { %v5312_v40 = vsel %vm3680_vm2, %v11675_v14, 0.0  ;;  %v11677_v20 = vpop.eup %11676 }
0x1a3b   :  { %5313 = vadd.xlane.f32.xlu0 %v5312_v40  ;;  %v4319_v24 = vpop.permute.xlu1 %4318  ;;  %v5309_v32 = vsel %vm3680_vm2, %v11677_v20, 0.0 }
0x1a3c   :  { %4324 = vst.msk [vmem:[#allocation4 + $0x8] sm:$0xff] %vm4322_vm5, %v4319_v24 }
0x1a3f   :  { %5310 = vadd.xlane.f32.xlu0 %v5309_v32  ;;  %v4544_v7 = vpop.permute.xlu1 %4543 }
0x1a40   :  { %4549 = vst.msk [vmem:[#allocation4 + $0x8] sm:$0xff] %vm4547_vm6, %v4544_v7 }
0x1a43   :  { %v4969_v25 = vpop.permute.xlu1 %4968 }
0x1a44   :  { %4973 = vst.msk [vmem:[#allocation4 + $0x18] sm:$0xff] %vm4097_vm4, %v4969_v25 }
0x1a47   :  { %v5419_v3 = vld [vmem:[#allocation4 + $0x8] sm:$0xff] }
0x1a55   :  { %4091 = vrot.lane.b32.xlu0 %v13538_v18, %s12120_s26 }
0x1a59   :  { %4541 = vrot.lane.b32.xlu0 %v13611_v52, %s12132_s22 }
0x1a5d   :  { %4966 = vrot.lane.b32.xlu0 %v13663_v37, %s12120_s26  ;;  %v5424_v37 = vld [vmem:[%s14533_s9 + $0x10] sm:$0xff] }
0x1a5e   :  { %v11116_v23 = vpack.c.bf16 %v5425_v35, %v5424_v37  ;;  %v5610_v35 = vld [vmem:[#allocation17 + $0x20] sm:$0xff] }
0x1a61   :  { %5188 = vrot.lane.b32.xlu0 %v5177_v38, %s12133_s13  ;;  %v5428_v38 = vld [vmem:[%s14533_s9 + $0x30] sm:$0xff] }
0x1a62   :  { %v11124_v44 = vpack.c.bf16 %v5429_v39, %v5428_v38  ;;  %v5618_v39 = vld [vmem:[#allocation17 + $0x60] sm:$0xff] }
0x1a65   :  { %5190 = vrot.lane.b32.xlu0 %v10335_v12, %s12133_s13  ;;  %v11120_v12 = vpack.c.bf16 %v5427_v16, %v5426_v49  ;;  %v5614_v49 = vld [vmem:[#allocation17 + $0x40] sm:$0xff]  ;;  %v5616_v16 = vld [vmem:[#allocation17 + $0x50] sm:$0xff] }
0x1ac8   :  { %v5314_v18 = vpop.xlane.xlu0 %5313 }
0x1ac9   :  { %11678 = vrcp.f32 %v5314_v18  ;;  %v5606_v18 = vld [vmem:[#allocation17] sm:$0xff] }
0x1acc   :  { %v5311_v54 = vpop.xlane.xlu0 %5310 }
0x1acd   :  { %11680 = vrcp.f32 %v5311_v54  ;;  %v5608_v54 = vld [vmem:[#allocation17 + $0x10] sm:$0xff] }
0x1ad0   :  { %v4092_v61 = vpop.permute.xlu0 %4091 }
0x1ad1   :  { %4098 = vst.msk [vmem:[#allocation4] sm:$0xff] %vm4097_vm4, %v4092_v61  ;;  %v11130_v61 = vpack.c.bf16 %v5608_v54, %v5606_v18  ;;  %v5826_v54 = vld [vmem:[%s14539_s15 + $0x98] sm:$0xff] }
0x1ad2   :  { %4323 = vst.msk [vmem:[#allocation4] sm:$0xff] %vm4322_vm5, %v4317_v51 }
0x1ad3   :  { %v11679_v52 = vpop.eup %11678 }
0x1ad4   :  { %v4542_v50 = vpop.permute.xlu0 %4541  ;;  %v5318_v28 = vmul.f32 %v11679_v52, %v11675_v14  ;;  %v5613_v52 = vld [vmem:[#allocation17 + $0x38] sm:$0xff] }
0x1ad5   :  { %4548 = vst.msk [vmem:[#allocation4] sm:$0xff] %vm4547_vm6, %v4542_v50  ;;  %v5611_v50 = vld [vmem:[#allocation17 + $0x28] sm:$0xff] }
0x1ad6   :  { %v11132_v37 = vpack.c.bf16 %v5613_v52, %v5611_v50  ;;  %v5809_v50 = vld [vmem:[%s14539_s15 + $0x10] sm:$0xff]  ;;  %v5810_v52 = vld [vmem:[%s14539_s15 + $0x18] sm:$0xff] }
0x1ad7   :  { %v11681_v47 = vpop.eup %11680 }
0x1ad8   :  { %v4967_v4 = vpop.permute.xlu0 %4966  ;;  %v5317_v41 = vmul.f32 %v11681_v47, %v11677_v20  ;;  %v5612_v47 = vld [vmem:[#allocation17 + $0x30] sm:$0xff] }
0x1ad9   :  { %4972 = vst.msk [vmem:[#allocation4 + $0x10] sm:$0xff] %vm4097_vm4, %v4967_v4  ;;  %v11134_v4 = vpack.c.bf16 %v5612_v47, %v5610_v35  ;;  %v5827_v35 = vld [vmem:[%s14539_s15 + $0xa0] sm:$0xff]  ;;  %v5828_v47 = vld [vmem:[%s14539_s15 + $0xa8] sm:$0xff] }
0x1ada   :  { %10347 = vmatprep.mubr.msk.f32.mxu0 %vm3680_vm2, %v5317_v41  ;;  %v5615_v41 = vld [vmem:[#allocation17 + $0x48] sm:$0xff] }
0x1adb   :  { %10348 = vmatmul.mubr.msk.f32.vlgmr.msra.gmra.mrb[30].mxu0 %vm3680_vm2, %v5318_v28  ;;  %v5617_v28 = vld [vmem:[#allocation17 + $0x58] sm:$0xff] }
0x1adc   :  { %11115 = vmatpush3.bf16.msra.mxu0 %v11112_v5  ;;  %v5189_v27 = vpop.permute.xlu0 %5188  ;;  %v5418_v21 = vld [vmem:[#allocation4] sm:$0xff]  ;;  %v11128_v5 = vpack.c.bf16 %v5609_v26, %v5607_v42 }
0x1add   :  { %5194 = vst.msk [vmem:[#allocation4 + $0x10] sm:$0xff] %vm4322_vm5, %v5189_v27  ;;  %10366 = vmatprep.mubr.msk.f32.mxu0 %vm336_vm1, %v5418_v21  ;;  %11117 = vmatprep.subr.bf16.mxu0 %v11116_v23  ;;  %v11138_v27 = vpack.c.bf16 %v5616_v16, %v5614_v49  ;;  %v5619_v21 = vld [vmem:[#allocation17 + $0x68] sm:$0xff]  ;;  %v5830_v16 = vld [vmem:[%s14539_s15 + $0xb8] sm:$0xff] }
0x1ade   :  { %11129 = vmatprep.subr.bf16.mxu1 %v11128_v5  ;;  %v5808_v5 = vld [vmem:[%s14539_s15 + $0x8] sm:$0xff]  ;;  %v5829_v49 = vld [vmem:[%s14539_s15 + $0xb0] sm:$0xff] }
0x1adf   :  { %11131 = vmatpush1.bf16.msra.mxu1 %v11130_v61 }
0x1ae0   :  { %11119 = vmatpush3.bf16.msra.mxu0 %v11116_v23  ;;  %v5191_v6 = vpop.permute.xlu0 %5190  ;;  %11133 = vmatprep.subr.bf16.mxu1 %v11132_v37  ;;  %v11136_v23 = vpack.c.bf16 %v5617_v28, %v5615_v41  ;;  %v11150_v37 = vpack.c.bf16 %v5810_v52, %v5809_v50  ;;  %v5811_v41 = vld [vmem:[%s14539_s15 + $0x20] sm:$0xff]  ;;  %v5812_v28 = vld [vmem:[%s14539_s15 + $0x28] sm:$0xff] }
0x1ae1   :  { %5195 = vst.msk [vmem:[#allocation4 + $0x18] sm:$0xff] %vm4322_vm5, %v5191_v6  ;;  %11121 = vmatprep.subr.bf16.mxu0 %v11120_v12  ;;  %v5620_v6 = vld [vmem:[#allocation17 + $0x70] sm:$0xff] }
0x1ae3   :  { %11135 = vmatpush1.bf16.msra.mxu1 %v11134_v4  ;;  %v11152_v4 = vpack.c.bf16 %v5828_v47, %v5827_v35 }
0x1ae4   :  { %11123 = vmatpush3.bf16.msra.mxu0 %v11120_v12  ;;  %11137 = vmatprep.subr.bf16.mxu1 %v11136_v23  ;;  %v5621_v12 = vld [vmem:[#allocation17 + $0x78] sm:$0xff]  ;;  %v11154_v23 = vpack.c.bf16 %v5812_v28, %v5811_v41 }
0x1ae5   :  { %11125 = vmatprep.subr.bf16.mxu0 %v11124_v44  ;;  %v11140_v38 = vpack.c.bf16 %v5621_v12, %v5619_v21  ;;  %v5813_v21 = vld [vmem:[%s14539_s15 + $0x30] sm:$0xff]  ;;  %v5814_v12 = vld [vmem:[%s14539_s15 + $0x38] sm:$0xff] }
0x1ae7   :  { %11139 = vmatpush1.bf16.msra.mxu1 %v11138_v27  ;;  %v11156_v27 = vpack.c.bf16 %v5830_v16, %v5829_v49 }
0x1ae8   :  { %11127 = vmatpush3.bf16.msra.mxu0 %v11124_v44  ;;  %v11142_v44 = vpack.c.bf16 %v5620_v6, %v5618_v39  ;;  %11141 = vmatprep.subr.bf16.mxu1 %v11140_v38  ;;  %v11158_v38 = vpack.c.bf16 %v5814_v12, %v5813_v21  ;;  %v5831_v39 = vld [vmem:[%s14539_s15 + $0xc0] sm:$0xff]  ;;  %v5832_v6 = vld [vmem:[%s14539_s15 + $0xc8] sm:$0xff] }
0x1aeb   :  { %10367 = vmatmul.mubr.msk.f32.vlgmr.msra.gmra.mrb[32].mxu0 %vm336_vm1, %v5419_v3  ;;  %11143 = vmatpush1.bf16.msra.mxu1 %v11142_v44  ;;  %v11160_v44 = vpack.c.bf16 %v5832_v6, %v5831_v39 }
0x1bae   :  { %v10349_v1 = vpop.f32.mrb[30].mxu0 }
0x1baf   :  { %v5399_v45 = vpop.f32.mrb[31].mxu0 }
0x1bb0   :  { %5410 = vrot.lane.b32.xlu0 %v5399_v45, %s12132_s22 }
0x1bb4   :  { %5412 = vrot.lane.b32.xlu0 %v10349_v1, %s12132_s22 }
0x1bbe   :  { %v10368_v46 = vpop.f32.mrb[32].mxu0 }
0x1bbf   :  { %v5513_v48 = vpop.f32.mrb[33].mxu0  ;;  %v5519_v15 = vadd.f32 %v10368_v46, %v13754_v8 }
0x1bc0   :  { %v5514_v53 = vadd.f32 %v13754_v8, %v5513_v48 }
0x1bc1   :  { %v13764_v11 = vadd.f32 %v5519_v15, %v13280_v62 }
0x1bc2   :  { %v13758_v59 = vadd.f32 %v5514_v53, %v13283_v10 }
0x1bc3   :  { %v5541_v60 = vsel %vm336_vm1, %v13764_v11, 0.0 }
0x1bc4   :  { %v5538_v9 = vsel %vm336_vm1, %v13758_v59, 0.0 }
0x1bc5   :  { %5539 = vadd.xlane.f32.xlu1 %v5538_v9  ;;  %v13776_v9 = vld [vmem:[#allocation14] ss:$0 sm:$0xff] }
0x1bd3   :  { %5542 = vadd.xlane.f32.xlu0 %v5541_v60 }
0x1c22   :  { %v5411_v30 = vpop.permute.xlu0 %5410 }
0x1c23   :  { %5416 = vst.msk [vmem:[#allocation4 + $0x10] sm:$0xff] %vm4547_vm6, %v5411_v30  ;;  %v13778_v30 = vld [vmem:[#allocation16] ss:$0 sm:$0xff] }
0x1c26   :  { %v5413_v55 = vpop.permute.xlu0 %5412 }
0x1c27   :  { %5417 = vst.msk [vmem:[#allocation4 + $0x18] sm:$0xff] %vm4547_vm6, %v5413_v55 }
0x1c2a   :  { %v5420_v10 = vld [vmem:[#allocation4 + $0x10] sm:$0xff] }
0x1c2b   :  { %10369 = vmatprep.mubr.msk.f32.mxu0 %vm336_vm1, %v5420_v10 }
0x1c2e   :  { %v5421_v58 = vld [vmem:[#allocation4 + $0x18] sm:$0xff] }
0x1c2f   :  { %10370 = vmatmul.mubr.msk.f32.gmra.mrb[34].mxu0 %vm336_vm1, %v5421_v58 }
0x1c52   :  { %v5540_v57 = vpop.xlane.xlu1 %5539 }
0x1c53   :  { %v5550_v51 = vmul.f32 0.015625, %v5540_v57 }
0x1c55   :  { %v5554_v62 = vsub.f32 %v13758_v59, %v5550_v51 }
0x1c57   :  { %v5558_v14 = vmul.f32 %v5554_v62, %v5554_v62 }
0x1c59   :  { %v5562_v40 = vsel %vm336_vm1, %v5558_v14, 0.0 }
0x1c5a   :  { %5563 = vadd.xlane.f32.xlu1 %v5562_v40 }
0x1c60   :  { %v5543_v20 = vpop.xlane.xlu0 %5542 }
0x1c61   :  { %v5551_v24 = vmul.f32 0.015625, %v5543_v20 }
0x1c63   :  { %v5555_v32 = vsub.f32 %v13764_v11, %v5551_v24 }
0x1c65   :  { %v5559_v7 = vmul.f32 %v5555_v32, %v5555_v32 }
0x1c67   :  { %v5565_v25 = vsel %vm336_vm1, %v5559_v7, 0.0 }
0x1c68   :  { %5566 = vadd.xlane.f32.xlu1 %v5565_v25 }
0x1ce7   :  { %v5564_v3 = vpop.xlane.xlu1 %5563 }
0x1ce8   :  { %v5574_v1 = vmul.f32 0.015625, %v5564_v3  ;;  %v5815_v3 = vld [vmem:[%s14539_s15 + $0x40] sm:$0xff] }
0x1cea   :  { %v5578_v45 = vadd.f32 1e-06, %v5574_v1  ;;  %v5816_v1 = vld [vmem:[%s14539_s15 + $0x48] sm:$0xff] }
0x1cec   :  { %11682 = vrsqrt.f32 %v5578_v45  ;;  %v11162_v45 = vpack.c.bf16 %v5816_v1, %v5815_v3 }
0x1cf5   :  { %v5567_v46 = vpop.xlane.xlu1 %5566 }
0x1cf6   :  { %v11683_v48 = vpop.eup %11682  ;;  %v5575_v53 = vmul.f32 0.015625, %v5567_v46  ;;  %v5833_v46 = vld [vmem:[%s14539_s15 + $0xd0] sm:$0xff] }
0x1cf7   :  { %v5586_v15 = vmul.f32 %v11683_v48, %v5554_v62  ;;  %v5834_v48 = vld [vmem:[%s14539_s15 + $0xd8] sm:$0xff] }
0x1cf8   :  { %v5579_v60 = vadd.f32 1e-06, %v5575_v53  ;;  %v11164_v53 = vpack.c.bf16 %v5834_v48, %v5833_v46 }
0x1cf9   :  { %v5594_v55 = vmul.f32 %v13776_v9, %v5586_v15  ;;  %v5817_v15 = vld [vmem:[%s14539_s15 + $0x50] sm:$0xff] }
0x1cfa   :  { %11684 = vrsqrt.f32 %v5579_v60  ;;  %v5818_v60 = vld [vmem:[%s14539_s15 + $0x58] sm:$0xff] }
0x1cfb   :  { %v5602_v10 = vadd.f32 %v13778_v30, %v5594_v55  ;;  %v11166_v55 = vpack.c.bf16 %v5818_v60, %v5817_v15 }
0x1cfd   :  { %8976 = vmatmul.mubr.msk.f32.vlgmr.msra.gmra.mrb[24].mxu1 %vm336_vm1, %v5602_v10  ;;  %v5835_v10 = vld [vmem:[%s14539_s15 + $0xe0] sm:$0xff] }
0x1cfe   :  { %5716 = vmatprep.mubr.f32.mxu1 %v13517_v29 }
0x1d02   :  { %v10371_v58 = vpop.f32.mrb[34].mxu0 }
0x1d03   :  { %v5529_v57 = vadd.f32 %v10371_v58, %v13754_v8  ;;  %v5523_v51 = vpop.f32.mrb[35].mxu0  ;;  %v5836_v58 = vld [vmem:[%s14539_s15 + $0xe8] sm:$0xff] }
0x1d04   :  { %v11685_v14 = vpop.eup %11684  ;;  %v5524_v40 = vadd.f32 %v13754_v8, %v5523_v51  ;;  %v5807_v8 = vld [vmem:[%s14539_s15] sm:$0xff] }
0x1d05   :  { %v13787_v62 = vadd.f32 %v5529_v57, %v13479_v63  ;;  %v5587_v20 = vmul.f32 %v11685_v14, %v5555_v32  ;;  %v5824_v63 = vld [vmem:[%s14539_s15 + $0x88] sm:$0xff]  ;;  %v11146_v18 = vpack.c.bf16 %v5808_v5, %v5807_v8  ;;  %v11168_v57 = vpack.c.bf16 %v5836_v58, %v5835_v10  ;;  %v5819_v51 = vld [vmem:[%s14539_s15 + $0x60] sm:$0xff] }
0x1d06   :  { %v13790_v24 = vadd.f32 %v5524_v40, %v13473_v56  ;;  %v5823_v56 = vld [vmem:[%s14539_s15 + $0x80] sm:$0xff]  ;;  %v5820_v14 = vld [vmem:[%s14539_s15 + $0x68] sm:$0xff]  ;;  %v5837_v40 = vld [vmem:[%s14539_s15 + $0xf0] sm:$0xff] }
0x1d07   :  { %v5547_v7 = vsel %vm336_vm1, %v13787_v62, 0.0  ;;  %v5595_v25 = vmul.f32 %v13776_v9, %v5587_v20  ;;  %v11144_v32 = vpack.c.bf16 %v5824_v63, %v5823_v56  ;;  %v11170_v20 = vpack.c.bf16 %v5820_v14, %v5819_v51 }
0x1d08   :  { %5548 = vadd.xlane.f32.xlu1 %v5547_v7  ;;  %v5544_v42 = vsel %vm336_vm1, %v13790_v24, 0.0  ;;  %v5838_v7 = vld [vmem:[%s14539_s15 + $0xf8] sm:$0xff] }
0x1d09   :  { %5545 = vadd.xlane.f32.xlu0 %v5544_v42  ;;  %v5603_v26 = vadd.f32 %v13778_v30, %v5595_v25  ;;  %11145 = vmatprep.subr.bf16.mxu0 %v11144_v32  ;;  %v5821_v25 = vld [vmem:[%s14539_s15 + $0x70] sm:$0xff]  ;;  %v5822_v42 = vld [vmem:[%s14539_s15 + $0x78] sm:$0xff] }
0x1d0a   :  { %11147 = vmatpush3.bf16.msra.mxu0 %v11146_v18  ;;  %v11174_v56 = vpack.c.bf16 %v5822_v42, %v5821_v25 }
0x1d0b   :  { %8977 = vmatmul.mubr.msk.f32.gmra.mrb[26].mxu1 %vm336_vm1, %v5603_v26  ;;  %v11172_v26 = vpack.c.bf16 %v5838_v7, %v5837_v40 }
0x1d0c   :  { %5722 = vmatprep.mubr.f32.mxu1 %v13517_v29  ;;  %v5825_v29 = vld [vmem:[%s14539_s15 + $0x90] sm:$0xff] }
0x1d0d   :  { %v11148_v61 = vpack.c.bf16 %v5826_v54, %v5825_v29 }
0x1d0f   :  { %11149 = vmatprep.subr.bf16.mxu0 %v11148_v61 }
0x1d10   :  { %11151 = vmatpush3.bf16.msra.mxu0 %v11150_v37  ;;  %v5622_v37 = vld [vmem:[#allocation19] ss:$2 sm:$0x3] }
0x1d11   :  { %11153 = vmatprep.subr.bf16.mxu0 %v11152_v4  ;;  %v13909_v35 = vrot.slane %v5622_v37, %v13353_v19  ;;  %v13912_v47 = vrot.slane %v5622_v37, %v13349_v13 }
0x1d14   :  { %11155 = vmatpush3.bf16.msra.mxu0 %v11154_v23 }
0x1d15   :  { %11157 = vmatprep.subr.bf16.mxu0 %v11156_v27 }
0x1d18   :  { %11159 = vmatpush3.bf16.msra.mxu0 %v11158_v38 }
0x1d19   :  { %11161 = vmatprep.subr.bf16.mxu0 %v11160_v44 }
0x1d1c   :  { %11163 = vmatpush3.bf16.msra.mxu0 %v11162_v45 }
0x1d1d   :  { %11165 = vmatprep.subr.bf16.mxu0 %v11164_v53 }
0x1d20   :  { %11167 = vmatpush3.bf16.msra.mxu0 %v11166_v55 }
0x1d21   :  { %11169 = vmatprep.subr.bf16.mxu0 %v11168_v57 }
0x1d24   :  { %11171 = vmatpush3.bf16.msra.mxu0 %v11170_v20 }
0x1d25   :  { %11173 = vmatprep.subr.bf16.mxu0 %v11172_v26 }
0x1d28   :  { %11175 = vmatpush3.bf16.msra.mxu0 %v11174_v56 }
0x1d95   :  { %v5549_v63 = vpop.xlane.xlu1 %5548 }
0x1d96   :  { %v5553_v8 = vmul.f32 0.015625, %v5549_v63  ;;  %v5546_v32 = vpop.xlane.xlu0 %5545 }
0x1d97   :  { %v5552_v5 = vmul.f32 0.015625, %v5546_v32 }
0x1d98   :  { %v13897_v18 = vsub.f32 %v13787_v62, %v5553_v8 }
0x1d99   :  { %v13900_v29 = vsub.f32 %v13790_v24, %v5552_v5 }
0x1d9a   :  { %v5561_v54 = vmul.f32 %v13897_v18, %v13897_v18 }
0x1d9b   :  { %v5560_v61 = vmul.f32 %v13900_v29, %v13900_v29 }
0x1d9c   :  { %v5571_v50 = vsel %vm336_vm1, %v5561_v54, 0.0 }
0x1d9d   :  { %5572 = vadd.xlane.f32.xlu1 %v5571_v50  ;;  %v5568_v52 = vsel %vm336_vm1, %v5560_v61, 0.0 }
0x1d9e   :  { %5569 = vadd.xlane.f32.xlu0 %v5568_v52 }
0x1dd0   :  { %v5712_v4 = vpop.f32.mrb[24].mxu1 }
0x1dd1   :  { %v5713_v41 = vadd.f32 %v5712_v4, %v13909_v35  ;;  %v5714_v28 = vpop.f32.mrb[25].mxu1 }
0x1dd2   :  { %v5715_v23 = vadd.f32 %v5714_v28, %v13912_v47 }
0x1dd3   :  { %v5743_v49 = vmul.f32 0.044715, %v5713_v41  ;;  %v5735_v26 = vmul.f32 0.5, %v5713_v41 }
0x1dd4   :  { %v5744_v16 = vmul.f32 0.044715, %v5715_v23  ;;  %v5736_v7 = vmul.f32 0.5, %v5715_v23 }
0x1dd5   :  { %v5751_v27 = vmul.f32 %v5743_v49, %v5713_v41 }
0x1dd6   :  { %v5752_v21 = vmul.f32 %v5744_v16, %v5715_v23 }
0x1dd7   :  { %v5759_v12 = vmul.f32 %v5751_v27, %v5713_v41 }
0x1dd8   :  { %v5760_v38 = vmul.f32 %v5752_v21, %v5715_v23 }
0x1dd9   :  { %v5767_v39 = vadd.f32 %v5759_v12, %v5713_v41 }
0x1dda   :  { %v5768_v6 = vadd.f32 %v5760_v38, %v5715_v23 }
0x1ddb   :  { %v5775_v44 = vmul.f32 0.7978846, %v5767_v39 }
0x1ddc   :  { %v5776_v3 = vmul.f32 0.7978846, %v5768_v6 }
0x1ddd   :  { %11686 = vtanh.f32 %v5775_v44 }
0x1dde   :  { %v5718_v1 = vpop.f32.mrb[26].mxu1  ;;  %11688 = vtanh.f32 %v5776_v3 }
0x1ddf   :  { %v5719_v45 = vadd.f32 %v5718_v1, %v13909_v35  ;;  %v5720_v46 = vpop.f32.mrb[27].mxu1  ;;  %v13927_v1 = vld [vmem:[%s14545_s21] sm:$0xff] }
0x1de0   :  { %v5721_v48 = vadd.f32 %v5720_v46, %v13912_v47 }
0x1de1   :  { %v5745_v53 = vmul.f32 0.044715, %v5719_v45  ;;  %v5737_v52 = vmul.f32 0.5, %v5719_v45 }
0x1de2   :  { %v5746_v15 = vmul.f32 0.044715, %v5721_v48  ;;  %v5738_v61 = vmul.f32 0.5, %v5721_v48 }
0x1de3   :  { %v5753_v60 = vmul.f32 %v5745_v53, %v5719_v45 }
0x1de4   :  { %v5754_v55 = vmul.f32 %v5746_v15, %v5721_v48 }
0x1de5   :  { %v5761_v10 = vmul.f32 %v5753_v60, %v5719_v45 }
0x1de6   :  { %v5762_v58 = vmul.f32 %v5754_v55, %v5721_v48 }
0x1de7   :  { %v11687_v57 = vpop.eup %11686  ;;  %v5769_v51 = vadd.f32 %v5761_v10, %v5719_v45 }
0x1de8   :  { %v11689_v14 = vpop.eup %11688  ;;  %v5791_v40 = vadd.f32 1.0, %v11687_v57  ;;  %v5770_v20 = vadd.f32 %v5762_v58, %v5721_v48 }
0x1de9   :  { %v5792_v25 = vadd.f32 1.0, %v11689_v14  ;;  %v5777_v42 = vmul.f32 0.7978846, %v5769_v51 }
0x1dea   :  { %v5778_v56 = vmul.f32 0.7978846, %v5770_v20  ;;  %v5799_v8 = vmul.f32 %v5791_v40, %v5735_v26 }
0x1deb   :  { %v5800_v63 = vmul.f32 %v5792_v25, %v5736_v7  ;;  %11690 = vtanh.f32 %v5777_v42 }
0x1dec   :  { %11692 = vtanh.f32 %v5778_v56 }
0x1ded   :  { %5908 = vmatprep.mubr.f32.mxu0 %v5800_v63 }
0x1dee   :  { %5909 = vmatmul.mubr.f32.vlgmr.msra.gmra.mrb[36].mxu0 %v5799_v8 }
0x1df5   :  { %v11691_v32 = vpop.eup %11690 }
0x1df6   :  { %v11693_v5 = vpop.eup %11692  ;;  %v5793_v54 = vadd.f32 1.0, %v11691_v32 }
0x1df7   :  { %v5794_v50 = vadd.f32 1.0, %v11693_v5 }
0x1df8   :  { %v5801_v4 = vmul.f32 %v5793_v54, %v5737_v52 }
0x1df9   :  { %v5802_v37 = vmul.f32 %v5794_v50, %v5738_v61 }
0x1dfb   :  { %5913 = vmatprep.mubr.f32.mxu0 %v5802_v37 }
0x1dfc   :  { %5914 = vmatmul.mubr.f32.gmra.mrb[38].mxu0 %v5801_v4 }
0x1e2a   :  { %v5573_v28 = vpop.xlane.xlu1 %5572 }
0x1e2b   :  { %v5577_v23 = vmul.f32 0.015625, %v5573_v28  ;;  %v5570_v41 = vpop.xlane.xlu0 %5569 }
0x1e2c   :  { %v5576_v49 = vmul.f32 0.015625, %v5570_v41 }
0x1e2d   :  { %v5581_v16 = vadd.f32 1e-06, %v5577_v23 }
0x1e2e   :  { %v5580_v27 = vadd.f32 1e-06, %v5576_v49 }
0x1e2f   :  { %11694 = vrsqrt.f32 %v5581_v16 }
0x1e30   :  { %11696 = vrsqrt.f32 %v5580_v27 }
0x1e39   :  { %v11695_v21 = vpop.eup %11694 }
0x1e3a   :  { %v11697_v12 = vpop.eup %11696  ;;  %v5589_v39 = vmul.f32 %v11695_v21, %v13897_v18 }
0x1e3b   :  { %v5588_v38 = vmul.f32 %v11697_v12, %v13900_v29  ;;  %v13933_v29 = vld [vmem:[#allocation20] ss:$0 sm:$0xff] }
0x1e3c   :  { %v5597_v3 = vmul.f32 %v13776_v9, %v5589_v39 }
0x1e3d   :  { %v5596_v6 = vmul.f32 %v13776_v9, %v5588_v38 }
0x1e3e   :  { %v5605_v45 = vadd.f32 %v13778_v30, %v5597_v3 }
0x1e3f   :  { %v5604_v44 = vadd.f32 %v13778_v30, %v5596_v6 }
0x1e41   :  { %8978 = vmatmul.mubr.msk.f32.gmra.mrb[28].mxu1 %vm336_vm1, %v5604_v44 }
0x1e42   :  { %5728 = vmatprep.mubr.f32.mxu1 %v13927_v1 }
0x1e45   :  { %8979 = vmatmul.mubr.msk.f32.gmra.mrb[30].mxu1 %vm336_vm1, %v5605_v45 }
0x1e46   :  { %6109 = vmatprep.mubr.f32.mxu1 %v13927_v1 }
0x1ec1   :  { %v9510_v18 = vpop.f32.mrb[36].mxu0 }
0x1ec2   :  { %v9511_v46 = vpop.f32.mrb[37].mxu0 }
0x1ec3   :  { %v9512_v9 = vadd.f32 %v9511_v46, %v9510_v18 }
0x1ec5   :  { %v5911_v48 = vadd.f32 %v9512_v9, %v13933_v29 }
0x1ec7   :  { %v13937_v53 = vadd.f32 %v5911_v48, %v13758_v59 }
0x1ec9   :  { %v5935_v15 = vsel %vm336_vm1, %v13937_v53, 0.0 }
0x1eca   :  { %5936 = vadd.xlane.f32.xlu0 %v5935_v15 }
0x1ecf   :  { %v9513_v60 = vpop.f32.mrb[38].mxu0 }
0x1ed0   :  { %v9514_v30 = vpop.f32.mrb[39].mxu0 }
0x1ed1   :  { %v9515_v55 = vadd.f32 %v9514_v30, %v9513_v60 }
0x1ed3   :  { %v5916_v10 = vadd.f32 %v9515_v55, %v13933_v29 }
0x1ed5   :  { %v13943_v58 = vadd.f32 %v5916_v10, %v13764_v11 }
0x1ed7   :  { %v5938_v57 = vsel %vm336_vm1, %v13943_v58, 0.0 }
0x1ed8   :  { %5939 = vadd.xlane.f32.xlu1 %v5938_v57 }
0x1f14   :  { %v5724_v51 = vpop.f32.mrb[28].mxu1 }
0x1f15   :  { %v5725_v59 = vadd.f32 %v5724_v51, %v13909_v35  ;;  %v5726_v14 = vpop.f32.mrb[29].mxu1 }
0x1f16   :  { %v5727_v40 = vadd.f32 %v5726_v14, %v13912_v47 }
0x1f17   :  { %v5747_v20 = vmul.f32 0.044715, %v5725_v59  ;;  %v5739_v6 = vmul.f32 0.5, %v5725_v59 }
0x1f18   :  { %v5748_v7 = vmul.f32 0.044715, %v5727_v40  ;;  %v5730_v25 = vpop.f32.mrb[30].mxu1  ;;  %v5740_v38 = vmul.f32 0.5, %v5727_v40 }
0x1f19   :  { %v5755_v42 = vmul.f32 %v5747_v20, %v5725_v59  ;;  %v5731_v26 = vadd.f32 %v5730_v25, %v13909_v35  ;;  %v5732_v56 = vpop.f32.mrb[31].mxu1 }
0x1f1a   :  { %v5756_v63 = vmul.f32 %v5748_v7, %v5727_v40  ;;  %v5733_v11 = vadd.f32 %v5732_v56, %v13912_v47 }
0x1f1b   :  { %v5749_v8 = vmul.f32 0.044715, %v5731_v26  ;;  %v5763_v32 = vmul.f32 %v5755_v42, %v5725_v59  ;;  %v5741_v15 = vmul.f32 0.5, %v5731_v26  ;;  %v6005_v42 = vld [vmem:[#allocation10 + $0x88] sm:$0xff] }
0x1f1c   :  { %v5750_v5 = vmul.f32 0.044715, %v5733_v11  ;;  %v5764_v54 = vmul.f32 %v5756_v63, %v5727_v40  ;;  %v5742_v9 = vmul.f32 0.5, %v5733_v11  ;;  %v6004_v63 = vld [vmem:[#allocation10 + $0x80] sm:$0xff] }
0x1f1d   :  { %v5757_v61 = vmul.f32 %v5749_v8, %v5731_v26  ;;  %v5771_v50 = vadd.f32 %v5763_v32, %v5725_v59  ;;  %v6009_v32 = vld [vmem:[#allocation10 + $0xa8] sm:$0xff] }
0x1f1e   :  { %v5758_v52 = vmul.f32 %v5750_v5, %v5733_v11  ;;  %v5772_v37 = vadd.f32 %v5764_v54, %v5727_v40  ;;  %v6011_v5 = vld [vmem:[#allocation10 + $0xb8] sm:$0xff] }
0x1f1f   :  { %v5779_v4 = vmul.f32 0.7978846, %v5771_v50  ;;  %v5765_v28 = vmul.f32 %v5757_v61, %v5731_v26  ;;  %v11180_v54 = vpack.c.bf16 %v6011_v5, %v6009_v32  ;;  %v6008_v61 = vld [vmem:[#allocation10 + $0xa0] sm:$0xff]  ;;  %v6010_v50 = vld [vmem:[#allocation10 + $0xb0] sm:$0xff] }
0x1f20   :  { %v5780_v23 = vmul.f32 0.7978846, %v5772_v37  ;;  %v5766_v41 = vmul.f32 %v5758_v52, %v5733_v11  ;;  %v11182_v52 = vpack.c.bf16 %v6010_v50, %v6008_v61  ;;  %v6013_v37 = vld [vmem:[#allocation10 + $0xc8] sm:$0xff] }
0x1f21   :  { %11698 = vtanh.f32 %v5779_v4  ;;  %v5773_v49 = vadd.f32 %v5765_v28, %v5731_v26  ;;  %v6007_v26 = vld [vmem:[#allocation10 + $0x98] sm:$0xff] }
0x1f22   :  { %11700 = vtanh.f32 %v5780_v23  ;;  %v5774_v35 = vadd.f32 %v5766_v41, %v5733_v11  ;;  %v11176_v56 = vpack.c.bf16 %v6007_v26, %v6005_v42  ;;  %v6006_v11 = vld [vmem:[#allocation10 + $0x90] sm:$0xff]  ;;  %v6015_v4 = vld [vmem:[#allocation10 + $0xd8] sm:$0xff]  ;;  %v6012_v23 = vld [vmem:[#allocation10 + $0xc0] sm:$0xff] }
0x1f23   :  { %v5781_v16 = vmul.f32 0.7978846, %v5773_v49  ;;  %v11178_v8 = vpack.c.bf16 %v6006_v11, %v6004_v63  ;;  %v11184_v28 = vpack.c.bf16 %v6015_v4, %v6013_v37  ;;  %v6014_v41 = vld [vmem:[#allocation10 + $0xd0] sm:$0xff]  ;;  %v6021_v37 = vld [vmem:[#allocation11 + $0x1] ss:$2 sm:$0x3] }
0x1f24   :  { %v5782_v27 = vmul.f32 0.7978846, %v5774_v35  ;;  %11177 = vmatprep.subr.bf16.mxu1 %v11176_v56  ;;  %v11186_v49 = vpack.c.bf16 %v6014_v41, %v6012_v23  ;;  %v6017_v35 = vld [vmem:[#allocation10 + $0xe8] sm:$0xff]  ;;  %v6026_v4 = vrot.slane %v6021_v37, %v13353_v19 }
0x1f25   :  { %11702 = vtanh.f32 %v5781_v16  ;;  %11179 = vmatpush1.bf16.msra.mxu1 %v11178_v8  ;;  %v6019_v16 = vld [vmem:[#allocation10 + $0xf8] sm:$0xff] }
0x1f26   :  { %11704 = vtanh.f32 %v5782_v27  ;;  %11181 = vmatprep.subr.bf16.mxu1 %v11180_v54  ;;  %v11188_v27 = vpack.c.bf16 %v6019_v16, %v6017_v35 }
0x1f29   :  { %11183 = vmatpush1.bf16.msra.mxu1 %v11182_v52 }
0x1f2a   :  { %11185 = vmatprep.subr.bf16.mxu1 %v11184_v28  ;;  %v6030_v28 = vrot.slane %v6021_v37, %v13349_v13 }
0x1f2b   :  { %v11699_v47 = vpop.eup %11698 }
0x1f2c   :  { %v11701_v21 = vpop.eup %11700  ;;  %v5795_v12 = vadd.f32 1.0, %v11699_v47  ;;  %v6016_v47 = vld [vmem:[#allocation10 + $0xe0] sm:$0xff] }
0x1f2d   :  { %v5796_v39 = vadd.f32 1.0, %v11701_v21  ;;  %11187 = vmatpush1.bf16.msra.mxu1 %v11186_v49  ;;  %v6018_v21 = vld [vmem:[#allocation10 + $0xf0] sm:$0xff] }
0x1f2e   :  { %v5803_v18 = vmul.f32 %v5795_v12, %v5739_v6  ;;  %v11190_v12 = vpack.c.bf16 %v6018_v21, %v6016_v47  ;;  %11189 = vmatprep.subr.bf16.mxu1 %v11188_v27 }
0x1f2f   :  { %v11703_v44 = vpop.eup %11702  ;;  %v5804_v3 = vmul.f32 %v5796_v39, %v5740_v38 }
0x1f30   :  { %v11705_v45 = vpop.eup %11704  ;;  %v5797_v46 = vadd.f32 1.0, %v11703_v44 }
0x1f31   :  { %5918 = vmatprep.mubr.f32.mxu0 %v5804_v3  ;;  %v5798_v48 = vadd.f32 1.0, %v11705_v45  ;;  %11191 = vmatpush1.bf16.msra.mxu1 %v11190_v12  ;;  %v13958_v45 = vld [vmem:[%s14562_s17 + $0x1] ss:$0 sm:$0xff] }
0x1f32   :  { %5919 = vmatmul.mubr.f32.gmra.mrb[40].mxu0 %v5803_v18  ;;  %v5805_v30 = vmul.f32 %v5797_v46, %v5741_v15 }
0x1f33   :  { %v5806_v60 = vmul.f32 %v5798_v48, %v5742_v9  ;;  %v13960_v9 = vld [vmem:[#allocation8 + $0x1] ss:$0 sm:$0xff] }
0x1f35   :  { %5923 = vmatprep.mubr.f32.mxu0 %v5806_v60 }
0x1f36   :  { %5924 = vmatmul.mubr.f32.gmra.mrb[42].mxu0 %v5805_v30 }
0x1f57   :  { %v5937_v55 = vpop.xlane.xlu0 %5936 }
0x1f58   :  { %v5947_v10 = vmul.f32 0.015625, %v5937_v55 }
0x1f5a   :  { %v5951_v57 = vsub.f32 %v13937_v53, %v5947_v10 }
0x1f5c   :  { %v5955_v51 = vmul.f32 %v5951_v57, %v5951_v57 }
0x1f5e   :  { %v5959_v59 = vsel %vm336_vm1, %v5955_v51, 0.0 }
0x1f5f   :  { %5960 = vadd.xlane.f32.xlu0 %v5959_v59 }
0x1f65   :  { %v5940_v14 = vpop.xlane.xlu1 %5939 }
0x1f66   :  { %v5948_v40 = vmul.f32 0.015625, %v5940_v14 }
0x1f68   :  { %v5952_v20 = vsub.f32 %v13943_v58, %v5948_v40 }
0x1f6a   :  { %v5956_v7 = vmul.f32 %v5952_v20, %v5952_v20 }
0x1f6c   :  { %v5962_v25 = vsel %vm336_vm1, %v5956_v7, 0.0 }
0x1f6d   :  { %5963 = vadd.xlane.f32.xlu1 %v5962_v25 }
0x1fec   :  { %v5961_v38 = vpop.xlane.xlu0 %5960 }
0x1fed   :  { %v5971_v39 = vmul.f32 0.015625, %v5961_v38 }
0x1fef   :  { %v5975_v6 = vadd.f32 1e-06, %v5971_v39 }
0x1ff1   :  { %11706 = vrsqrt.f32 %v5975_v6 }
0x1ffa   :  { %v5964_v44 = vpop.xlane.xlu1 %5963 }
0x1ffb   :  { %v11707_v3 = vpop.eup %11706  ;;  %v5972_v18 = vmul.f32 0.015625, %v5964_v44 }
0x1ffc   :  { %v5983_v46 = vmul.f32 %v11707_v3, %v5951_v57 }
0x1ffd   :  { %v5976_v48 = vadd.f32 1e-06, %v5972_v18 }
0x1ffe   :  { %v5991_v15 = vmul.f32 %v13958_v45, %v5983_v46 }
0x1fff   :  { %11708 = vrsqrt.f32 %v5976_v48 }
0x2000   :  { %v5999_v60 = vadd.f32 %v13960_v9, %v5991_v15 }
0x2002   :  { %8983 = vmatmul.mubr.msk.f32.vlgmr.msra.gmra.mrb[32].mxu1 %vm336_vm1, %v5999_v60 }
0x2003   :  { %6115 = vmatprep.mubr.f32.mxu1 %v13927_v1 }
0x2005   :  { %v9516_v30 = vpop.f32.mrb[40].mxu0 }
0x2006   :  { %v9517_v55 = vpop.f32.mrb[41].mxu0 }
0x2007   :  { %v9518_v10 = vadd.f32 %v9517_v55, %v9516_v30 }
0x2009   :  { %v11709_v51 = vpop.eup %11708  ;;  %v5921_v59 = vadd.f32 %v9518_v10, %v13933_v29  ;;  %v9519_v14 = vpop.f32.mrb[42].mxu0 }
0x200a   :  { %v9520_v57 = vpop.f32.mrb[43].mxu0  ;;  %v5984_v40 = vmul.f32 %v11709_v51, %v5952_v20 }
0x200b   :  { %v13968_v7 = vadd.f32 %v5921_v59, %v13790_v24  ;;  %v9521_v25 = vadd.f32 %v9520_v57, %v9519_v14 }
0x200c   :  { %v5992_v42 = vmul.f32 %v13958_v45, %v5984_v40 }
0x200d   :  { %v5926_v26 = vadd.f32 %v9521_v25, %v13933_v29  ;;  %v5941_v56 = vsel %vm336_vm1, %v13968_v7, 0.0 }
0x200e   :  { %5942 = vadd.xlane.f32.xlu0 %v5941_v56  ;;  %v6000_v63 = vadd.f32 %v13960_v9, %v5992_v42 }
0x200f   :  { %v13976_v11 = vadd.f32 %v5926_v26, %v13787_v62 }
0x2010   :  { %8984 = vmatmul.mubr.msk.f32.gmra.mrb[34].mxu1 %vm336_vm1, %v6000_v63 }
0x2011   :  { %v5944_v24 = vsel %vm336_vm1, %v13976_v11, 0.0  ;;  %6121 = vmatprep.mubr.f32.mxu1 %v13927_v1 }
0x2012   :  { %5945 = vadd.xlane.f32.xlu1 %v5944_v24 }
0x209b   :  { %v5943_v20 = vpop.xlane.xlu0 %5942 }
0x209c   :  { %v5949_v8 = vmul.f32 0.015625, %v5943_v20 }
0x209e   :  { %v5953_v29 = vsub.f32 %v13968_v7, %v5949_v8 }
0x209f   :  { %v5946_v32 = vpop.xlane.xlu1 %5945 }
0x20a0   :  { %v5950_v5 = vmul.f32 0.015625, %v5946_v32  ;;  %v5957_v54 = vmul.f32 %v5953_v29, %v5953_v29 }
0x20a2   :  { %v5954_v61 = vsub.f32 %v13976_v11, %v5950_v5  ;;  %v5965_v62 = vsel %vm336_vm1, %v5957_v54, 0.0 }
0x20a3   :  { %5966 = vadd.xlane.f32.xlu0 %v5965_v62 }
0x20a4   :  { %v5958_v50 = vmul.f32 %v5954_v61, %v5954_v61 }
0x20a6   :  { %v5968_v52 = vsel %vm336_vm1, %v5958_v50, 0.0 }
0x20a7   :  { %5969 = vadd.xlane.f32.xlu1 %v5968_v52 }
0x20d5   :  { %v6111_v23 = vpop.f32.mrb[32].mxu1 }
0x20d6   :  { %v13988_v41 = vadd.f32 %v6111_v23, %v6026_v4  ;;  %v6113_v49 = vpop.f32.mrb[33].mxu1 }
0x20d7   :  { %v6114_v35 = vadd.f32 %v6113_v49, %v6030_v28 }
0x20d9   :  { %6135 = vst.msk [vmem:[#allocation3 + $0x8] sm:$0xff] %vm336_vm1, %v6114_v35 }
0x20e0   :  { %v6144_v38 = vld [vmem:[#allocation3 + $0x8] sm:$0xff] }
0x20e3   :  { %v6117_v16 = vpop.f32.mrb[34].mxu1 }
0x20e4   :  { %v13991_v27 = vadd.f32 %v6117_v16, %v6026_v4  ;;  %v6119_v47 = vpop.f32.mrb[35].mxu1 }
0x20e5   :  { %v6120_v21 = vadd.f32 %v6119_v47, %v6030_v28 }
0x20e6   :  { %v13995_v12 = vpack.i.bf16 %v13991_v27, %v13988_v41 }
0x20e7   :  { %6137 = vst.msk [vmem:[#allocation3 + $0x18] sm:$0xff] %vm336_vm1, %v6120_v21 }
0x20e8   :  { %11493 = vrot.lane.b32.xlu0 %v13995_v12, %s12130_s30 }
0x20ec   :  { %6350 = vrot.lane.b32.xlu0 %v13988_v41, %s12131_s14 }
0x20ee   :  { %v6145_v39 = vld [vmem:[#allocation3 + $0x18] sm:$0xff] }
0x20ef   :  { %v14002_v6 = vpack.i.bf16 %v6145_v39, %v6144_v38  ;;  %v11198_v56 = vpack.c.bf16 %v6145_v39, %v6144_v38 }
0x20f0   :  { %11503 = vrot.lane.b32.xlu0 %v13995_v12, %s12133_s13 }
0x20f4   :  { %6352 = vrot.lane.b32.xlu0 %v13991_v27, %s12131_s14 }
0x20f8   :  { %6574 = vrot.lane.b32.xlu0 %v13991_v27, %s12134_s2 }
0x2130   :  { %v5967_v44 = vpop.xlane.xlu0 %5966 }
0x2131   :  { %v5973_v3 = vmul.f32 0.015625, %v5967_v44 }
0x2133   :  { %v5977_v18 = vadd.f32 1e-06, %v5973_v3 }
0x2134   :  { %v5970_v46 = vpop.xlane.xlu1 %5969 }
0x2135   :  { %11710 = vrsqrt.f32 %v5977_v18  ;;  %v5974_v48 = vmul.f32 0.015625, %v5970_v46 }
0x2137   :  { %v5978_v15 = vadd.f32 1e-06, %v5974_v48 }
0x2139   :  { %11712 = vrsqrt.f32 %v5978_v15 }
0x213f   :  { %v11711_v60 = vpop.eup %11710 }
0x2140   :  { %v5985_v30 = vmul.f32 %v11711_v60, %v5953_v29 }
0x2142   :  { %v5993_v55 = vmul.f32 %v13958_v45, %v5985_v30 }
0x2143   :  { %v11713_v10 = vpop.eup %11712 }
0x2144   :  { %v6001_v51 = vadd.f32 %v13960_v9, %v5993_v55  ;;  %v5986_v59 = vmul.f32 %v11713_v10, %v5954_v61 }
0x2146   :  { %8985 = vmatmul.mubr.msk.f32.gmra.mrb[36].mxu1 %vm336_vm1, %v6001_v51  ;;  %v5994_v14 = vmul.f32 %v13958_v45, %v5986_v59 }
0x2147   :  { %6127 = vmatprep.mubr.f32.mxu1 %v13927_v1 }
0x2148   :  { %v6002_v57 = vadd.f32 %v13960_v9, %v5994_v14 }
0x214a   :  { %8986 = vmatmul.mubr.msk.f32.gmra.mrb[38].mxu1 %vm336_vm1, %v6002_v57 }
0x214b   :  { %10376 = vmatprep.mubr.msk.f32.mxu1 %vm3680_vm2, %v13988_v41 }
0x215a   :  { %v11494_v40 = vpop.permute.xlu0 %11493 }
0x215b   :  { %v11496_v25 = vunpack.i.h.bf16 %v11494_v40  ;;  %v11495_v42 = vunpack.i.l.bf16 %v11494_v40 }
0x215d   :  { %v11192_v26 = vpack.c.bf16 %v11496_v25, %v11495_v42 }
0x215e   :  { %v6351_v15 = vpop.permute.xlu0 %6350 }
0x215f   :  { %11194 = vmatprep.subr.msk.bf16.mxu1 %vm13408_vm3, %v11192_v26 }
0x2160   :  { %11197 = vmatpush3.bf16.xpose.msk.msra.mxu1 %vm13408_vm3, %v11192_v26 }
0x2161   :  { %11199 = vmatprep.subr.bf16.mxu1 %v11198_v56 }
0x2162   :  { %v11504_v51 = vpop.permute.xlu0 %11503 }
0x2163   :  { %v11506_v57 = vunpack.i.h.bf16 %v11504_v51  ;;  %v11505_v40 = vunpack.i.l.bf16 %v11504_v51 }
0x2165   :  { %v11212_v26 = vpack.c.bf16 %v11506_v57, %v11505_v40 }
0x2167   :  { %10377 = vmatmul.mubr.msk.f32.vlgmr.msra.gmra.mrb[40].mxu1 %vm3680_vm2, %v13991_v27 }
0x2168   :  { %11201 = vmatpush3.bf16.msra.mxu1 %v11198_v56  ;;  %v6353_v56 = vpop.permute.xlu0 %6352 }
0x2219   :  { %v6123_v1 = vpop.f32.mrb[36].mxu1 }
0x221a   :  { %v14025_v45 = vadd.f32 %v6123_v1, %v6026_v4  ;;  %v6125_v9 = vpop.f32.mrb[37].mxu1 }
0x221b   :  { %v6126_v63 = vadd.f32 %v6125_v9, %v6030_v28  ;;  %v6575_v9 = vpop.permute.xlu0 %6574 }
0x221d   :  { %6139 = vst.msk [vmem:[#allocation3 + $0x28] sm:$0xff] %vm336_vm1, %v6126_v63  ;;  %v6129_v24 = vpop.f32.mrb[38].mxu1 }
0x221e   :  { %v14028_v20 = vadd.f32 %v6129_v24, %v6026_v4  ;;  %v6131_v8 = vpop.f32.mrb[39].mxu1 }
0x221f   :  { %v6132_v29 = vadd.f32 %v6131_v8, %v6030_v28 }
0x2221   :  { %6141 = vst.msk [vmem:[#allocation3 + $0x38] sm:$0xff] %vm336_vm1, %v6132_v29 }
0x2224   :  { %v14031_v32 = vld [vmem:[#allocation3 + $0x28] sm:$0xff] }
0x2228   :  { %v14033_v5 = vld [vmem:[#allocation3 + $0x38] sm:$0xff] }
0x2229   :  { %v14037_v54 = vpack.i.bf16 %v14033_v5, %v14031_v32 }
0x223a   :  { %v10378_v61 = vpop.f32.mrb[40].mxu1 }
0x223b   :  { %v6226_v62 = vpop.f32.mrb[41].mxu1  ;;  %v6236_v50 = vmul.f32 0.25, %v10378_v61 }
0x223c   :  { %v6235_v52 = vmul.f32 0.25, %v6226_v62 }
0x223d   :  { %v6238_v4 = vadd.f32 %v6236_v50, %v13437_v17 }
0x223e   :  { %v6237_v37 = vadd.f32 %v6235_v52, %v13434_v2 }
0x223f   :  { %v6242_v23 = vsel %vm3680_vm2, %v6238_v4, -inf }
0x2240   :  { %v6239_v28 = vsel %vm3680_vm2, %v6237_v37, -inf }
0x2241   :  { %6240 = vmax.xlane.f32.xlu1 %v6239_v28 }
0x2245   :  { %6243 = vmax.xlane.f32.xlu1 %v6242_v23 }
0x22ce   :  { %v6241_v49 = vpop.xlane.xlu1 %6240 }
0x22cf   :  { %v6245_v35 = vsub.f32 %v6237_v37, %v6241_v49 }
0x22d1   :  { %v6247_v21 = vmul.f32 1.442695, %v6245_v35 }
0x22d2   :  { %v6244_v16 = vpop.xlane.xlu1 %6243 }
0x22d3   :  { %v6246_v47 = vsub.f32 %v6238_v4, %v6244_v16 }
0x22d5   :  { %v6249_v38 = vmul.f32 1.442695, %v6246_v47 }
0x22d7   :  { %11714 = vpow2.f32 %v6249_v38 }
0x22d8   :  { %11716 = vpow2.f32 %v6247_v21 }
0x22e1   :  { %v11715_v39 = vpop.eup %11714 }
0x22e2   :  { %v6254_v44 = vsel %vm3680_vm2, %v11715_v39, 0.0  ;;  %v11717_v3 = vpop.eup %11716 }
0x22e3   :  { %6255 = vadd.xlane.f32.xlu1 %v6254_v44  ;;  %v6251_v18 = vsel %vm3680_vm2, %v11717_v3, 0.0 }
0x22e7   :  { %6252 = vadd.xlane.f32.xlu1 %v6251_v18 }
0x22f8   :  { %11498 = vrot.lane.b32.xlu1 %v13995_v12, %s12132_s22 }
0x22fc   :  { %6572 = vrot.lane.b32.xlu1 %v13988_v41, %s12134_s2 }
0x2370   :  { %v6256_v46 = vpop.xlane.xlu1 %6255 }
0x2371   :  { %11718 = vrcp.f32 %v6256_v46 }
0x2374   :  { %v6253_v48 = vpop.xlane.xlu1 %6252 }
0x2375   :  { %11720 = vrcp.f32 %v6253_v48 }
0x2378   :  { %v11499_v60 = vpop.permute.xlu1 %11498 }
0x2379   :  { %v11501_v30 = vunpack.i.h.bf16 %v11499_v60  ;;  %v11500_v55 = vunpack.i.l.bf16 %v11499_v60 }
0x237b   :  { %v11202_v10 = vpack.c.bf16 %v11501_v30, %v11500_v55  ;;  %v11719_v59 = vpop.eup %11718 }
0x237c   :  { %v6260_v42 = vmul.f32 %v11719_v59, %v11715_v39  ;;  %v6573_v1 = vpop.permute.xlu1 %6572 }
0x237d   :  { %11204 = vmatprep.subr.msk.bf16.mxu1 %vm13408_vm3, %v11202_v10 }
0x237f   :  { %v11721_v14 = vpop.eup %11720 }
0x2380   :  { %v6259_v25 = vmul.f32 %v11721_v14, %v11717_v3 }
0x2382   :  { %10383 = vmatprep.mubr.msk.f32.mxu1 %vm3680_vm2, %v6259_v25 }
0x2383   :  { %10384 = vmatmul.mubr.msk.f32.vlgmr.msra.gmra.mrb[42].mxu1 %vm3680_vm2, %v6260_v42 }
0x2384   :  { %11207 = vmatpush3.bf16.xpose.msk.msra.mxu1 %vm13408_vm3, %v11202_v10  ;;  %10390 = vmatprep.mubr.msk.f32.mxu1 %vm3680_vm2, %v6351_v15 }
0x2385   :  { %11214 = vmatprep.subr.msk.bf16.mxu1 %vm13408_vm3, %v11212_v26 }
0x238b   :  { %10391 = vmatmul.mubr.msk.f32.vlgmr.msra.gmra.mrb[44].mxu1 %vm3680_vm2, %v6353_v56 }
0x238c   :  { %11217 = vmatpush3.bf16.xpose.msk.msra.mxu1 %vm13408_vm3, %v11212_v26  ;;  %10404 = vmatprep.mubr.msk.f32.mxu1 %vm3680_vm2, %v6573_v1 }
0x2393   :  { %10405 = vmatmul.mubr.msk.f32.vlgmr.msra.gmra.mrb[46].mxu1 %vm3680_vm2, %v6575_v9 }
0x2456   :  { %v10385_v63 = vpop.f32.mrb[42].mxu1 }
0x2457   :  { %6343 = vst.msk [vmem:[#allocation4 + $0x8] sm:$0xff] %vm3680_vm2, %v10385_v63  ;;  %v6333_v24 = vpop.f32.mrb[43].mxu1 }
0x2458   :  { %6342 = vst.msk [vmem:[#allocation4] sm:$0xff] %vm3680_vm2, %v6333_v24 }
0x245e   :  { %v10392_v8 = vpop.f32.mrb[44].mxu1 }
0x245f   :  { %v6442_v29 = vmul.f32 0.25, %v10392_v8  ;;  %v6432_v61 = vpop.f32.mrb[45].mxu1 }
0x2460   :  { %v6441_v62 = vmul.f32 0.25, %v6432_v61 }
0x2461   :  { %v6444_v50 = vadd.f32 %v6442_v29, %v13463_v31 }
0x2462   :  { %v6443_v52 = vadd.f32 %v6441_v62, %v13466_v34 }
0x2463   :  { %v6448_v37 = vsel %vm3680_vm2, %v6444_v50, -inf }
0x2464   :  { %6449 = vmax.xlane.f32.xlu0 %v6448_v37  ;;  %v6445_v4 = vsel %vm3680_vm2, %v6443_v52, -inf }
0x2465   :  { %6446 = vmax.xlane.f32.xlu1 %v6445_v4 }
0x2466   :  { %v10406_v28 = vpop.f32.mrb[46].mxu1 }
0x2467   :  { %v6654_v23 = vpop.f32.mrb[47].mxu1  ;;  %v6664_v49 = vmul.f32 0.25, %v10406_v28 }
0x2468   :  { %v6663_v35 = vmul.f32 0.25, %v6654_v23 }
0x2469   :  { %v6666_v47 = vadd.f32 %v6664_v49, %v13544_v22 }
0x246a   :  { %v6665_v16 = vadd.f32 %v6663_v35, %v13547_v33 }
0x246b   :  { %v6670_v38 = vsel %vm3680_vm2, %v6666_v47, -inf }
0x246c   :  { %v6667_v21 = vsel %vm3680_vm2, %v6665_v16, -inf }
0x246d   :  { %6668 = vmax.xlane.f32.xlu0 %v6667_v21 }
0x2471   :  { %6671 = vmax.xlane.f32.xlu0 %v6670_v38 }
0x2476   :  { %11508 = vrot.lane.b32.xlu1 %v14002_v6, %s12131_s14 }
0x24f1   :  { %v6450_v39 = vpop.xlane.xlu0 %6449 }
0x24f2   :  { %v6452_v44 = vsub.f32 %v6444_v50, %v6450_v39  ;;  %v6447_v3 = vpop.xlane.xlu1 %6446 }
0x24f3   :  { %v6451_v18 = vsub.f32 %v6443_v52, %v6447_v3  ;;  %v11238_v3 = vpack.c.bf16 %v14033_v5, %v14031_v32 }
0x24f4   :  { %v6455_v46 = vmul.f32 1.442695, %v6452_v44 }
0x24f5   :  { %v6453_v48 = vmul.f32 1.442695, %v6451_v18 }
0x24f6   :  { %11722 = vpow2.f32 %v6455_v46  ;;  %v11509_v15 = vpop.permute.xlu1 %11508 }
0x24f7   :  { %11724 = vpow2.f32 %v6453_v48  ;;  %v11511_v60 = vunpack.i.h.bf16 %v11509_v15  ;;  %v11510_v30 = vunpack.i.l.bf16 %v11509_v15 }
0x24f9   :  { %v11208_v55 = vpack.c.bf16 %v11511_v60, %v11510_v30 }
0x24fa   :  { %v6669_v10 = vpop.xlane.xlu0 %6668 }
0x24fb   :  { %11209 = vmatprep.subr.bf16.mxu0 %v11208_v55  ;;  %v6673_v1 = vsub.f32 %v6665_v16, %v6669_v10 }
0x24fc   :  { %11211 = vmatpush3.bf16.msra.mxu0 %v11208_v55 }
0x24fd   :  { %v6675_v9 = vmul.f32 1.442695, %v6673_v1 }
0x24fe   :  { %v6672_v51 = vpop.xlane.xlu0 %6671 }
0x24ff   :  { %v6674_v59 = vsub.f32 %v6666_v47, %v6672_v51 }
0x2500   :  { %v11723_v14 = vpop.eup %11722 }
0x2501   :  { %v11725_v57 = vpop.eup %11724  ;;  %v6677_v40 = vmul.f32 1.442695, %v6674_v59  ;;  %v6460_v25 = vsel %vm3680_vm2, %v11723_v14, 0.0 }
0x2502   :  { %6461 = vadd.xlane.f32.xlu0 %v6460_v25  ;;  %v6457_v42 = vsel %vm3680_vm2, %v11725_v57, 0.0 }
0x2503   :  { %11726 = vpow2.f32 %v6677_v40  ;;  %6458 = vadd.xlane.f32.xlu1 %v6457_v42 }
0x2504   :  { %11728 = vpow2.f32 %v6675_v9 }
0x250d   :  { %v11727_v26 = vpop.eup %11726 }
0x250e   :  { %v6682_v56 = vsel %vm3680_vm2, %v11727_v26, 0.0  ;;  %v11729_v63 = vpop.eup %11728 }
0x250f   :  { %6683 = vadd.xlane.f32.xlu0 %v6682_v56  ;;  %v6679_v24 = vsel %vm3680_vm2, %v11729_v63, 0.0 }
0x2514   :  { %11518 = vrot.lane.b32.xlu1 %v13995_v12, %s12120_s26 }
0x2518   :  { %6794 = vrot.lane.b32.xlu1 %v13988_v41, %s12135_s20 }
0x2525   :  { %11513 = vrot.lane.b32.xlu0 %v14002_v6, %s12134_s2 }
0x253c   :  { %6680 = vadd.xlane.f32.xlu1 %v6679_v24 }
0x254d   :  { %6796 = vrot.lane.b32.xlu1 %v13991_v27, %s12135_s20 }
0x258f   :  { %v6462_v8 = vpop.xlane.xlu0 %6461 }
0x2590   :  { %11730 = vrcp.f32 %v6462_v8  ;;  %v6459_v29 = vpop.xlane.xlu1 %6458 }
0x2591   :  { %11732 = vrcp.f32 %v6459_v29 }
0x2594   :  { %v11519_v52 = vpop.permute.xlu1 %11518 }
0x2595   :  { %v11521_v4 = vunpack.i.h.bf16 %v11519_v52  ;;  %v11520_v28 = vunpack.i.l.bf16 %v11519_v52 }
0x2597   :  { %v11222_v35 = vpack.c.bf16 %v11521_v4, %v11520_v28 }
0x2598   :  { %v6795_v16 = vpop.permute.xlu1 %6794 }
0x259a   :  { %v11731_v12 = vpop.eup %11730 }
0x259b   :  { %v11733_v61 = vpop.eup %11732  ;;  %v6466_v50 = vmul.f32 %v11731_v12, %v11723_v14 }
0x259c   :  { %v6684_v41 = vpop.xlane.xlu0 %6683  ;;  %v6465_v62 = vmul.f32 %v11733_v61, %v11725_v57  ;;  %v14113_v57 = vpack.i.bf16 %v14028_v20, %v14025_v45 }
0x259d   :  { %11734 = vrcp.f32 %v6684_v41 }
0x259e   :  { %10397 = vmatprep.mubr.msk.f32.mxu0 %vm3680_vm2, %v6465_v62 }
0x259f   :  { %10398 = vmatmul.mubr.msk.f32.vlgmr.msra.gmra.mrb[44].mxu0 %vm3680_vm2, %v6466_v50 }
0x25a0   :  { %v11514_v37 = vpop.permute.xlu0 %11513 }
0x25a1   :  { %v11516_v23 = vunpack.i.h.bf16 %v11514_v37  ;;  %v11515_v49 = vunpack.i.l.bf16 %v11514_v37 }
0x25a3   :  { %v11218_v27 = vpack.c.bf16 %v11516_v23, %v11515_v49 }
0x25a5   :  { %11219 = vmatprep.subr.bf16.mxu0 %v11218_v27 }
0x25a6   :  { %11221 = vmatpush3.bf16.msra.mxu0 %v11218_v27 }
0x25a7   :  { %11224 = vmatprep.subr.msk.bf16.mxu0 %vm13408_vm3, %v11222_v35  ;;  %v11735_v21 = vpop.eup %11734 }
0x25a8   :  { %v6688_v44 = vmul.f32 %v11735_v21, %v11727_v26 }
0x25c9   :  { %v6681_v47 = vpop.xlane.xlu1 %6680 }
0x25ca   :  { %11736 = vrcp.f32 %v6681_v47 }
0x25cd   :  { %v6797_v18 = vpop.permute.xlu1 %6796 }
0x25d4   :  { %v11737_v38 = vpop.eup %11736 }
0x25d5   :  { %v6687_v39 = vmul.f32 %v11737_v38, %v11729_v63 }
0x25d7   :  { %10411 = vmatprep.mubr.msk.f32.mxu0 %vm3680_vm2, %v6687_v39 }
0x25d8   :  { %10412 = vmatmul.mubr.msk.f32.vlgmr.msra.gmra.mrb[46].mxu0 %vm3680_vm2, %v6688_v44 }
0x25d9   :  { %11227 = vmatpush3.bf16.xpose.msk.msra.mxu0 %vm13408_vm3, %v11222_v35  ;;  %10418 = vmatprep.mubr.msk.f32.mxu0 %vm3680_vm2, %v6795_v16 }
0x25da   :  { %11239 = vmatprep.subr.bf16.mxu0 %v11238_v3 }
0x25e0   :  { %10419 = vmatmul.mubr.msk.f32.vlgmr.msra.gmra.mrb[48].mxu0 %vm3680_vm2, %v6797_v18 }
0x25e1   :  { %11241 = vmatpush3.bf16.msra.mxu0 %v11238_v3 }
0x2672   :  { %v14099_v46 = vpop.f32.mrb[44].mxu0 }
0x2673   :  { %v14101_v48 = vpop.f32.mrb[45].mxu0 }
0x26ab   :  { %v14103_v15 = vpop.f32.mrb[46].mxu0 }
0x26ac   :  { %v14105_v60 = vpop.f32.mrb[47].mxu0 }
0x26b3   :  { %v10420_v30 = vpop.f32.mrb[48].mxu0 }
0x26b4   :  { %v6886_v32 = vmul.f32 0.25, %v10420_v30  ;;  %v6876_v5 = vpop.f32.mrb[49].mxu0 }
0x26b5   :  { %v6885_v55 = vmul.f32 0.25, %v6876_v5 }
0x26b6   :  { %v6888_v10 = vadd.f32 %v6886_v32, %v13558_v36 }
0x26b7   :  { %v6887_v51 = vadd.f32 %v6885_v55, %v13553_v0 }
0x26b8   :  { %v6892_v59 = vsel %vm3680_vm2, %v6888_v10, -inf }
0x26b9   :  { %6893 = vmax.xlane.f32.xlu1 %v6892_v59  ;;  %v6889_v14 = vsel %vm3680_vm2, %v6887_v51, -inf }
0x26ba   :  { %6890 = vmax.xlane.f32.xlu0 %v6889_v14 }
0x26ca   :  { %11528 = vrot.lane.b32.xlu1 %v14113_v57, %s12130_s30 }
0x2746   :  { %v6894_v40 = vpop.xlane.xlu1 %6893 }
0x2747   :  { %v6896_v25 = vsub.f32 %v6888_v10, %v6894_v40  ;;  %v6891_v42 = vpop.xlane.xlu0 %6890 }
0x2748   :  { %v6895_v26 = vsub.f32 %v6887_v51, %v6891_v42 }
0x2749   :  { %v6899_v56 = vmul.f32 1.442695, %v6896_v25 }
0x274a   :  { %v6897_v1 = vmul.f32 1.442695, %v6895_v26  ;;  %v11529_v61 = vpop.permute.xlu1 %11528 }
0x274b   :  { %11738 = vpow2.f32 %v6899_v56  ;;  %v11531_v62 = vunpack.i.h.bf16 %v11529_v61  ;;  %v11530_v50 = vunpack.i.l.bf16 %v11529_v61 }
0x274c   :  { %11740 = vpow2.f32 %v6897_v1 }
0x274d   :  { %v11232_v28 = vpack.c.bf16 %v11531_v62, %v11530_v50 }
0x2755   :  { %v11739_v9 = vpop.eup %11738 }
0x2756   :  { %v6904_v63 = vsel %vm3680_vm2, %v11739_v9, 0.0  ;;  %v11741_v24 = vpop.eup %11740 }
0x2757   :  { %6905 = vadd.xlane.f32.xlu0 %v6904_v63  ;;  %v6901_v8 = vsel %vm3680_vm2, %v11741_v24, 0.0 }
0x275b   :  { %6902 = vadd.xlane.f32.xlu0 %v6901_v8 }
0x2771   :  { %11523 = vrot.lane.b32.xlu0 %v14002_v6, %s12135_s20 }
0x27e4   :  { %v6906_v29 = vpop.xlane.xlu0 %6905 }
0x27e5   :  { %11742 = vrcp.f32 %v6906_v29 }
0x27e8   :  { %v6903_v12 = vpop.xlane.xlu0 %6902 }
0x27e9   :  { %11744 = vrcp.f32 %v6903_v12 }
0x27ec   :  { %v11524_v41 = vpop.permute.xlu0 %11523 }
0x27ed   :  { %v11526_v52 = vunpack.i.h.bf16 %v11524_v41  ;;  %v11525_v37 = vunpack.i.l.bf16 %v11524_v41 }
0x27ef   :  { %v11228_v4 = vpack.c.bf16 %v11526_v52, %v11525_v37  ;;  %v11743_v23 = vpop.eup %11742 }
0x27f0   :  { %v6910_v27 = vmul.f32 %v11743_v23, %v11739_v9 }
0x27f1   :  { %11229 = vmatprep.subr.bf16.mxu1 %v11228_v4 }
0x27f2   :  { %11231 = vmatpush3.bf16.msra.mxu1 %v11228_v4 }
0x27f3   :  { %v11745_v49 = vpop.eup %11744  ;;  %11234 = vmatprep.subr.msk.bf16.mxu1 %vm13408_vm3, %v11232_v28 }
0x27f4   :  { %v6909_v6 = vmul.f32 %v11745_v49, %v11741_v24 }
0x27f6   :  { %10425 = vmatprep.mubr.msk.f32.mxu1 %vm3680_vm2, %v6909_v6 }
0x27f7   :  { %10426 = vmatmul.mubr.msk.f32.vlgmr.msra.gmra.mrb[48].mxu1 %vm3680_vm2, %v6910_v27 }
0x27f8   :  { %10432 = vmatprep.mubr.msk.f32.mxu1 %vm3680_vm2, %v14025_v45 }
0x27fb   :  { %11237 = vmatpush3.bf16.xpose.msk.msra.mxu1 %vm13408_vm3, %v11232_v28 }
0x2802   :  { %10433 = vmatmul.mubr.msk.f32.vlgmr.msra.gmra.mrb[50].mxu1 %vm3680_vm2, %v14028_v20 }
0x28ca   :  { %v14131_v35 = vpop.f32.mrb[48].mxu1 }
0x28cb   :  { %v14133_v16 = vpop.f32.mrb[49].mxu1 }
0x28d5   :  { %v10434_v47 = vpop.f32.mrb[50].mxu1 }
0x28d6   :  { %v7104_v21 = vmul.f32 0.25, %v10434_v47  ;;  %v7094_v38 = vpop.f32.mrb[51].mxu1 }
0x28d7   :  { %v7103_v39 = vmul.f32 0.25, %v7094_v38 }
0x28d8   :  { %v7106_v44 = vadd.f32 %v7104_v21, %v13437_v17 }
0x28d9   :  { %v7105_v3 = vadd.f32 %v7103_v39, %v13434_v2 }
0x28da   :  { %v7110_v18 = vsel %vm3680_vm2, %v7106_v44, -inf }
0x28db   :  { %7111 = vmax.xlane.f32.xlu0 %v7110_v18  ;;  %v7107_v30 = vsel %vm3680_vm2, %v7105_v3, -inf }
0x28dc   :  { %7108 = vmax.xlane.f32.xlu1 %v7107_v30 }
0x2968   :  { %v7112_v32 = vpop.xlane.xlu0 %7111 }
0x2969   :  { %v7114_v5 = vsub.f32 %v7106_v44, %v7112_v32  ;;  %v7109_v55 = vpop.xlane.xlu1 %7108 }
0x296a   :  { %v7113_v10 = vsub.f32 %v7105_v3, %v7109_v55 }
0x296b   :  { %v7117_v51 = vmul.f32 1.442695, %v7114_v5 }
0x296c   :  { %v7115_v59 = vmul.f32 1.442695, %v7113_v10 }
0x296d   :  { %11746 = vpow2.f32 %v7117_v51 }
0x296e   :  { %11748 = vpow2.f32 %v7115_v59 }
0x2977   :  { %v11747_v14 = vpop.eup %11746 }
0x2978   :  { %v11749_v40 = vpop.eup %11748  ;;  %v7122_v17 = vsel %vm3680_vm2, %v11747_v14, 0.0 }
0x2979   :  { %7123 = vadd.xlane.f32.xlu1 %v7122_v17  ;;  %v7119_v2 = vsel %vm3680_vm2, %v11749_v40, 0.0 }
0x297a   :  { %7120 = vadd.xlane.f32.xlu0 %v7119_v2 }
0x298a   :  { %7218 = vrot.lane.b32.xlu1 %v14025_v45, %s12131_s14 }
0x298e   :  { %7220 = vrot.lane.b32.xlu1 %v14028_v20, %s12131_s14 }
0x2990   :  { %11533 = vrot.lane.b32.xlu0 %v14113_v57, %s12132_s22 }
0x2a06   :  { %v7124_v25 = vpop.xlane.xlu1 %7123 }
0x2a07   :  { %11750 = vrcp.f32 %v7124_v25  ;;  %v7121_v42 = vpop.xlane.xlu0 %7120 }
0x2a08   :  { %11752 = vrcp.f32 %v7121_v42 }
0x2a0a   :  { %v7219_v12 = vpop.permute.xlu1 %7218 }
0x2a0b   :  { %v11534_v26 = vpop.permute.xlu0 %11533 }
0x2a0c   :  { %v11536_v56 = vunpack.i.h.bf16 %v11534_v26  ;;  %v11535_v1 = vunpack.i.l.bf16 %v11534_v26 }
0x2a0e   :  { %v11242_v9 = vpack.c.bf16 %v11536_v56, %v11535_v1  ;;  %v7221_v61 = vpop.permute.xlu1 %7220 }
0x2a10   :  { %11244 = vmatprep.subr.msk.bf16.mxu0 %vm13408_vm3, %v11242_v9 }
0x2a11   :  { %v11751_v63 = vpop.eup %11750 }
0x2a12   :  { %v11753_v24 = vpop.eup %11752  ;;  %v7128_v29 = vmul.f32 %v11751_v63, %v11747_v14 }
0x2a13   :  { %v7127_v8 = vmul.f32 %v11753_v24, %v11749_v40 }
0x2a15   :  { %10439 = vmatprep.mubr.msk.f32.mxu0 %vm3680_vm2, %v7127_v8 }
0x2a16   :  { %10440 = vmatmul.mubr.msk.f32.vlgmr.msra.gmra.mrb[50].mxu0 %vm3680_vm2, %v7128_v29 }
0x2a17   :  { %11247 = vmatpush3.bf16.xpose.msk.msra.mxu0 %vm13408_vm3, %v11242_v9  ;;  %10446 = vmatprep.mubr.msk.f32.mxu0 %vm3680_vm2, %v7219_v12 }
0x2a1e   :  { %10447 = vmatmul.mubr.msk.f32.vlgmr.msra.gmra.mrb[52].mxu0 %vm3680_vm2, %v7221_v61 }
0x2ae9   :  { %v10441_v41 = vpop.f32.mrb[50].mxu0 }
0x2aea   :  { %7211 = vst.msk [vmem:[#allocation4 + $0x18] sm:$0xff] %vm3680_vm2, %v10441_v41  ;;  %v7201_v62 = vpop.f32.mrb[51].mxu0 }
0x2aeb   :  { %7210 = vst.msk [vmem:[#allocation4 + $0x10] sm:$0xff] %vm3680_vm2, %v7201_v62 }
0x2af1   :  { %v10448_v50 = vpop.f32.mrb[52].mxu0 }
0x2af2   :  { %v7310_v52 = vmul.f32 0.25, %v10448_v50  ;;  %v7300_v37 = vpop.f32.mrb[53].mxu0 }
0x2af3   :  { %v7309_v4 = vmul.f32 0.25, %v7300_v37 }
0x2af4   :  { %v7312_v28 = vadd.f32 %v7310_v52, %v13463_v31 }
0x2af5   :  { %v7311_v23 = vadd.f32 %v7309_v4, %v13466_v34 }
0x2af6   :  { %v7316_v49 = vsel %vm3680_vm2, %v7312_v28, -inf }
0x2af7   :  { %7317 = vmax.xlane.f32.xlu0 %v7316_v49  ;;  %v7313_v6 = vsel %vm3680_vm2, %v7311_v23, -inf }
0x2af8   :  { %7314 = vmax.xlane.f32.xlu1 %v7313_v6 }
0x2b09   :  { %11538 = vrot.lane.b32.xlu1 %v14037_v54, %s12131_s14 }
0x2b0d   :  { %7440 = vrot.lane.b32.xlu1 %v14025_v45, %s12134_s2 }
0x2b11   :  { %7442 = vrot.lane.b32.xlu1 %v14028_v20, %s12134_s2 }
0x2b84   :  { %v7318_v27 = vpop.xlane.xlu0 %7317 }
0x2b85   :  { %v7320_v47 = vsub.f32 %v7312_v28, %v7318_v27  ;;  %v7315_v31 = vpop.xlane.xlu1 %7314 }
0x2b86   :  { %v7319_v21 = vsub.f32 %v7311_v23, %v7315_v31 }
0x2b87   :  { %v7323_v34 = vmul.f32 1.442695, %v7320_v47 }
0x2b88   :  { %v7321_v38 = vmul.f32 1.442695, %v7319_v21 }
0x2b89   :  { %11754 = vpow2.f32 %v7323_v34  ;;  %v11539_v39 = vpop.permute.xlu1 %11538 }
0x2b8a   :  { %v11541_v44 = vunpack.i.h.bf16 %v11539_v39  ;;  %v11540_v3 = vunpack.i.l.bf16 %v11539_v39  ;;  %11756 = vpow2.f32 %v7321_v38 }
0x2b8c   :  { %v11248_v18 = vpack.c.bf16 %v11541_v44, %v11540_v3 }
0x2b8d   :  { %v7441_v56 = vpop.permute.xlu1 %7440 }
0x2b8e   :  { %11249 = vmatprep.subr.bf16.mxu1 %v11248_v18 }
0x2b8f   :  { %11251 = vmatpush3.bf16.msra.mxu1 %v11248_v18 }
0x2b91   :  { %v7443_v1 = vpop.permute.xlu1 %7442 }
0x2b93   :  { %v11755_v30 = vpop.eup %11754 }
0x2b94   :  { %v7328_v32 = vsel %vm3680_vm2, %v11755_v30, 0.0  ;;  %v11757_v5 = vpop.eup %11756 }
0x2b95   :  { %7329 = vadd.xlane.f32.xlu0 %v7328_v32  ;;  %v7325_v55 = vsel %vm3680_vm2, %v11757_v5, 0.0 }
0x2b99   :  { %7326 = vadd.xlane.f32.xlu0 %v7325_v55 }
0x2baf   :  { %11543 = vrot.lane.b32.xlu0 %v14113_v57, %s12133_s13 }
0x2c22   :  { %v7330_v10 = vpop.xlane.xlu0 %7329 }
0x2c23   :  { %11758 = vrcp.f32 %v7330_v10  ;;  %v14208_v10 = vld [vmem:[%s14545_s21] sm:$0xff] }
0x2c26   :  { %v7327_v51 = vpop.xlane.xlu0 %7326 }
0x2c27   :  { %11760 = vrcp.f32 %v7327_v51 }
0x2c2a   :  { %v11544_v59 = vpop.permute.xlu0 %11543 }
0x2c2b   :  { %v11546_v14 = vunpack.i.h.bf16 %v11544_v59  ;;  %v11545_v40 = vunpack.i.l.bf16 %v11544_v59 }
0x2c2d   :  { %v11252_v17 = vpack.c.bf16 %v11546_v14, %v11545_v40  ;;  %v11759_v2 = vpop.eup %11758 }
0x2c2e   :  { %v7334_v26 = vmul.f32 %v11759_v2, %v11755_v30 }
0x2c2f   :  { %11254 = vmatprep.subr.msk.bf16.mxu1 %vm13408_vm3, %v11252_v17 }
0x2c31   :  { %v11761_v25 = vpop.eup %11760 }
0x2c32   :  { %v7333_v42 = vmul.f32 %v11761_v25, %v11757_v5 }
0x2c34   :  { %10453 = vmatprep.mubr.msk.f32.mxu1 %vm3680_vm2, %v7333_v42 }
0x2c35   :  { %10454 = vmatmul.mubr.msk.f32.vlgmr.msra.gmra.mrb[52].mxu1 %vm3680_vm2, %v7334_v26 }
0x2c36   :  { %11257 = vmatpush3.bf16.xpose.msk.msra.mxu1 %vm13408_vm3, %v11252_v17  ;;  %10460 = vmatprep.mubr.msk.f32.mxu1 %vm3680_vm2, %v7441_v56 }
0x2c3d   :  { %10461 = vmatmul.mubr.msk.f32.vlgmr.msra.gmra.mrb[54].mxu1 %vm3680_vm2, %v7443_v1 }
0x2d08   :  { %v14179_v9 = vpop.f32.mrb[52].mxu1 }
0x2d09   :  { %v14181_v63 = vpop.f32.mrb[53].mxu1 }
0x2d10   :  { %v10462_v24 = vpop.f32.mrb[54].mxu1 }
0x2d11   :  { %v7532_v8 = vmul.f32 0.25, %v10462_v24  ;;  %v7522_v29 = vpop.f32.mrb[55].mxu1 }
0x2d12   :  { %v7531_v12 = vmul.f32 0.25, %v7522_v29 }
0x2d13   :  { %v7534_v61 = vadd.f32 %v7532_v8, %v13544_v22 }
0x2d14   :  { %v7533_v41 = vadd.f32 %v7531_v12, %v13547_v33 }
0x2d15   :  { %v7538_v62 = vsel %vm3680_vm2, %v7534_v61, -inf }
0x2d16   :  { %7539 = vmax.xlane.f32.xlu0 %v7538_v62  ;;  %v7535_v50 = vsel %vm3680_vm2, %v7533_v41, -inf }
0x2d17   :  { %7536 = vmax.xlane.f32.xlu1 %v7535_v50 }
0x2d28   :  { %11548 = vrot.lane.b32.xlu1 %v14037_v54, %s12134_s2 }
0x2d2c   :  { %7662 = vrot.lane.b32.xlu1 %v14025_v45, %s12135_s20 }
0x2d30   :  { %7664 = vrot.lane.b32.xlu1 %v14028_v20, %s12135_s20 }
0x2da3   :  { %v7540_v52 = vpop.xlane.xlu0 %7539 }
0x2da4   :  { %v7542_v37 = vsub.f32 %v7534_v61, %v7540_v52  ;;  %v7537_v22 = vpop.xlane.xlu1 %7536 }
0x2da5   :  { %v7541_v4 = vsub.f32 %v7533_v41, %v7537_v22  ;;  %v9035_v22 = vld [vmem:[%s14533_s9 + $0x40] sm:$0xff] }
0x2da6   :  { %v7545_v33 = vmul.f32 1.442695, %v7542_v37 }
0x2da7   :  { %v7543_v28 = vmul.f32 1.442695, %v7541_v4  ;;  %v9036_v4 = vld [vmem:[%s14533_s9 + $0x48] sm:$0xff] }
0x2da8   :  { %11762 = vpow2.f32 %v7545_v33  ;;  %v11549_v23 = vpop.permute.xlu1 %11548  ;;  %v11272_v33 = vpack.c.bf16 %v9036_v4, %v9035_v22  ;;  %v8068_v22 = vld [vmem:[#allocation17 + $0x80] sm:$0xff] }
0x2da9   :  { %v11551_v49 = vunpack.i.h.bf16 %v11549_v23  ;;  %v11550_v6 = vunpack.i.l.bf16 %v11549_v23  ;;  %11764 = vpow2.f32 %v7543_v28 }
0x2dab   :  { %v11258_v27 = vpack.c.bf16 %v11551_v49, %v11550_v6 }
0x2dac   :  { %v7663_v55 = vpop.permute.xlu1 %7662 }
0x2dad   :  { %11259 = vmatprep.subr.bf16.mxu0 %v11258_v27 }
0x2dae   :  { %11261 = vmatpush3.bf16.msra.mxu0 %v11258_v27 }
0x2db2   :  { %v11763_v47 = vpop.eup %11762 }
0x2db3   :  { %v7550_v45 = vsel %vm3680_vm2, %v11763_v47, 0.0  ;;  %v11765_v31 = vpop.eup %11764 }
0x2db4   :  { %7551 = vadd.xlane.f32.xlu0 %v7550_v45  ;;  %v7547_v20 = vsel %vm3680_vm2, %v11765_v31, 0.0 }
0x2db8   :  { %7548 = vadd.xlane.f32.xlu0 %v7547_v20 }
0x2dce   :  { %11553 = vrot.lane.b32.xlu0 %v14113_v57, %s12120_s26  ;;  %v7665_v57 = vpop.permute.xlu1 %7664 }
0x2e41   :  { %v7552_v21 = vpop.xlane.xlu0 %7551 }
0x2e42   :  { %11766 = vrcp.f32 %v7552_v21  ;;  %v9039_v21 = vld [vmem:[%s14533_s9 + $0x60] sm:$0xff] }
0x2e45   :  { %v7549_v34 = vpop.xlane.xlu0 %7548 }
0x2e46   :  { %11768 = vrcp.f32 %v7549_v34  ;;  %v9040_v34 = vld [vmem:[%s14533_s9 + $0x68] sm:$0xff] }
0x2e49   :  { %v11554_v38 = vpop.permute.xlu0 %11553 }
0x2e4a   :  { %v11556_v39 = vunpack.i.h.bf16 %v11554_v38  ;;  %v11555_v44 = vunpack.i.l.bf16 %v11554_v38 }
0x2e4c   :  { %v11262_v3 = vpack.c.bf16 %v11556_v39, %v11555_v44  ;;  %v11767_v18 = vpop.eup %11766  ;;  %v11280_v44 = vpack.c.bf16 %v9040_v34, %v9039_v21  ;;  %v8083_v21 = vld [vmem:[#allocation17 + $0xf8] sm:$0xff]  ;;  %v8080_v34 = vld [vmem:[#allocation17 + $0xe0] sm:$0xff] }
0x2e4d   :  { %v7556_v5 = vmul.f32 %v11767_v18, %v11763_v47  ;;  %v9042_v18 = vld [vmem:[%s14533_s9 + $0x78] sm:$0xff] }
0x2e4e   :  { %11264 = vmatprep.subr.msk.bf16.mxu0 %vm13408_vm3, %v11262_v3 }
0x2e50   :  { %v11769_v30 = vpop.eup %11768 }
0x2e51   :  { %v7555_v32 = vmul.f32 %v11769_v30, %v11765_v31 }
0x2e53   :  { %10467 = vmatprep.mubr.msk.f32.mxu0 %vm3680_vm2, %v7555_v32 }
0x2e54   :  { %10468 = vmatmul.mubr.msk.f32.vlgmr.msra.gmra.mrb[54].mxu0 %vm3680_vm2, %v7556_v5 }
0x2e55   :  { %11267 = vmatpush3.bf16.xpose.msk.msra.mxu0 %vm13408_vm3, %v11262_v3  ;;  %10474 = vmatprep.mubr.msk.f32.mxu0 %vm3680_vm2, %v7663_v55  ;;  %v9041_v3 = vld [vmem:[%s14533_s9 + $0x70] sm:$0xff] }
0x2e56   :  { %v11284_v30 = vpack.c.bf16 %v9042_v18, %v9041_v3 }
0x2e5c   :  { %10475 = vmatmul.mubr.msk.f32.vlgmr.msra.gmra.mrb[56].mxu0 %vm3680_vm2, %v7665_v57 }
0x2e5d   :  { %8173 = vmatprep.mubr.f32.mxu0 %v14208_v10 }
0x2f27   :  { %v10469_v51 = vpop.f32.mrb[54].mxu0 }
0x2f28   :  { %v7637_v59 = vpop.f32.mrb[55].mxu0 }
0x2f2f   :  { %v10476_v14 = vpop.f32.mrb[56].mxu0 }
0x2f30   :  { %v7754_v40 = vmul.f32 0.25, %v10476_v14  ;;  %v7744_v17 = vpop.f32.mrb[57].mxu0 }
0x2f31   :  { %v7753_v2 = vmul.f32 0.25, %v7744_v17 }
0x2f32   :  { %v7756_v43 = vadd.f32 %v7754_v40, %v13558_v36 }
0x2f33   :  { %v7755_v25 = vadd.f32 %v7753_v2, %v13553_v0 }
0x2f34   :  { %v7760_v42 = vsel %vm3680_vm2, %v7756_v43, -inf }
0x2f35   :  { %7761 = vmax.xlane.f32.xlu0 %v7760_v42  ;;  %v7757_v26 = vsel %vm3680_vm2, %v7755_v25, -inf }
0x2f36   :  { %7758 = vmax.xlane.f32.xlu1 %v7757_v26 }
0x2f47   :  { %11558 = vrot.lane.b32.xlu1 %v14037_v54, %s12135_s20 }
0x2f4b   :  { %6560 = vrot.lane.b32.xlu1 %v14099_v46, %s12120_s26 }
0x2f4f   :  { %6780 = vrot.lane.b32.xlu1 %v14105_v60, %s12133_s13 }
0x2f53   :  { %6782 = vrot.lane.b32.xlu1 %v14103_v15, %s12133_s13 }
0x2f57   :  { %7004 = vrot.lane.b32.xlu1 %v14131_v35, %s12132_s22 }
0x2f5b   :  { %7428 = vrot.lane.b32.xlu1 %v14179_v9, %s12120_s26 }
0x2f5f   :  { %7650 = vrot.lane.b32.xlu1 %v10469_v51, %s12133_s13 }
0x2fc2   :  { %v7762_v0 = vpop.xlane.xlu0 %7761 }
0x2fc3   :  { %v7764_v36 = vsub.f32 %v7756_v43, %v7762_v0  ;;  %v7759_v54 = vpop.xlane.xlu1 %7758 }
0x2fc4   :  { %v7763_v56 = vsub.f32 %v7755_v25, %v7759_v54 }
0x2fc5   :  { %v7767_v1 = vmul.f32 1.442695, %v7764_v36 }
0x2fc6   :  { %v7765_v46 = vmul.f32 1.442695, %v7763_v56 }
0x2fc7   :  { %v11559_v24 = vpop.permute.xlu1 %11558 }
0x2fc8   :  { %11770 = vpow2.f32 %v7765_v46  ;;  %v11561_v60 = vunpack.i.h.bf16 %v11559_v24  ;;  %v11560_v8 = vunpack.i.l.bf16 %v11559_v24 }
0x2fc9   :  { %11772 = vpow2.f32 %v7767_v1 }
0x2fca   :  { %v11268_v15 = vpack.c.bf16 %v11561_v60, %v11560_v8 }
0x2fcb   :  { %v6561_v29 = vpop.permute.xlu1 %6560 }
0x2fcc   :  { %6565 = vst.msk [vmem:[#allocation4 + $0x8] sm:$0xff] %vm4097_vm4, %v6561_v29  ;;  %11269 = vmatprep.subr.bf16.mxu1 %v11268_v15 }
0x2fcd   :  { %11271 = vmatpush3.bf16.msra.mxu1 %v11268_v15 }
0x2fce   :  { %11273 = vmatprep.subr.bf16.mxu1 %v11272_v33 }
0x2fcf   :  { %v6781_v35 = vpop.permute.xlu1 %6780 }
0x2fd2   :  { %v11771_v9 = vpop.eup %11770 }
0x2fd3   :  { %v6783_v12 = vpop.permute.xlu1 %6782  ;;  %v7769_v61 = vsel %vm3680_vm2, %v11771_v9, 0.0  ;;  %v11773_v41 = vpop.eup %11772 }
0x2fd4   :  { %6787 = vst.msk [vmem:[#allocation4 + $0x8] sm:$0xff] %vm4322_vm5, %v6783_v12  ;;  %7770 = vadd.xlane.f32.xlu0 %v7769_v61  ;;  %v7772_v50 = vsel %vm3680_vm2, %v11773_v41, 0.0 }
0x2fd7   :  { %v7005_v62 = vpop.permute.xlu1 %7004 }
0x2fd8   :  { %7009 = vst.msk [vmem:[#allocation4 + $0x8] sm:$0xff] %vm4547_vm6, %v7005_v62  ;;  %7773 = vadd.xlane.f32.xlu0 %v7772_v50  ;;  %v8069_v50 = vld [vmem:[#allocation17 + $0x88] sm:$0xff] }
0x2fdb   :  { %v7429_v52 = vpop.permute.xlu1 %7428 }
0x2fdc   :  { %7433 = vst.msk [vmem:[#allocation4 + $0x18] sm:$0xff] %vm4097_vm4, %v7429_v52  ;;  %v8071_v52 = vld [vmem:[#allocation17 + $0x98] sm:$0xff] }
0x2fdf   :  { %v7651_v37 = vpop.permute.xlu1 %7650  ;;  %v7879_v32 = vld [vmem:[#allocation4 + $0x8] sm:$0xff] }
0x2fe0   :  { %7655 = vst.msk [vmem:[#allocation4 + $0x18] sm:$0xff] %vm4322_vm5, %v7651_v37  ;;  %v11288_v37 = vpack.c.bf16 %v8071_v52, %v8069_v50  ;;  %v9073_v50 = vld [vmem:[%s14539_s15 + $0x198] sm:$0xff] }
0x2fe2   :  { %11289 = vmatprep.subr.bf16.mxu0 %v11288_v37  ;;  %v9056_v37 = vld [vmem:[%s14539_s15 + $0x110] sm:$0xff] }
0x2fee   :  { %6558 = vrot.lane.b32.xlu0 %v14101_v48, %s12120_s26 }
0x2ff2   :  { %7002 = vrot.lane.b32.xlu0 %v14133_v16, %s12132_s22  ;;  %v9037_v16 = vld [vmem:[%s14533_s9 + $0x50] sm:$0xff] }
0x2ff6   :  { %7426 = vrot.lane.b32.xlu0 %v14181_v63, %s12120_s26  ;;  %v9038_v63 = vld [vmem:[%s14533_s9 + $0x58] sm:$0xff] }
0x2ff7   :  { %v11276_v20 = vpack.c.bf16 %v9038_v63, %v9037_v16  ;;  %v8079_v16 = vld [vmem:[#allocation17 + $0xd8] sm:$0xff] }
0x2ffa   :  { %7648 = vrot.lane.b32.xlu0 %v7637_v59, %s12133_s13  ;;  %v9043_v59 = vld [vmem:[#allocation13 + $0x1] ss:$0 sm:$0xff] }
0x3061   :  { %v7771_v28 = vpop.xlane.xlu0 %7770 }
0x3062   :  { %11774 = vrcp.f32 %v7771_v28  ;;  %v8075_v28 = vld [vmem:[#allocation17 + $0xb8] sm:$0xff] }
0x3065   :  { %v7774_v48 = vpop.xlane.xlu0 %7773 }
0x3066   :  { %11776 = vrcp.f32 %v7774_v48 }
0x3069   :  { %v6559_v23 = vpop.permute.xlu0 %6558 }
0x306a   :  { %6564 = vst.msk [vmem:[#allocation4] sm:$0xff] %vm4097_vm4, %v6559_v23  ;;  %v8072_v23 = vld [vmem:[#allocation17 + $0xa0] sm:$0xff] }
0x306b   :  { %6786 = vst.msk [vmem:[#allocation4] sm:$0xff] %vm4322_vm5, %v6781_v35 }
0x306c   :  { %v11775_v49 = vpop.eup %11774 }
0x306d   :  { %v7003_v6 = vpop.permute.xlu0 %7002  ;;  %v7777_v27 = vmul.f32 %v11775_v49, %v11771_v9  ;;  %v8074_v49 = vld [vmem:[#allocation17 + $0xb0] sm:$0xff] }
0x306e   :  { %7008 = vst.msk [vmem:[#allocation4] sm:$0xff] %vm4547_vm6, %v7003_v6  ;;  %v11294_v6 = vpack.c.bf16 %v8074_v49, %v8072_v23  ;;  %v9059_v23 = vld [vmem:[%s14539_s15 + $0x128] sm:$0xff] }
0x306f   :  { %10481 = vmatprep.mubr.msk.f32.mxu1 %vm3680_vm2, %v7777_v27  ;;  %v8077_v27 = vld [vmem:[#allocation17 + $0xc8] sm:$0xff] }
0x3070   :  { %v11777_v47 = vpop.eup %11776  ;;  %v11296_v63 = vpack.c.bf16 %v8079_v16, %v8077_v27  ;;  %v9077_v27 = vld [vmem:[%s14539_s15 + $0x1b8] sm:$0xff] }
0x3071   :  { %v7778_v45 = vmul.f32 %v11777_v47, %v11773_v41  ;;  %v7427_v31 = vpop.permute.xlu0 %7426  ;;  %v8076_v47 = vld [vmem:[#allocation17 + $0xc0] sm:$0xff] }
0x3072   :  { %7432 = vst.msk [vmem:[#allocation4 + $0x10] sm:$0xff] %vm4097_vm4, %v7427_v31 }
0x3073   :  { %10482 = vmatmul.mubr.msk.f32.vlgmr.msra.gmra.mrb[56].mxu1 %vm3680_vm2, %v7778_v45  ;;  %v8078_v45 = vld [vmem:[#allocation17 + $0xd0] sm:$0xff] }
0x3074   :  { %11275 = vmatpush3.bf16.msra.mxu1 %v11272_v33  ;;  %v8073_v33 = vld [vmem:[#allocation17 + $0xa8] sm:$0xff]  ;;  %v11298_v31 = vpack.c.bf16 %v8078_v45, %v8076_v47  ;;  %v9061_v47 = vld [vmem:[%s14539_s15 + $0x138] sm:$0xff] }
0x3075   :  { %v7649_v38 = vpop.permute.xlu0 %7648  ;;  %11277 = vmatprep.subr.bf16.mxu1 %v11276_v20  ;;  %v7878_v39 = vld [vmem:[#allocation4] sm:$0xff]  ;;  %v11292_v48 = vpack.c.bf16 %v8075_v28, %v8073_v33  ;;  %v9075_v33 = vld [vmem:[%s14539_s15 + $0x1a8] sm:$0xff] }
0x3076   :  { %7654 = vst.msk [vmem:[#allocation4 + $0x10] sm:$0xff] %vm4322_vm5, %v7649_v38  ;;  %10500 = vmatprep.mubr.msk.f32.mxu1 %vm336_vm1, %v7878_v39  ;;  %v8082_v39 = vld [vmem:[#allocation17 + $0xf0] sm:$0xff] }
0x3078   :  { %11279 = vmatpush3.bf16.msra.mxu1 %v11276_v20  ;;  %v8081_v20 = vld [vmem:[#allocation17 + $0xe8] sm:$0xff] }
0x3079   :  { %11281 = vmatprep.subr.bf16.mxu1 %v11280_v44  ;;  %v11300_v38 = vpack.c.bf16 %v8083_v21, %v8081_v20  ;;  %v9079_v20 = vld [vmem:[%s14539_s15 + $0x1c8] sm:$0xff] }
0x307c   :  { %11283 = vmatpush3.bf16.msra.mxu1 %v11280_v44  ;;  %v11302_v44 = vpack.c.bf16 %v8082_v39, %v8080_v34  ;;  %v9062_v34 = vld [vmem:[%s14539_s15 + $0x140] sm:$0xff]  ;;  %v9080_v39 = vld [vmem:[%s14539_s15 + $0x1d0] sm:$0xff] }
0x307d   :  { %11285 = vmatprep.subr.bf16.mxu1 %v11284_v30 }
0x3080   :  { %11287 = vmatpush3.bf16.msra.mxu1 %v11284_v30 }
0x3083   :  { %10501 = vmatmul.mubr.msk.f32.vlgmr.msra.gmra.mrb[58].mxu1 %vm336_vm1, %v7879_v32 }
0x3146   :  { %v10483_v5 = vpop.f32.mrb[56].mxu1 }
0x3147   :  { %7872 = vrot.lane.b32.xlu1 %v10483_v5, %s12132_s22  ;;  %v7859_v55 = vpop.f32.mrb[57].mxu1 }
0x3148   :  { %7870 = vrot.lane.b32.xlu0 %v7859_v55, %s12132_s22 }
0x3156   :  { %v10502_v57 = vpop.f32.mrb[58].mxu1 }
0x3157   :  { %v7974_v51 = vpop.f32.mrb[59].mxu1  ;;  %v7980_v40 = vadd.f32 %v10502_v57, %v9043_v59 }
0x3158   :  { %v7975_v14 = vadd.f32 %v9043_v59, %v7974_v51 }
0x3159   :  { %v14281_v2 = vadd.f32 %v7980_v40, %v13943_v58 }
0x315a   :  { %v14278_v17 = vadd.f32 %v7975_v14, %v13937_v53 }
0x315b   :  { %v8002_v25 = vsel %vm336_vm1, %v14281_v2, 0.0 }
0x315c   :  { %v7999_v43 = vsel %vm336_vm1, %v14278_v17, 0.0 }
0x3167   :  { %8000 = vadd.xlane.f32.xlu0 %v7999_v43 }
0x316b   :  { %8003 = vadd.xlane.f32.xlu1 %v8002_v25 }
0x31b9   :  { %v7873_v42 = vpop.permute.xlu1 %7872 }
0x31ba   :  { %7877 = vst.msk [vmem:[#allocation4 + $0x18] sm:$0xff] %vm4547_vm6, %v7873_v42  ;;  %v7871_v26 = vpop.permute.xlu0 %7870 }
0x31bb   :  { %7876 = vst.msk [vmem:[#allocation4 + $0x10] sm:$0xff] %vm4547_vm6, %v7871_v26 }
0x31c1   :  { %v7881_v53 = vld [vmem:[#allocation4 + $0x18] sm:$0xff] }
0x31c2   :  { %v7880_v0 = vld [vmem:[#allocation4 + $0x10] sm:$0xff] }
0x31c3   :  { %10503 = vmatprep.mubr.msk.f32.mxu1 %vm336_vm1, %v7880_v0 }
0x31c4   :  { %10504 = vmatmul.mubr.msk.f32.gmra.mrb[60].mxu1 %vm336_vm1, %v7881_v53 }
0x31f4   :  { %v8001_v46 = vpop.xlane.xlu0 %8000 }
0x31f5   :  { %v8011_v8 = vmul.f32 0.015625, %v8001_v46 }
0x31f7   :  { %v14301_v9 = vsub.f32 %v14278_v17, %v8011_v8 }
0x31f8   :  { %v8004_v58 = vpop.xlane.xlu1 %8003 }
0x31f9   :  { %v8012_v36 = vmul.f32 0.015625, %v8004_v58  ;;  %v8019_v62 = vmul.f32 %v14301_v9, %v14301_v9 }
0x31fb   :  { %v14292_v54 = vsub.f32 %v14281_v2, %v8012_v36 }
0x31fd   :  { %v8020_v56 = vmul.f32 %v14292_v54, %v14292_v54 }
0x31ff   :  { %v8026_v1 = vsel %vm336_vm1, %v8020_v56, 0.0 }
0x3200   :  { %8027 = vadd.xlane.f32.xlu1 %v8026_v1  ;;  %v14327_v1 = vld [vmem:[#allocation14 + $0x1] ss:$0 sm:$0xff] }
0x328d   :  { %v8028_v3 = vpop.xlane.xlu1 %8027 }
0x328e   :  { %v8036_v32 = vmul.f32 0.015625, %v8028_v3  ;;  %v9081_v3 = vld [vmem:[%s14539_s15 + $0x1d8] sm:$0xff] }
0x3297   :  { %v10505_v24 = vpop.f32.mrb[60].mxu1 }
0x3298   :  { %v7984_v60 = vpop.f32.mrb[61].mxu1  ;;  %v7990_v15 = vadd.f32 %v10505_v24, %v9043_v59  ;;  %v14330_v24 = vld [vmem:[#allocation16 + $0x1] ss:$0 sm:$0xff] }
0x3299   :  { %v7985_v29 = vadd.f32 %v9043_v59, %v7984_v60  ;;  %v8040_v59 = vadd.f32 1e-06, %v8036_v32  ;;  %v11324_v32 = vpack.c.bf16 %v9081_v3, %v9080_v39 }
0x329a   :  { %v14304_v12 = vadd.f32 %v7990_v15, %v13976_v11  ;;  %v8070_v11 = vld [vmem:[#allocation17 + $0x90] sm:$0xff] }
0x329b   :  { %v14298_v35 = vadd.f32 %v7985_v29, %v13968_v7  ;;  %v8023_v7 = vsel %vm336_vm1, %v8019_v62, 0.0  ;;  %v11290_v4 = vpack.c.bf16 %v8070_v11, %v8068_v22  ;;  %11778 = vrsqrt.f32 %v8040_v59  ;;  %v9071_v29 = vld [vmem:[%s14539_s15 + $0x188] sm:$0xff]  ;;  %v9057_v22 = vld [vmem:[%s14539_s15 + $0x118] sm:$0xff] }
0x329c   :  { %v8008_v41 = vsel %vm336_vm1, %v14304_v12, 0.0  ;;  %v11310_v11 = vpack.c.bf16 %v9057_v22, %v9056_v37  ;;  %v8085_v37 = vld [vmem:[#allocation19 + $0x1] ss:$2 sm:$0x3] }
0x329d   :  { %v8005_v61 = vsel %vm336_vm1, %v14298_v35, 0.0  ;;  %11291 = vmatpush1.bf16.msra.mxu0 %v11290_v4  ;;  %v9074_v4 = vld [vmem:[%s14539_s15 + $0x1a0] sm:$0xff]  ;;  %v14446_v22 = vrot.slane %v8085_v37, %v13349_v13 }
0x329e   :  { %8006 = vadd.xlane.f32.xlu0 %v8005_v61  ;;  %11293 = vmatprep.subr.bf16.mxu0 %v11292_v48  ;;  %v11312_v28 = vpack.c.bf16 %v9075_v33, %v9074_v4  ;;  %v9058_v48 = vld [vmem:[%s14539_s15 + $0x120] sm:$0xff] }
0x329f   :  { %v11314_v49 = vpack.c.bf16 %v9059_v23, %v9058_v48 }
0x32a1   :  { %11295 = vmatpush1.bf16.msra.mxu0 %v11294_v6  ;;  %v9076_v6 = vld [vmem:[%s14539_s15 + $0x1b0] sm:$0xff] }
0x32a2   :  { %8009 = vadd.xlane.f32.xlu0 %v8008_v41  ;;  %11297 = vmatprep.subr.bf16.mxu0 %v11296_v63  ;;  %v9055_v41 = vld [vmem:[%s14539_s15 + $0x108] sm:$0xff]  ;;  %v11316_v16 = vpack.c.bf16 %v9077_v27, %v9076_v6  ;;  %v9060_v63 = vld [vmem:[%s14539_s15 + $0x130] sm:$0xff] }
0x32a3   :  { %v11318_v45 = vpack.c.bf16 %v9061_v47, %v9060_v63 }
0x32a5   :  { %11299 = vmatpush1.bf16.msra.mxu0 %v11298_v31  ;;  %v11779_v53 = vpop.eup %11778  ;;  %v9078_v31 = vld [vmem:[%s14539_s15 + $0x1c0] sm:$0xff] }
0x32a6   :  { %8024 = vadd.xlane.f32.xlu0 %v8023_v7  ;;  %11301 = vmatprep.subr.bf16.mxu0 %v11300_v38  ;;  %v8048_v56 = vmul.f32 %v11779_v53, %v14292_v54  ;;  %v9070_v54 = vld [vmem:[%s14539_s15 + $0x180] sm:$0xff]  ;;  %v9072_v7 = vld [vmem:[%s14539_s15 + $0x190] sm:$0xff]  ;;  %v11320_v21 = vpack.c.bf16 %v9079_v20, %v9078_v31  ;;  %v9063_v38 = vld [vmem:[%s14539_s15 + $0x148] sm:$0xff] }
0x32a7   :  { %v11304_v61 = vpack.c.bf16 %v9071_v29, %v9070_v54  ;;  %v11308_v52 = vpack.c.bf16 %v9073_v50, %v9072_v7  ;;  %v9068_v53 = vld [vmem:[%s14539_s15 + $0x170] sm:$0xff] }
0x32a8   :  { %v8056_v8 = vmul.f32 %v14327_v1, %v8048_v56 }
0x32a9   :  { %11303 = vmatpush1.bf16.msra.mxu0 %v11302_v44  ;;  %11305 = vmatprep.subr.bf16.mxu1 %v11304_v61  ;;  %v11322_v44 = vpack.c.bf16 %v9063_v38, %v9062_v34 }
0x32aa   :  { %v8064_v15 = vadd.f32 %v14330_v24, %v8056_v8 }
0x332b   :  { %v8007_v18 = vpop.xlane.xlu0 %8006 }
0x332c   :  { %v8013_v30 = vmul.f32 0.015625, %v8007_v18  ;;  %v9064_v18 = vld [vmem:[%s14539_s15 + $0x150] sm:$0xff] }
0x332e   :  { %v14314_v5 = vsub.f32 %v14298_v35, %v8013_v30  ;;  %v9065_v30 = vld [vmem:[%s14539_s15 + $0x158] sm:$0xff] }
0x332f   :  { %v8010_v55 = vpop.xlane.xlu0 %8009 }
0x3330   :  { %v8014_v57 = vmul.f32 0.015625, %v8010_v55  ;;  %v8021_v51 = vmul.f32 %v14314_v5, %v14314_v5  ;;  %v9082_v55 = vld [vmem:[%s14539_s15 + $0x1e0] sm:$0xff] }
0x3332   :  { %v14319_v14 = vsub.f32 %v14304_v12, %v8014_v57  ;;  %v8029_v40 = vsel %vm336_vm1, %v8021_v51, 0.0  ;;  %v9083_v57 = vld [vmem:[%s14539_s15 + $0x1e8] sm:$0xff]  ;;  %v11326_v51 = vpack.c.bf16 %v9065_v30, %v9064_v18 }
0x3333   :  { %8030 = vadd.xlane.f32.xlu0 %v8029_v40  ;;  %v8025_v43 = vpop.xlane.xlu0 %8024  ;;  %v11328_v59 = vpack.c.bf16 %v9083_v57, %v9082_v55  ;;  %v9066_v40 = vld [vmem:[%s14539_s15 + $0x160] sm:$0xff] }
0x3334   :  { %v8035_v25 = vmul.f32 0.015625, %v8025_v43  ;;  %v8022_v42 = vmul.f32 %v14319_v14, %v14319_v14  ;;  %v9067_v43 = vld [vmem:[%s14539_s15 + $0x168] sm:$0xff] }
0x3336   :  { %v8039_v26 = vadd.f32 1e-06, %v8035_v25  ;;  %v8032_v0 = vsel %vm336_vm1, %v8022_v42, 0.0  ;;  %v9084_v25 = vld [vmem:[%s14539_s15 + $0x1f0] sm:$0xff]  ;;  %v9085_v42 = vld [vmem:[%s14539_s15 + $0x1f8] sm:$0xff] }
0x3337   :  { %8033 = vadd.xlane.f32.xlu1 %v8032_v0  ;;  %v11332_v0 = vpack.c.bf16 %v9085_v42, %v9084_v25 }
0x3338   :  { %11780 = vrsqrt.f32 %v8039_v26  ;;  %v11330_v26 = vpack.c.bf16 %v9067_v43, %v9066_v40 }
0x3342   :  { %v11781_v58 = vpop.eup %11780 }
0x3343   :  { %v8047_v36 = vmul.f32 %v11781_v58, %v14301_v9  ;;  %v9054_v9 = vld [vmem:[%s14539_s15 + $0x100] sm:$0xff]  ;;  %v9069_v58 = vld [vmem:[%s14539_s15 + $0x178] sm:$0xff] }
0x3344   :  { %v11306_v62 = vpack.c.bf16 %v9055_v41, %v9054_v9 }
0x3345   :  { %v8055_v46 = vmul.f32 %v14327_v1, %v8047_v36  ;;  %v11334_v36 = vpack.c.bf16 %v9069_v58, %v9068_v53 }
0x3346   :  { %11307 = vmatpush3.bf16.msra.mxu1 %v11306_v62 }
0x3347   :  { %v8063_v60 = vadd.f32 %v14330_v24, %v8055_v46  ;;  %11309 = vmatprep.subr.bf16.mxu1 %v11308_v52 }
0x3349   :  { %9050 = vmatmul.mubr.msk.f32.vlgmr.msra.gmra.mrb[58].mxu0 %vm336_vm1, %v8063_v60 }
0x334a   :  { %8179 = vmatprep.mubr.f32.mxu0 %v14208_v10  ;;  %11311 = vmatpush3.bf16.msra.mxu1 %v11310_v11 }
0x334b   :  { %11313 = vmatprep.subr.bf16.mxu1 %v11312_v28 }
0x334d   :  { %9051 = vmatmul.mubr.msk.f32.gmra.mrb[60].mxu0 %vm336_vm1, %v8064_v15 }
0x334e   :  { %8185 = vmatprep.mubr.f32.mxu0 %v14208_v10  ;;  %11315 = vmatpush3.bf16.msra.mxu1 %v11314_v49 }
0x334f   :  { %11317 = vmatprep.subr.bf16.mxu1 %v11316_v16 }
0x3352   :  { %11319 = vmatpush3.bf16.msra.mxu1 %v11318_v45 }
0x3353   :  { %11321 = vmatprep.subr.bf16.mxu1 %v11320_v21 }
0x3356   :  { %11323 = vmatpush3.bf16.msra.mxu1 %v11322_v44 }
0x3357   :  { %11325 = vmatprep.subr.bf16.mxu1 %v11324_v32 }
0x335a   :  { %11327 = vmatpush3.bf16.msra.mxu1 %v11326_v51 }
0x335b   :  { %11329 = vmatprep.subr.bf16.mxu1 %v11328_v59 }
0x335e   :  { %11331 = vmatpush3.bf16.msra.mxu1 %v11330_v26 }
0x335f   :  { %11333 = vmatprep.subr.bf16.mxu1 %v11332_v0 }
0x3362   :  { %11335 = vmatpush3.bf16.msra.mxu1 %v11334_v36 }
0x33c0   :  { %v8031_v56 = vpop.xlane.xlu0 %8030 }
0x33c1   :  { %v8037_v46 = vmul.f32 0.015625, %v8031_v56 }
0x33c3   :  { %v8041_v60 = vadd.f32 1e-06, %v8037_v46 }
0x33c4   :  { %v8034_v8 = vpop.xlane.xlu1 %8033 }
0x33c5   :  { %11782 = vrsqrt.f32 %v8041_v60  ;;  %v8038_v15 = vmul.f32 0.015625, %v8034_v8 }
0x33c7   :  { %v8042_v54 = vadd.f32 1e-06, %v8038_v15 }
0x33c9   :  { %11784 = vrsqrt.f32 %v8042_v54 }
0x33cf   :  { %v11783_v29 = vpop.eup %11782 }
0x33d0   :  { %v8049_v9 = vmul.f32 %v11783_v29, %v14314_v5  ;;  %v8090_v5 = vrot.slane %v8085_v37, %v13353_v19 }
0x33d2   :  { %v8057_v61 = vmul.f32 %v14327_v1, %v8049_v9 }
0x33d3   :  { %v11785_v41 = vpop.eup %11784 }
0x33d4   :  { %v8065_v62 = vadd.f32 %v14330_v24, %v8057_v61  ;;  %v8050_v7 = vmul.f32 %v11785_v41, %v14319_v14 }
0x33d6   :  { %9052 = vmatmul.mubr.msk.f32.gmra.mrb[62].mxu0 %vm336_vm1, %v8065_v62  ;;  %v8058_v50 = vmul.f32 %v14327_v1, %v8050_v7 }
0x33d7   :  { %8191 = vmatprep.mubr.f32.mxu0 %v14208_v10 }
0x33d8   :  { %v8066_v52 = vadd.f32 %v14330_v24, %v8058_v50 }
0x33da   :  { %9053 = vmatmul.mubr.msk.f32.gmra.mrb[64].mxu0 %vm336_vm1, %v8066_v52 }
0x341c   :  { %v8175_v11 = vpop.f32.mrb[58].mxu0 }
0x341d   :  { %v8176_v4 = vadd.f32 %v8175_v11, %v8090_v5  ;;  %v8177_v33 = vpop.f32.mrb[59].mxu0 }
0x341e   :  { %v8178_v14 = vadd.f32 %v8177_v33, %v14446_v22 }
0x341f   :  { %v8206_v28 = vmul.f32 0.044715, %v8176_v4  ;;  %v8198_v59 = vmul.f32 0.5, %v8176_v4 }
0x3420   :  { %v8207_v48 = vmul.f32 0.044715, %v8178_v14  ;;  %v8181_v1 = vpop.f32.mrb[60].mxu0  ;;  %v8199_v57 = vmul.f32 0.5, %v8178_v14 }
0x3421   :  { %v8214_v23 = vmul.f32 %v8206_v28, %v8176_v4  ;;  %v8182_v10 = vadd.f32 %v8181_v1, %v8090_v5  ;;  %v8183_v49 = vpop.f32.mrb[61].mxu0 }
0x3422   :  { %v8215_v24 = vmul.f32 %v8207_v48, %v8178_v14  ;;  %v8184_v6 = vadd.f32 %v8183_v49, %v14446_v22 }
0x3423   :  { %v8222_v27 = vmul.f32 %v8214_v23, %v8176_v4  ;;  %v8208_v16 = vmul.f32 0.044715, %v8182_v10  ;;  %v8200_v58 = vmul.f32 0.5, %v8182_v10 }
0x3424   :  { %v8209_v19 = vmul.f32 0.044715, %v8184_v6  ;;  %v8223_v63 = vmul.f32 %v8215_v24, %v8178_v14  ;;  %v8201_v0 = vmul.f32 0.5, %v8184_v6 }
0x3425   :  { %v8230_v13 = vadd.f32 %v8222_v27, %v8176_v4  ;;  %v8216_v47 = vmul.f32 %v8208_v16, %v8182_v10 }
0x3426   :  { %v8217_v45 = vmul.f32 %v8209_v19, %v8184_v6  ;;  %v8231_v31 = vadd.f32 %v8223_v63, %v8178_v14 }
0x3427   :  { %v8238_v20 = vmul.f32 0.7978846, %v8230_v13  ;;  %v8224_v21 = vmul.f32 %v8216_v47, %v8182_v10 }
0x3428   :  { %v8239_v34 = vmul.f32 0.7978846, %v8231_v31  ;;  %v8225_v38 = vmul.f32 %v8217_v45, %v8184_v6 }
0x3429   :  { %11786 = vtanh.f32 %v8238_v20  ;;  %v8232_v39 = vadd.f32 %v8224_v21, %v8182_v10 }
0x342a   :  { %11788 = vtanh.f32 %v8239_v34  ;;  %v8233_v44 = vadd.f32 %v8225_v38, %v8184_v6 }
0x342b   :  { %v8240_v3 = vmul.f32 0.7978846, %v8232_v39 }
0x342c   :  { %v8241_v18 = vmul.f32 0.7978846, %v8233_v44 }
0x342d   :  { %11790 = vtanh.f32 %v8240_v3 }
0x342e   :  { %11792 = vtanh.f32 %v8241_v18 }
0x3433   :  { %v11787_v30 = vpop.eup %11786 }
0x3434   :  { %v11789_v32 = vpop.eup %11788  ;;  %v8254_v55 = vadd.f32 1.0, %v11787_v30 }
0x3435   :  { %v8255_v51 = vadd.f32 1.0, %v11789_v32  ;;  %v9086_v32 = vld [vmem:[#allocation20 + $0x1] ss:$0 sm:$0xff] }
0x3436   :  { %v8262_v42 = vmul.f32 %v8254_v55, %v8198_v59 }
0x3437   :  { %v11791_v40 = vpop.eup %11790  ;;  %v8263_v43 = vmul.f32 %v8255_v51, %v8199_v57 }
0x3438   :  { %v11793_v25 = vpop.eup %11792  ;;  %v8256_v26 = vadd.f32 1.0, %v11791_v40 }
0x3439   :  { %8372 = vmatprep.mubr.f32.mxu1 %v8263_v43  ;;  %v8257_v53 = vadd.f32 1.0, %v11793_v25 }
0x343a   :  { %8373 = vmatmul.mubr.f32.vlgmr.msra.gmra.mrb[62].mxu1 %v8262_v42  ;;  %v8264_v56 = vmul.f32 %v8256_v26, %v8200_v58 }
0x343b   :  { %v8265_v36 = vmul.f32 %v8257_v53, %v8201_v0 }
0x343d   :  { %8377 = vmatprep.mubr.f32.mxu1 %v8265_v36 }
0x343e   :  { %8378 = vmatmul.mubr.f32.gmra.mrb[64].mxu1 %v8264_v56 }
0x34a9   :  { %v8187_v46 = vpop.f32.mrb[62].mxu0 }
0x34aa   :  { %v8188_v60 = vadd.f32 %v8187_v46, %v8090_v5  ;;  %v8189_v8 = vpop.f32.mrb[63].mxu0 }
0x34ab   :  { %v8190_v15 = vadd.f32 %v8189_v8, %v14446_v22 }
0x34ac   :  { %v8210_v54 = vmul.f32 0.044715, %v8188_v60  ;;  %v8202_v47 = vmul.f32 0.5, %v8188_v60 }
0x34ad   :  { %v8211_v29 = vmul.f32 0.044715, %v8190_v15  ;;  %v8193_v9 = vpop.f32.mrb[64].mxu0  ;;  %v8203_v63 = vmul.f32 0.5, %v8190_v15 }
0x34ae   :  { %v8218_v61 = vmul.f32 %v8210_v54, %v8188_v60  ;;  %v8194_v41 = vadd.f32 %v8193_v9, %v8090_v5  ;;  %v8195_v62 = vpop.f32.mrb[65].mxu0 }
0x34af   :  { %v8219_v7 = vmul.f32 %v8211_v29, %v8190_v15  ;;  %v8196_v50 = vadd.f32 %v8195_v62, %v14446_v22 }
0x34b0   :  { %v8212_v52 = vmul.f32 0.044715, %v8194_v41  ;;  %v8226_v37 = vmul.f32 %v8218_v61, %v8188_v60  ;;  %v8204_v44 = vmul.f32 0.5, %v8194_v41 }
0x34b1   :  { %v8213_v11 = vmul.f32 0.044715, %v8196_v50  ;;  %v8227_v4 = vmul.f32 %v8219_v7, %v8190_v15  ;;  %v8205_v38 = vmul.f32 0.5, %v8196_v50 }
0x34b2   :  { %v8220_v33 = vmul.f32 %v8212_v52, %v8194_v41  ;;  %v8234_v14 = vadd.f32 %v8226_v37, %v8188_v60 }
0x34b3   :  { %v8221_v28 = vmul.f32 %v8213_v11, %v8196_v50  ;;  %v8235_v48 = vadd.f32 %v8227_v4, %v8190_v15 }
0x34b4   :  { %v8242_v1 = vmul.f32 0.7978846, %v8234_v14  ;;  %v8228_v23 = vmul.f32 %v8220_v33, %v8194_v41  ;;  %v8471_v33 = vld [vmem:[%s14543_s19] sm:$0xff] }
0x34b5   :  { %v8243_v10 = vmul.f32 0.7978846, %v8235_v48  ;;  %v8229_v49 = vmul.f32 %v8221_v28, %v8196_v50  ;;  %v8473_v28 = vld [vmem:[%s14543_s19 + $0x10] sm:$0xff]  ;;  %v8474_v48 = vld [vmem:[%s14543_s19 + $0x18] sm:$0xff] }
0x34b6   :  { %11794 = vtanh.f32 %v8242_v1  ;;  %v8236_v24 = vadd.f32 %v8228_v23, %v8194_v41  ;;  %v11340_v1 = vpack.c.bf16 %v8474_v48, %v8473_v28  ;;  %v8475_v23 = vld [vmem:[%s14543_s19 + $0x20] sm:$0xff] }
0x34b7   :  { %11796 = vtanh.f32 %v8243_v10  ;;  %v8237_v5 = vadd.f32 %v8229_v49, %v8196_v50  ;;  %v8476_v10 = vld [vmem:[%s14543_s19 + $0x28] sm:$0xff] }
0x34b8   :  { %v8244_v6 = vmul.f32 0.7978846, %v8236_v24  ;;  %v11344_v49 = vpack.c.bf16 %v8476_v10, %v8475_v23  ;;  %v8477_v24 = vld [vmem:[%s14543_s19 + $0x30] sm:$0xff] }
0x34b9   :  { %v8245_v27 = vmul.f32 0.7978846, %v8237_v5  ;;  %v8478_v5 = vld [vmem:[%s14543_s19 + $0x38] sm:$0xff] }
0x34ba   :  { %11798 = vtanh.f32 %v8244_v6  ;;  %v11348_v6 = vpack.c.bf16 %v8478_v5, %v8477_v24 }
0x34bb   :  { %11800 = vtanh.f32 %v8245_v27 }
0x34c0   :  { %v11795_v22 = vpop.eup %11794 }
0x34c1   :  { %v11797_v16 = vpop.eup %11796  ;;  %v8258_v19 = vadd.f32 1.0, %v11795_v22 }
0x34c2   :  { %v8259_v13 = vadd.f32 1.0, %v11797_v16 }
0x34c3   :  { %v8266_v21 = vmul.f32 %v8258_v19, %v8202_v47 }
0x34c4   :  { %v11799_v45 = vpop.eup %11798  ;;  %v8267_v31 = vmul.f32 %v8259_v13, %v8203_v63 }
0x34c5   :  { %v11801_v20 = vpop.eup %11800  ;;  %v8260_v34 = vadd.f32 1.0, %v11799_v45 }
0x34c6   :  { %8382 = vmatprep.mubr.f32.mxu1 %v8267_v31  ;;  %v8261_v39 = vadd.f32 1.0, %v11801_v20 }
0x34c7   :  { %8383 = vmatmul.mubr.f32.gmra.mrb[66].mxu1 %v8266_v21  ;;  %v8268_v18 = vmul.f32 %v8260_v34, %v8204_v44 }
0x34c8   :  { %v8269_v3 = vmul.f32 %v8261_v39, %v8205_v38 }
0x34ca   :  { %8387 = vmatprep.mubr.f32.mxu1 %v8269_v3 }
0x34cb   :  { %8388 = vmatmul.mubr.f32.gmra.mrb[68].mxu1 %v8268_v18 }
0x350d   :  { %v9630_v30 = vpop.f32.mrb[62].mxu1 }
0x350e   :  { %v9631_v55 = vpop.f32.mrb[63].mxu1 }
0x350f   :  { %v9632_v57 = vadd.f32 %v9631_v55, %v9630_v30  ;;  %v9087_v30 = vld [vmem:[#allocation22] ss:$0 sm:$0xff]  ;;  %v9088_v55 = vld [vmem:[#allocation23] ss:$0 sm:$0xff] }
0x3511   :  { %v8375_v51 = vadd.f32 %v9632_v57, %v9086_v32  ;;  %v9633_v59 = vpop.f32.mrb[64].mxu1 }
0x3512   :  { %v9634_v40 = vpop.f32.mrb[65].mxu1 }
0x3513   :  { %v9635_v43 = vadd.f32 %v9634_v40, %v9633_v59  ;;  %v8393_v25 = vadd.f32 %v8375_v51, %v14278_v17 }
0x3515   :  { %v8380_v42 = vadd.f32 %v9635_v43, %v9086_v32  ;;  %v8399_v26 = vsel %vm336_vm1, %v8393_v25, 0.0 }
0x3516   :  { %8400 = vadd.xlane.f32.xlu0 %v8399_v26 }
0x3517   :  { %v8394_v0 = vadd.f32 %v8380_v42, %v14281_v2 }
0x3519   :  { %v8402_v53 = vsel %vm336_vm1, %v8394_v0, 0.0 }
0x351a   :  { %8403 = vadd.xlane.f32.xlu1 %v8402_v53 }
0x359a   :  { %v9636_v58 = vpop.f32.mrb[66].mxu1 }
0x359b   :  { %v9637_v36 = vpop.f32.mrb[67].mxu1 }
0x359c   :  { %v9638_v56 = vadd.f32 %v9637_v36, %v9636_v58 }
0x359e   :  { %v8385_v46 = vadd.f32 %v9638_v56, %v9086_v32  ;;  %v9639_v60 = vpop.f32.mrb[68].mxu1 }
0x359f   :  { %v9640_v8 = vpop.f32.mrb[69].mxu1 }
0x35a0   :  { %v9641_v15 = vadd.f32 %v9640_v8, %v9639_v60  ;;  %v8395_v54 = vadd.f32 %v8385_v46, %v14298_v35 }
0x35a2   :  { %v8390_v29 = vadd.f32 %v9641_v15, %v9086_v32  ;;  %v8405_v17 = vsel %vm336_vm1, %v8395_v54, 0.0 }
0x35a3   :  { %8406 = vadd.xlane.f32.xlu0 %v8405_v17  ;;  %v8401_v9 = vpop.xlane.xlu0 %8400 }
0x35a4   :  { %v8411_v61 = vmul.f32 0.015625, %v8401_v9  ;;  %v8396_v2 = vadd.f32 %v8390_v29, %v14304_v12  ;;  %v8472_v12 = vld [vmem:[%s14543_s19 + $0x8] sm:$0xff]  ;;  %v9089_v9 = vld [vmem:[#allocation25] ss:$0 sm:$0xff] }
0x35a5   :  { %v11336_v14 = vpack.c.bf16 %v8472_v12, %v8471_v33 }
0x35a6   :  { %v8415_v41 = vsub.f32 %v8393_v25, %v8411_v61  ;;  %v8408_v62 = vsel %vm336_vm1, %v8396_v2, 0.0 }
0x35a7   :  { %v8404_v7 = vpop.xlane.xlu1 %8403  ;;  %8409 = vadd.xlane.f32.xlu1 %v8408_v62  ;;  %11337 = vmatprep.subr.bf16.mxu0 %v11336_v14 }
0x35a8   :  { %v8412_v50 = vmul.f32 0.015625, %v8404_v7  ;;  %v8419_v52 = vmul.f32 %v8415_v41, %v8415_v41  ;;  %11339 = vmatpush3.bf16.msra.mxu0 %v11336_v14 }
0x35a9   :  { %11341 = vmatprep.subr.bf16.mxu0 %v11340_v1 }
0x35aa   :  { %v8416_v37 = vsub.f32 %v8394_v0, %v8412_v50  ;;  %v8423_v11 = vsel %vm336_vm1, %v8419_v52, 0.0 }
0x35ab   :  { %8424 = vadd.xlane.f32.xlu0 %v8423_v11 }
0x35ac   :  { %v8420_v35 = vmul.f32 %v8416_v37, %v8416_v37  ;;  %11343 = vmatpush3.bf16.msra.mxu0 %v11340_v1 }
0x35ad   :  { %11345 = vmatprep.subr.bf16.mxu0 %v11344_v49 }
0x35ae   :  { %v8426_v4 = vsel %vm336_vm1, %v8420_v35, 0.0 }
0x35af   :  { %8427 = vadd.xlane.f32.xlu1 %v8426_v4 }
0x35b0   :  { %11347 = vmatpush3.bf16.msra.mxu0 %v11344_v49 }
0x35b1   :  { %11349 = vmatprep.subr.bf16.mxu0 %v11348_v6 }
0x35b4   :  { %11351 = vmatpush3.bf16.msra.mxu0 %v11348_v6 }
0x3630   :  { %v8407_v27 = vpop.xlane.xlu0 %8406 }
0x3631   :  { %v8413_v22 = vmul.f32 0.015625, %v8407_v27 }
0x3633   :  { %v8417_v16 = vsub.f32 %v8395_v54, %v8413_v22 }
0x3634   :  { %v8410_v19 = vpop.xlane.xlu1 %8409 }
0x3635   :  { %v8414_v63 = vmul.f32 0.015625, %v8410_v19  ;;  %v8421_v13 = vmul.f32 %v8417_v16, %v8417_v16 }
0x3637   :  { %v8418_v47 = vsub.f32 %v8396_v2, %v8414_v63  ;;  %v8429_v45 = vsel %vm336_vm1, %v8421_v13, 0.0 }
0x3638   :  { %8430 = vadd.xlane.f32.xlu0 %v8429_v45  ;;  %v8425_v31 = vpop.xlane.xlu0 %8424 }
0x3639   :  { %v8435_v20 = vmul.f32 0.015625, %v8425_v31  ;;  %v8422_v21 = vmul.f32 %v8418_v47, %v8418_v47 }
0x363b   :  { %v8439_v34 = vadd.f32 1e-06, %v8435_v20  ;;  %v8432_v38 = vsel %vm336_vm1, %v8422_v21, 0.0 }
0x363c   :  { %8433 = vadd.xlane.f32.xlu1 %v8432_v38  ;;  %v8428_v39 = vpop.xlane.xlu1 %8427 }
0x363d   :  { %11802 = vrsqrt.f32 %v8439_v34  ;;  %v8436_v44 = vmul.f32 0.015625, %v8428_v39 }
0x363f   :  { %v8440_v3 = vadd.f32 1e-06, %v8436_v44 }
0x3641   :  { %11804 = vrsqrt.f32 %v8440_v3 }
0x3647   :  { %v11803_v18 = vpop.eup %11802 }
0x3648   :  { %v8447_v32 = vmul.f32 %v11803_v18, %v8415_v41 }
0x364a   :  { %v8457_v57 = vmul.f32 %v9087_v30, %v8447_v32 }
0x364b   :  { %v11805_v51 = vpop.eup %11804 }
0x364c   :  { %v8448_v59 = vmul.f32 %v11805_v51, %v8416_v37  ;;  %v8467_v40 = vadd.f32 %v9088_v55, %v8457_v57 }
0x364e   :  { %v8458_v43 = vmul.f32 %v9087_v30, %v8448_v59  ;;  %10522 = vmatprep.mubr.msk.f32.mxu0 %vm336_vm1, %v8467_v40  ;;  %8587 = vst.msk [vmem:[%s14545_s21] sm:$0xff] %vm336_vm1, %v8467_v40 }
0x3650   :  { %v8468_v25 = vadd.f32 %v9088_v55, %v8458_v43 }
0x3652   :  { %8588 = vst.msk [vmem:[%s14545_s21 + $0x8] sm:$0xff] %vm336_vm1, %v8468_v25  ;;  %10523 = vmatmul.mubr.msk.f32.vlgmr.msra.gmra.mrb[66].mxu0 %vm336_vm1, %v8468_v25 }
0x36c5   :  { %v8431_v42 = vpop.xlane.xlu0 %8430 }
0x36c6   :  { %v8437_v26 = vmul.f32 0.015625, %v8431_v42 }
0x36c8   :  { %v8441_v0 = vadd.f32 1e-06, %v8437_v26 }
0x36c9   :  { %v8434_v53 = vpop.xlane.xlu1 %8433 }
0x36ca   :  { %11806 = vrsqrt.f32 %v8441_v0  ;;  %v8438_v58 = vmul.f32 0.015625, %v8434_v53 }
0x36cc   :  { %v8442_v36 = vadd.f32 1e-06, %v8438_v58 }
0x36ce   :  { %11808 = vrsqrt.f32 %v8442_v36 }
0x36d4   :  { %v11807_v56 = vpop.eup %11806 }
0x36d5   :  { %v8449_v46 = vmul.f32 %v11807_v56, %v8417_v16 }
0x36d7   :  { %v8459_v60 = vmul.f32 %v9087_v30, %v8449_v46 }
0x36d8   :  { %v11809_v8 = vpop.eup %11808 }
0x36d9   :  { %v8469_v15 = vadd.f32 %v9088_v55, %v8459_v60  ;;  %v8450_v54 = vmul.f32 %v11809_v8, %v8418_v47 }
0x36db   :  { %10525 = vmatprep.mubr.msk.f32.mxu0 %vm336_vm1, %v8469_v15  ;;  %8589 = vst.msk [vmem:[%s14545_s21 + $0x10] sm:$0xff] %vm336_vm1, %v8469_v15  ;;  %v8460_v29 = vmul.f32 %v9087_v30, %v8450_v54 }
0x36dd   :  { %v8470_v17 = vadd.f32 %v9088_v55, %v8460_v29 }
0x36df   :  { %10526 = vmatmul.mubr.msk.f32.gmra.mrb[68].mxu0 %vm336_vm1, %v8470_v17  ;;  %8590 = vst.msk [vmem:[%s14545_s21 + $0x18] sm:$0xff] %vm336_vm1, %v8470_v17 }
0x3725   :  { %v10524_v61 = vpop.f32.mrb[66].mxu0 }
0x3726   :  { %v8570_v2 = vadd.f32 %v10524_v61, %v9089_v9  ;;  %v8564_v41 = vpop.f32.mrb[67].mxu0 }
0x3727   :  { %v8565_v62 = vadd.f32 %v9089_v9, %v8564_v41 }
0x3728   :  { %8597 = vrot.lane.b32.xlu1 %v8570_v2, %s12130_s30 }
0x3729   :  { %8595 = vrot.lane.b32.xlu0 %v8565_v62, %s12130_s30 }
0x379a   :  { %v8598_v7 = vpop.permute.xlu1 %8597 }
0x379b   :  { %8609 = vst.msk [vmem:[%s14545_s21 + $0x8] sm:$0xff] %vm8607_vm7, %v8598_v7  ;;  %v8596_v50 = vpop.permute.xlu0 %8595 }
0x379c   :  { %8608 = vst.msk [vmem:[%s14545_s21] sm:$0xff] %vm8607_vm7, %v8596_v50 }
0x37b2   :  { %v10527_v52 = vpop.f32.mrb[68].mxu0 }
0x37b3   :  { %v8574_v37 = vpop.f32.mrb[69].mxu0  ;;  %v8580_v35 = vadd.f32 %v10527_v52, %v9089_v9 }
0x37b4   :  { %v8575_v11 = vadd.f32 %v9089_v9, %v8574_v37 }
0x37b6   :  { %8599 = vrot.lane.b32.xlu1 %v8575_v11, %s12130_s30 }
0x37ba   :  { %8601 = vrot.lane.b32.xlu1 %v8580_v35, %s12130_s30 }
0x3828   :  { %v8600_v4 = vpop.permute.xlu1 %8599 }
0x3829   :  { %8610 = vst.msk [vmem:[%s14545_s21 + $0x10] sm:$0xff] %vm8607_vm7, %v8600_v4 }
0x382c   :  { %v8602_v33 = vpop.permute.xlu1 %8601 }
0x382d   :  { %8611 = vst.msk [vmem:[%s14545_s21 + $0x18] sm:$0xff] %vm8607_vm7, %v8602_v33 }
0x382e   :  { %8616 = vsyncpa [#allocation7], 1 }
0x382f   :  { %8617 = vsyncpa [#allocation9], 1 }
0x3830   :  { %8618 = vsyncpa [#allocation12], 1 }
0x3831   :  { %8619 = vsyncpa [#allocation15], 1 }
0x3832   :  { %8620 = vsyncpa [#allocation18], 1 }
0x3833   :  { %8621 = vsyncpa [#allocation21], 1 }
0x3834   :  { %8622 = vsyncpa [#allocation24], 1 }

</bundles_post_ra>
